<compile_context>
chip_gen: v7x
topology: tpu7x:2x2x1
jax: 0.10.0
libtpu: 0.0.40
codegen_flags: <defaults>
</compile_context>

<pallas_src>
import functools

import jax
import jax.numpy as jnp
import numpy as np
from jax.experimental import pallas as pl
from jax.experimental.pallas import tpu as pltpu

NEG_SLOPE = 0.01                 # torch.nn.LeakyReLU default negative_slope
NUM_CLASSES = 2
VMEM_LIMIT = 40 * 1024 * 1024    # > 2 x 10.5 MB weight buffers, < v7x physical

SMALL_DIMS = [(384, 100), (100, 50), (50, 20)]
STREAM_DIMS = [(35000, 10000), (10000, 2000)]    # tiled, weights streamed
TAIL_DIMS = [(2000, 1000), (1000, 500), (500, 200), (200, 100), (100, 2)]
BLK_TK, BLK_TN = 5000, 1000      # divide K and N of both streamed layers exactly


# ----------------------------------------------------------------------------
# Stage 1: per-position MLP 384 -> 100 -> 50 -> 20 (no activations, as in the
# PyTorch forward).  Whole problem (2000 rows) fits VMEM -> single invocation.
# ----------------------------------------------------------------------------
def bert_mlp_kernel(x_ref, w1_ref, b1_ref, w2_ref, b2_ref, w3_ref, b3_ref, o_ref):
    bf16, f32 = jnp.bfloat16, jnp.float32
    h = x_ref[...]
    h = jnp.dot(h.astype(bf16), w1_ref[...], preferred_element_type=f32) + b1_ref[...]
    h = jnp.dot(h.astype(bf16), w2_ref[...], preferred_element_type=f32) + b2_ref[...]
    h = jnp.dot(h.astype(bf16), w3_ref[...], preferred_element_type=f32) + b3_ref[...]
    o_ref[...] = h.astype(o_ref.dtype)


def bert_mlp(x2d, w1, b1, w2, b2, w3, b3):
    n = x2d.shape[0]
    return pl.pallas_call(
        bert_mlp_kernel,
        out_shape=jax.ShapeDtypeStruct((n, w3.shape[1]), jnp.float32),
        compiler_params=pltpu.CompilerParams(vmem_limit_bytes=VMEM_LIMIT),
    )(x2d, w1, b1, w2, b2, w3, b3)


# ----------------------------------------------------------------------------
# Stage 2: streamed Linear (+ LeakyReLU) over blocked bf16 weights.
#   x_blk : (Kb, B, tk)  f32      w_blk : (Kb, Nb, tk, tn)  bf16
#   b_blk : (Nb, 1, tn)  f32      out   : (Nb, B, tn)       f32
# Grid = (Nb "parallel", Kb "arbitrary"); acc in VMEM; bias + activation on
# the last K step.  Every weight-block DMA reads one contiguous HBM region.
# ----------------------------------------------------------------------------
def stream_linear_kernel(x_ref, w_ref, b_ref, o_ref, acc_ref, *, leaky):
    k = pl.program_id(1)

    @pl.when(k == 0)
    def _():
        acc_ref[...] = jnp.zeros_like(acc_ref)

    acc_ref[...] += jnp.dot(x_ref[0].astype(jnp.bfloat16), w_ref[0, 0],
                            preferred_element_type=jnp.float32)

    @pl.when(k == pl.num_programs(1) - 1)
    def _():
        y = acc_ref[...] + b_ref[0]
        if leaky:
            y = jnp.where(y >= 0, y, NEG_SLOPE * y)
        o_ref[0] = y.astype(o_ref.dtype)


def stream_linear(x, w_blk, b_blk, *, leaky):
    bsz, k_dim = x.shape
    kb, nb, tk, tn = w_blk.shape
    assert k_dim == kb * tk
    n_dim = nb * tn
    xb = x.reshape(bsz, kb, tk).transpose(1, 0, 2)        # (Kb, B, tk), tiny

    out = pl.pallas_call(
        functools.partial(stream_linear_kernel, leaky=leaky),
        out_shape=jax.ShapeDtypeStruct((nb, bsz, tn), jnp.float32),
        grid=(nb, kb),
        in_specs=[
            pl.BlockSpec((1, bsz, tk), lambda j, k: (k, 0, 0)),
            pl.BlockSpec((1, 1, tk, tn), lambda j, k: (k, j, 0, 0)),
            pl.BlockSpec((1, 1, tn), lambda j, k: (j, 0, 0)),
        ],
        out_specs=pl.BlockSpec((1, bsz, tn), lambda j, k: (j, 0, 0)),
        scratch_shapes=[pltpu.VMEM((bsz, tn), jnp.float32)],
        compiler_params=pltpu.CompilerParams(
            dimension_semantics=("parallel", "arbitrary"),
            vmem_limit_bytes=VMEM_LIMIT),
        cost_estimate=pl.CostEstimate(
            flops=2 * bsz * k_dim * n_dim,
            transcendentals=0,
            bytes_accessed=(w_blk.size * w_blk.dtype.itemsize
                            + x.size * x.dtype.itemsize
                            + bsz * n_dim * 4 + n_dim * 4)),
    )(xb, w_blk, b_blk)
    return out.transpose(1, 0, 2).reshape(bsz, n_dim)


# ----------------------------------------------------------------------------
# Stage 3: fused tail 2000 -> 1000 -> 500 -> 200 -> 100 -> 2(+pad) + softmax.
# All weights resident in VMEM; one pallas_call, no grid.
# ----------------------------------------------------------------------------
def fused_tail_kernel(x_ref, *refs):
    o_ref = refs[-1]
    wb = refs[:-1]
    n_layers = len(wb) // 2
    h = x_ref[...]
    for i in range(n_layers):
        w = wb[2 * i][...]
        b = wb[2 * i + 1][...]
        h = jnp.dot(h.astype(jnp.bfloat16), w, preferred_element_type=jnp.float32) + b
        if i < n_layers - 1:
            h = jnp.where(h >= 0, h, NEG_SLOPE * h)
    # softmax over the (padded) logit lanes; pad logits are -1e30 -> exp == 0.
    m = jnp.max(h, axis=-1, keepdims=True)
    e = jnp.exp(h - m)
    o_ref[...] = (e / jnp.sum(e, axis=-1, keepdims=True)).astype(o_ref.dtype)


def fused_tail(x, tail_params):
    flat = []
    for w, b in tail_params:
        flat += [w, b]
    padded_out = tail_params[-1][0].shape[1]
    probs = pl.pallas_call(
        fused_tail_kernel,
        out_shape=jax.ShapeDtypeStruct((x.shape[0], padded_out), jnp.float32),
        compiler_params=pltpu.CompilerParams(vmem_limit_bytes=VMEM_LIMIT),
    )(x, *flat)
    return probs[:, :NUM_CLASSES]


# ----------------------------------------------------------------------------
# Parameters (deterministic, synthetic).  Weights bf16, biases f32.
# Streamed weights are generated directly in blocked (Kb, Nb, tk, tn) layout.
# ----------------------------------------------------------------------------
def _dense_layer(kw, kb, fin, fout):
    scale = (2.0 / fin) ** 0.5
    w = jax.random.normal(kw, (fin, fout), dtype=jnp.bfloat16) * scale
    b = 0.01 * jax.random.normal(kb, (1, fout), dtype=jnp.float32)
    return w, b


def _stream_layer(kw, kb, fin, fout, tk, tn):
    scale = (2.0 / fin) ** 0.5
    w_blk = jax.random.normal(kw, (fin // tk, fout // tn, tk, tn),
                              dtype=jnp.bfloat16) * scale
    b = 0.01 * jax.random.normal(kb, (1, fout), dtype=jnp.float32)
    b_blk = b.reshape(fout // tn, 1, tn)
    return w_blk, b_blk


def init_params(key):
    n_layers = len(SMALL_DIMS) + len(STREAM_DIMS) + len(TAIL_DIMS)
    keys = jax.random.split(key, 2 * n_layers)
    idx = 0

    small = []
    for fin, fout in SMALL_DIMS:
        small.append(_dense_layer(keys[idx], keys[idx + 1], fin, fout))
        idx += 2

    stream = []
    for fin, fout in STREAM_DIMS:
        stream.append(_stream_layer(keys[idx], keys[idx + 1], fin, fout,
                                    BLK_TK, BLK_TN))
        idx += 2

    tail = []
    for fin, fout in TAIL_DIMS:
        tail.append(_dense_layer(keys[idx], keys[idx + 1], fin, fout))
        idx += 2

    # Pad the final 100->2 layer to 128 output lanes; padded logits get a bias
    # of -1e30 so they contribute exactly zero probability after softmax.
    w_last, b_last = tail[-1]
    pad = 128 - w_last.shape[1]
    w_last = jnp.pad(w_last, ((0, 0), (0, pad)))
    b_last = jnp.pad(b_last, ((0, 0), (0, pad)), constant_values=-1e30)
    tail[-1] = (w_last, b_last)

    return {"small": small, "stream": stream, "tail": tail}


# ----------------------------------------------------------------------------
# Full forward (Pallas) and pure-JAX reference.
# ----------------------------------------------------------------------------
def rerank_forward(x, params):
    B, C, H, W = x.shape
    (w1, b1), (w2, b2), (w3, b3) = params["small"]

    bert = x[:, :, :, 13:-2].reshape(B * C * H, 384)
    bert = bert_mlp(bert, w1, b1, w2, b2, w3, b3)          # (B*C*H, 20)
    bert = bert.reshape(B, C, H, 20)

    cat = jnp.concatenate([x[..., :13], bert, x[..., -2:]], axis=3)
    f = cat.reshape(B, -1)                                  # (B, 35000)

    for w_blk, b_blk in params["stream"]:                   # 35000->10000->2000
        f = stream_linear(f, w_blk, b_blk, leaky=True)

    return fused_tail(f, params["tail"])                    # (B, 2)


def reference_forward(x, params):
    bf16, f32 = jnp.bfloat16, jnp.float32

    def lin(h, w, b):
        return jnp.dot(h.astype(bf16), w, preferred_element_type=f32) + b

    B = x.shape[0]
    (w1, b1), (w2, b2), (w3, b3) = params["small"]
    h = x[:, :, :, 13:-2]
    h = lin(h, w1, b1)
    h = lin(h, w2, b2)
    h = lin(h, w3, b3)
    cat = jnp.concatenate([x[..., :13], h, x[..., -2:]], axis=3)
    f = cat.reshape(B, -1)

    for w_blk, b_blk in params["stream"]:
        kb, nb, tk, tn = w_blk.shape
        w = w_blk.transpose(0, 2, 1, 3).reshape(kb * tk, nb * tn)
        b = b_blk.transpose(1, 0, 2).reshape(1, nb * tn)
        f = lin(f, w, b)
        f = jnp.where(f >= 0, f, NEG_SLOPE * f)

    n_tail = len(params["tail"])
    for i, (w, b) in enumerate(params["tail"]):
        f = lin(f, w, b)
        if i < n_tail - 1:
            f = jnp.where(f >= 0, f, NEG_SLOPE * f)
    f = f[:, :NUM_CLASSES]            # drop -1e30 padded logits (exactly 0 prob)
    return jax.nn.softmax(f, axis=1)


if __name__ == "__main__":
    key = jax.random.PRNGKey(0)
    pkey, xkey = jax.random.split(key)
    params = init_params(pkey)

    # C*H*(13+20+2) must equal 35000 -> C*H = 1000; W = 13 + 384 + 2 = 399.
    B, C, H, W = 2, 4, 250, 399
    x = jax.random.normal(xkey, (B, C, H, W), dtype=jnp.float32)

    out = jax.block_until_ready(rerank_forward(x, params))
    assert out.shape == (B, NUM_CLASSES), out.shape

    ref = jax.block_until_ready(reference_forward(x, params))
    np.testing.assert_allclose(np.asarray(out), np.asarray(ref),
                               rtol=2e-2, atol=2e-3)
    print("KERNEL_OK")
</pallas_src>

<mosaic_0001>
module attributes {stable_mosaic.version = 11 : i64} {
  func.func @bert_mlp_kernel(%arg0: memref<2000x384xf32, #tpu.memory_space<vmem>>, %arg1: memref<384x100xbf16, #tpu.memory_space<vmem>>, %arg2: memref<1x100xf32, #tpu.memory_space<vmem>>, %arg3: memref<100x50xbf16, #tpu.memory_space<vmem>>, %arg4: memref<1x50xf32, #tpu.memory_space<vmem>>, %arg5: memref<50x20xbf16, #tpu.memory_space<vmem>>, %arg6: memref<1x20xf32, #tpu.memory_space<vmem>>, %arg7: memref<2000x20xf32, #tpu.memory_space<vmem>>) attributes {dimension_semantics = [], scalar_prefetch = 0 : i64, scratch_operands = 0 : i64, tpu.core_type = #tpu.core_type<tc>} {
    %c0 = arith.constant 0 : index
    %c0_0 = arith.constant 0 : index
    %0 = vector.load %arg0[%c0, %c0_0] : memref<2000x384xf32, #tpu.memory_space<vmem>>, vector<2000x384xf32>
    %1 = arith.truncf %0 : vector<2000x384xf32> to vector<2000x384xbf16>
    %c0_1 = arith.constant 0 : index
    %c0_2 = arith.constant 0 : index
    %2 = vector.load %arg1[%c0_1, %c0_2] : memref<384x100xbf16, #tpu.memory_space<vmem>>, vector<384x100xbf16>
    %cst = arith.constant dense<0.000000e+00> : vector<2000x100xf32>
    %3 = tpu.matmul %1, %2, %cst {dimension_numbers = #tpu.dot_dimension_numbers<[1], [0], [0], [1], [0, 0, 1, 1], [], []>} : vector<2000x384xbf16>, vector<384x100xbf16>, vector<2000x100xf32> -> vector<2000x100xf32>
    %c0_3 = arith.constant 0 : index
    %c0_4 = arith.constant 0 : index
    %4 = vector.load %arg2[%c0_3, %c0_4] : memref<1x100xf32, #tpu.memory_space<vmem>>, vector<1x100xf32>
    %5 = vector.broadcast %4 : vector<1x100xf32> to vector<2000x100xf32>
    %6 = arith.addf %3, %5 : vector<2000x100xf32>
    %7 = arith.truncf %6 : vector<2000x100xf32> to vector<2000x100xbf16>
    %c0_5 = arith.constant 0 : index
    %c0_6 = arith.constant 0 : index
    %8 = vector.load %arg3[%c0_5, %c0_6] : memref<100x50xbf16, #tpu.memory_space<vmem>>, vector<100x50xbf16>
    %cst_7 = arith.constant dense<0.000000e+00> : vector<2000x50xf32>
    %9 = tpu.matmul %7, %8, %cst_7 {dimension_numbers = #tpu.dot_dimension_numbers<[1], [0], [0], [1], [0, 0, 1, 1], [], []>} : vector<2000x100xbf16>, vector<100x50xbf16>, vector<2000x50xf32> -> vector<2000x50xf32>
    %c0_8 = arith.constant 0 : index
    %c0_9 = arith.constant 0 : index
    %10 = vector.load %arg4[%c0_8, %c0_9] : memref<1x50xf32, #tpu.memory_space<vmem>>, vector<1x50xf32>
    %11 = vector.broadcast %10 : vector<1x50xf32> to vector<2000x50xf32>
    %12 = arith.addf %9, %11 : vector<2000x50xf32>
    %13 = arith.truncf %12 : vector<2000x50xf32> to vector<2000x50xbf16>
    %c0_10 = arith.constant 0 : index
    %c0_11 = arith.constant 0 : index
    %14 = vector.load %arg5[%c0_10, %c0_11] : memref<50x20xbf16, #tpu.memory_space<vmem>>, vector<50x20xbf16>
    %cst_12 = arith.constant dense<0.000000e+00> : vector<2000x20xf32>
    %15 = tpu.matmul %13, %14, %cst_12 {dimension_numbers = #tpu.dot_dimension_numbers<[1], [0], [0], [1], [0, 0, 1, 1], [], []>} : vector<2000x50xbf16>, vector<50x20xbf16>, vector<2000x20xf32> -> vector<2000x20xf32>
    %c0_13 = arith.constant 0 : index
    %c0_14 = arith.constant 0 : index
    %16 = vector.load %arg6[%c0_13, %c0_14] : memref<1x20xf32, #tpu.memory_space<vmem>>, vector<1x20xf32>
    %17 = vector.broadcast %16 : vector<1x20xf32> to vector<2000x20xf32>
    %18 = arith.addf %15, %17 : vector<2000x20xf32>
    %c0_15 = arith.constant 0 : index
    %c0_16 = arith.constant 0 : index
    %19 = vector.load %arg7[%c0_15, %c0_16] : memref<2000x20xf32, #tpu.memory_space<vmem>>, vector<2000x20xf32>
    tpu.vector_store %arg7[%c0_15, %c0_16], %18 {strides = array<i32>} : memref<2000x20xf32, #tpu.memory_space<vmem>>, vector<2000x20xf32>,
    return
  }
}

</mosaic_0001>

<bundles_post_ra>
// kernel: tpu_custom_call.1
= control target key start
LH: loop header
LB: loop body
LE: loop exit
PB: predicated region body
PF: predicated region fallthrough
CT: control target
= control target key end

     0   :  { %12 = vsyncpa [#allocation3], 0  ;;  %s14385_s0 = inlined_call_operand.hbm [shape: f32[2000,384], index: 0, kind: input, shape index: {}]   ;;  %s14386_s1 = inlined_call_operand.vmem [shape: bf16[384,100], index: 1, kind: input, shape index: {}]   ;;  %s14387_s2 = inlined_call_operand.hbm [shape: f32[1,100], index: 2, kind: input, shape index: {}]   ;;  %s14388_s3 = inlined_call_operand.vmem [shape: bf16[100,50], index: 3, kind: input, shape index: {}]   ;;  %s14389_s4 = inlined_call_operand.hbm [shape: f32[1,50], index: 4, kind: input, shape index: {}]   ;;  %s14390_s5 = inlined_call_operand.vmem [shape: bf16[50,20], index: 5, kind: input, shape index: {}]   ;;  %s14391_s6 = inlined_call_operand.hbm [shape: f32[1,20], index: 6, kind: input, shape index: {}]   ;;  %s14392_s7 = inlined_call_operand.vmem [shape: f32[2000,20], index: 7, kind: output, shape index: {}]  }
   0x1   :  { %13 = vsyncpa [#allocation5], 0 }
   0x2   :  { %14 = vsyncpa [#allocation8], 0  ;;  %s9890_s24 = smov [#allocation4]   ;;  %s9891_s26 = smov [#allocation2]  }
   0x3   :  { %s35_s25 = sshll.u32 %s9890_s24, 4  ;;  %s20_s27 = sshll.u32 %s9891_s26, 4  ;;  %s36_s25 = int_to_ptr.vmem [resolvable:$true] %s35_s25  ;;  %s9939_s27 = int_to_ptr.vmem [resolvable:$true] %s20_s27 }
   0x4   :  { %s9796_s30 = scalar_lea.hbm %s14387_s2, 16 }
   0x5   :  { %p9797_p0 = scmp.ne.s32.totalorder %s14387_s2, %s9796_s30  ;;  %p9800_p1 = scmp.lt.u32.totalorder %s9796_s30, %s14387_s2 }
   0x7   :  { %p9802_p2 = pnand %p9800_p1, %p9797_p0 }
   0x9   :  { %9805 = shalt.err (!%p9802_p2)
}
   0xa   :  { %s9806_s12 = scalar_lea.vmem %s36_s25, 16  ;;  %s9810_s13 = scalar_lea.vmem %s36_s25, 32 }
   0xb   :  { %p9807_p3 = scmp.ne.s32.totalorder %s36_s25, %s9806_s12  ;;  %p9811_p4 = scmp.lt.s32.totalorder %s36_s25, %s36_s25 }
   0xc   :  { %p9812_p5 = scmp.lt.s32.totalorder %s9810_s13, %s9806_s12 }
   0xe   :  { %p9813_p6 = por %p9812_p5, %p9811_p4 }
  0x10   :  { %p9814_p7 = pnand %p9813_p6, %p9807_p3 }
  0x12   :  { %9817 = shalt.err (!%p9814_p7)
}
  0x13   :  { %38 = dma.hbm_to_vmem [thread:$0]  %s14387_s2, 16, %s36_s25, [#allocation5]  }
  0x14   :  { %s9818_s18 = scalar_lea.hbm %s14385_s0, 96000 }
  0x15   :  { %p9819_p8 = scmp.ne.s32.totalorder %s14385_s0, %s9818_s18  ;;  %p9822_p9 = scmp.lt.u32.totalorder %s9818_s18, %s14385_s0 }
  0x17   :  { %p9824_p10 = pnand %p9822_p9, %p9819_p8 }
  0x19   :  { %9827 = shalt.err (!%p9824_p10)
}
  0x1a   :  { %s9828_s23 = scalar_lea.vmem %s9939_s27, 96000  ;;  %p9833_p12 = scmp.lt.s32.totalorder %s9939_s27, %s9939_s27 }
  0x1b   :  { %p9829_p11 = scmp.ne.s32.totalorder %s9939_s27, %s9828_s23  ;;  %p9834_p13 = scmp.lt.s32.totalorder %s9828_s23, %s9828_s23 }
  0x1d   :  { %p9835_p0 = por %p9834_p13, %p9833_p12 }
  0x1f   :  { %p9836_p1 = pnand %p9835_p0, %p9829_p11 }
  0x21   :  { %9839 = shalt.err (!%p9836_p1)
}
  0x22   :  { %s9892_s2 = smov 384   ;;  %s9893_s24 = smov 24  }
  0x23   :  { %26 = dma.hbm_to_vmem [thread:$0]  %s14385_s0, 96000, %s9939_s27, [#allocation3], %s9892_s2, %s9892_s2, %s9893_s24  }
  0x24   :  { %s9894_s28 = smov [#allocation6]   ;;  %s9895_s30 = smov [#allocation7]  }
  0x25   :  { %s47_s29 = sshll.u32 %s9894_s28, 4  ;;  %s59_s8 = sshll.u32 %s9895_s30, 4  ;;  %s48_s29 = int_to_ptr.vmem [resolvable:$true] %s47_s29  ;;  %s60_s8 = int_to_ptr.vmem [resolvable:$true] %s59_s8 }
  0x26   :  { %s9840_s11 = scalar_lea.hbm %s14389_s4, 16 }
  0x27   :  { %p9841_p2 = scmp.ne.s32.totalorder %s14389_s4, %s9840_s11  ;;  %p9844_p3 = scmp.lt.u32.totalorder %s9840_s11, %s14389_s4 }
  0x29   :  { %p9846_p4 = pnand %p9844_p3, %p9841_p2 }
  0x2b   :  { %9849 = shalt.err (!%p9846_p4)
}
  0x2c   :  { %s9850_s0 = scalar_lea.vmem %s48_s29, 16  ;;  %s9854_s27 = scalar_lea.vmem %s48_s29, 32 }
  0x2d   :  { %p9851_p5 = scmp.ne.s32.totalorder %s48_s29, %s9850_s0  ;;  %p9855_p6 = scmp.lt.s32.totalorder %s48_s29, %s48_s29 }
  0x2e   :  { %p9856_p7 = scmp.lt.s32.totalorder %s9854_s27, %s9850_s0 }
  0x30   :  { %p9857_p8 = por %p9856_p7, %p9855_p6 }
  0x32   :  { %p9858_p9 = pnand %p9857_p8, %p9851_p5 }
  0x34   :  { %9861 = shalt.err (!%p9858_p9)
}
  0x35   :  { %50 = dma.hbm_to_vmem [thread:$0]  %s14389_s4, 16, %s48_s29, [#allocation5]  }
  0x36   :  { %s9862_s20 = scalar_lea.hbm %s14391_s6, 16 }
  0x37   :  { %p9863_p10 = scmp.ne.s32.totalorder %s14391_s6, %s9862_s20  ;;  %p9866_p11 = scmp.lt.u32.totalorder %s9862_s20, %s14391_s6 }
  0x39   :  { %p9868_p12 = pnand %p9866_p11, %p9863_p10 }
  0x3b   :  { %9871 = shalt.err (!%p9868_p12)
}
  0x3c   :  { %s9872_s24 = scalar_lea.vmem %s60_s8, 16  ;;  %s9876_s25 = scalar_lea.vmem %s60_s8, 32 }
  0x3d   :  { %p9873_p13 = scmp.ne.s32.totalorder %s60_s8, %s9872_s24  ;;  %p9877_p0 = scmp.lt.s32.totalorder %s60_s8, %s60_s8 }
  0x3e   :  { %p9878_p1 = scmp.lt.s32.totalorder %s9876_s25, %s9872_s24 }
  0x40   :  { %p9879_p2 = por %p9878_p1, %p9877_p0 }
  0x42   :  { %p9880_p3 = pnand %p9879_p2, %p9873_p13 }
  0x44   :  { %9883 = shalt.err (!%p9880_p3)
}
  0x45   :  { %62 = dma.hbm_to_vmem [thread:$0]  %s14391_s6, 16, %s60_s8, [#allocation8]  }
  0x46   :  { %9884 = dma.done.wait [#allocation3], 96000  }
  0x47   :  { %9885 = vsyncadd [#allocation3], 4294871296 }
  0x48   :  { %9886 = dma.done.wait [#allocation5], 32  }
  0x49   :  { %9887 = vsyncadd [#allocation5], 4294967264 }
  0x4a   :  { %9888 = dma.done.wait [#allocation8], 16  }
  0x4b   :  { %9889 = vsyncadd [#allocation8], 4294967280  ;;  %v9896_v0 = vmov 0   ;;  %v14393_v1 = vmov 0.0   ;;  %v9751_v2 = vld [vmem:[%s14386_s1] sm:$0xff]   ;;  %v9752_v3 = vld [vmem:[%s14386_s1 + $0x8] sm:$0xff]  }
  0x4c   :  { %1400 = vmatprep.subr.bf16.mxu0 %v9896_v0  ;;  %8092 = vmatprep.subr.bf16.mxu1 %v14393_v1  ;;  %v9753_v4 = vld [vmem:[%s14386_s1 + $0x10] sm:$0xff]   ;;  %v9754_v5 = vld [vmem:[%s14386_s1 + $0x18] sm:$0xff]   ;;  %v9755_v6 = vld [vmem:[%s14386_s1 + $0x20] sm:$0xff]   ;;  %vm9898_vm0 = vmmov 0   ;;  %vm4026_vm1 = vcmask 1041408   ;;  %vm3650_vm2 = vcmask 818176  }
  0x4d   :  { %1401 = vmatpush1.bf16.msra.mxu0 %v9751_v2  ;;  %v77_v7 = vld [vmem:[#allocation2 + $0x8] sm:$0xff]  ;;  %v80_v8 = vld [vmem:[#allocation2 + $0x20] sm:$0xff]  ;;  %v9757_v11 = vld [vmem:[%s14386_s1 + $0x30] sm:$0xff]   ;;  %vm5599_vm3 = vcmask 1040384   ;;  %vm5223_vm4 = vcmask 408576   ;;  %vm6636_vm5 = vcmask 162816  }
  0x4e   :  { %1402 = vmatprep.subr.bf16.mxu0 %v9896_v0  ;;  %v827_v9 = vpack.c.bf16 %v80_v8, %v77_v7  ;;  %v9756_v10 = vld [vmem:[%s14386_s1 + $0x28] sm:$0xff]   ;;  %v9758_v12 = vld [vmem:[%s14386_s1 + $0x38] sm:$0xff]   ;;  %v9759_v13 = vld [vmem:[%s14386_s1 + $0x40] sm:$0xff]  }
  0x4f   :  { %v9760_v14 = vld [vmem:[%s14386_s1 + $0x48] sm:$0xff]   ;;  %v9761_v15 = vld [vmem:[%s14386_s1 + $0x50] sm:$0xff]   ;;  %v9762_v16 = vld [vmem:[%s14386_s1 + $0x58] sm:$0xff]  }
  0x50   :  { %1432 = vmatprep.mubr.bf16.mxu0 %v827_v9  ;;  %v9763_v17 = vld [vmem:[%s14386_s1 + $0x60] sm:$0xff]   ;;  %v9764_v18 = vld [vmem:[%s14386_s1 + $0x68] sm:$0xff]   ;;  %v9765_v19 = vld [vmem:[%s14386_s1 + $0x70] sm:$0xff]  }
  0x51   :  { %1403 = vmatpush1.bf16.msra.mxu0 %v9752_v3  ;;  %v9766_v20 = vld [vmem:[%s14386_s1 + $0x78] sm:$0xff]   ;;  %v76_v21 = vld [vmem:[#allocation2] sm:$0xff]  ;;  %v86_v24 = vld [vmem:[#allocation2 + $0x50] sm:$0xff] }
  0x52   :  { %1404 = vmatprep.subr.bf16.mxu0 %v9896_v0  ;;  %v79_v22 = vld [vmem:[#allocation2 + $0x18] sm:$0xff]  ;;  %v9767_v26 = vld [vmem:[%s14386_s1 + $0x80] sm:$0xff]   ;;  %v82_v28 = vld [vmem:[#allocation2 + $0x30] sm:$0xff] }
  0x53   :  { %v83_v23 = vld [vmem:[#allocation2 + $0x38] sm:$0xff]  ;;  %v826_v25 = vpack.c.bf16 %v79_v22, %v76_v21  ;;  %v85_v29 = vld [vmem:[#allocation2 + $0x48] sm:$0xff]  ;;  %v92_v32 = vld [vmem:[#allocation2 + $0x80] sm:$0xff] }
  0x54   :  { %v830_v27 = vpack.c.bf16 %v86_v24, %v83_v23  ;;  %v9768_v30 = vld [vmem:[%s14386_s1 + $0x88] sm:$0xff]   ;;  %v829_v33 = vpack.c.bf16 %v85_v29, %v82_v28  ;;  %v88_v35 = vld [vmem:[#allocation2 + $0x60] sm:$0xff]  ;;  %v91_v36 = vld [vmem:[#allocation2 + $0x78] sm:$0xff] }
  0x55   :  { %1405 = vmatpush1.bf16.msra.mxu0 %v9753_v4  ;;  %v89_v31 = vld [vmem:[#allocation2 + $0x68] sm:$0xff]  ;;  %v95_v37 = vld [vmem:[#allocation2 + $0x98] sm:$0xff]  ;;  %v98_v38 = vld [vmem:[#allocation2 + $0xb0] sm:$0xff]  ;;  %v832_v39 = vpack.c.bf16 %v91_v36, %v88_v35 }
  0x56   :  { %1406 = vmatprep.subr.bf16.mxu0 %v9896_v0  ;;  %v833_v34 = vpack.c.bf16 %v92_v32, %v89_v31  ;;  %v836_v40 = vpack.c.bf16 %v98_v38, %v95_v37  ;;  %v94_v41 = vld [vmem:[#allocation2 + $0x90] sm:$0xff]  ;;  %v97_v42 = vld [vmem:[#allocation2 + $0xa8] sm:$0xff]  ;;  %v104_v44 = vld [vmem:[#allocation2 + $0xe0] sm:$0xff] }
  0x57   :  { %v101_v43 = vld [vmem:[#allocation2 + $0xc8] sm:$0xff]  ;;  %v835_v45 = vpack.c.bf16 %v97_v42, %v94_v41  ;;  %v100_v47 = vld [vmem:[#allocation2 + $0xc0] sm:$0xff]  ;;  %v103_v48 = vld [vmem:[#allocation2 + $0xd8] sm:$0xff] }
  0x58   :  { %v839_v46 = vpack.c.bf16 %v104_v44, %v101_v43  ;;  %v107_v49 = vld [vmem:[#allocation2 + $0xf8] sm:$0xff]  ;;  %v110_v50 = vld [vmem:[#allocation2 + $0x110] sm:$0xff]  ;;  %v838_v51 = vpack.c.bf16 %v103_v48, %v100_v47  ;;  %v109_v54 = vld [vmem:[#allocation2 + $0x108] sm:$0xff] }
  0x59   :  { %1407 = vmatpush1.bf16.msra.mxu0 %v9754_v5  ;;  %v842_v52 = vpack.c.bf16 %v110_v50, %v107_v49  ;;  %v106_v53 = vld [vmem:[#allocation2 + $0xf0] sm:$0xff]  ;;  %v113_v55 = vld [vmem:[#allocation2 + $0x128] sm:$0xff]  ;;  %v116_v56 = vld [vmem:[#allocation2 + $0x140] sm:$0xff] }
  0x5a   :  { %1408 = vmatprep.subr.bf16.mxu0 %v9896_v0  ;;  %v841_v57 = vpack.c.bf16 %v109_v54, %v106_v53  ;;  %v845_v58 = vpack.c.bf16 %v116_v56, %v113_v55  ;;  %v112_v59 = vld [vmem:[#allocation2 + $0x120] sm:$0xff]  ;;  %v115_v60 = vld [vmem:[#allocation2 + $0x138] sm:$0xff]  ;;  %v122_v62 = vld [vmem:[#allocation2 + $0x170] sm:$0xff] }
  0x5b   :  { %v119_v61 = vld [vmem:[#allocation2 + $0x158] sm:$0xff]  ;;  %v844_v63 = vpack.c.bf16 %v115_v60, %v112_v59  ;;  %v118_v2 = vld [vmem:[#allocation2 + $0x150] sm:$0xff]  ;;  %v121_v3 = vld [vmem:[#allocation2 + $0x168] sm:$0xff] }
  0x5c   :  { %v125_v4 = vld [vmem:[#allocation2 + $0x188] sm:$0xff]  ;;  %v128_v5 = vld [vmem:[#allocation2 + $0x1a0] sm:$0xff]  ;;  %v127_v9 = vld [vmem:[#allocation2 + $0x198] sm:$0xff] }
  0x5d   :  { %1409 = vmatpush1.bf16.msra.mxu0 %v9755_v6  ;;  %v847_v6 = vpack.c.bf16 %v121_v3, %v118_v2  ;;  %v851_v7 = vpack.c.bf16 %v128_v5, %v125_v4  ;;  %v124_v8 = vld [vmem:[#allocation2 + $0x180] sm:$0xff]  ;;  %v139_v21 = vld [vmem:[#allocation2 + $0x1f8] sm:$0xff]  ;;  %v146_v23 = vld [vmem:[#allocation2 + $0x230] sm:$0xff] }
  0x5e   :  { %1410 = vmatprep.subr.bf16.mxu0 %v9896_v0  ;;  %v143_v22 = vld [vmem:[#allocation2 + $0x218] sm:$0xff]  ;;  %v149_v28 = vld [vmem:[#allocation2 + $0x248] sm:$0xff]  ;;  %v152_v29 = vld [vmem:[#allocation2 + $0x260] sm:$0xff] }
  0x5f   :  { %v863_v31 = vpack.c.bf16 %v152_v29, %v149_v28  ;;  %v148_v32 = vld [vmem:[#allocation2 + $0x240] sm:$0xff]  ;;  %v158_v35 = vld [vmem:[#allocation2 + $0x290] sm:$0xff]  ;;  %v179_v59 = vld [vmem:[#allocation2 + $0x338] sm:$0xff] }
  0x60   :  { %v154_v38 = vld [vmem:[#allocation2 + $0x270] sm:$0xff]  ;;  %v164_v41 = vld [vmem:[#allocation2 + $0x2c0] sm:$0xff]  ;;  %v185_v2 = vld [vmem:[#allocation2 + $0x368] sm:$0xff] }
  0x61   :  { %1411 = vmatpush1.bf16.msra.mxu0 %v9756_v10  ;;  %v131_v10 = vld [vmem:[#allocation2 + $0x1b8] sm:$0xff]  ;;  %v160_v44 = vld [vmem:[#allocation2 + $0x2a0] sm:$0xff]  ;;  %v170_v47 = vld [vmem:[#allocation2 + $0x2f0] sm:$0xff] }
  0x62   :  { %1412 = vmatprep.subr.bf16.mxu0 %v9896_v0  ;;  %v166_v50 = vld [vmem:[#allocation2 + $0x2d0] sm:$0xff]  ;;  %v176_v53 = vld [vmem:[#allocation2 + $0x320] sm:$0xff] }
  0x63   :  { %v9769_v56 = vld [vmem:[%s14386_s1 + $0x90] sm:$0xff]   ;;  %v188_v3 = vld [vmem:[#allocation2 + $0x380] sm:$0xff] }
  0x64   :  { %v182_v60 = vld [vmem:[#allocation2 + $0x350] sm:$0xff]  ;;  %v881_v5 = vpack.c.bf16 %v188_v3, %v185_v2  ;;  %v244_v3 = vld [vmem:[#allocation2 + $0x540] sm:$0xff] }
  0x65   :  { %1413 = vmatpush1.bf16.msra.mxu0 %v9757_v11  ;;  %v134_v11 = vld [vmem:[#allocation2 + $0x1d0] sm:$0xff] }
  0x66   :  { %1414 = vmatprep.subr.bf16.mxu0 %v9896_v0 }
  0x69   :  { %1415 = vmatpush1.bf16.msra.mxu0 %v9758_v12  ;;  %v850_v12 = vpack.c.bf16 %v127_v9, %v124_v8  ;;  %v191_v8 = vld [vmem:[#allocation2 + $0x398] sm:$0xff]  ;;  %v194_v9 = vld [vmem:[#allocation2 + $0x3b0] sm:$0xff] }
  0x6a   :  { %1416 = vmatprep.subr.bf16.mxu0 %v9896_v0 }
  0x6d   :  { %1417 = vmatpush1.bf16.msra.mxu0 %v9759_v13  ;;  %v854_v13 = vpack.c.bf16 %v134_v11, %v131_v10  ;;  %v884_v11 = vpack.c.bf16 %v194_v9, %v191_v8  ;;  %v250_v9 = vld [vmem:[#allocation2 + $0x570] sm:$0xff] }
  0x6e   :  { %1418 = vmatprep.subr.bf16.mxu0 %v9896_v0 }
  0x71   :  { %1419 = vmatpush1.bf16.msra.mxu0 %v9760_v14  ;;  %v130_v14 = vld [vmem:[#allocation2 + $0x1b0] sm:$0xff] }
  0x72   :  { %1420 = vmatprep.subr.bf16.mxu0 %v9896_v0 }
  0x75   :  { %1421 = vmatpush1.bf16.msra.mxu0 %v9761_v15  ;;  %v133_v15 = vld [vmem:[#allocation2 + $0x1c8] sm:$0xff] }
  0x76   :  { %1422 = vmatprep.subr.bf16.mxu0 %v9896_v0 }
  0x79   :  { %1423 = vmatpush1.bf16.msra.mxu0 %v9762_v16  ;;  %v137_v16 = vld [vmem:[#allocation2 + $0x1e8] sm:$0xff] }
  0x7a   :  { %1424 = vmatprep.subr.bf16.mxu0 %v9896_v0 }
  0x7d   :  { %1425 = vmatpush1.bf16.msra.mxu0 %v9763_v17  ;;  %v140_v17 = vld [vmem:[#allocation2 + $0x200] sm:$0xff] }
  0x7e   :  { %1426 = vmatprep.subr.bf16.mxu0 %v9896_v0 }
  0x81   :  { %1427 = vmatpush1.bf16.msra.mxu0 %v9764_v18  ;;  %v853_v18 = vpack.c.bf16 %v133_v15, %v130_v14  ;;  %v197_v14 = vld [vmem:[#allocation2 + $0x3c8] sm:$0xff]  ;;  %v200_v15 = vld [vmem:[#allocation2 + $0x3e0] sm:$0xff] }
  0x82   :  { %1428 = vmatprep.subr.bf16.mxu0 %v9896_v0 }
  0x85   :  { %1429 = vmatpush1.bf16.msra.mxu0 %v9765_v19  ;;  %v857_v19 = vpack.c.bf16 %v140_v17, %v137_v16  ;;  %v887_v17 = vpack.c.bf16 %v200_v15, %v197_v14  ;;  %v256_v15 = vld [vmem:[#allocation2 + $0x5a0] sm:$0xff] }
  0x86   :  { %1430 = vmatprep.subr.bf16.mxu0 %v9896_v0  ;;  %v848_v0 = vpack.c.bf16 %v122_v62, %v119_v61  ;;  %v878_v62 = vpack.c.bf16 %v182_v60, %v179_v59  ;;  %v238_v60 = vld [vmem:[#allocation2 + $0x510] sm:$0xff] }
  0x89   :  { %1431 = vmatpush1.bf16.msra.mxu0 %v9766_v20  ;;  %v136_v20 = vld [vmem:[#allocation2 + $0x1e0] sm:$0xff] }
  0x8a   :  { %7576 = vmatprep.subr.bf16.mxu0 %v14393_v1  ;;  %v856_v24 = vpack.c.bf16 %v139_v21, %v136_v20  ;;  %v203_v20 = vld [vmem:[#allocation2 + $0x3f8] sm:$0xff]  ;;  %v206_v21 = vld [vmem:[#allocation2 + $0x410] sm:$0xff] }
  0x8c   :  { %1433 = vmatmul.mubr.bf16.vlgmr.msra.gmra.mrb[0].mxu0 %v826_v25  ;;  %v860_v25 = vpack.c.bf16 %v146_v23, %v143_v22  ;;  %v890_v23 = vpack.c.bf16 %v206_v21, %v203_v20  ;;  %v262_v21 = vld [vmem:[#allocation2 + $0x5d0] sm:$0xff] }
  0x8d   :  { %7577 = vmatpush3.bf16.msra.mxu0 %v9767_v26  ;;  %1440 = vmatprep.mubr.bf16.mxu0 %v830_v27  ;;  %v142_v26 = vld [vmem:[#allocation2 + $0x210] sm:$0xff]  ;;  %v145_v27 = vld [vmem:[#allocation2 + $0x228] sm:$0xff] }
  0x8e   :  { %7578 = vmatprep.subr.bf16.mxu0 %v14393_v1 }
  0x91   :  { %7579 = vmatpush3.bf16.msra.mxu0 %v9768_v30  ;;  %v859_v30 = vpack.c.bf16 %v145_v27, %v142_v26  ;;  %v209_v26 = vld [vmem:[#allocation2 + $0x428] sm:$0xff]  ;;  %v212_v27 = vld [vmem:[#allocation2 + $0x440] sm:$0xff] }
  0x92   :  { %7580 = vmatprep.subr.bf16.mxu0 %v14393_v1  ;;  %v893_v29 = vpack.c.bf16 %v212_v27, %v209_v26  ;;  %v9770_v27 = vld [vmem:[%s14386_s1 + $0x98] sm:$0xff]  }
  0x94   :  { %1441 = vmatmul.mubr.bf16.gmra.mrb[4].mxu0 %v829_v33  ;;  %v151_v33 = vld [vmem:[#allocation2 + $0x258] sm:$0xff] }
  0x95   :  { %1448 = vmatprep.mubr.bf16.mxu0 %v833_v34  ;;  %v155_v34 = vld [vmem:[#allocation2 + $0x278] sm:$0xff]  ;;  %v862_v36 = vpack.c.bf16 %v151_v33, %v148_v32  ;;  %7581 = vmatpush3.bf16.msra.mxu0 %v9769_v56  ;;  %v218_v33 = vld [vmem:[#allocation2 + $0x470] sm:$0xff] }
  0x96   :  { %v866_v37 = vpack.c.bf16 %v158_v35, %v155_v34  ;;  %7582 = vmatprep.subr.bf16.mxu0 %v14393_v1  ;;  %v215_v32 = vld [vmem:[#allocation2 + $0x458] sm:$0xff] }
  0x97   :  { %v896_v35 = vpack.c.bf16 %v218_v33, %v215_v32  ;;  %v239_v56 = vld [vmem:[#allocation2 + $0x518] sm:$0xff] }
  0x99   :  { %7583 = vmatpush3.bf16.msra.mxu0 %v9770_v27  ;;  %v335_v27 = vld [vmem:[#allocation2 + $0x818] sm:$0xff] }
  0x9a   :  { %7584 = vmatprep.subr.bf16.mxu0 %v14393_v1 }
  0x9c   :  { %1449 = vmatmul.mubr.bf16.gmra.mrb[8].mxu0 %v832_v39  ;;  %v157_v39 = vld [vmem:[#allocation2 + $0x288] sm:$0xff] }
  0x9d   :  { %1456 = vmatprep.mubr.bf16.mxu0 %v836_v40  ;;  %v161_v40 = vld [vmem:[#allocation2 + $0x2a8] sm:$0xff]  ;;  %v865_v42 = vpack.c.bf16 %v157_v39, %v154_v38  ;;  %v224_v39 = vld [vmem:[#allocation2 + $0x4a0] sm:$0xff] }
  0x9e   :  { %v869_v43 = vpack.c.bf16 %v164_v41, %v161_v40  ;;  %v221_v38 = vld [vmem:[#allocation2 + $0x488] sm:$0xff] }
  0x9f   :  { %v899_v41 = vpack.c.bf16 %v224_v39, %v221_v38 }
  0xa4   :  { %1457 = vmatmul.mubr.bf16.gmra.mrb[12].mxu0 %v835_v45  ;;  %v163_v45 = vld [vmem:[#allocation2 + $0x2b8] sm:$0xff] }
  0xa5   :  { %1464 = vmatprep.mubr.bf16.mxu0 %v839_v46  ;;  %v167_v46 = vld [vmem:[#allocation2 + $0x2d8] sm:$0xff]  ;;  %v868_v48 = vpack.c.bf16 %v163_v45, %v160_v44  ;;  %v230_v45 = vld [vmem:[#allocation2 + $0x4d0] sm:$0xff] }
  0xa6   :  { %v872_v49 = vpack.c.bf16 %v170_v47, %v167_v46  ;;  %v227_v44 = vld [vmem:[#allocation2 + $0x4b8] sm:$0xff] }
  0xa7   :  { %v902_v47 = vpack.c.bf16 %v230_v45, %v227_v44 }
  0xac   :  { %1465 = vmatmul.mubr.bf16.gmra.mrb[16].mxu0 %v838_v51  ;;  %v169_v51 = vld [vmem:[#allocation2 + $0x2e8] sm:$0xff] }
  0xad   :  { %1472 = vmatprep.mubr.bf16.mxu0 %v842_v52  ;;  %v173_v52 = vld [vmem:[#allocation2 + $0x308] sm:$0xff]  ;;  %v871_v54 = vpack.c.bf16 %v169_v51, %v166_v50  ;;  %v236_v51 = vld [vmem:[#allocation2 + $0x500] sm:$0xff] }
  0xae   :  { %v875_v55 = vpack.c.bf16 %v176_v53, %v173_v52  ;;  %v233_v50 = vld [vmem:[#allocation2 + $0x4e8] sm:$0xff] }
  0xaf   :  { %v905_v53 = vpack.c.bf16 %v236_v51, %v233_v50 }
  0xb4   :  { %1473 = vmatmul.mubr.bf16.gmra.mrb[20].mxu0 %v841_v57  ;;  %v172_v57 = vld [vmem:[#allocation2 + $0x300] sm:$0xff] }
  0xb5   :  { %1480 = vmatprep.mubr.bf16.mxu0 %v845_v58  ;;  %v175_v58 = vld [vmem:[#allocation2 + $0x318] sm:$0xff] }
  0xb6   :  { %v874_v61 = vpack.c.bf16 %v175_v58, %v172_v57  ;;  %v242_v57 = vld [vmem:[#allocation2 + $0x530] sm:$0xff] }
  0xb7   :  { %v908_v59 = vpack.c.bf16 %v242_v57, %v239_v56 }
  0xbc   :  { %1481 = vmatmul.mubr.bf16.gmra.mrb[24].mxu0 %v844_v63  ;;  %v178_v63 = vld [vmem:[#allocation2 + $0x330] sm:$0xff] }
  0xbd   :  { %1488 = vmatprep.mubr.bf16.mxu0 %v848_v0  ;;  %v181_v0 = vld [vmem:[#allocation2 + $0x348] sm:$0xff] }
  0xbe   :  { %v877_v4 = vpack.c.bf16 %v181_v0, %v178_v63  ;;  %v248_v63 = vld [vmem:[#allocation2 + $0x560] sm:$0xff] }
  0xc4   :  { %1489 = vmatmul.mubr.bf16.gmra.mrb[28].mxu0 %v847_v6  ;;  %v184_v6 = vld [vmem:[#allocation2 + $0x360] sm:$0xff] }
  0xc5   :  { %1496 = vmatprep.mubr.bf16.mxu0 %v851_v7  ;;  %v187_v7 = vld [vmem:[#allocation2 + $0x378] sm:$0xff] }
  0xc6   :  { %v880_v10 = vpack.c.bf16 %v187_v7, %v184_v6  ;;  %v254_v6 = vld [vmem:[#allocation2 + $0x590] sm:$0xff] }
  0xcc   :  { %1497 = vmatmul.mubr.bf16.gmra.mrb[32].mxu0 %v850_v12  ;;  %v190_v12 = vld [vmem:[#allocation2 + $0x390] sm:$0xff] }
  0xcd   :  { %1504 = vmatprep.mubr.bf16.mxu0 %v854_v13  ;;  %v193_v13 = vld [vmem:[#allocation2 + $0x3a8] sm:$0xff] }
  0xce   :  { %v883_v16 = vpack.c.bf16 %v193_v13, %v190_v12  ;;  %v260_v12 = vld [vmem:[#allocation2 + $0x5c0] sm:$0xff] }
  0xd4   :  { %1505 = vmatmul.mubr.bf16.gmra.mrb[36].mxu0 %v853_v18  ;;  %v196_v18 = vld [vmem:[#allocation2 + $0x3c0] sm:$0xff] }
  0xd5   :  { %1512 = vmatprep.mubr.bf16.mxu0 %v857_v19  ;;  %v199_v19 = vld [vmem:[#allocation2 + $0x3d8] sm:$0xff] }
  0xd6   :  { %v886_v22 = vpack.c.bf16 %v199_v19, %v196_v18  ;;  %v266_v18 = vld [vmem:[#allocation2 + $0x5f0] sm:$0xff] }
  0xdc   :  { %1513 = vmatmul.mubr.bf16.gmra.mrb[40].mxu0 %v856_v24  ;;  %v202_v24 = vld [vmem:[#allocation2 + $0x3f0] sm:$0xff] }
  0xdd   :  { %1520 = vmatprep.mubr.bf16.mxu0 %v860_v25  ;;  %v205_v25 = vld [vmem:[#allocation2 + $0x408] sm:$0xff] }
  0xde   :  { %v889_v28 = vpack.c.bf16 %v205_v25, %v202_v24  ;;  %v272_v24 = vld [vmem:[#allocation2 + $0x620] sm:$0xff] }
  0xe4   :  { %1521 = vmatmul.mubr.bf16.gmra.mrb[44].mxu0 %v859_v30  ;;  %v208_v30 = vld [vmem:[#allocation2 + $0x420] sm:$0xff] }
  0xe5   :  { %1528 = vmatprep.mubr.bf16.mxu0 %v863_v31  ;;  %v211_v31 = vld [vmem:[#allocation2 + $0x438] sm:$0xff] }
  0xe6   :  { %v892_v34 = vpack.c.bf16 %v211_v31, %v208_v30  ;;  %v275_v30 = vld [vmem:[#allocation2 + $0x638] sm:$0xff]  ;;  %v278_v31 = vld [vmem:[#allocation2 + $0x650] sm:$0xff] }
  0xe7   :  { %v926_v33 = vpack.c.bf16 %v278_v31, %v275_v30  ;;  %v334_v31 = vld [vmem:[#allocation2 + $0x810] sm:$0xff] }
  0xec   :  { %1529 = vmatmul.mubr.bf16.gmra.mrb[48].mxu0 %v862_v36  ;;  %v214_v36 = vld [vmem:[#allocation2 + $0x450] sm:$0xff] }
  0xed   :  { %1536 = vmatprep.mubr.bf16.mxu0 %v866_v37  ;;  %v217_v37 = vld [vmem:[#allocation2 + $0x468] sm:$0xff] }
  0xee   :  { %v895_v40 = vpack.c.bf16 %v217_v37, %v214_v36  ;;  %v281_v36 = vld [vmem:[#allocation2 + $0x668] sm:$0xff]  ;;  %v284_v37 = vld [vmem:[#allocation2 + $0x680] sm:$0xff] }
  0xef   :  { %v929_v39 = vpack.c.bf16 %v284_v37, %v281_v36  ;;  %v340_v37 = vld [vmem:[#allocation2 + $0x840] sm:$0xff] }
  0xf4   :  { %1537 = vmatmul.mubr.bf16.gmra.mrb[52].mxu0 %v865_v42  ;;  %v220_v42 = vld [vmem:[#allocation2 + $0x480] sm:$0xff] }
  0xf5   :  { %1544 = vmatprep.mubr.bf16.mxu0 %v869_v43  ;;  %v223_v43 = vld [vmem:[#allocation2 + $0x498] sm:$0xff] }
  0xf6   :  { %v898_v46 = vpack.c.bf16 %v223_v43, %v220_v42  ;;  %v287_v42 = vld [vmem:[#allocation2 + $0x698] sm:$0xff]  ;;  %v290_v43 = vld [vmem:[#allocation2 + $0x6b0] sm:$0xff] }
  0xf7   :  { %v932_v45 = vpack.c.bf16 %v290_v43, %v287_v42  ;;  %v346_v43 = vld [vmem:[#allocation2 + $0x870] sm:$0xff] }
  0xfc   :  { %1545 = vmatmul.mubr.bf16.gmra.mrb[56].mxu0 %v868_v48  ;;  %v226_v48 = vld [vmem:[#allocation2 + $0x4b0] sm:$0xff] }
  0xfd   :  { %1552 = vmatprep.mubr.bf16.mxu0 %v872_v49  ;;  %v229_v49 = vld [vmem:[#allocation2 + $0x4c8] sm:$0xff] }
  0xfe   :  { %v901_v52 = vpack.c.bf16 %v229_v49, %v226_v48  ;;  %v293_v48 = vld [vmem:[#allocation2 + $0x6c8] sm:$0xff]  ;;  %v296_v49 = vld [vmem:[#allocation2 + $0x6e0] sm:$0xff] }
  0xff   :  { %v935_v51 = vpack.c.bf16 %v296_v49, %v293_v48  ;;  %v352_v49 = vld [vmem:[#allocation2 + $0x8a0] sm:$0xff] }
 0x104   :  { %1553 = vmatmul.mubr.bf16.gmra.mrb[60].mxu0 %v871_v54  ;;  %v232_v54 = vld [vmem:[#allocation2 + $0x4e0] sm:$0xff] }
 0x105   :  { %1560 = vmatprep.mubr.bf16.mxu0 %v875_v55  ;;  %v235_v55 = vld [vmem:[#allocation2 + $0x4f8] sm:$0xff] }
 0x106   :  { %v904_v58 = vpack.c.bf16 %v235_v55, %v232_v54  ;;  %v299_v54 = vld [vmem:[#allocation2 + $0x6f8] sm:$0xff]  ;;  %v302_v55 = vld [vmem:[#allocation2 + $0x710] sm:$0xff] }
 0x107   :  { %v938_v57 = vpack.c.bf16 %v302_v55, %v299_v54  ;;  %v9771_v55 = vld [vmem:[%s14386_s1 + $0xa0] sm:$0xff]  }
 0x108   :  { %7585 = vmatpush3.bf16.msra.mxu0 %v9771_v55  ;;  %v425_v55 = vld [vmem:[#allocation2 + $0xae8] sm:$0xff] }
 0x109   :  { %7586 = vmatprep.subr.bf16.mxu0 %v14393_v1 }
 0x10c   :  { %1561 = vmatmul.mubr.bf16.gmra.mrb[64].mxu0 %v874_v61  ;;  %v241_v61 = vld [vmem:[#allocation2 + $0x528] sm:$0xff] }
 0x10d   :  { %1568 = vmatprep.mubr.bf16.mxu0 %v878_v62  ;;  %v245_v62 = vld [vmem:[#allocation2 + $0x548] sm:$0xff]  ;;  %v907_v0 = vpack.c.bf16 %v241_v61, %v238_v60  ;;  %v308_v61 = vld [vmem:[#allocation2 + $0x740] sm:$0xff] }
 0x10e   :  { %v911_v2 = vpack.c.bf16 %v248_v63, %v245_v62  ;;  %v305_v60 = vld [vmem:[#allocation2 + $0x728] sm:$0xff] }
 0x10f   :  { %v941_v63 = vpack.c.bf16 %v308_v61, %v305_v60 }
 0x114   :  { %1569 = vmatmul.mubr.bf16.gmra.mrb[68].mxu0 %v877_v4  ;;  %v247_v4 = vld [vmem:[#allocation2 + $0x558] sm:$0xff] }
 0x115   :  { %1576 = vmatprep.mubr.bf16.mxu0 %v881_v5  ;;  %v251_v5 = vld [vmem:[#allocation2 + $0x578] sm:$0xff]  ;;  %v910_v7 = vpack.c.bf16 %v247_v4, %v244_v3  ;;  %v314_v4 = vld [vmem:[#allocation2 + $0x770] sm:$0xff] }
 0x116   :  { %v914_v8 = vpack.c.bf16 %v254_v6, %v251_v5  ;;  %v311_v3 = vld [vmem:[#allocation2 + $0x758] sm:$0xff] }
 0x117   :  { %v944_v6 = vpack.c.bf16 %v314_v4, %v311_v3 }
 0x11c   :  { %1577 = vmatmul.mubr.bf16.gmra.mrb[72].mxu0 %v880_v10  ;;  %v253_v10 = vld [vmem:[#allocation2 + $0x588] sm:$0xff] }
 0x11d   :  { %1584 = vmatprep.mubr.bf16.mxu0 %v884_v11  ;;  %v257_v11 = vld [vmem:[#allocation2 + $0x5a8] sm:$0xff]  ;;  %v913_v13 = vpack.c.bf16 %v253_v10, %v250_v9  ;;  %v320_v10 = vld [vmem:[#allocation2 + $0x7a0] sm:$0xff] }
 0x11e   :  { %v917_v14 = vpack.c.bf16 %v260_v12, %v257_v11  ;;  %v317_v9 = vld [vmem:[#allocation2 + $0x788] sm:$0xff] }
 0x11f   :  { %v947_v12 = vpack.c.bf16 %v320_v10, %v317_v9 }
 0x124   :  { %1585 = vmatmul.mubr.bf16.gmra.mrb[76].mxu0 %v883_v16  ;;  %v259_v16 = vld [vmem:[#allocation2 + $0x5b8] sm:$0xff] }
 0x125   :  { %1592 = vmatprep.mubr.bf16.mxu0 %v887_v17  ;;  %v263_v17 = vld [vmem:[#allocation2 + $0x5d8] sm:$0xff]  ;;  %v916_v19 = vpack.c.bf16 %v259_v16, %v256_v15  ;;  %v326_v16 = vld [vmem:[#allocation2 + $0x7d0] sm:$0xff] }
 0x126   :  { %v920_v20 = vpack.c.bf16 %v266_v18, %v263_v17  ;;  %v323_v15 = vld [vmem:[#allocation2 + $0x7b8] sm:$0xff] }
 0x127   :  { %v950_v18 = vpack.c.bf16 %v326_v16, %v323_v15 }
 0x12c   :  { %1593 = vmatmul.mubr.bf16.gmra.mrb[80].mxu0 %v886_v22  ;;  %v265_v22 = vld [vmem:[#allocation2 + $0x5e8] sm:$0xff] }
 0x12d   :  { %1600 = vmatprep.mubr.bf16.mxu0 %v890_v23  ;;  %v269_v23 = vld [vmem:[#allocation2 + $0x608] sm:$0xff]  ;;  %v919_v25 = vpack.c.bf16 %v265_v22, %v262_v21  ;;  %v332_v22 = vld [vmem:[#allocation2 + $0x800] sm:$0xff] }
 0x12e   :  { %v923_v26 = vpack.c.bf16 %v272_v24, %v269_v23  ;;  %v329_v21 = vld [vmem:[#allocation2 + $0x7e8] sm:$0xff] }
 0x12f   :  { %v953_v24 = vpack.c.bf16 %v332_v22, %v329_v21 }
 0x134   :  { %1601 = vmatmul.mubr.bf16.gmra.mrb[84].mxu0 %v889_v28  ;;  %v268_v28 = vld [vmem:[#allocation2 + $0x600] sm:$0xff] }
 0x135   :  { %1608 = vmatprep.mubr.bf16.mxu0 %v893_v29  ;;  %v271_v29 = vld [vmem:[#allocation2 + $0x618] sm:$0xff] }
 0x136   :  { %v922_v32 = vpack.c.bf16 %v271_v29, %v268_v28  ;;  %v338_v28 = vld [vmem:[#allocation2 + $0x830] sm:$0xff] }
 0x137   :  { %v956_v30 = vpack.c.bf16 %v338_v28, %v335_v27 }
 0x13c   :  { %1609 = vmatmul.mubr.bf16.gmra.mrb[88].mxu0 %v892_v34  ;;  %v274_v34 = vld [vmem:[#allocation2 + $0x630] sm:$0xff] }
 0x13d   :  { %1616 = vmatprep.mubr.bf16.mxu0 %v896_v35  ;;  %v277_v35 = vld [vmem:[#allocation2 + $0x648] sm:$0xff] }
 0x13e   :  { %v925_v38 = vpack.c.bf16 %v277_v35, %v274_v34  ;;  %v344_v34 = vld [vmem:[#allocation2 + $0x860] sm:$0xff] }
 0x144   :  { %1617 = vmatmul.mubr.bf16.gmra.mrb[92].mxu0 %v895_v40  ;;  %v280_v40 = vld [vmem:[#allocation2 + $0x660] sm:$0xff] }
 0x145   :  { %1624 = vmatprep.mubr.bf16.mxu0 %v899_v41  ;;  %v283_v41 = vld [vmem:[#allocation2 + $0x678] sm:$0xff] }
 0x146   :  { %v928_v44 = vpack.c.bf16 %v283_v41, %v280_v40  ;;  %v350_v40 = vld [vmem:[#allocation2 + $0x890] sm:$0xff] }
 0x14c   :  { %1625 = vmatmul.mubr.bf16.gmra.mrb[96].mxu0 %v898_v46  ;;  %v286_v46 = vld [vmem:[#allocation2 + $0x690] sm:$0xff] }
 0x14d   :  { %1632 = vmatprep.mubr.bf16.mxu0 %v902_v47  ;;  %v289_v47 = vld [vmem:[#allocation2 + $0x6a8] sm:$0xff] }
 0x14e   :  { %v931_v50 = vpack.c.bf16 %v289_v47, %v286_v46  ;;  %v356_v46 = vld [vmem:[#allocation2 + $0x8c0] sm:$0xff] }
 0x154   :  { %1633 = vmatmul.mubr.bf16.gmra.mrb[100].mxu0 %v901_v52  ;;  %v292_v52 = vld [vmem:[#allocation2 + $0x6c0] sm:$0xff] }
 0x155   :  { %1640 = vmatprep.mubr.bf16.mxu0 %v905_v53  ;;  %v295_v53 = vld [vmem:[#allocation2 + $0x6d8] sm:$0xff] }
 0x156   :  { %v934_v56 = vpack.c.bf16 %v295_v53, %v292_v52  ;;  %v362_v52 = vld [vmem:[#allocation2 + $0x8f0] sm:$0xff] }
 0x15c   :  { %1641 = vmatmul.mubr.bf16.gmra.mrb[104].mxu0 %v904_v58  ;;  %v298_v58 = vld [vmem:[#allocation2 + $0x6f0] sm:$0xff] }
 0x15d   :  { %1648 = vmatprep.mubr.bf16.mxu0 %v908_v59  ;;  %v301_v59 = vld [vmem:[#allocation2 + $0x708] sm:$0xff] }
 0x15e   :  { %v937_v62 = vpack.c.bf16 %v301_v59, %v298_v58  ;;  %v365_v58 = vld [vmem:[#allocation2 + $0x908] sm:$0xff]  ;;  %v368_v59 = vld [vmem:[#allocation2 + $0x920] sm:$0xff] }
 0x15f   :  { %v971_v61 = vpack.c.bf16 %v368_v59, %v365_v58  ;;  %v424_v59 = vld [vmem:[#allocation2 + $0xae0] sm:$0xff] }
 0x164   :  { %1649 = vmatmul.mubr.bf16.gmra.mrb[108].mxu0 %v907_v0  ;;  %v304_v0 = vld [vmem:[#allocation2 + $0x720] sm:$0xff] }
 0x165   :  { %1656 = vmatprep.mubr.bf16.mxu0 %v911_v2  ;;  %v307_v2 = vld [vmem:[#allocation2 + $0x738] sm:$0xff] }
 0x166   :  { %v940_v5 = vpack.c.bf16 %v307_v2, %v304_v0  ;;  %v371_v0 = vld [vmem:[#allocation2 + $0x938] sm:$0xff]  ;;  %v374_v2 = vld [vmem:[#allocation2 + $0x950] sm:$0xff] }
 0x167   :  { %v974_v4 = vpack.c.bf16 %v374_v2, %v371_v0  ;;  %v430_v2 = vld [vmem:[#allocation2 + $0xb10] sm:$0xff] }
 0x16c   :  { %1657 = vmatmul.mubr.bf16.gmra.mrb[112].mxu0 %v910_v7  ;;  %v310_v7 = vld [vmem:[#allocation2 + $0x750] sm:$0xff] }
 0x16d   :  { %1664 = vmatprep.mubr.bf16.mxu0 %v914_v8  ;;  %v313_v8 = vld [vmem:[#allocation2 + $0x768] sm:$0xff] }
 0x16e   :  { %v943_v11 = vpack.c.bf16 %v313_v8, %v310_v7  ;;  %v377_v7 = vld [vmem:[#allocation2 + $0x968] sm:$0xff]  ;;  %v380_v8 = vld [vmem:[#allocation2 + $0x980] sm:$0xff] }
 0x16f   :  { %v977_v10 = vpack.c.bf16 %v380_v8, %v377_v7  ;;  %v436_v8 = vld [vmem:[#allocation2 + $0xb40] sm:$0xff] }
 0x174   :  { %1665 = vmatmul.mubr.bf16.gmra.mrb[116].mxu0 %v913_v13  ;;  %v316_v13 = vld [vmem:[#allocation2 + $0x780] sm:$0xff] }
 0x175   :  { %1672 = vmatprep.mubr.bf16.mxu0 %v917_v14  ;;  %v319_v14 = vld [vmem:[#allocation2 + $0x798] sm:$0xff] }
 0x176   :  { %v946_v17 = vpack.c.bf16 %v319_v14, %v316_v13  ;;  %v383_v13 = vld [vmem:[#allocation2 + $0x998] sm:$0xff]  ;;  %v386_v14 = vld [vmem:[#allocation2 + $0x9b0] sm:$0xff] }
 0x177   :  { %v980_v16 = vpack.c.bf16 %v386_v14, %v383_v13  ;;  %v442_v14 = vld [vmem:[#allocation2 + $0xb70] sm:$0xff] }
 0x17c   :  { %1673 = vmatmul.mubr.bf16.gmra.mrb[120].mxu0 %v916_v19  ;;  %v322_v19 = vld [vmem:[#allocation2 + $0x7b0] sm:$0xff] }
 0x17d   :  { %1680 = vmatprep.mubr.bf16.mxu0 %v920_v20  ;;  %v325_v20 = vld [vmem:[#allocation2 + $0x7c8] sm:$0xff] }
 0x17e   :  { %v949_v23 = vpack.c.bf16 %v325_v20, %v322_v19  ;;  %v389_v19 = vld [vmem:[#allocation2 + $0x9c8] sm:$0xff]  ;;  %v392_v20 = vld [vmem:[#allocation2 + $0x9e0] sm:$0xff] }
 0x17f   :  { %v983_v22 = vpack.c.bf16 %v392_v20, %v389_v19  ;;  %v448_v20 = vld [vmem:[#allocation2 + $0xba0] sm:$0xff] }
 0x184   :  { %1681 = vmatmul.mubr.bf16.gmra.mrb[124].mxu0 %v919_v25  ;;  %v328_v25 = vld [vmem:[#allocation2 + $0x7e0] sm:$0xff] }
 0x185   :  { %1688 = vmatprep.mubr.bf16.mxu0 %v923_v26  ;;  %v331_v26 = vld [vmem:[#allocation2 + $0x7f8] sm:$0xff] }
 0x186   :  { %v952_v29 = vpack.c.bf16 %v331_v26, %v328_v25  ;;  %v395_v25 = vld [vmem:[#allocation2 + $0x9f8] sm:$0xff]  ;;  %v398_v26 = vld [vmem:[#allocation2 + $0xa10] sm:$0xff] }
 0x187   :  { %v986_v28 = vpack.c.bf16 %v398_v26, %v395_v25  ;;  %v9772_v26 = vld [vmem:[%s14386_s1 + $0xa8] sm:$0xff]  }
 0x188   :  { %7587 = vmatpush3.bf16.msra.mxu0 %v9772_v26 }
 0x189   :  { %7588 = vmatprep.subr.bf16.mxu0 %v14393_v1 }
 0x18c   :  { %1689 = vmatmul.mubr.bf16.gmra.mrb[128].mxu0 %v922_v32  ;;  %v337_v32 = vld [vmem:[#allocation2 + $0x828] sm:$0xff] }
 0x18d   :  { %1696 = vmatprep.mubr.bf16.mxu0 %v926_v33  ;;  %v341_v33 = vld [vmem:[#allocation2 + $0x848] sm:$0xff]  ;;  %v955_v35 = vpack.c.bf16 %v337_v32, %v334_v31  ;;  %v404_v32 = vld [vmem:[#allocation2 + $0xa40] sm:$0xff] }
 0x18e   :  { %v959_v36 = vpack.c.bf16 %v344_v34, %v341_v33  ;;  %v401_v31 = vld [vmem:[#allocation2 + $0xa28] sm:$0xff] }
 0x18f   :  { %v989_v34 = vpack.c.bf16 %v404_v32, %v401_v31 }
 0x194   :  { %1697 = vmatmul.mubr.bf16.gmra.mrb[132].mxu0 %v925_v38  ;;  %v343_v38 = vld [vmem:[#allocation2 + $0x858] sm:$0xff] }
 0x195   :  { %1704 = vmatprep.mubr.bf16.mxu0 %v929_v39  ;;  %v347_v39 = vld [vmem:[#allocation2 + $0x878] sm:$0xff]  ;;  %v958_v41 = vpack.c.bf16 %v343_v38, %v340_v37  ;;  %v410_v38 = vld [vmem:[#allocation2 + $0xa70] sm:$0xff] }
 0x196   :  { %v962_v42 = vpack.c.bf16 %v350_v40, %v347_v39  ;;  %v407_v37 = vld [vmem:[#allocation2 + $0xa58] sm:$0xff] }
 0x197   :  { %v992_v40 = vpack.c.bf16 %v410_v38, %v407_v37 }
 0x19c   :  { %1705 = vmatmul.mubr.bf16.gmra.mrb[136].mxu0 %v928_v44  ;;  %v349_v44 = vld [vmem:[#allocation2 + $0x888] sm:$0xff] }
 0x19d   :  { %1712 = vmatprep.mubr.bf16.mxu0 %v932_v45  ;;  %v353_v45 = vld [vmem:[#allocation2 + $0x8a8] sm:$0xff]  ;;  %v961_v47 = vpack.c.bf16 %v349_v44, %v346_v43  ;;  %v416_v44 = vld [vmem:[#allocation2 + $0xaa0] sm:$0xff] }
 0x19e   :  { %v965_v48 = vpack.c.bf16 %v356_v46, %v353_v45  ;;  %v413_v43 = vld [vmem:[#allocation2 + $0xa88] sm:$0xff] }
 0x19f   :  { %v995_v46 = vpack.c.bf16 %v416_v44, %v413_v43  ;;  %v466_v43 = vld [vmem:[#allocation2 + $0xc30] sm:$0xff]  ;;  %v469_v44 = vld [vmem:[#allocation2 + $0xc48] sm:$0xff] }
 0x1a4   :  { %1713 = vmatmul.mubr.bf16.gmra.mrb[140].mxu0 %v931_v50  ;;  %v355_v50 = vld [vmem:[#allocation2 + $0x8b8] sm:$0xff] }
 0x1a5   :  { %1720 = vmatprep.mubr.bf16.mxu0 %v935_v51  ;;  %v359_v51 = vld [vmem:[#allocation2 + $0x8d8] sm:$0xff]  ;;  %v964_v53 = vpack.c.bf16 %v355_v50, %v352_v49  ;;  %v422_v50 = vld [vmem:[#allocation2 + $0xad0] sm:$0xff] }
 0x1a6   :  { %v968_v54 = vpack.c.bf16 %v362_v52, %v359_v51  ;;  %v419_v49 = vld [vmem:[#allocation2 + $0xab8] sm:$0xff] }
 0x1a7   :  { %v998_v52 = vpack.c.bf16 %v422_v50, %v419_v49  ;;  %v1021_v49 = vpack.c.bf16 %v469_v44, %v466_v43  ;;  %v505_v43 = vld [vmem:[#allocation2 + $0xd68] sm:$0xff] }
 0x1a8   :  { %v509_v44 = vld [vmem:[#allocation2 + $0xd88] sm:$0xff] }
 0x1ac   :  { %1721 = vmatmul.mubr.bf16.gmra.mrb[144].mxu0 %v934_v56  ;;  %v358_v56 = vld [vmem:[#allocation2 + $0x8d0] sm:$0xff] }
 0x1ad   :  { %1728 = vmatprep.mubr.bf16.mxu0 %v938_v57  ;;  %v361_v57 = vld [vmem:[#allocation2 + $0x8e8] sm:$0xff] }
 0x1ae   :  { %v967_v60 = vpack.c.bf16 %v361_v57, %v358_v56  ;;  %v428_v56 = vld [vmem:[#allocation2 + $0xb00] sm:$0xff] }
 0x1af   :  { %v1001_v58 = vpack.c.bf16 %v428_v56, %v425_v55  ;;  %v479_v55 = vld [vmem:[#allocation2 + $0xc98] sm:$0xff]  ;;  %v482_v56 = vld [vmem:[#allocation2 + $0xcb0] sm:$0xff] }
 0x1b4   :  { %1729 = vmatmul.mubr.bf16.gmra.mrb[148].mxu0 %v937_v62  ;;  %v364_v62 = vld [vmem:[#allocation2 + $0x900] sm:$0xff] }
 0x1b5   :  { %1736 = vmatprep.mubr.bf16.mxu0 %v941_v63  ;;  %v367_v63 = vld [vmem:[#allocation2 + $0x918] sm:$0xff] }
 0x1b6   :  { %v970_v3 = vpack.c.bf16 %v367_v63, %v364_v62  ;;  %v434_v62 = vld [vmem:[#allocation2 + $0xb30] sm:$0xff] }
 0x1bc   :  { %1737 = vmatmul.mubr.bf16.gmra.mrb[152].mxu0 %v940_v5  ;;  %v370_v5 = vld [vmem:[#allocation2 + $0x930] sm:$0xff] }
 0x1bd   :  { %1744 = vmatprep.mubr.bf16.mxu0 %v944_v6  ;;  %v373_v6 = vld [vmem:[#allocation2 + $0x948] sm:$0xff] }
 0x1be   :  { %v973_v9 = vpack.c.bf16 %v373_v6, %v370_v5  ;;  %v440_v5 = vld [vmem:[#allocation2 + $0xb60] sm:$0xff] }
 0x1c4   :  { %1745 = vmatmul.mubr.bf16.gmra.mrb[156].mxu0 %v943_v11  ;;  %v376_v11 = vld [vmem:[#allocation2 + $0x960] sm:$0xff] }
 0x1c5   :  { %1752 = vmatprep.mubr.bf16.mxu0 %v947_v12  ;;  %v379_v12 = vld [vmem:[#allocation2 + $0x978] sm:$0xff] }
 0x1c6   :  { %v976_v15 = vpack.c.bf16 %v379_v12, %v376_v11  ;;  %v446_v11 = vld [vmem:[#allocation2 + $0xb90] sm:$0xff] }
 0x1cc   :  { %1753 = vmatmul.mubr.bf16.gmra.mrb[160].mxu0 %v946_v17  ;;  %v382_v17 = vld [vmem:[#allocation2 + $0x990] sm:$0xff] }
 0x1cd   :  { %1760 = vmatprep.mubr.bf16.mxu0 %v950_v18  ;;  %v385_v18 = vld [vmem:[#allocation2 + $0x9a8] sm:$0xff] }
 0x1ce   :  { %v979_v21 = vpack.c.bf16 %v385_v18, %v382_v17  ;;  %v452_v17 = vld [vmem:[#allocation2 + $0xbc0] sm:$0xff] }
 0x1d4   :  { %1761 = vmatmul.mubr.bf16.gmra.mrb[164].mxu0 %v949_v23  ;;  %v388_v23 = vld [vmem:[#allocation2 + $0x9c0] sm:$0xff] }
 0x1d5   :  { %1768 = vmatprep.mubr.bf16.mxu0 %v953_v24  ;;  %v391_v24 = vld [vmem:[#allocation2 + $0x9d8] sm:$0xff] }
 0x1d6   :  { %v982_v27 = vpack.c.bf16 %v391_v24, %v388_v23  ;;  %v458_v23 = vld [vmem:[#allocation2 + $0xbf0] sm:$0xff] }
 0x1dc   :  { %1769 = vmatmul.mubr.bf16.gmra.mrb[168].mxu0 %v952_v29  ;;  %v394_v29 = vld [vmem:[#allocation2 + $0x9f0] sm:$0xff] }
 0x1dd   :  { %1776 = vmatprep.mubr.bf16.mxu0 %v956_v30  ;;  %v397_v30 = vld [vmem:[#allocation2 + $0xa08] sm:$0xff] }
 0x1de   :  { %v985_v33 = vpack.c.bf16 %v397_v30, %v394_v29  ;;  %v461_v29 = vld [vmem:[#allocation2 + $0xc08] sm:$0xff]  ;;  %v464_v30 = vld [vmem:[#allocation2 + $0xc20] sm:$0xff] }
 0x1df   :  { %v1019_v32 = vpack.c.bf16 %v464_v30, %v461_v29  ;;  %v496_v30 = vld [vmem:[#allocation2 + $0xd20] sm:$0xff] }
 0x1e4   :  { %1777 = vmatmul.mubr.bf16.gmra.mrb[172].mxu0 %v955_v35  ;;  %v400_v35 = vld [vmem:[#allocation2 + $0xa20] sm:$0xff] }
 0x1e5   :  { %1784 = vmatprep.mubr.bf16.mxu0 %v959_v36  ;;  %v403_v36 = vld [vmem:[#allocation2 + $0xa38] sm:$0xff] }
 0x1e6   :  { %v988_v39 = vpack.c.bf16 %v403_v36, %v400_v35  ;;  %v467_v35 = vld [vmem:[#allocation2 + $0xc38] sm:$0xff]  ;;  %v470_v36 = vld [vmem:[#allocation2 + $0xc50] sm:$0xff] }
 0x1ec   :  { %1785 = vmatmul.mubr.bf16.gmra.mrb[176].mxu0 %v958_v41  ;;  %v406_v41 = vld [vmem:[#allocation2 + $0xa50] sm:$0xff] }
 0x1ed   :  { %1792 = vmatprep.mubr.bf16.mxu0 %v962_v42  ;;  %v409_v42 = vld [vmem:[#allocation2 + $0xa68] sm:$0xff] }
 0x1ee   :  { %v991_v45 = vpack.c.bf16 %v409_v42, %v406_v41  ;;  %v1022_v41 = vpack.c.bf16 %v470_v36, %v467_v35 }
 0x1f4   :  { %1793 = vmatmul.mubr.bf16.gmra.mrb[180].mxu0 %v961_v47  ;;  %v412_v47 = vld [vmem:[#allocation2 + $0xa80] sm:$0xff] }
 0x1f5   :  { %1800 = vmatprep.mubr.bf16.mxu0 %v965_v48  ;;  %v415_v48 = vld [vmem:[#allocation2 + $0xa98] sm:$0xff] }
 0x1f6   :  { %v994_v51 = vpack.c.bf16 %v415_v48, %v412_v47 }
 0x1fc   :  { %1801 = vmatmul.mubr.bf16.gmra.mrb[184].mxu0 %v964_v53  ;;  %v418_v53 = vld [vmem:[#allocation2 + $0xab0] sm:$0xff] }
 0x1fd   :  { %1808 = vmatprep.mubr.bf16.mxu0 %v968_v54  ;;  %v421_v54 = vld [vmem:[#allocation2 + $0xac8] sm:$0xff] }
 0x1fe   :  { %v997_v57 = vpack.c.bf16 %v421_v54, %v418_v53  ;;  %v472_v53 = vld [vmem:[#allocation2 + $0xc60] sm:$0xff]  ;;  %v475_v54 = vld [vmem:[#allocation2 + $0xc78] sm:$0xff] }
 0x204   :  { %1809 = vmatmul.mubr.bf16.gmra.mrb[188].mxu0 %v967_v60  ;;  %v427_v60 = vld [vmem:[#allocation2 + $0xaf8] sm:$0xff] }
 0x205   :  { %1816 = vmatprep.mubr.bf16.mxu0 %v971_v61  ;;  %v431_v61 = vld [vmem:[#allocation2 + $0xb18] sm:$0xff]  ;;  %v1000_v63 = vpack.c.bf16 %v427_v60, %v424_v59  ;;  %v1024_v59 = vpack.c.bf16 %v475_v54, %v472_v53  ;;  %v508_v54 = vld [vmem:[#allocation2 + $0xd80] sm:$0xff] }
 0x206   :  { %v1004_v0 = vpack.c.bf16 %v434_v62, %v431_v61  ;;  %v1028_v61 = vpack.c.bf16 %v482_v56, %v479_v55  ;;  %v511_v55 = vld [vmem:[#allocation2 + $0xd98] sm:$0xff] }
 0x207   :  { %v515_v56 = vld [vmem:[#allocation2 + $0xdb8] sm:$0xff] }
 0x20c   :  { %1817 = vmatmul.mubr.bf16.gmra.mrb[192].mxu0 %v970_v3  ;;  %v433_v3 = vld [vmem:[#allocation2 + $0xb28] sm:$0xff] }
 0x20d   :  { %1824 = vmatprep.mubr.bf16.mxu0 %v974_v4  ;;  %v437_v4 = vld [vmem:[#allocation2 + $0xb48] sm:$0xff]  ;;  %v1003_v6 = vpack.c.bf16 %v433_v3, %v430_v2  ;;  %v488_v3 = vld [vmem:[#allocation2 + $0xce0] sm:$0xff] }
 0x20e   :  { %v1007_v7 = vpack.c.bf16 %v440_v5, %v437_v4  ;;  %v485_v2 = vld [vmem:[#allocation2 + $0xcc8] sm:$0xff] }
 0x214   :  { %1825 = vmatmul.mubr.bf16.gmra.mrb[196].mxu0 %v973_v9  ;;  %v439_v9 = vld [vmem:[#allocation2 + $0xb58] sm:$0xff] }
 0x215   :  { %1832 = vmatprep.mubr.bf16.mxu0 %v977_v10  ;;  %v443_v10 = vld [vmem:[#allocation2 + $0xb78] sm:$0xff]  ;;  %v1006_v12 = vpack.c.bf16 %v439_v9, %v436_v8  ;;  %v1031_v8 = vpack.c.bf16 %v488_v3, %v485_v2  ;;  %v514_v3 = vld [vmem:[#allocation2 + $0xdb0] sm:$0xff] }
 0x216   :  { %v1010_v13 = vpack.c.bf16 %v446_v11, %v443_v10  ;;  %v484_v10 = vld [vmem:[#allocation2 + $0xcc0] sm:$0xff]  ;;  %v487_v11 = vld [vmem:[#allocation2 + $0xcd8] sm:$0xff] }
 0x21c   :  { %1833 = vmatmul.mubr.bf16.gmra.mrb[200].mxu0 %v976_v15  ;;  %v445_v15 = vld [vmem:[#allocation2 + $0xb88] sm:$0xff] }
 0x21d   :  { %1840 = vmatprep.mubr.bf16.mxu0 %v980_v16  ;;  %v449_v16 = vld [vmem:[#allocation2 + $0xba8] sm:$0xff]  ;;  %v1009_v18 = vpack.c.bf16 %v445_v15, %v442_v14 }
 0x21e   :  { %v1013_v19 = vpack.c.bf16 %v452_v17, %v449_v16  ;;  %v1030_v16 = vpack.c.bf16 %v487_v11, %v484_v10 }
 0x224   :  { %1841 = vmatmul.mubr.bf16.gmra.mrb[204].mxu0 %v979_v21  ;;  %v451_v21 = vld [vmem:[#allocation2 + $0xbb8] sm:$0xff] }
 0x225   :  { %1848 = vmatprep.mubr.bf16.mxu0 %v983_v22  ;;  %v455_v22 = vld [vmem:[#allocation2 + $0xbd8] sm:$0xff]  ;;  %v1012_v24 = vpack.c.bf16 %v451_v21, %v448_v20  ;;  %v490_v20 = vld [vmem:[#allocation2 + $0xcf0] sm:$0xff]  ;;  %v493_v21 = vld [vmem:[#allocation2 + $0xd08] sm:$0xff] }
 0x226   :  { %v1016_v25 = vpack.c.bf16 %v458_v23, %v455_v22  ;;  %v497_v22 = vld [vmem:[#allocation2 + $0xd28] sm:$0xff]  ;;  %v500_v23 = vld [vmem:[#allocation2 + $0xd40] sm:$0xff]  ;;  %v1033_v26 = vpack.c.bf16 %v493_v21, %v490_v20  ;;  %v530_v20 = vld [vmem:[#allocation2 + $0xe30] sm:$0xff] }
 0x22c   :  { %1849 = vmatmul.mubr.bf16.gmra.mrb[208].mxu0 %v982_v27  ;;  %v454_v27 = vld [vmem:[#allocation2 + $0xbd0] sm:$0xff] }
 0x22d   :  { %1856 = vmatprep.mubr.bf16.mxu0 %v986_v28  ;;  %v457_v28 = vld [vmem:[#allocation2 + $0xbe8] sm:$0xff] }
 0x22e   :  { %v1015_v31 = vpack.c.bf16 %v457_v28, %v454_v27  ;;  %v1037_v28 = vpack.c.bf16 %v500_v23, %v497_v22 }
 0x234   :  { %1857 = vmatmul.mubr.bf16.gmra.mrb[212].mxu0 %v985_v33  ;;  %v460_v33 = vld [vmem:[#allocation2 + $0xc00] sm:$0xff] }
 0x235   :  { %1864 = vmatprep.mubr.bf16.mxu0 %v989_v34  ;;  %v463_v34 = vld [vmem:[#allocation2 + $0xc18] sm:$0xff] }
 0x23c   :  { %1865 = vmatmul.mubr.bf16.gmra.mrb[216].mxu0 %v988_v39  ;;  %v1018_v39 = vpack.c.bf16 %v463_v34, %v460_v33  ;;  %v506_v33 = vld [vmem:[#allocation2 + $0xd70] sm:$0xff] }
 0x23d   :  { %1872 = vmatprep.mubr.bf16.mxu0 %v992_v40 }
 0x244   :  { %1873 = vmatmul.mubr.bf16.gmra.mrb[220].mxu0 %v991_v45  ;;  %v473_v45 = vld [vmem:[#allocation2 + $0xc68] sm:$0xff] }
 0x245   :  { %1880 = vmatprep.mubr.bf16.mxu0 %v995_v46  ;;  %v476_v46 = vld [vmem:[#allocation2 + $0xc80] sm:$0xff] }
 0x24c   :  { %1881 = vmatmul.mubr.bf16.gmra.mrb[224].mxu0 %v994_v51  ;;  %v1025_v51 = vpack.c.bf16 %v476_v46, %v473_v45  ;;  %v512_v45 = vld [vmem:[#allocation2 + $0xda0] sm:$0xff] }
 0x24d   :  { %1888 = vmatprep.mubr.bf16.mxu0 %v998_v52 }
 0x254   :  { %1889 = vmatmul.mubr.bf16.gmra.mrb[228].mxu0 %v997_v57 }
 0x255   :  { %1896 = vmatprep.mubr.bf16.mxu0 %v1001_v58 }
 0x25c   :  { %1897 = vmatmul.mubr.bf16.gmra.mrb[232].mxu0 %v1000_v63  ;;  %v478_v63 = vld [vmem:[#allocation2 + $0xc90] sm:$0xff] }
 0x25d   :  { %1904 = vmatprep.mubr.bf16.mxu0 %v1004_v0  ;;  %v481_v0 = vld [vmem:[#allocation2 + $0xca8] sm:$0xff] }
 0x264   :  { %1905 = vmatmul.mubr.bf16.gmra.mrb[236].mxu0 %v1003_v6  ;;  %v1027_v6 = vpack.c.bf16 %v481_v0, %v478_v63 }
 0x265   :  { %1912 = vmatprep.mubr.bf16.mxu0 %v1007_v7 }
 0x26c   :  { %1913 = vmatmul.mubr.bf16.gmra.mrb[240].mxu0 %v1006_v12  ;;  %v491_v12 = vld [vmem:[#allocation2 + $0xcf8] sm:$0xff] }
 0x26d   :  { %1920 = vmatprep.mubr.bf16.mxu0 %v1010_v13  ;;  %v494_v13 = vld [vmem:[#allocation2 + $0xd10] sm:$0xff] }
 0x274   :  { %1921 = vmatmul.mubr.bf16.gmra.mrb[244].mxu0 %v1009_v18  ;;  %v1034_v18 = vpack.c.bf16 %v494_v13, %v491_v12 }
 0x275   :  { %1928 = vmatprep.mubr.bf16.mxu0 %v1013_v19 }
 0x27c   :  { %1929 = vmatmul.mubr.bf16.gmra.mrb[248].mxu0 %v1012_v24 }
 0x27d   :  { %1936 = vmatprep.mubr.bf16.mxu0 %v1016_v25 }
 0x284   :  { %1937 = vmatmul.mubr.bf16.gmra.mrb[252].mxu0 %v1015_v31  ;;  %v499_v31 = vld [vmem:[#allocation2 + $0xd38] sm:$0xff] }
 0x285   :  { %1944 = vmatprep.mubr.bf16.mxu0 %v1019_v32  ;;  %v503_v32 = vld [vmem:[#allocation2 + $0xd58] sm:$0xff]  ;;  %v1036_v36 = vpack.c.bf16 %v499_v31, %v496_v30  ;;  %v529_v30 = vld [vmem:[#allocation2 + $0xe28] sm:$0xff] }
 0x286   :  { %v533_v31 = vld [vmem:[#allocation2 + $0xe48] sm:$0xff] }
 0x287   :  { %v10068_v37 = vpop.f32.mrb[148].mxu0 }
 0x288   :  { %v1732_v38 = vpop.f32.mrb[149].mxu0 }
 0x289   :  { %v10070_v40 = vpop.f32.mrb[150].mxu0 }
 0x28a   :  { %v1735_v42 = vpop.f32.mrb[151].mxu0 }
 0x28b   :  { %v502_v42 = vld [vmem:[#allocation2 + $0xd50] sm:$0xff] }
 0x28c   :  { %1945 = vmatmul.mubr.bf16.gmra.mrb[148].mxu0 %v1018_v39  ;;  %v1040_v39 = vpack.c.bf16 %v506_v33, %v503_v32  ;;  %v536_v32 = vld [vmem:[#allocation2 + $0xe60] sm:$0xff] }
 0x28d   :  { %1952 = vmatprep.mubr.bf16.mxu0 %v1022_v41 }
 0x28f   :  { %v10072_v47 = vpop.f32.mrb[152].mxu0 }
 0x290   :  { %v1740_v48 = vpop.f32.mrb[153].mxu0 }
 0x291   :  { %v10074_v50 = vpop.f32.mrb[154].mxu0 }
 0x292   :  { %v1743_v52 = vpop.f32.mrb[155].mxu0 }
 0x293   :  { %v1043_v52 = vpack.c.bf16 %v512_v45, %v509_v44  ;;  %v535_v44 = vld [vmem:[#allocation2 + $0xe58] sm:$0xff] }
 0x294   :  { %1953 = vmatmul.mubr.bf16.gmra.mrb[152].mxu0 %v1021_v49  ;;  %v1039_v49 = vpack.c.bf16 %v505_v43, %v502_v42  ;;  %v532_v43 = vld [vmem:[#allocation2 + $0xe40] sm:$0xff]  ;;  %v539_v45 = vld [vmem:[#allocation2 + $0xe78] sm:$0xff] }
 0x295   :  { %1960 = vmatprep.mubr.bf16.mxu0 %v1025_v51 }
 0x297   :  { %v10076_v57 = vpop.f32.mrb[156].mxu0 }
 0x298   :  { %v1748_v58 = vpop.f32.mrb[157].mxu0 }
 0x299   :  { %v10078_v60 = vpop.f32.mrb[158].mxu0  ;;  %v518_v58 = vld [vmem:[#allocation2 + $0xdd0] sm:$0xff] }
 0x29a   :  { %v1751_v62 = vpop.f32.mrb[159].mxu0  ;;  %v1046_v0 = vpack.c.bf16 %v518_v58, %v515_v56  ;;  %v538_v58 = vld [vmem:[#allocation2 + $0xe70] sm:$0xff] }
 0x29b   :  { %v1042_v62 = vpack.c.bf16 %v511_v55, %v508_v54 }
 0x29c   :  { %1961 = vmatmul.mubr.bf16.gmra.mrb[156].mxu0 %v1024_v59 }
 0x29d   :  { %1968 = vmatprep.mubr.bf16.mxu0 %v1028_v61 }
 0x29f   :  { %v10080_v4 = vpop.f32.mrb[160].mxu0 }
 0x2a0   :  { %v1756_v5 = vpop.f32.mrb[161].mxu0 }
 0x2a1   :  { %v10082_v7 = vpop.f32.mrb[162].mxu0  ;;  %v517_v5 = vld [vmem:[#allocation2 + $0xdc8] sm:$0xff] }
 0x2a2   :  { %v1759_v9 = vpop.f32.mrb[163].mxu0  ;;  %v1045_v11 = vpack.c.bf16 %v517_v5, %v514_v3 }
 0x2a4   :  { %1969 = vmatmul.mubr.bf16.gmra.mrb[160].mxu0 %v1027_v6  ;;  %v521_v6 = vld [vmem:[#allocation2 + $0xde8] sm:$0xff] }
 0x2a5   :  { %1976 = vmatprep.mubr.bf16.mxu0 %v1031_v8  ;;  %v524_v8 = vld [vmem:[#allocation2 + $0xe00] sm:$0xff] }
 0x2a6   :  { %v1049_v13 = vpack.c.bf16 %v524_v8, %v521_v6 }
 0x2a7   :  { %v10084_v14 = vpop.f32.mrb[164].mxu0 }
 0x2a8   :  { %v1764_v15 = vpop.f32.mrb[165].mxu0 }
 0x2a9   :  { %v10086_v17 = vpop.f32.mrb[166].mxu0 }
 0x2aa   :  { %v1767_v19 = vpop.f32.mrb[167].mxu0 }
 0x2ab   :  { %v527_v19 = vld [vmem:[#allocation2 + $0xe18] sm:$0xff] }
 0x2ac   :  { %1977 = vmatmul.mubr.bf16.gmra.mrb[164].mxu0 %v1030_v16  ;;  %v520_v16 = vld [vmem:[#allocation2 + $0xde0] sm:$0xff] }
 0x2ad   :  { %1984 = vmatprep.mubr.bf16.mxu0 %v1034_v18  ;;  %v523_v18 = vld [vmem:[#allocation2 + $0xdf8] sm:$0xff] }
 0x2ae   :  { %v1048_v23 = vpack.c.bf16 %v523_v18, %v520_v16  ;;  %v554_v16 = vld [vmem:[#allocation2 + $0xef0] sm:$0xff] }
 0x2af   :  { %v10088_v24 = vpop.f32.mrb[168].mxu0 }
 0x2b0   :  { %v1772_v25 = vpop.f32.mrb[169].mxu0 }
 0x2b1   :  { %v10090_v27 = vpop.f32.mrb[170].mxu0 }
 0x2b2   :  { %v1775_v29 = vpop.f32.mrb[171].mxu0 }
 0x2b3   :  { %v526_v29 = vld [vmem:[#allocation2 + $0xe10] sm:$0xff] }
 0x2b4   :  { %1985 = vmatmul.mubr.bf16.gmra.mrb[168].mxu0 %v1033_v26  ;;  %v1052_v26 = vpack.c.bf16 %v530_v20, %v527_v19 }
 0x2b5   :  { %1992 = vmatprep.mubr.bf16.mxu0 %v1037_v28 }
 0x2b7   :  { %v10092_v34 = vpop.f32.mrb[172].mxu0 }
 0x2b8   :  { %v1780_v35 = vpop.f32.mrb[173].mxu0 }
 0x2b9   :  { %v10094_v38 = vpop.f32.mrb[174].mxu0 }
 0x2ba   :  { %v1783_v41 = vpop.f32.mrb[175].mxu0 }
 0x2bb   :  { %v1055_v41 = vpack.c.bf16 %v536_v32, %v533_v31  ;;  %v557_v31 = vld [vmem:[#allocation2 + $0xf08] sm:$0xff]  ;;  %v560_v32 = vld [vmem:[#allocation2 + $0xf20] sm:$0xff] }
 0x2bc   :  { %1993 = vmatmul.mubr.bf16.gmra.mrb[172].mxu0 %v1036_v36  ;;  %v1051_v36 = vpack.c.bf16 %v529_v30, %v526_v29  ;;  %v550_v29 = vld [vmem:[#allocation2 + $0xed0] sm:$0xff]  ;;  %v553_v30 = vld [vmem:[#allocation2 + $0xee8] sm:$0xff] }
 0x2bd   :  { %2000 = vmatprep.mubr.bf16.mxu0 %v1040_v39 }
 0x2bf   :  { %v10096_v46 = vpop.f32.mrb[176].mxu0 }
 0x2c0   :  { %v1788_v48 = vpop.f32.mrb[177].mxu0 }
 0x2c1   :  { %v10098_v51 = vpop.f32.mrb[178].mxu0  ;;  %v542_v48 = vld [vmem:[#allocation2 + $0xe90] sm:$0xff] }
 0x2c2   :  { %v1791_v53 = vpop.f32.mrb[179].mxu0  ;;  %v1058_v55 = vpack.c.bf16 %v542_v48, %v539_v45  ;;  %v556_v45 = vld [vmem:[#allocation2 + $0xf00] sm:$0xff]  ;;  %v559_v48 = vld [vmem:[#allocation2 + $0xf18] sm:$0xff] }
 0x2c3   :  { %v1054_v53 = vpack.c.bf16 %v535_v44, %v532_v43  ;;  %v1067_v43 = vpack.c.bf16 %v560_v32, %v557_v31 }
 0x2c4   :  { %2001 = vmatmul.mubr.bf16.gmra.mrb[176].mxu0 %v1039_v49 }
 0x2c5   :  { %2008 = vmatprep.mubr.bf16.mxu0 %v1043_v52 }
 0x2c7   :  { %v10100_v59 = vpop.f32.mrb[180].mxu0 }
 0x2c8   :  { %v1796_v61 = vpop.f32.mrb[181].mxu0 }
 0x2c9   :  { %v10102_v63 = vpop.f32.mrb[182].mxu0  ;;  %v541_v61 = vld [vmem:[#allocation2 + $0xe88] sm:$0xff] }
 0x2ca   :  { %v1799_v2 = vpop.f32.mrb[183].mxu0  ;;  %v1057_v5 = vpack.c.bf16 %v541_v61, %v538_v58  ;;  %v1066_v58 = vpack.c.bf16 %v559_v48, %v556_v45  ;;  %v577_v45 = vld [vmem:[#allocation2 + $0xfa8] sm:$0xff] }
 0x2cb   :  { %v581_v48 = vld [vmem:[#allocation2 + $0xfc8] sm:$0xff] }
 0x2cc   :  { %2009 = vmatmul.mubr.bf16.gmra.mrb[180].mxu0 %v1042_v62  ;;  %v545_v62 = vld [vmem:[#allocation2 + $0xea8] sm:$0xff] }
 0x2cd   :  { %2016 = vmatprep.mubr.bf16.mxu0 %v1046_v0  ;;  %v548_v0 = vld [vmem:[#allocation2 + $0xec0] sm:$0xff] }
 0x2ce   :  { %v1061_v8 = vpack.c.bf16 %v548_v0, %v545_v62 }
 0x2cf   :  { %v10104_v9 = vpop.f32.mrb[184].mxu0 }
 0x2d0   :  { %v1804_v10 = vpop.f32.mrb[185].mxu0 }
 0x2d1   :  { %v10106_v12 = vpop.f32.mrb[186].mxu0 }
 0x2d2   :  { %v1807_v15 = vpop.f32.mrb[187].mxu0 }
 0x2d3   :  { %v551_v15 = vld [vmem:[#allocation2 + $0xed8] sm:$0xff] }
 0x2d4   :  { %2017 = vmatmul.mubr.bf16.gmra.mrb[184].mxu0 %v1045_v11  ;;  %v544_v11 = vld [vmem:[#allocation2 + $0xea0] sm:$0xff] }
 0x2d5   :  { %2024 = vmatprep.mubr.bf16.mxu0 %v1049_v13  ;;  %v547_v13 = vld [vmem:[#allocation2 + $0xeb8] sm:$0xff] }
 0x2d6   :  { %v1060_v20 = vpack.c.bf16 %v547_v13, %v544_v11 }
 0x2d7   :  { %v10108_v21 = vpop.f32.mrb[188].mxu0 }
 0x2d8   :  { %v1812_v22 = vpop.f32.mrb[189].mxu0 }
 0x2d9   :  { %v10110_v25 = vpop.f32.mrb[190].mxu0 }
 0x2da   :  { %v1815_v28 = vpop.f32.mrb[191].mxu0 }
 0x2db   :  { %v9773_v28 = vld [vmem:[%s14386_s1 + $0xb0] sm:$0xff]  }
 0x2dc   :  { %2025 = vmatmul.mubr.bf16.gmra.mrb[188].mxu0 %v1048_v23  ;;  %v1064_v23 = vpack.c.bf16 %v554_v16, %v551_v15 }
 0x2dd   :  { %2032 = vmatprep.mubr.bf16.mxu0 %v1052_v26  ;;  %7589 = vmatpush3.bf16.msra.mxu0 %v9773_v28  ;;  %v575_v28 = vld [vmem:[#allocation2 + $0xf98] sm:$0xff] }
 0x2de   :  { %7590 = vmatprep.subr.bf16.mxu0 %v14393_v1 }
 0x2df   :  { %v10112_v33 = vpop.f32.mrb[192].mxu0 }
 0x2e0   :  { %v1820_v35 = vpop.f32.mrb[193].mxu0 }
 0x2e1   :  { %v10114_v39 = vpop.f32.mrb[194].mxu0 }
 0x2e2   :  { %v1823_v42 = vpop.f32.mrb[195].mxu0 }
 0x2e4   :  { %2033 = vmatmul.mubr.bf16.gmra.mrb[192].mxu0 %v1051_v36 }
 0x2e5   :  { %2040 = vmatprep.mubr.bf16.mxu0 %v1055_v41  ;;  %v1063_v41 = vpack.c.bf16 %v553_v30, %v550_v29  ;;  %v578_v29 = vld [vmem:[#allocation2 + $0xfb0] sm:$0xff] }
 0x2e7   :  { %v10116_v49 = vpop.f32.mrb[196].mxu0 }
 0x2e8   :  { %v1828_v52 = vpop.f32.mrb[197].mxu0 }
 0x2e9   :  { %v10118_v54 = vpop.f32.mrb[198].mxu0  ;;  %v563_v52 = vld [vmem:[#allocation2 + $0xf38] sm:$0xff] }
 0x2ea   :  { %v1831_v56 = vpop.f32.mrb[199].mxu0 }
 0x2ec   :  { %2041 = vmatmul.mubr.bf16.gmra.mrb[196].mxu0 %v1054_v53  ;;  %v566_v53 = vld [vmem:[#allocation2 + $0xf50] sm:$0xff] }
 0x2ed   :  { %2048 = vmatprep.mubr.bf16.mxu0 %v1058_v55  ;;  %v1070_v62 = vpack.c.bf16 %v566_v53, %v563_v52  ;;  %v584_v52 = vld [vmem:[#allocation2 + $0xfe0] sm:$0xff] }
 0x2ef   :  { %v10120_v2 = vpop.f32.mrb[200].mxu0 }
 0x2f0   :  { %v1836_v3 = vpop.f32.mrb[201].mxu0 }
 0x2f1   :  { %v10122_v6 = vpop.f32.mrb[202].mxu0  ;;  %v562_v3 = vld [vmem:[#allocation2 + $0xf30] sm:$0xff] }
 0x2f2   :  { %v1839_v10 = vpop.f32.mrb[203].mxu0 }
 0x2f3   :  { %v572_v10 = vld [vmem:[#allocation2 + $0xf80] sm:$0xff] }
 0x2f4   :  { %2049 = vmatmul.mubr.bf16.gmra.mrb[200].mxu0 %v1057_v5  ;;  %v565_v5 = vld [vmem:[#allocation2 + $0xf48] sm:$0xff] }
 0x2f5   :  { %2056 = vmatprep.mubr.bf16.mxu0 %v1061_v8  ;;  %v569_v8 = vld [vmem:[#allocation2 + $0xf68] sm:$0xff]  ;;  %v1069_v15 = vpack.c.bf16 %v565_v5, %v562_v3  ;;  %v580_v5 = vld [vmem:[#allocation2 + $0xfc0] sm:$0xff] }
 0x2f7   :  { %v10124_v18 = vpop.f32.mrb[204].mxu0 }
 0x2f8   :  { %v1844_v19 = vpop.f32.mrb[205].mxu0 }
 0x2f9   :  { %v10126_v22 = vpop.f32.mrb[206].mxu0  ;;  %v1073_v19 = vpack.c.bf16 %v572_v10, %v569_v8  ;;  %v583_v8 = vld [vmem:[#allocation2 + $0xfd8] sm:$0xff] }
 0x2fa   :  { %v1847_v26 = vpop.f32.mrb[207].mxu0  ;;  %v587_v10 = vld [vmem:[#allocation2 + $0xff8] sm:$0xff] }
 0x2fb   :  { %v571_v26 = vld [vmem:[#allocation2 + $0xf78] sm:$0xff] }
 0x2fc   :  { %2057 = vmatmul.mubr.bf16.gmra.mrb[204].mxu0 %v1060_v20 }
 0x2fd   :  { %2064 = vmatprep.mubr.bf16.mxu0 %v1064_v23  ;;  %v568_v23 = vld [vmem:[#allocation2 + $0xf60] sm:$0xff] }
 0x2fe   :  { %v1072_v32 = vpack.c.bf16 %v571_v26, %v568_v23 }
 0x2ff   :  { %v10132_v35 = vpop.f32.mrb[208].mxu0 }
 0x300   :  { %v1852_v36 = vpop.f32.mrb[209].mxu0 }
 0x301   :  { %v10134_v42 = vpop.f32.mrb[210].mxu0 }
 0x302   :  { %v1855_v44 = vpop.f32.mrb[211].mxu0 }
 0x303   :  { %v574_v44 = vld [vmem:[#allocation2 + $0xf90] sm:$0xff] }
 0x304   :  { %2065 = vmatmul.mubr.bf16.gmra.mrb[208].mxu0 %v1063_v41  ;;  %v1076_v41 = vpack.c.bf16 %v578_v29, %v575_v28  ;;  %v586_v29 = vld [vmem:[#allocation2 + $0xff0] sm:$0xff] }
 0x305   :  { %2072 = vmatprep.mubr.bf16.mxu0 %v1067_v43 }
 0x307   :  { %v10136_v55 = vpop.f32.mrb[212].mxu0 }
 0x308   :  { %v1860_v56 = vpop.f32.mrb[213].mxu0 }
 0x309   :  { %v10138_v61 = vpop.f32.mrb[214].mxu0 }
 0x30a   :  { %v1863_v0 = vpop.f32.mrb[215].mxu0 }
 0x30b   :  { %v1079_v0 = vpack.c.bf16 %v584_v52, %v581_v48 }
 0x30c   :  { %2073 = vmatmul.mubr.bf16.gmra.mrb[212].mxu0 %v1066_v58  ;;  %v1075_v58 = vpack.c.bf16 %v577_v45, %v574_v44 }
 0x30d   :  { %2080 = vmatprep.mubr.bf16.mxu0 %v1070_v62 }
 0x30f   :  { %v10140_v11 = vpop.f32.mrb[216].mxu0 }
 0x310   :  { %v1868_v13 = vpop.f32.mrb[217].mxu0 }
 0x311   :  { %v10142_v16 = vpop.f32.mrb[218].mxu0  ;;  %v590_v13 = vld [vmem:[#allocation2 + $0x1010] sm:$0xff] }
 0x312   :  { %v1871_v20 = vpop.f32.mrb[219].mxu0  ;;  %v1082_v26 = vpack.c.bf16 %v590_v13, %v587_v10 }
 0x313   :  { %v1078_v20 = vpack.c.bf16 %v583_v8, %v580_v5  ;;  %v602_v5 = vld [vmem:[#allocation2 + $0x1070] sm:$0xff] }
 0x314   :  { %2081 = vmatmul.mubr.bf16.gmra.mrb[216].mxu0 %v1069_v15 }
 0x315   :  { %2088 = vmatprep.mubr.bf16.mxu0 %v1073_v19 }
 0x317   :  { %v10144_v30 = vpop.f32.mrb[220].mxu0 }
 0x318   :  { %v1876_v31 = vpop.f32.mrb[221].mxu0 }
 0x319   :  { %v10146_v36 = vpop.f32.mrb[222].mxu0  ;;  %v589_v31 = vld [vmem:[#allocation2 + $0x1008] sm:$0xff] }
 0x31a   :  { %v1879_v43 = vpop.f32.mrb[223].mxu0  ;;  %v1081_v45 = vpack.c.bf16 %v589_v31, %v586_v29  ;;  %v601_v29 = vld [vmem:[#allocation2 + $0x1068] sm:$0xff] }
 0x31b   :  { %v605_v31 = vld [vmem:[#allocation2 + $0x1088] sm:$0xff] }
 0x31c   :  { %2089 = vmatmul.mubr.bf16.gmra.mrb[220].mxu0 %v1072_v32  ;;  %v593_v32 = vld [vmem:[#allocation2 + $0x1028] sm:$0xff] }
 0x31d   :  { %2096 = vmatprep.mubr.bf16.mxu0 %v1076_v41  ;;  %v596_v41 = vld [vmem:[#allocation2 + $0x1040] sm:$0xff] }
 0x31e   :  { %v1085_v52 = vpack.c.bf16 %v596_v41, %v593_v32  ;;  %v608_v32 = vld [vmem:[#allocation2 + $0x10a0] sm:$0xff] }
 0x31f   :  { %v10148_v53 = vpop.f32.mrb[224].mxu0 }
 0x320   :  { %v1884_v56 = vpop.f32.mrb[225].mxu0 }
 0x321   :  { %v10150_v62 = vpop.f32.mrb[226].mxu0 }
 0x322   :  { %v1887_v3 = vpop.f32.mrb[227].mxu0 }
 0x323   :  { %v599_v3 = vld [vmem:[#allocation2 + $0x1058] sm:$0xff] }
 0x324   :  { %2097 = vmatmul.mubr.bf16.gmra.mrb[224].mxu0 %v1075_v58  ;;  %v592_v58 = vld [vmem:[#allocation2 + $0x1020] sm:$0xff] }
 0x325   :  { %2104 = vmatprep.mubr.bf16.mxu0 %v1079_v0  ;;  %v595_v0 = vld [vmem:[#allocation2 + $0x1038] sm:$0xff] }
 0x326   :  { %v1084_v13 = vpack.c.bf16 %v595_v0, %v592_v58  ;;  %v604_v58 = vld [vmem:[#allocation2 + $0x1080] sm:$0xff]  ;;  %v607_v0 = vld [vmem:[#allocation2 + $0x1098] sm:$0xff] }
 0x327   :  { %v10152_v15 = vpop.f32.mrb[228].mxu0 }
 0x328   :  { %v1892_v19 = vpop.f32.mrb[229].mxu0 }
 0x329   :  { %v10154_v23 = vpop.f32.mrb[230].mxu0 }
 0x32a   :  { %v1895_v28 = vpop.f32.mrb[231].mxu0 }
 0x32b   :  { %v598_v28 = vld [vmem:[#allocation2 + $0x1050] sm:$0xff] }
 0x32c   :  { %2105 = vmatmul.mubr.bf16.gmra.mrb[228].mxu0 %v1078_v20  ;;  %v1088_v20 = vpack.c.bf16 %v602_v5, %v599_v3  ;;  %v611_v3 = vld [vmem:[#allocation2 + $0x10b8] sm:$0xff]  ;;  %v614_v5 = vld [vmem:[#allocation2 + $0x10d0] sm:$0xff] }
 0x32d   :  { %2112 = vmatprep.mubr.bf16.mxu0 %v1082_v26 }
 0x32f   :  { %v10156_v43 = vpop.f32.mrb[232].mxu0 }
 0x330   :  { %v1900_v44 = vpop.f32.mrb[233].mxu0 }
 0x331   :  { %v10158_v48 = vpop.f32.mrb[234].mxu0 }
 0x332   :  { %14558 = vst [vmem:[#allocation12_spill] sm:$0xff] %v10158_v48  ;;  %v1903_v56 = vpop.f32.mrb[235].mxu0 }
 0x333   :  { %v1091_v56 = vpack.c.bf16 %v608_v32, %v605_v31  ;;  %v617_v31 = vld [vmem:[#allocation2 + $0x10e8] sm:$0xff] }
 0x334   :  { %2113 = vmatmul.mubr.bf16.gmra.mrb[232].mxu0 %v1081_v45  ;;  %v1087_v45 = vpack.c.bf16 %v601_v29, %v598_v28  ;;  %v610_v28 = vld [vmem:[#allocation2 + $0x10b0] sm:$0xff]  ;;  %v613_v29 = vld [vmem:[#allocation2 + $0x10c8] sm:$0xff] }
 0x335   :  { %2120 = vmatprep.mubr.bf16.mxu0 %v1085_v52 }
 0x337   :  { %v10160_v8 = vpop.f32.mrb[236].mxu0 }
 0x338   :  { %14559 = vst [vmem:[#allocation13_spill] sm:$0xff] %v10160_v8  ;;  %v1908_v10 = vpop.f32.mrb[237].mxu0 }
 0x339   :  { %v10162_v19 = vpop.f32.mrb[238].mxu0 }
 0x33a   :  { %14560 = vst [vmem:[#allocation14_spill] sm:$0xff] %v10162_v19  ;;  %v1911_v26 = vpop.f32.mrb[239].mxu0  ;;  %v1094_v19 = vpack.c.bf16 %v614_v5, %v611_v3  ;;  %v623_v3 = vld [vmem:[#allocation2 + $0x1118] sm:$0xff] }
 0x33c   :  { %2121 = vmatmul.mubr.bf16.gmra.mrb[236].mxu0 %v1084_v13 }
 0x33d   :  { %2128 = vmatprep.mubr.bf16.mxu0 %v1088_v20  ;;  %v1090_v20 = vpack.c.bf16 %v607_v0, %v604_v58  ;;  %v616_v58 = vld [vmem:[#allocation2 + $0x10e0] sm:$0xff]  ;;  %v619_v0 = vld [vmem:[#allocation2 + $0x10f8] sm:$0xff] }
 0x33f   :  { %v10164_v41 = vpop.f32.mrb[240].mxu0 }
 0x340   :  { %14561 = vst [vmem:[#allocation15_spill] sm:$0xff] %v10164_v41  ;;  %v1916_v44 = vpop.f32.mrb[241].mxu0 }
 0x341   :  { %v10166_v52 = vpop.f32.mrb[242].mxu0 }
 0x342   :  { %14562 = vst [vmem:[#allocation16_spill] sm:$0xff] %v10166_v52  ;;  %v1919_v1 = vpop.f32.mrb[243].mxu0 }
 0x343   :  { %v620_v1 = vld [vmem:[#allocation2 + $0x1100] sm:$0xff] }
 0x344   :  { %2129 = vmatmul.mubr.bf16.gmra.mrb[240].mxu0 %v1087_v45  ;;  %v1093_v45 = vpack.c.bf16 %v613_v29, %v610_v28  ;;  %v1097_v52 = vpack.c.bf16 %v620_v1, %v617_v31  ;;  %v622_v28 = vld [vmem:[#allocation2 + $0x1110] sm:$0xff]  ;;  %v625_v29 = vld [vmem:[#allocation2 + $0x1128] sm:$0xff] }
 0x345   :  { %2136 = vmatprep.mubr.bf16.mxu0 %v1091_v56  ;;  %v629_v31 = vld [vmem:[#allocation2 + $0x1148] sm:$0xff] }
 0x347   :  { %v10168_v10 = vpop.f32.mrb[244].mxu0 }
 0x348   :  { %14563 = vst [vmem:[#allocation17_spill] sm:$0xff] %v10168_v10  ;;  %v1924_v13 = vpop.f32.mrb[245].mxu0 }
 0x349   :  { %v10170_v26 = vpop.f32.mrb[246].mxu0  ;;  %v1096_v13 = vpack.c.bf16 %v619_v0, %v616_v58  ;;  %v628_v58 = vld [vmem:[#allocation2 + $0x1140] sm:$0xff]  ;;  %v631_v0 = vld [vmem:[#allocation2 + $0x1158] sm:$0xff] }
 0x34a   :  { %14564 = vst [vmem:[#allocation18_spill] sm:$0xff] %v10170_v26  ;;  %v1927_v41 = vpop.f32.mrb[247].mxu0 }
 0x34b   :  { %v626_v41 = vld [vmem:[#allocation2 + $0x1130] sm:$0xff] }
 0x34c   :  { %2137 = vmatmul.mubr.bf16.gmra.mrb[244].mxu0 %v1090_v20  ;;  %v1100_v26 = vpack.c.bf16 %v626_v41, %v623_v3  ;;  %v635_v3 = vld [vmem:[#allocation2 + $0x1178] sm:$0xff] }
 0x34d   :  { %2144 = vmatprep.mubr.bf16.mxu0 %v1094_v19 }
 0x34f   :  { %v10172_v32 = vpop.f32.mrb[248].mxu0 }
 0x350   :  { %14565 = vst [vmem:[#allocation19_spill] sm:$0xff] %v10172_v32  ;;  %v1932_v44 = vpop.f32.mrb[249].mxu0 }
 0x351   :  { %v10174_v56 = vpop.f32.mrb[250].mxu0  ;;  %v1099_v44 = vpack.c.bf16 %v625_v29, %v622_v28  ;;  %v634_v28 = vld [vmem:[#allocation2 + $0x1170] sm:$0xff]  ;;  %v637_v29 = vld [vmem:[#allocation2 + $0x1188] sm:$0xff] }
 0x352   :  { %14566 = vst [vmem:[#allocation20_spill] sm:$0xff] %v10174_v56  ;;  %v1935_v10 = vpop.f32.mrb[251].mxu0 }
 0x353   :  { %v632_v10 = vld [vmem:[#allocation2 + $0x1160] sm:$0xff] }
 0x354   :  { %2145 = vmatmul.mubr.bf16.gmra.mrb[248].mxu0 %v1093_v45  ;;  %v1103_v56 = vpack.c.bf16 %v632_v10, %v629_v31  ;;  %v641_v31 = vld [vmem:[#allocation2 + $0x11a8] sm:$0xff] }
 0x355   :  { %2152 = vmatprep.mubr.bf16.mxu0 %v1097_v52 }
 0x357   :  { %v10176_v5 = vpop.f32.mrb[252].mxu0 }
 0x358   :  { %14567 = vst [vmem:[#allocation21_spill] sm:$0xff] %v10176_v5  ;;  %v1940_v19 = vpop.f32.mrb[253].mxu0 }
 0x359   :  { %v10178_v20 = vpop.f32.mrb[254].mxu0  ;;  %v1102_v19 = vpack.c.bf16 %v631_v0, %v628_v58  ;;  %v640_v58 = vld [vmem:[#allocation2 + $0x11a0] sm:$0xff]  ;;  %v643_v0 = vld [vmem:[#allocation2 + $0x11b8] sm:$0xff] }
 0x35a   :  { %14568 = vst [vmem:[#allocation22_spill] sm:$0xff] %v10178_v20  ;;  %v1943_v32 = vpop.f32.mrb[255].mxu0 }
 0x35b   :  { %v638_v32 = vld [vmem:[#allocation2 + $0x1190] sm:$0xff] }
 0x35c   :  { %2153 = vmatmul.mubr.bf16.gmra.mrb[252].mxu0 %v1096_v13  ;;  %v1106_v20 = vpack.c.bf16 %v638_v32, %v635_v3  ;;  %v647_v3 = vld [vmem:[#allocation2 + $0x11d8] sm:$0xff] }
 0x35d   :  { %2160 = vmatprep.mubr.bf16.mxu0 %v1100_v26 }
 0x35f   :  { %v10180_v1 = vpop.f32.mrb[148].mxu0 }
 0x360   :  { %14569 = vst [vmem:[#allocation23_spill] sm:$0xff] %v10180_v1  ;;  %v1948_v52 = vpop.f32.mrb[149].mxu0 }
 0x361   :  { %v10182_v45 = vpop.f32.mrb[150].mxu0  ;;  %v1105_v52 = vpack.c.bf16 %v637_v29, %v634_v28 }
 0x362   :  { %14570 = vst [vmem:[#allocation24_spill] sm:$0xff] %v10182_v45  ;;  %v1951_v5 = vpop.f32.mrb[151].mxu0 }
 0x363   :  { %v644_v5 = vld [vmem:[#allocation2 + $0x11c0] sm:$0xff] }
 0x364   :  { %2161 = vmatmul.mubr.bf16.gmra.mrb[148].mxu0 %v1099_v44  ;;  %v1109_v45 = vpack.c.bf16 %v644_v5, %v641_v31  ;;  %v653_v31 = vld [vmem:[#allocation2 + $0x1208] sm:$0xff]  ;;  %v656_v5 = vld [vmem:[#allocation2 + $0x1220] sm:$0xff] }
 0x365   :  { %2168 = vmatprep.mubr.bf16.mxu0 %v1103_v56 }
 0x367   :  { %v10184_v41 = vpop.f32.mrb[152].mxu0 }
 0x368   :  { %14571 = vst [vmem:[#allocation25_spill] sm:$0xff] %v10184_v41  ;;  %v1956_v26 = vpop.f32.mrb[153].mxu0 }
 0x369   :  { %v10186_v13 = vpop.f32.mrb[154].mxu0  ;;  %v1108_v26 = vpack.c.bf16 %v643_v0, %v640_v58  ;;  %v1115_v0 = vpack.c.bf16 %v656_v5, %v653_v31 }
 0x36a   :  { %14572 = vst [vmem:[#allocation26_spill] sm:$0xff] %v10186_v13  ;;  %v1959_v1 = vpop.f32.mrb[155].mxu0 }
 0x36b   :  { %v650_v1 = vld [vmem:[#allocation2 + $0x11f0] sm:$0xff] }
 0x36c   :  { %2169 = vmatmul.mubr.bf16.gmra.mrb[152].mxu0 %v1102_v19  ;;  %v9774_v19 = vld [vmem:[%s14386_s1 + $0xb8] sm:$0xff]   ;;  %v1112_v28 = vpack.c.bf16 %v650_v1, %v647_v3 }
 0x36d   :  { %2176 = vmatprep.mubr.bf16.mxu0 %v1106_v20  ;;  %7591 = vmatpush3.bf16.msra.mxu0 %v9774_v19  ;;  %v655_v3 = vld [vmem:[#allocation2 + $0x1218] sm:$0xff]  ;;  %v662_v19 = vld [vmem:[#allocation2 + $0x1250] sm:$0xff] }
 0x36e   :  { %v659_v1 = vld [vmem:[#allocation2 + $0x1238] sm:$0xff] }
 0x36f   :  { %v10188_v10 = vpop.f32.mrb[156].mxu0  ;;  %v1118_v13 = vpack.c.bf16 %v662_v19, %v659_v1  ;;  %v671_v1 = vld [vmem:[#allocation2 + $0x1298] sm:$0xff] }
 0x370   :  { %14573 = vst [vmem:[#allocation27_spill] sm:$0xff] %v10188_v10  ;;  %v1964_v56 = vpop.f32.mrb[157].mxu0 }
 0x371   :  { %v10190_v44 = vpop.f32.mrb[158].mxu0 }
 0x372   :  { %14574 = vst [vmem:[#allocation28_spill] sm:$0xff] %v10190_v44  ;;  %v1967_v41 = vpop.f32.mrb[159].mxu0 }
 0x373   :  { %v649_v41 = vld [vmem:[#allocation2 + $0x11e8] sm:$0xff] }
 0x374   :  { %2177 = vmatmul.mubr.bf16.gmra.mrb[156].mxu0 %v1105_v52 }
 0x375   :  { %2184 = vmatprep.mubr.bf16.mxu0 %v1109_v45  ;;  %v646_v45 = vld [vmem:[#allocation2 + $0x11d0] sm:$0xff] }
 0x377   :  { %v10192_v32 = vpop.f32.mrb[160].mxu0 }
 0x378   :  { %14575 = vst [vmem:[#allocation29_spill] sm:$0xff] %v10192_v32  ;;  %v1972_v20 = vpop.f32.mrb[161].mxu0 }
 0x379   :  { %v10197_v56 = vpop.f32.mrb[162].mxu0  ;;  %v1111_v20 = vpack.c.bf16 %v649_v41, %v646_v45  ;;  %v661_v45 = vld [vmem:[#allocation2 + $0x1248] sm:$0xff] }
 0x37a   :  { %14576 = vst [vmem:[#allocation30_spill] sm:$0xff] %v10197_v56  ;;  %v1975_v29 = vpop.f32.mrb[163].mxu0  ;;  %v652_v56 = vld [vmem:[#allocation2 + $0x1200] sm:$0xff]  ;;  %v665_v41 = vld [vmem:[#allocation2 + $0x1268] sm:$0xff] }
 0x37b   :  { %v1114_v29 = vpack.c.bf16 %v655_v3, %v652_v56  ;;  %v664_v56 = vld [vmem:[#allocation2 + $0x1260] sm:$0xff]  ;;  %v667_v3 = vld [vmem:[#allocation2 + $0x1278] sm:$0xff] }
 0x37c   :  { %2185 = vmatmul.mubr.bf16.gmra.mrb[160].mxu0 %v1108_v26 }
 0x37d   :  { %2192 = vmatprep.mubr.bf16.mxu0 %v1112_v28 }
 0x37f   :  { %v10199_v52 = vpop.f32.mrb[164].mxu0 }
 0x380   :  { %14577 = vst [vmem:[#allocation31_spill] sm:$0xff] %v10199_v52  ;;  %v1980_v32 = vpop.f32.mrb[165].mxu0 }
 0x381   :  { %v10201_v58 = vpop.f32.mrb[166].mxu0  ;;  %v658_v32 = vld [vmem:[#allocation2 + $0x1230] sm:$0xff] }
 0x382   :  { %14578 = vst [vmem:[#allocation32_spill] sm:$0xff] %v10201_v58  ;;  %v1983_v44 = vpop.f32.mrb[167].mxu0 }
 0x383   :  { %v668_v44 = vld [vmem:[#allocation2 + $0x1280] sm:$0xff] }
 0x384   :  { %2193 = vmatmul.mubr.bf16.gmra.mrb[164].mxu0 %v1111_v20  ;;  %v1117_v20 = vpack.c.bf16 %v661_v45, %v658_v32  ;;  %v1121_v58 = vpack.c.bf16 %v668_v44, %v665_v41  ;;  %v670_v32 = vld [vmem:[#allocation2 + $0x1290] sm:$0xff]  ;;  %v673_v45 = vld [vmem:[#allocation2 + $0x12a8] sm:$0xff] }
 0x385   :  { %2200 = vmatprep.mubr.bf16.mxu0 %v1115_v0  ;;  %v677_v41 = vld [vmem:[#allocation2 + $0x12c8] sm:$0xff] }
 0x387   :  { %v10203_v26 = vpop.f32.mrb[168].mxu0 }
 0x388   :  { %14579 = vst [vmem:[#allocation33_spill] sm:$0xff] %v10203_v26  ;;  %v1988_v28 = vpop.f32.mrb[169].mxu0 }
 0x389   :  { %v10205_v10 = vpop.f32.mrb[170].mxu0  ;;  %v1120_v28 = vpack.c.bf16 %v667_v3, %v664_v56  ;;  %v676_v56 = vld [vmem:[#allocation2 + $0x12c0] sm:$0xff]  ;;  %v679_v3 = vld [vmem:[#allocation2 + $0x12d8] sm:$0xff] }
 0x38a   :  { %14580 = vst [vmem:[#allocation34_spill] sm:$0xff] %v10205_v10  ;;  %v1991_v52 = vpop.f32.mrb[171].mxu0 }
 0x38b   :  { %v674_v52 = vld [vmem:[#allocation2 + $0x12b0] sm:$0xff] }
 0x38c   :  { %2201 = vmatmul.mubr.bf16.gmra.mrb[168].mxu0 %v1114_v29  ;;  %v1124_v10 = vpack.c.bf16 %v674_v52, %v671_v1  ;;  %v683_v1 = vld [vmem:[#allocation2 + $0x12f8] sm:$0xff] }
 0x38d   :  { %2208 = vmatprep.mubr.bf16.mxu0 %v1118_v13 }
 0x38f   :  { %v10207_v31 = vpop.f32.mrb[172].mxu0 }
 0x390   :  { %14581 = vst [vmem:[#allocation35_spill] sm:$0xff] %v10207_v31  ;;  %v1996_v5 = vpop.f32.mrb[173].mxu0 }
 0x391   :  { %v10209_v0 = vpop.f32.mrb[174].mxu0  ;;  %v1123_v5 = vpack.c.bf16 %v673_v45, %v670_v32  ;;  %v682_v32 = vld [vmem:[#allocation2 + $0x12f0] sm:$0xff]  ;;  %v685_v45 = vld [vmem:[#allocation2 + $0x1308] sm:$0xff] }
 0x392   :  { %14582 = vst [vmem:[#allocation36_spill] sm:$0xff] %v10209_v0  ;;  %v1999_v26 = vpop.f32.mrb[175].mxu0 }
 0x393   :  { %v680_v26 = vld [vmem:[#allocation2 + $0x12e0] sm:$0xff] }
 0x394   :  { %2209 = vmatmul.mubr.bf16.gmra.mrb[172].mxu0 %v1117_v20  ;;  %v1127_v0 = vpack.c.bf16 %v680_v26, %v677_v41  ;;  %v689_v41 = vld [vmem:[#allocation2 + $0x1328] sm:$0xff] }
 0x395   :  { %2216 = vmatprep.mubr.bf16.mxu0 %v1121_v58 }
 0x397   :  { %v10211_v19 = vpop.f32.mrb[176].mxu0 }
 0x398   :  { %14583 = vst [vmem:[#allocation37_spill] sm:$0xff] %v10211_v19  ;;  %v2004_v13 = vpop.f32.mrb[177].mxu0 }
 0x399   :  { %v10213_v29 = vpop.f32.mrb[178].mxu0  ;;  %v1126_v13 = vpack.c.bf16 %v679_v3, %v676_v56  ;;  %v688_v56 = vld [vmem:[#allocation2 + $0x1320] sm:$0xff]  ;;  %v691_v3 = vld [vmem:[#allocation2 + $0x1338] sm:$0xff] }
 0x39a   :  { %14584 = vst [vmem:[#allocation38_spill] sm:$0xff] %v10213_v29  ;;  %v2007_v31 = vpop.f32.mrb[179].mxu0 }
 0x39b   :  { %v686_v31 = vld [vmem:[#allocation2 + $0x1310] sm:$0xff] }
 0x39c   :  { %2217 = vmatmul.mubr.bf16.gmra.mrb[176].mxu0 %v1120_v28  ;;  %v1130_v29 = vpack.c.bf16 %v686_v31, %v683_v1  ;;  %v695_v1 = vld [vmem:[#allocation2 + $0x1358] sm:$0xff] }
 0x39d   :  { %2224 = vmatprep.mubr.bf16.mxu0 %v1124_v10 }
 0x39f   :  { %v10215_v44 = vpop.f32.mrb[180].mxu0 }
 0x3a0   :  { %14585 = vst [vmem:[#allocation39_spill] sm:$0xff] %v10215_v44  ;;  %v2012_v58 = vpop.f32.mrb[181].mxu0 }
 0x3a1   :  { %v10217_v20 = vpop.f32.mrb[182].mxu0  ;;  %v1129_v58 = vpack.c.bf16 %v685_v45, %v682_v32  ;;  %v694_v32 = vld [vmem:[#allocation2 + $0x1350] sm:$0xff]  ;;  %v697_v45 = vld [vmem:[#allocation2 + $0x1368] sm:$0xff] }
 0x3a2   :  { %14586 = vst [vmem:[#allocation40_spill] sm:$0xff] %v10217_v20  ;;  %v2015_v19 = vpop.f32.mrb[183].mxu0 }
 0x3a3   :  { %v692_v19 = vld [vmem:[#allocation2 + $0x1340] sm:$0xff] }
 0x3a4   :  { %2225 = vmatmul.mubr.bf16.gmra.mrb[180].mxu0 %v1123_v5  ;;  %v1133_v20 = vpack.c.bf16 %v692_v19, %v689_v41  ;;  %v701_v41 = vld [vmem:[#allocation2 + $0x1388] sm:$0xff] }
 0x3a5   :  { %2232 = vmatprep.mubr.bf16.mxu0 %v1127_v0 }
 0x3a7   :  { %v10219_v52 = vpop.f32.mrb[184].mxu0 }
 0x3a8   :  { %14587 = vst [vmem:[#allocation41_spill] sm:$0xff] %v10219_v52  ;;  %v2020_v10 = vpop.f32.mrb[185].mxu0 }
 0x3a9   :  { %v10221_v28 = vpop.f32.mrb[186].mxu0  ;;  %v1132_v10 = vpack.c.bf16 %v691_v3, %v688_v56  ;;  %v700_v56 = vld [vmem:[#allocation2 + $0x1380] sm:$0xff]  ;;  %v703_v3 = vld [vmem:[#allocation2 + $0x1398] sm:$0xff] }
 0x3aa   :  { %14588 = vst [vmem:[#allocation42_spill] sm:$0xff] %v10221_v28  ;;  %v2023_v44 = vpop.f32.mrb[187].mxu0 }
 0x3ab   :  { %v698_v44 = vld [vmem:[#allocation2 + $0x1370] sm:$0xff] }
 0x3ac   :  { %2233 = vmatmul.mubr.bf16.gmra.mrb[184].mxu0 %v1126_v13  ;;  %v1136_v28 = vpack.c.bf16 %v698_v44, %v695_v1  ;;  %v707_v1 = vld [vmem:[#allocation2 + $0x13b8] sm:$0xff] }
 0x3ad   :  { %2240 = vmatprep.mubr.bf16.mxu0 %v1130_v29 }
 0x3af   :  { %v10223_v26 = vpop.f32.mrb[188].mxu0 }
 0x3b0   :  { %14589 = vst [vmem:[#allocation43_spill] sm:$0xff] %v10223_v26  ;;  %v2028_v0 = vpop.f32.mrb[189].mxu0 }
 0x3b1   :  { %v10225_v5 = vpop.f32.mrb[190].mxu0  ;;  %v1135_v0 = vpack.c.bf16 %v697_v45, %v694_v32  ;;  %v706_v32 = vld [vmem:[#allocation2 + $0x13b0] sm:$0xff]  ;;  %v709_v45 = vld [vmem:[#allocation2 + $0x13c8] sm:$0xff] }
 0x3b2   :  { %14590 = vst [vmem:[#allocation44_spill] sm:$0xff] %v10225_v5  ;;  %v2031_v52 = vpop.f32.mrb[191].mxu0 }
 0x3b3   :  { %v704_v52 = vld [vmem:[#allocation2 + $0x13a0] sm:$0xff] }
 0x3b4   :  { %2241 = vmatmul.mubr.bf16.gmra.mrb[188].mxu0 %v1129_v58  ;;  %v1139_v5 = vpack.c.bf16 %v704_v52, %v701_v41  ;;  %v713_v41 = vld [vmem:[#allocation2 + $0x13e8] sm:$0xff] }
 0x3b5   :  { %2248 = vmatprep.mubr.bf16.mxu0 %v1133_v20 }
 0x3b7   :  { %v10227_v31 = vpop.f32.mrb[192].mxu0 }
 0x3b8   :  { %14591 = vst [vmem:[#allocation45_spill] sm:$0xff] %v10227_v31  ;;  %v2036_v29 = vpop.f32.mrb[193].mxu0 }
 0x3b9   :  { %v10229_v13 = vpop.f32.mrb[194].mxu0  ;;  %v1138_v29 = vpack.c.bf16 %v703_v3, %v700_v56  ;;  %v712_v56 = vld [vmem:[#allocation2 + $0x13e0] sm:$0xff]  ;;  %v715_v3 = vld [vmem:[#allocation2 + $0x13f8] sm:$0xff] }
 0x3ba   :  { %14592 = vst [vmem:[#allocation46_spill] sm:$0xff] %v10229_v13  ;;  %v2039_v26 = vpop.f32.mrb[195].mxu0 }
 0x3bb   :  { %v710_v26 = vld [vmem:[#allocation2 + $0x13d0] sm:$0xff] }
 0x3bc   :  { %2249 = vmatmul.mubr.bf16.gmra.mrb[192].mxu0 %v1132_v10  ;;  %v1142_v13 = vpack.c.bf16 %v710_v26, %v707_v1  ;;  %v719_v1 = vld [vmem:[#allocation2 + $0x1418] sm:$0xff] }
 0x3bd   :  { %2256 = vmatprep.mubr.bf16.mxu0 %v1136_v28 }
 0x3bf   :  { %v10231_v19 = vpop.f32.mrb[196].mxu0 }
 0x3c0   :  { %14593 = vst [vmem:[#allocation47_spill] sm:$0xff] %v10231_v19  ;;  %v2044_v20 = vpop.f32.mrb[197].mxu0 }
 0x3c1   :  { %v10233_v58 = vpop.f32.mrb[198].mxu0  ;;  %v1141_v20 = vpack.c.bf16 %v709_v45, %v706_v32  ;;  %v718_v32 = vld [vmem:[#allocation2 + $0x1410] sm:$0xff]  ;;  %v721_v45 = vld [vmem:[#allocation2 + $0x1428] sm:$0xff] }
 0x3c2   :  { %14594 = vst [vmem:[#allocation48_spill] sm:$0xff] %v10233_v58  ;;  %v2047_v31 = vpop.f32.mrb[199].mxu0 }
 0x3c3   :  { %v716_v31 = vld [vmem:[#allocation2 + $0x1400] sm:$0xff] }
 0x3c4   :  { %2257 = vmatmul.mubr.bf16.gmra.mrb[196].mxu0 %v1135_v0  ;;  %v1145_v58 = vpack.c.bf16 %v716_v31, %v713_v41  ;;  %v725_v41 = vld [vmem:[#allocation2 + $0x1448] sm:$0xff] }
 0x3c5   :  { %2264 = vmatprep.mubr.bf16.mxu0 %v1139_v5 }
 0x3c7   :  { %v10235_v44 = vpop.f32.mrb[200].mxu0 }
 0x3c8   :  { %14595 = vst [vmem:[#allocation49_spill] sm:$0xff] %v10235_v44  ;;  %v2052_v28 = vpop.f32.mrb[201].mxu0 }
 0x3c9   :  { %v10237_v10 = vpop.f32.mrb[202].mxu0  ;;  %v1144_v28 = vpack.c.bf16 %v715_v3, %v712_v56  ;;  %v724_v56 = vld [vmem:[#allocation2 + $0x1440] sm:$0xff]  ;;  %v727_v3 = vld [vmem:[#allocation2 + $0x1458] sm:$0xff] }
 0x3ca   :  { %14596 = vst [vmem:[#allocation50_spill] sm:$0xff] %v10237_v10  ;;  %v2055_v19 = vpop.f32.mrb[203].mxu0 }
 0x3cb   :  { %v722_v19 = vld [vmem:[#allocation2 + $0x1430] sm:$0xff] }
 0x3cc   :  { %2265 = vmatmul.mubr.bf16.gmra.mrb[200].mxu0 %v1138_v29  ;;  %v1148_v10 = vpack.c.bf16 %v722_v19, %v719_v1  ;;  %v731_v1 = vld [vmem:[#allocation2 + $0x1478] sm:$0xff] }
 0x3cd   :  { %2272 = vmatprep.mubr.bf16.mxu0 %v1142_v13 }
 0x3cf   :  { %v10239_v52 = vpop.f32.mrb[204].mxu0 }
 0x3d0   :  { %14597 = vst [vmem:[#allocation51_spill] sm:$0xff] %v10239_v52  ;;  %v2060_v5 = vpop.f32.mrb[205].mxu0 }
 0x3d1   :  { %v10241_v0 = vpop.f32.mrb[206].mxu0  ;;  %v1147_v5 = vpack.c.bf16 %v721_v45, %v718_v32  ;;  %v730_v32 = vld [vmem:[#allocation2 + $0x1470] sm:$0xff]  ;;  %v733_v45 = vld [vmem:[#allocation2 + $0x1488] sm:$0xff] }
 0x3d2   :  { %14598 = vst [vmem:[#allocation52_spill] sm:$0xff] %v10241_v0  ;;  %v2063_v44 = vpop.f32.mrb[207].mxu0 }
 0x3d3   :  { %v728_v44 = vld [vmem:[#allocation2 + $0x1460] sm:$0xff] }
 0x3d4   :  { %2273 = vmatmul.mubr.bf16.gmra.mrb[204].mxu0 %v1141_v20  ;;  %v1151_v0 = vpack.c.bf16 %v728_v44, %v725_v41  ;;  %v740_v41 = vld [vmem:[#allocation2 + $0x14c0] sm:$0xff] }
 0x3d5   :  { %2280 = vmatprep.mubr.bf16.mxu0 %v1145_v58 }
 0x3d7   :  { %v10243_v26 = vpop.f32.mrb[208].mxu0 }
 0x3d8   :  { %14599 = vst [vmem:[#allocation53_spill] sm:$0xff] %v10243_v26  ;;  %v2068_v13 = vpop.f32.mrb[209].mxu0 }
 0x3d9   :  { %v10245_v29 = vpop.f32.mrb[210].mxu0  ;;  %v1150_v13 = vpack.c.bf16 %v727_v3, %v724_v56 }
 0x3da   :  { %14600 = vst [vmem:[#allocation54_spill] sm:$0xff] %v10245_v29  ;;  %v2071_v52 = vpop.f32.mrb[211].mxu0 }
 0x3db   :  { %v734_v52 = vld [vmem:[#allocation2 + $0x1490] sm:$0xff] }
 0x3dc   :  { %2281 = vmatmul.mubr.bf16.gmra.mrb[208].mxu0 %v1144_v28  ;;  %v1154_v29 = vpack.c.bf16 %v734_v52, %v731_v1  ;;  %v743_v1 = vld [vmem:[#allocation2 + $0x14d8] sm:$0xff]  ;;  %v746_v52 = vld [vmem:[#allocation2 + $0x14f0] sm:$0xff] }
 0x3dd   :  { %2288 = vmatprep.mubr.bf16.mxu0 %v1148_v10  ;;  %v1160_v8 = vpack.c.bf16 %v746_v52, %v743_v1 }
 0x3df   :  { %v10247_v31 = vpop.f32.mrb[212].mxu0 }
 0x3e0   :  { %14601 = vst [vmem:[#allocation55_spill] sm:$0xff] %v10247_v31  ;;  %v2076_v58 = vpop.f32.mrb[213].mxu0 }
 0x3e1   :  { %v10249_v20 = vpop.f32.mrb[214].mxu0 }
 0x3e2   :  { %14602 = vst [vmem:[#allocation56_spill] sm:$0xff] %v10249_v20  ;;  %v2079_v26 = vpop.f32.mrb[215].mxu0 }
 0x3e3   :  { %v14605_v26 = vmov 0.0  }
 0x3e4   :  { %2289 = vmatmul.mubr.bf16.gmra.mrb[212].mxu0 %v1147_v5  ;;  %8106 = vmatprep.mubr.msk.bf16.mxu1 %vm9898_vm0, %v14605_v26  ;;  %v1153_v5 = vpack.c.bf16 %v733_v45, %v730_v32  ;;  %v742_v32 = vld [vmem:[#allocation2 + $0x14d0] sm:$0xff]  ;;  %v745_v45 = vld [vmem:[#allocation2 + $0x14e8] sm:$0xff] }
 0x3e5   :  { %2296 = vmatprep.mubr.bf16.mxu0 %v1151_v0  ;;  %v737_v0 = vld [vmem:[#allocation2 + $0x14a8] sm:$0xff] }
 0x3e6   :  { %v1157_v56 = vpack.c.bf16 %v740_v41, %v737_v0  ;;  %v749_v0 = vld [vmem:[#allocation2 + $0x1508] sm:$0xff]  ;;  %v752_v41 = vld [vmem:[#allocation2 + $0x1520] sm:$0xff] }
 0x3e7   :  { %v10251_v19 = vpop.f32.mrb[216].mxu0 }
 0x3e8   :  { %14603 = vst [vmem:[#allocation57_spill] sm:$0xff] %v10251_v19  ;;  %v2084_v10 = vpop.f32.mrb[217].mxu0 }
 0x3e9   :  { %v10253_v28 = vpop.f32.mrb[218].mxu0 }
 0x3ea   :  { %14604 = vst [vmem:[#allocation58_spill] sm:$0xff] %v10253_v28  ;;  %v2087_v31 = vpop.f32.mrb[219].mxu0 }
 0x3eb   :  { %v736_v31 = vld [vmem:[#allocation2 + $0x14a0] sm:$0xff] }
 0x3ec   :  { %2297 = vmatmul.mubr.bf16.gmra.mrb[216].mxu0 %v1150_v13 }
 0x3ed   :  { %2304 = vmatprep.mubr.bf16.mxu0 %v1154_v29  ;;  %v739_v29 = vld [vmem:[#allocation2 + $0x14b8] sm:$0xff] }
 0x3ee   :  { %v1156_v19 = vpack.c.bf16 %v739_v29, %v736_v31  ;;  %v751_v31 = vld [vmem:[#allocation2 + $0x1518] sm:$0xff] }
 0x3ef   :  { %v10257_v44 = vpop.f32.mrb[220].mxu0  ;;  %v755_v29 = vld [vmem:[#allocation2 + $0x1538] sm:$0xff] }
 0x3f0   :  { %14606 = vst [vmem:[#allocation59_spill] sm:$0xff] %v10257_v44  ;;  %v2092_v58 = vpop.f32.mrb[221].mxu0 }
 0x3f1   :  { %v10259_v10 = vpop.f32.mrb[222].mxu0 }
 0x3f2   :  { %14607 = vst [vmem:[#allocation60_spill] sm:$0xff] %v10259_v10  ;;  %v2095_v3 = vpop.f32.mrb[223].mxu0  ;;  %v1163_v10 = vpack.c.bf16 %v752_v41, %v749_v0  ;;  %v761_v0 = vld [vmem:[#allocation2 + $0x1568] sm:$0xff] }
 0x3f4   :  { %2305 = vmatmul.mubr.bf16.gmra.mrb[220].mxu0 %v1153_v5 }
 0x3f5   :  { %2312 = vmatprep.mubr.bf16.mxu0 %v1157_v56  ;;  %v1159_v56 = vpack.c.bf16 %v745_v45, %v742_v32  ;;  %v754_v32 = vld [vmem:[#allocation2 + $0x1530] sm:$0xff]  ;;  %v757_v45 = vld [vmem:[#allocation2 + $0x1548] sm:$0xff] }
 0x3f7   :  { %v10261_v13 = vpop.f32.mrb[224].mxu0 }
 0x3f8   :  { %14608 = vst [vmem:[#allocation61_spill] sm:$0xff] %v10261_v13  ;;  %v2100_v28 = vpop.f32.mrb[225].mxu0 }
 0x3f9   :  { %v10263_v20 = vpop.f32.mrb[226].mxu0  ;;  %v748_v28 = vld [vmem:[#allocation2 + $0x1500] sm:$0xff] }
 0x3fa   :  { %14609 = vst [vmem:[#allocation62_spill] sm:$0xff] %v10263_v20  ;;  %v2103_v44 = vpop.f32.mrb[227].mxu0  ;;  %v1162_v1 = vpack.c.bf16 %v751_v31, %v748_v28  ;;  %v760_v28 = vld [vmem:[#allocation2 + $0x1560] sm:$0xff]  ;;  %v763_v31 = vld [vmem:[#allocation2 + $0x1578] sm:$0xff] }
 0x3fb   :  { %v758_v44 = vld [vmem:[#allocation2 + $0x1550] sm:$0xff] }
 0x3fc   :  { %2313 = vmatmul.mubr.bf16.gmra.mrb[224].mxu0 %v1156_v19  ;;  %v1166_v20 = vpack.c.bf16 %v758_v44, %v755_v29  ;;  %v767_v29 = vld [vmem:[#allocation2 + $0x1598] sm:$0xff] }
 0x3fd   :  { %2320 = vmatprep.mubr.bf16.mxu0 %v1160_v8 }
 0x3ff   :  { %v10265_v58 = vpop.f32.mrb[228].mxu0 }
 0x400   :  { %14610 = vst [vmem:[#allocation63_spill] sm:$0xff] %v10265_v58  ;;  %v2108_v5 = vpop.f32.mrb[229].mxu0 }
 0x401   :  { %v10267_v3 = vpop.f32.mrb[230].mxu0  ;;  %v1165_v5 = vpack.c.bf16 %v757_v45, %v754_v32  ;;  %v766_v32 = vld [vmem:[#allocation2 + $0x1590] sm:$0xff]  ;;  %v769_v45 = vld [vmem:[#allocation2 + $0x15a8] sm:$0xff] }
 0x402   :  { %14611 = vst [vmem:[#allocation64_spill] sm:$0xff] %v10267_v3  ;;  %v2111_v13 = vpop.f32.mrb[231].mxu0 }
 0x403   :  { %v764_v13 = vld [vmem:[#allocation2 + $0x1580] sm:$0xff] }
 0x404   :  { %2321 = vmatmul.mubr.bf16.gmra.mrb[228].mxu0 %v1159_v56  ;;  %v1169_v3 = vpack.c.bf16 %v764_v13, %v761_v0  ;;  %v773_v0 = vld [vmem:[#allocation2 + $0x15c8] sm:$0xff] }
 0x405   :  { %2328 = vmatprep.mubr.bf16.mxu0 %v1163_v10 }
 0x407   :  { %v10269_v19 = vpop.f32.mrb[232].mxu0 }
 0x408   :  { %14612 = vst [vmem:[#allocation65_spill] sm:$0xff] %v10269_v19  ;;  %v2116_v8 = vpop.f32.mrb[233].mxu0 }
 0x409   :  { %v10271_v52 = vpop.f32.mrb[234].mxu0  ;;  %v1168_v8 = vpack.c.bf16 %v763_v31, %v760_v28  ;;  %v772_v28 = vld [vmem:[#allocation2 + $0x15c0] sm:$0xff]  ;;  %v775_v31 = vld [vmem:[#allocation2 + $0x15d8] sm:$0xff] }
 0x40a   :  { %14613 = vst [vmem:[#allocation66_spill] sm:$0xff] %v10271_v52  ;;  %v2119_v58 = vpop.f32.mrb[235].mxu0 }
 0x40b   :  { %v770_v58 = vld [vmem:[#allocation2 + $0x15b0] sm:$0xff] }
 0x40c   :  { %2329 = vmatmul.mubr.bf16.gmra.mrb[232].mxu0 %v1162_v1  ;;  %v1172_v52 = vpack.c.bf16 %v770_v58, %v767_v29  ;;  %v779_v29 = vld [vmem:[#allocation2 + $0x15f8] sm:$0xff] }
 0x40d   :  { %2336 = vmatprep.mubr.bf16.mxu0 %v1166_v20 }
 0x40f   :  { %v10273_v41 = vpop.f32.mrb[236].mxu0 }
 0x410   :  { %14614 = vst [vmem:[#allocation67_spill] sm:$0xff] %v10273_v41  ;;  %v2124_v10 = vpop.f32.mrb[237].mxu0 }
 0x411   :  { %v10275_v56 = vpop.f32.mrb[238].mxu0  ;;  %v1171_v10 = vpack.c.bf16 %v769_v45, %v766_v32  ;;  %v778_v32 = vld [vmem:[#allocation2 + $0x15f0] sm:$0xff]  ;;  %v781_v45 = vld [vmem:[#allocation2 + $0x1608] sm:$0xff] }
 0x412   :  { %14615 = vst [vmem:[#allocation68_spill] sm:$0xff] %v10275_v56  ;;  %v2127_v19 = vpop.f32.mrb[239].mxu0 }
 0x413   :  { %v776_v19 = vld [vmem:[#allocation2 + $0x15e0] sm:$0xff] }
 0x414   :  { %2337 = vmatmul.mubr.bf16.gmra.mrb[236].mxu0 %v1165_v5  ;;  %v1175_v56 = vpack.c.bf16 %v776_v19, %v773_v0  ;;  %v785_v0 = vld [vmem:[#allocation2 + $0x1628] sm:$0xff] }
 0x415   :  { %2344 = vmatprep.mubr.bf16.mxu0 %v1169_v3 }
 0x417   :  { %v10277_v44 = vpop.f32.mrb[240].mxu0 }
 0x418   :  { %14616 = vst [vmem:[#allocation69_spill] sm:$0xff] %v10277_v44  ;;  %v2132_v20 = vpop.f32.mrb[241].mxu0 }
 0x419   :  { %v10279_v1 = vpop.f32.mrb[242].mxu0  ;;  %v1174_v20 = vpack.c.bf16 %v775_v31, %v772_v28  ;;  %v784_v28 = vld [vmem:[#allocation2 + $0x1620] sm:$0xff]  ;;  %v787_v31 = vld [vmem:[#allocation2 + $0x1638] sm:$0xff] }
 0x41a   :  { %14617 = vst [vmem:[#allocation70_spill] sm:$0xff] %v10279_v1  ;;  %v2135_v41 = vpop.f32.mrb[243].mxu0 }
 0x41b   :  { %v782_v41 = vld [vmem:[#allocation2 + $0x1610] sm:$0xff] }
 0x41c   :  { %2345 = vmatmul.mubr.bf16.gmra.mrb[240].mxu0 %v1168_v8  ;;  %v1178_v1 = vpack.c.bf16 %v782_v41, %v779_v29  ;;  %v791_v29 = vld [vmem:[#allocation2 + $0x1658] sm:$0xff] }
 0x41d   :  { %2352 = vmatprep.mubr.bf16.mxu0 %v1172_v52 }
 0x41f   :  { %v10281_v13 = vpop.f32.mrb[244].mxu0 }
 0x420   :  { %14618 = vst [vmem:[#allocation71_spill] sm:$0xff] %v10281_v13  ;;  %v2140_v3 = vpop.f32.mrb[245].mxu0 }
 0x421   :  { %v10283_v5 = vpop.f32.mrb[246].mxu0  ;;  %v1177_v3 = vpack.c.bf16 %v781_v45, %v778_v32  ;;  %v790_v32 = vld [vmem:[#allocation2 + $0x1650] sm:$0xff]  ;;  %v793_v45 = vld [vmem:[#allocation2 + $0x1668] sm:$0xff] }
 0x422   :  { %14619 = vst [vmem:[#allocation72_spill] sm:$0xff] %v10283_v5  ;;  %v2143_v44 = vpop.f32.mrb[247].mxu0 }
 0x423   :  { %v788_v44 = vld [vmem:[#allocation2 + $0x1640] sm:$0xff] }
 0x424   :  { %2353 = vmatmul.mubr.bf16.gmra.mrb[244].mxu0 %v1171_v10  ;;  %v1181_v5 = vpack.c.bf16 %v788_v44, %v785_v0  ;;  %v797_v0 = vld [vmem:[#allocation2 + $0x1688] sm:$0xff] }
 0x425   :  { %2360 = vmatprep.mubr.bf16.mxu0 %v1175_v56 }
 0x427   :  { %v10285_v58 = vpop.f32.mrb[248].mxu0 }
 0x428   :  { %14620 = vst [vmem:[#allocation73_spill] sm:$0xff] %v10285_v58  ;;  %v2148_v52 = vpop.f32.mrb[249].mxu0 }
 0x429   :  { %v10287_v8 = vpop.f32.mrb[250].mxu0  ;;  %v1180_v52 = vpack.c.bf16 %v787_v31, %v784_v28  ;;  %v796_v28 = vld [vmem:[#allocation2 + $0x1680] sm:$0xff]  ;;  %v799_v31 = vld [vmem:[#allocation2 + $0x1698] sm:$0xff] }
 0x42a   :  { %14621 = vst [vmem:[#allocation74_spill] sm:$0xff] %v10287_v8  ;;  %v2151_v13 = vpop.f32.mrb[251].mxu0 }
 0x42b   :  { %v794_v13 = vld [vmem:[#allocation2 + $0x1670] sm:$0xff] }
 0x42c   :  { %2361 = vmatmul.mubr.bf16.gmra.mrb[248].mxu0 %v1174_v20  ;;  %v1184_v8 = vpack.c.bf16 %v794_v13, %v791_v29  ;;  %v803_v29 = vld [vmem:[#allocation2 + $0x16b8] sm:$0xff] }
 0x42d   :  { %2368 = vmatprep.mubr.bf16.mxu0 %v1178_v1 }
 0x42f   :  { %v10289_v19 = vpop.f32.mrb[252].mxu0 }
 0x430   :  { %14622 = vst [vmem:[#allocation75_spill] sm:$0xff] %v10289_v19  ;;  %v2156_v56 = vpop.f32.mrb[253].mxu0 }
 0x431   :  { %v10291_v10 = vpop.f32.mrb[254].mxu0  ;;  %v1183_v56 = vpack.c.bf16 %v793_v45, %v790_v32  ;;  %v802_v32 = vld [vmem:[#allocation2 + $0x16b0] sm:$0xff]  ;;  %v805_v45 = vld [vmem:[#allocation2 + $0x16c8] sm:$0xff] }
 0x432   :  { %14623 = vst [vmem:[#allocation76_spill] sm:$0xff] %v10291_v10  ;;  %v2159_v58 = vpop.f32.mrb[255].mxu0 }
 0x433   :  { %v800_v58 = vld [vmem:[#allocation2 + $0x16a0] sm:$0xff] }
 0x434   :  { %2369 = vmatmul.mubr.bf16.gmra.mrb[252].mxu0 %v1177_v3  ;;  %v1187_v10 = vpack.c.bf16 %v800_v58, %v797_v0  ;;  %v809_v0 = vld [vmem:[#allocation2 + $0x16e8] sm:$0xff] }
 0x435   :  { %2376 = vmatprep.mubr.bf16.mxu0 %v1181_v5 }
 0x437   :  { %v10293_v41 = vpop.f32.mrb[148].mxu0 }
 0x438   :  { %14624 = vst [vmem:[#allocation77_spill] sm:$0xff] %v10293_v41  ;;  %v2164_v1 = vpop.f32.mrb[149].mxu0 }
 0x439   :  { %v10295_v20 = vpop.f32.mrb[150].mxu0  ;;  %v1186_v1 = vpack.c.bf16 %v799_v31, %v796_v28  ;;  %v808_v28 = vld [vmem:[#allocation2 + $0x16e0] sm:$0xff]  ;;  %v811_v31 = vld [vmem:[#allocation2 + $0x16f8] sm:$0xff] }
 0x43a   :  { %14625 = vst [vmem:[#allocation78_spill] sm:$0xff] %v10295_v20  ;;  %v2167_v19 = vpop.f32.mrb[151].mxu0 }
 0x43b   :  { %v806_v19 = vld [vmem:[#allocation2 + $0x16d0] sm:$0xff] }
 0x43c   :  { %2377 = vmatmul.mubr.bf16.gmra.mrb[148].mxu0 %v1180_v52  ;;  %v1190_v20 = vpack.c.bf16 %v806_v19, %v803_v29  ;;  %v815_v29 = vld [vmem:[#allocation2 + $0x1718] sm:$0xff] }
 0x43d   :  { %2384 = vmatprep.mubr.bf16.mxu0 %v1184_v8 }
 0x43f   :  { %v10297_v44 = vpop.f32.mrb[152].mxu0 }
 0x440   :  { %14626 = vst [vmem:[#allocation79_spill] sm:$0xff] %v10297_v44  ;;  %v2172_v5 = vpop.f32.mrb[153].mxu0 }
 0x441   :  { %v10299_v3 = vpop.f32.mrb[154].mxu0  ;;  %v1189_v5 = vpack.c.bf16 %v805_v45, %v802_v32  ;;  %v814_v32 = vld [vmem:[#allocation2 + $0x1710] sm:$0xff]  ;;  %v817_v45 = vld [vmem:[#allocation2 + $0x1728] sm:$0xff] }
 0x442   :  { %14627 = vst [vmem:[#allocation80_spill] sm:$0xff] %v10299_v3  ;;  %v2175_v41 = vpop.f32.mrb[155].mxu0 }
 0x443   :  { %v812_v41 = vld [vmem:[#allocation2 + $0x1700] sm:$0xff] }
 0x444   :  { %2385 = vmatmul.mubr.bf16.gmra.mrb[152].mxu0 %v1183_v56  ;;  %v1193_v3 = vpack.c.bf16 %v812_v41, %v809_v0  ;;  %v821_v0 = vld [vmem:[#allocation2 + $0x1748] sm:$0xff] }
 0x445   :  { %2392 = vmatprep.mubr.bf16.mxu0 %v1187_v10 }
 0x447   :  { %v10301_v13 = vpop.f32.mrb[156].mxu0 }
 0x448   :  { %14628 = vst [vmem:[#allocation81_spill] sm:$0xff] %v10301_v13  ;;  %v2180_v8 = vpop.f32.mrb[157].mxu0 }
 0x449   :  { %v10303_v52 = vpop.f32.mrb[158].mxu0  ;;  %v1192_v8 = vpack.c.bf16 %v811_v31, %v808_v28  ;;  %v820_v28 = vld [vmem:[#allocation2 + $0x1740] sm:$0xff]  ;;  %v823_v31 = vld [vmem:[#allocation2 + $0x1758] sm:$0xff] }
 0x44a   :  { %14629 = vst [vmem:[#allocation82_spill] sm:$0xff] %v10303_v52  ;;  %v2183_v44 = vpop.f32.mrb[159].mxu0 }
 0x44b   :  { %v818_v44 = vld [vmem:[#allocation2 + $0x1730] sm:$0xff] }
 0x44c   :  { %2393 = vmatmul.mubr.bf16.gmra.mrb[156].mxu0 %v1186_v1  ;;  %v1196_v52 = vpack.c.bf16 %v818_v44, %v815_v29 }
 0x44d   :  { %2400 = vmatprep.mubr.bf16.mxu0 %v1190_v20 }
 0x44f   :  { %v10305_v58 = vpop.f32.mrb[160].mxu0 }
 0x450   :  { %14630 = vst [vmem:[#allocation83_spill] sm:$0xff] %v10305_v58  ;;  %v2188_v10 = vpop.f32.mrb[161].mxu0 }
 0x451   :  { %v10307_v56 = vpop.f32.mrb[162].mxu0  ;;  %v1195_v10 = vpack.c.bf16 %v817_v45, %v814_v32  ;;  %v81_v32 = vld [vmem:[#allocation2 + $0x28] sm:$0xff] }
 0x452   :  { %14631 = vst [vmem:[#allocation84_spill] sm:$0xff] %v10307_v56  ;;  %v2191_v13 = vpop.f32.mrb[163].mxu0 }
 0x453   :  { %v824_v13 = vld [vmem:[#allocation2 + $0x1760] sm:$0xff] }
 0x454   :  { %2401 = vmatmul.mubr.bf16.gmra.mrb[160].mxu0 %v1189_v5  ;;  %v1199_v56 = vpack.c.bf16 %v824_v13, %v821_v0  ;;  %v90_v13 = vld [vmem:[#allocation2 + $0x70] sm:$0xff] }
 0x455   :  { %2408 = vmatprep.mubr.bf16.mxu0 %v1193_v3 }
 0x457   :  { %v10309_v19 = vpop.f32.mrb[164].mxu0 }
 0x458   :  { %14632 = vst [vmem:[#allocation85_spill] sm:$0xff] %v10309_v19  ;;  %v2196_v20 = vpop.f32.mrb[165].mxu0 }
 0x459   :  { %v10311_v1 = vpop.f32.mrb[166].mxu0 }
 0x45a   :  { %14633 = vst [vmem:[#allocation86_spill] sm:$0xff] %v10311_v1  ;;  %v2199_v58 = vpop.f32.mrb[167].mxu0 }
 0x45c   :  { %2409 = vmatmul.mubr.bf16.gmra.mrb[164].mxu0 %v1192_v8  ;;  %v78_v8 = vld [vmem:[#allocation2 + $0x10] sm:$0xff] }
 0x45d   :  { %2416 = vmatprep.mubr.bf16.mxu0 %v1196_v52  ;;  %v1198_v52 = vpack.c.bf16 %v823_v31, %v820_v28  ;;  %v828_v45 = vpack.c.bf16 %v81_v32, %v78_v8  ;;  %v96_v28 = vld [vmem:[#allocation2 + $0xa0] sm:$0xff]  ;;  %v99_v31 = vld [vmem:[#allocation2 + $0xb8] sm:$0xff] }
 0x45e   :  { %v108_v32 = vld [vmem:[#allocation2 + $0x100] sm:$0xff] }
 0x45f   :  { %v10313_v41 = vpop.f32.mrb[168].mxu0 }
 0x460   :  { %14634 = vst [vmem:[#allocation87_spill] sm:$0xff] %v10313_v41  ;;  %v2204_v3 = vpop.f32.mrb[169].mxu0 }
 0x461   :  { %v10315_v5 = vpop.f32.mrb[170].mxu0  ;;  %v93_v3 = vld [vmem:[#allocation2 + $0x88] sm:$0xff] }
 0x462   :  { %14635 = vst [vmem:[#allocation88_spill] sm:$0xff] %v10315_v5  ;;  %v2207_v19 = vpop.f32.mrb[171].mxu0 }
 0x463   :  { %v87_v19 = vld [vmem:[#allocation2 + $0x58] sm:$0xff] }
 0x464   :  { %2417 = vmatmul.mubr.bf16.gmra.mrb[168].mxu0 %v1195_v10  ;;  %v834_v10 = vpack.c.bf16 %v93_v3, %v90_v13  ;;  %v120_v3 = vld [vmem:[#allocation2 + $0x160] sm:$0xff] }
 0x465   :  { %2424 = vmatprep.mubr.bf16.mxu0 %v1199_v56  ;;  %v84_v56 = vld [vmem:[#allocation2 + $0x40] sm:$0xff] }
 0x466   :  { %v831_v0 = vpack.c.bf16 %v87_v19, %v84_v56  ;;  %v114_v19 = vld [vmem:[#allocation2 + $0x130] sm:$0xff] }
 0x467   :  { %v10317_v29 = vpop.f32.mrb[172].mxu0 }
 0x468   :  { %14636 = vst [vmem:[#allocation89_spill] sm:$0xff] %v10317_v29  ;;  %v2212_v58 = vpop.f32.mrb[173].mxu0 }
 0x469   :  { %v10319_v44 = vpop.f32.mrb[174].mxu0  ;;  %v837_v58 = vpack.c.bf16 %v99_v31, %v96_v28  ;;  %v126_v31 = vld [vmem:[#allocation2 + $0x190] sm:$0xff] }
 0x46a   :  { %14637 = vst [vmem:[#allocation90_spill] sm:$0xff] %v10319_v44  ;;  %v2215_v20 = vpop.f32.mrb[175].mxu0 }
 0x46b   :  { %v105_v20 = vld [vmem:[#allocation2 + $0xe8] sm:$0xff] }
 0x46c   :  { %2425 = vmatmul.mubr.bf16.gmra.mrb[172].mxu0 %v1198_v52  ;;  %v102_v52 = vld [vmem:[#allocation2 + $0xd0] sm:$0xff] }
 0x46d   :  { %7592 = vmatprep.mubr.msk.bf16.mxu0 %vm9898_vm0, %v14605_v26  ;;  %v840_v8 = vpack.c.bf16 %v105_v20, %v102_v52  ;;  %v9775_v52 = vld [vmem:[%s14388_s3] sm:$0xff]  }
 0x46e   :  { %8093 = vmatpush3.bf16.msra.mxu1 %v9775_v52  ;;  %v9780_v52 = vld [vmem:[%s14388_s3 + $0x28] sm:$0xff]  }
 0x46f   :  { %8094 = vmatprep.subr.bf16.mxu1 %v14605_v26 }
 0x474   :  { %7593 = vmatmul.mubr.bf16.vlgmr.msra.gmra.mrb[0].mxu0 %v828_v45  ;;  %v111_v45 = vld [vmem:[#allocation2 + $0x118] sm:$0xff] }
 0x475   :  { %7596 = vmatprep.mubr.msk.bf16.mxu0 %vm9898_vm0, %v14605_v26  ;;  %v843_v56 = vpack.c.bf16 %v111_v45, %v108_v32  ;;  %v132_v32 = vld [vmem:[#allocation2 + $0x1c0] sm:$0xff]  ;;  %v135_v45 = vld [vmem:[#allocation2 + $0x1d8] sm:$0xff] }
 0x47c   :  { %7597 = vmatmul.mubr.bf16.gmra.mrb[4].mxu0 %v831_v0  ;;  %v117_v0 = vld [vmem:[#allocation2 + $0x148] sm:$0xff] }
 0x47d   :  { %7600 = vmatprep.mubr.msk.bf16.mxu0 %vm9898_vm0, %v14605_v26  ;;  %v846_v13 = vpack.c.bf16 %v117_v0, %v114_v19  ;;  %v855_v19 = vpack.c.bf16 %v135_v45, %v132_v32  ;;  %v9778_v0 = vld [vmem:[%s14388_s3 + $0x18] sm:$0xff]   ;;  %v150_v45 = vld [vmem:[#allocation2 + $0x250] sm:$0xff] }
 0x484   :  { %7601 = vmatmul.mubr.bf16.gmra.mrb[8].mxu0 %v834_v10  ;;  %v123_v10 = vld [vmem:[#allocation2 + $0x178] sm:$0xff] }
 0x485   :  { %7604 = vmatprep.mubr.msk.bf16.mxu0 %vm9898_vm0, %v14605_v26  ;;  %v849_v28 = vpack.c.bf16 %v123_v10, %v120_v3  ;;  %v141_v3 = vld [vmem:[#allocation2 + $0x208] sm:$0xff]  ;;  %v9779_v10 = vld [vmem:[%s14388_s3 + $0x20] sm:$0xff]  }
 0x48c   :  { %7605 = vmatmul.mubr.bf16.gmra.mrb[12].mxu0 %v837_v58  ;;  %v129_v58 = vld [vmem:[#allocation2 + $0x1a8] sm:$0xff] }
 0x48d   :  { %7608 = vmatprep.mubr.msk.bf16.mxu0 %vm9898_vm0, %v14605_v26  ;;  %v852_v20 = vpack.c.bf16 %v129_v58, %v126_v31  ;;  %v144_v31 = vld [vmem:[#allocation2 + $0x220] sm:$0xff]  ;;  %v147_v58 = vld [vmem:[#allocation2 + $0x238] sm:$0xff] }
 0x494   :  { %7609 = vmatmul.mubr.bf16.gmra.mrb[16].mxu0 %v840_v8  ;;  %v9776_v8 = vld [vmem:[%s14388_s3 + $0x8] sm:$0xff]  }
 0x495   :  { %7612 = vmatprep.mubr.msk.bf16.mxu0 %vm9898_vm0, %v14605_v26  ;;  %8095 = vmatpush3.bf16.msra.mxu1 %v9776_v8  ;;  %v9781_v8 = vld [vmem:[%s14388_s3 + $0x30] ss:$0 sps:$4 sm:$0x33]  }
 0x496   :  { %8096 = vmatprep.subr.bf16.mxu1 %v14605_v26  ;;  %v4028_v32 = vsel %vm4026_vm1, %v9781_v8, 0  ;;  %v174_v8 = vld [vmem:[#allocation2 + $0x310] sm:$0xff] }
 0x49c   :  { %7613 = vmatmul.mubr.bf16.gmra.mrb[20].mxu0 %v843_v56  ;;  %v9777_v56 = vld [vmem:[%s14388_s3 + $0x10] sm:$0xff]  }
 0x49d   :  { %7616 = vmatprep.mubr.msk.bf16.mxu0 %vm9898_vm0, %v14605_v26  ;;  %8097 = vmatpush3.bf16.msra.mxu1 %v9777_v56  ;;  %v153_v56 = vld [vmem:[#allocation2 + $0x268] sm:$0xff] }
 0x49e   :  { %8098 = vmatprep.subr.bf16.mxu1 %v14605_v26 }
 0x4a1   :  { %8099 = vmatpush3.bf16.msra.mxu1 %v9778_v0  ;;  %v156_v0 = vld [vmem:[#allocation2 + $0x280] sm:$0xff] }
 0x4a2   :  { %8100 = vmatprep.subr.bf16.mxu1 %v14605_v26 }
 0x4a4   :  { %7617 = vmatmul.mubr.bf16.gmra.mrb[24].mxu0 %v846_v13  ;;  %v138_v13 = vld [vmem:[#allocation2 + $0x1f0] sm:$0xff] }
 0x4a5   :  { %7620 = vmatprep.mubr.msk.bf16.mxu0 %vm9898_vm0, %v14605_v26  ;;  %8101 = vmatpush3.bf16.msra.mxu1 %v9779_v10  ;;  %v162_v10 = vld [vmem:[#allocation2 + $0x2b0] sm:$0xff] }
 0x4a6   :  { %8102 = vmatprep.subr.bf16.mxu1 %v14605_v26 }
 0x4a9   :  { %8103 = vmatpush3.bf16.msra.mxu1 %v9780_v52  ;;  %v171_v52 = vld [vmem:[#allocation2 + $0x2f8] sm:$0xff] }
 0x4aa   :  { %8104 = vmatprep.subr.bf16.mxu1 %v14605_v26 }
 0x4ac   :  { %7621 = vmatmul.mubr.bf16.gmra.mrb[28].mxu0 %v849_v28  ;;  %v858_v28 = vpack.c.bf16 %v141_v3, %v138_v13  ;;  %v159_v13 = vld [vmem:[#allocation2 + $0x298] sm:$0xff] }
 0x4ad   :  { %7624 = vmatprep.mubr.msk.bf16.mxu0 %vm9898_vm0, %v14605_v26  ;;  %8105 = vmatpush3.bf16.msra.mxu1 %v4028_v32  ;;  %v867_v3 = vpack.c.bf16 %v159_v13, %v156_v0  ;;  %v177_v32 = vld [vmem:[#allocation2 + $0x328] sm:$0xff]  ;;  %v186_v13 = vld [vmem:[#allocation2 + $0x370] sm:$0xff] }
 0x4ae   :  { %8606 = vmatprep.subr.bf16.mxu1 %v14605_v26 }
 0x4b4   :  { %7625 = vmatmul.mubr.bf16.gmra.mrb[32].mxu0 %v852_v20  ;;  %v861_v20 = vpack.c.bf16 %v147_v58, %v144_v31  ;;  %v168_v58 = vld [vmem:[#allocation2 + $0x2e0] sm:$0xff] }
 0x4b5   :  { %7628 = vmatprep.mubr.msk.bf16.mxu0 %vm9898_vm0, %v14605_v26 }
 0x4bc   :  { %7629 = vmatmul.mubr.bf16.gmra.mrb[36].mxu0 %v855_v19  ;;  %v864_v19 = vpack.c.bf16 %v153_v56, %v150_v45  ;;  %v876_v45 = vpack.c.bf16 %v177_v32, %v174_v8  ;;  %v180_v56 = vld [vmem:[#allocation2 + $0x340] sm:$0xff] }
 0x4bd   :  { %7632 = vmatprep.mubr.msk.bf16.mxu0 %vm9898_vm0, %v14605_v26  ;;  %v204_v32 = vld [vmem:[#allocation2 + $0x400] sm:$0xff] }
 0x4c4   :  { %7633 = vmatmul.mubr.bf16.gmra.mrb[40].mxu0 %v858_v28  ;;  %v165_v28 = vld [vmem:[#allocation2 + $0x2c8] sm:$0xff] }
 0x4c5   :  { %7636 = vmatprep.mubr.msk.bf16.mxu0 %vm9898_vm0, %v14605_v26  ;;  %v870_v31 = vpack.c.bf16 %v165_v28, %v162_v10  ;;  %v192_v28 = vld [vmem:[#allocation2 + $0x3a0] sm:$0xff] }
 0x4cc   :  { %7637 = vmatmul.mubr.bf16.gmra.mrb[44].mxu0 %v861_v20  ;;  %v873_v20 = vpack.c.bf16 %v171_v52, %v168_v58  ;;  %v198_v52 = vld [vmem:[#allocation2 + $0x3d0] sm:$0xff] }
 0x4cd   :  { %7640 = vmatprep.mubr.msk.bf16.mxu0 %vm9898_vm0, %v14605_v26 }
 0x4d4   :  { %7641 = vmatmul.mubr.bf16.gmra.mrb[48].mxu0 %v864_v19  ;;  %v183_v19 = vld [vmem:[#allocation2 + $0x358] sm:$0xff] }
 0x4d5   :  { %7644 = vmatprep.mubr.msk.bf16.mxu0 %vm9898_vm0, %v14605_v26  ;;  %v879_v0 = vpack.c.bf16 %v183_v19, %v180_v56  ;;  %v210_v19 = vld [vmem:[#allocation2 + $0x430] sm:$0xff] }
 0x4dc   :  { %7645 = vmatmul.mubr.bf16.gmra.mrb[52].mxu0 %v867_v3  ;;  %v189_v3 = vld [vmem:[#allocation2 + $0x388] sm:$0xff] }
 0x4dd   :  { %7648 = vmatprep.mubr.msk.bf16.mxu0 %vm9898_vm0, %v14605_v26  ;;  %v882_v10 = vpack.c.bf16 %v189_v3, %v186_v13  ;;  %v216_v3 = vld [vmem:[#allocation2 + $0x460] sm:$0xff] }
 0x4e4   :  { %7649 = vmatmul.mubr.bf16.gmra.mrb[56].mxu0 %v870_v31  ;;  %v195_v31 = vld [vmem:[#allocation2 + $0x3b8] sm:$0xff] }
 0x4e5   :  { %7652 = vmatprep.mubr.msk.bf16.mxu0 %vm9898_vm0, %v14605_v26  ;;  %v885_v58 = vpack.c.bf16 %v195_v31, %v192_v28  ;;  %v222_v31 = vld [vmem:[#allocation2 + $0x490] sm:$0xff] }
 0x4ec   :  { %7653 = vmatmul.mubr.bf16.gmra.mrb[60].mxu0 %v873_v20  ;;  %v201_v20 = vld [vmem:[#allocation2 + $0x3e8] sm:$0xff] }
 0x4ed   :  { %7656 = vmatprep.mubr.msk.bf16.mxu0 %vm9898_vm0, %v14605_v26  ;;  %v888_v8 = vpack.c.bf16 %v201_v20, %v198_v52  ;;  %v228_v20 = vld [vmem:[#allocation2 + $0x4c0] sm:$0xff] }
 0x4f4   :  { %7657 = vmatmul.mubr.bf16.gmra.mrb[64].mxu0 %v876_v45  ;;  %v207_v45 = vld [vmem:[#allocation2 + $0x418] sm:$0xff] }
 0x4f5   :  { %7660 = vmatprep.mubr.msk.bf16.mxu0 %vm9898_vm0, %v14605_v26  ;;  %v891_v56 = vpack.c.bf16 %v207_v45, %v204_v32  ;;  %v234_v45 = vld [vmem:[#allocation2 + $0x4f0] sm:$0xff] }
 0x4fc   :  { %7661 = vmatmul.mubr.bf16.gmra.mrb[68].mxu0 %v879_v0  ;;  %v213_v0 = vld [vmem:[#allocation2 + $0x448] sm:$0xff] }
 0x4fd   :  { %7664 = vmatprep.mubr.msk.bf16.mxu0 %vm9898_vm0, %v14605_v26  ;;  %v894_v13 = vpack.c.bf16 %v213_v0, %v210_v19  ;;  %v240_v0 = vld [vmem:[#allocation2 + $0x520] sm:$0xff] }
 0x504   :  { %7665 = vmatmul.mubr.bf16.gmra.mrb[72].mxu0 %v882_v10  ;;  %v219_v10 = vld [vmem:[#allocation2 + $0x478] sm:$0xff] }
 0x505   :  { %7668 = vmatprep.mubr.msk.bf16.mxu0 %vm9898_vm0, %v14605_v26  ;;  %v897_v28 = vpack.c.bf16 %v219_v10, %v216_v3 }
 0x50c   :  { %7669 = vmatmul.mubr.bf16.gmra.mrb[76].mxu0 %v885_v58  ;;  %v225_v58 = vld [vmem:[#allocation2 + $0x4a8] sm:$0xff] }
 0x50d   :  { %7672 = vmatprep.mubr.msk.bf16.mxu0 %vm9898_vm0, %v14605_v26  ;;  %v900_v52 = vpack.c.bf16 %v225_v58, %v222_v31  ;;  %v10405_v31 = vld [vmem:[#allocation4] ss:$0 sm:$0xff] }
 0x514   :  { %7673 = vmatmul.mubr.bf16.gmra.mrb[80].mxu0 %v888_v8  ;;  %v231_v8 = vld [vmem:[#allocation2 + $0x4d8] sm:$0xff] }
 0x515   :  { %7676 = vmatprep.mubr.msk.bf16.mxu0 %vm9898_vm0, %v14605_v26  ;;  %v903_v32 = vpack.c.bf16 %v231_v8, %v228_v20 }
 0x51c   :  { %7677 = vmatmul.mubr.bf16.gmra.mrb[84].mxu0 %v891_v56  ;;  %v237_v56 = vld [vmem:[#allocation2 + $0x508] sm:$0xff] }
 0x51d   :  { %7680 = vmatprep.mubr.msk.bf16.mxu0 %vm9898_vm0, %v14605_v26  ;;  %v906_v19 = vpack.c.bf16 %v237_v56, %v234_v45  ;;  %v246_v56 = vld [vmem:[#allocation2 + $0x550] sm:$0xff] }
 0x524   :  { %7681 = vmatmul.mubr.bf16.gmra.mrb[88].mxu0 %v894_v13  ;;  %v243_v13 = vld [vmem:[#allocation2 + $0x538] sm:$0xff] }
 0x525   :  { %7684 = vmatprep.mubr.msk.bf16.mxu0 %vm9898_vm0, %v14605_v26 }
 0x52c   :  { %7685 = vmatmul.mubr.bf16.gmra.mrb[92].mxu0 %v897_v28  ;;  %v909_v28 = vpack.c.bf16 %v243_v13, %v240_v0 }
 0x52d   :  { %7688 = vmatprep.mubr.msk.bf16.mxu0 %vm9898_vm0, %v14605_v26 }
 0x534   :  { %7689 = vmatmul.mubr.bf16.gmra.mrb[96].mxu0 %v900_v52 }
 0x535   :  { %7692 = vmatprep.mubr.msk.bf16.mxu0 %vm9898_vm0, %v14605_v26 }
 0x53c   :  { %7693 = vmatmul.mubr.bf16.gmra.mrb[100].mxu0 %v903_v32  ;;  %v9782_v32 = vld [vmem:[%s14390_s5] sm:$0xff]  }
 0x53d   :  { %7696 = vmatprep.mubr.msk.bf16.mxu0 %vm9898_vm0, %v14605_v26 }
 0x544   :  { %7697 = vmatmul.mubr.bf16.gmra.mrb[104].mxu0 %v906_v19  ;;  %v249_v19 = vld [vmem:[#allocation2 + $0x568] sm:$0xff] }
 0x545   :  { %7700 = vmatprep.mubr.msk.bf16.mxu0 %vm9898_vm0, %v14605_v26 }
 0x547   :  { %v2467_v3 = vpop.f32.mrb[0].mxu0 }
 0x548   :  { %v7594_v10 = vpop.f32.mrb[1].mxu0  ;;  %v9114_v52 = vadd.f32 %v10405_v31, %v2467_v3  ;;  %v912_v3 = vpack.c.bf16 %v249_v19, %v246_v56 }
 0x549   :  { %v2470_v58 = vpop.f32.mrb[2].mxu0 }
 0x54a   :  { %v9115_v20 = vadd.f32 %v10405_v31, %v2470_v58  ;;  %v7595_v8 = vpop.f32.mrb[3].mxu0 }
 0x54b   :  { %v252_v8 = vld [vmem:[#allocation2 + $0x580] sm:$0xff] }
 0x54c   :  { %v3466_v45 = vpack.c.bf16 %v9115_v20, %v9114_v52  ;;  %7701 = vmatmul.mubr.bf16.gmra.mrb[108].mxu0 %v909_v28 }
 0x54d   :  { %7704 = vmatprep.mubr.msk.bf16.mxu0 %vm9898_vm0, %v14605_v26 }
 0x54e   :  { %8107 = vmatmul.mubr.msk.bf16.vlgmr.msra.gmra.mrb[0].mxu1 %vm3650_vm2, %v3466_v45 }
 0x54f   :  { %v2475_v0 = vpop.f32.mrb[4].mxu0  ;;  %8607 = vmatpush3.bf16.msra.mxu1 %v9782_v32  ;;  %8110 = vmatprep.mubr.msk.bf16.mxu1 %vm9898_vm0, %v14605_v26  ;;  %v255_v32 = vld [vmem:[#allocation2 + $0x598] sm:$0xff] }
 0x550   :  { %v7598_v13 = vpop.f32.mrb[5].mxu0  ;;  %8608 = vmatprep.subr.bf16.mxu1 %v14605_v26  ;;  %v9116_v58 = vadd.f32 %v10405_v31, %v2475_v0  ;;  %v915_v19 = vpack.c.bf16 %v255_v32, %v252_v8 }
 0x551   :  { %v2478_v10 = vpop.f32.mrb[6].mxu0 }
 0x552   :  { %v9117_v28 = vadd.f32 %v10405_v31, %v2478_v10  ;;  %v7599_v52 = vpop.f32.mrb[7].mxu0 }
 0x553   :  { %v261_v52 = vld [vmem:[#allocation2 + $0x5c8] sm:$0xff] }
 0x554   :  { %v3467_v20 = vpack.c.bf16 %v9117_v28, %v9116_v58  ;;  %7705 = vmatmul.mubr.bf16.gmra.mrb[112].mxu0 %v912_v3  ;;  %v258_v28 = vld [vmem:[#allocation2 + $0x5b0] sm:$0xff] }
 0x555   :  { %7708 = vmatprep.mubr.msk.bf16.mxu0 %vm9898_vm0, %v14605_v26  ;;  %v918_v32 = vpack.c.bf16 %v261_v52, %v258_v28 }
 0x556   :  { %8111 = vmatmul.mubr.msk.bf16.gmra.mrb[4].mxu1 %vm3650_vm2, %v3467_v20 }
 0x557   :  { %v2483_v45 = vpop.f32.mrb[8].mxu0  ;;  %8114 = vmatprep.mubr.msk.bf16.mxu1 %vm9898_vm0, %v14605_v26 }
 0x558   :  { %v7602_v56 = vpop.f32.mrb[9].mxu0  ;;  %v9118_v0 = vadd.f32 %v10405_v31, %v2483_v45 }
 0x559   :  { %v2486_v13 = vpop.f32.mrb[10].mxu0 }
 0x55a   :  { %v9119_v10 = vadd.f32 %v10405_v31, %v2486_v13  ;;  %v7603_v58 = vpop.f32.mrb[11].mxu0 }
 0x55b   :  { %v267_v58 = vld [vmem:[#allocation2 + $0x5f8] sm:$0xff] }
 0x55c   :  { %v3468_v3 = vpack.c.bf16 %v9119_v10, %v9118_v0  ;;  %7709 = vmatmul.mubr.bf16.gmra.mrb[116].mxu0 %v915_v19  ;;  %v264_v10 = vld [vmem:[#allocation2 + $0x5e0] sm:$0xff] }
 0x55d   :  { %7712 = vmatprep.mubr.msk.bf16.mxu0 %vm9898_vm0, %v14605_v26  ;;  %v921_v52 = vpack.c.bf16 %v267_v58, %v264_v10 }
 0x55e   :  { %8115 = vmatmul.mubr.msk.bf16.gmra.mrb[8].mxu1 %vm3650_vm2, %v3468_v3 }
 0x55f   :  { %v2491_v20 = vpop.f32.mrb[12].mxu0  ;;  %8118 = vmatprep.mubr.msk.bf16.mxu1 %vm9898_vm0, %v14605_v26 }
 0x560   :  { %v7606_v8 = vpop.f32.mrb[13].mxu0  ;;  %v9120_v45 = vadd.f32 %v10405_v31, %v2491_v20 }
 0x561   :  { %v2494_v56 = vpop.f32.mrb[14].mxu0 }
 0x562   :  { %v9121_v13 = vadd.f32 %v10405_v31, %v2494_v56  ;;  %v7607_v0 = vpop.f32.mrb[15].mxu0 }
 0x563   :  { %v273_v0 = vld [vmem:[#allocation2 + $0x628] sm:$0xff] }
 0x564   :  { %v3469_v19 = vpack.c.bf16 %v9121_v13, %v9120_v45  ;;  %7713 = vmatmul.mubr.bf16.gmra.mrb[120].mxu0 %v918_v32  ;;  %v270_v13 = vld [vmem:[#allocation2 + $0x610] sm:$0xff] }
 0x565   :  { %7716 = vmatprep.mubr.msk.bf16.mxu0 %vm9898_vm0, %v14605_v26  ;;  %v924_v58 = vpack.c.bf16 %v273_v0, %v270_v13 }
 0x566   :  { %8119 = vmatmul.mubr.msk.bf16.gmra.mrb[12].mxu1 %vm3650_vm2, %v3469_v19 }
 0x567   :  { %v2499_v3 = vpop.f32.mrb[16].mxu0  ;;  %8122 = vmatprep.mubr.msk.bf16.mxu1 %vm9898_vm0, %v14605_v26 }
 0x568   :  { %v7610_v28 = vpop.f32.mrb[17].mxu0  ;;  %v9122_v20 = vadd.f32 %v10405_v31, %v2499_v3 }
 0x569   :  { %v2502_v8 = vpop.f32.mrb[18].mxu0 }
 0x56a   :  { %v9123_v56 = vadd.f32 %v10405_v31, %v2502_v8  ;;  %v7611_v45 = vpop.f32.mrb[19].mxu0 }
 0x56b   :  { %v279_v45 = vld [vmem:[#allocation2 + $0x658] sm:$0xff] }
 0x56c   :  { %v3470_v32 = vpack.c.bf16 %v9123_v56, %v9122_v20  ;;  %7717 = vmatmul.mubr.bf16.gmra.mrb[124].mxu0 %v921_v52  ;;  %v276_v56 = vld [vmem:[#allocation2 + $0x640] sm:$0xff] }
 0x56d   :  { %7720 = vmatprep.mubr.msk.bf16.mxu0 %vm9898_vm0, %v14605_v26  ;;  %v927_v0 = vpack.c.bf16 %v279_v45, %v276_v56 }
 0x56e   :  { %8123 = vmatmul.mubr.msk.bf16.gmra.mrb[16].mxu1 %vm3650_vm2, %v3470_v32 }
 0x56f   :  { %v2507_v19 = vpop.f32.mrb[20].mxu0  ;;  %8126 = vmatprep.mubr.msk.bf16.mxu1 %vm9898_vm0, %v14605_v26 }
 0x570   :  { %v7614_v10 = vpop.f32.mrb[21].mxu0  ;;  %v9124_v3 = vadd.f32 %v10405_v31, %v2507_v19 }
 0x571   :  { %v2510_v28 = vpop.f32.mrb[22].mxu0 }
 0x572   :  { %v9125_v8 = vadd.f32 %v10405_v31, %v2510_v28  ;;  %v7615_v20 = vpop.f32.mrb[23].mxu0 }
 0x573   :  { %v285_v20 = vld [vmem:[#allocation2 + $0x688] sm:$0xff] }
 0x574   :  { %v3471_v52 = vpack.c.bf16 %v9125_v8, %v9124_v3  ;;  %7721 = vmatmul.mubr.bf16.gmra.mrb[128].mxu0 %v924_v58  ;;  %v282_v8 = vld [vmem:[#allocation2 + $0x670] sm:$0xff] }
 0x575   :  { %7724 = vmatprep.mubr.msk.bf16.mxu0 %vm9898_vm0, %v14605_v26  ;;  %v930_v45 = vpack.c.bf16 %v285_v20, %v282_v8 }
 0x576   :  { %8127 = vmatmul.mubr.msk.bf16.gmra.mrb[20].mxu1 %vm3650_vm2, %v3471_v52 }
 0x577   :  { %v2515_v32 = vpop.f32.mrb[24].mxu0  ;;  %8130 = vmatprep.mubr.msk.bf16.mxu1 %vm9898_vm0, %v14605_v26 }
 0x578   :  { %v7618_v13 = vpop.f32.mrb[25].mxu0  ;;  %v9126_v19 = vadd.f32 %v10405_v31, %v2515_v32 }
 0x579   :  { %v2518_v10 = vpop.f32.mrb[26].mxu0 }
 0x57a   :  { %v9127_v28 = vadd.f32 %v10405_v31, %v2518_v10  ;;  %v7619_v3 = vpop.f32.mrb[27].mxu0 }
 0x57b   :  { %v291_v3 = vld [vmem:[#allocation2 + $0x6b8] sm:$0xff] }
 0x57c   :  { %v3472_v58 = vpack.c.bf16 %v9127_v28, %v9126_v19  ;;  %7725 = vmatmul.mubr.bf16.gmra.mrb[132].mxu0 %v927_v0  ;;  %v288_v28 = vld [vmem:[#allocation2 + $0x6a0] sm:$0xff] }
 0x57d   :  { %7728 = vmatprep.mubr.msk.bf16.mxu0 %vm9898_vm0, %v14605_v26  ;;  %v933_v20 = vpack.c.bf16 %v291_v3, %v288_v28 }
 0x57e   :  { %8131 = vmatmul.mubr.msk.bf16.gmra.mrb[24].mxu1 %vm3650_vm2, %v3472_v58 }
 0x57f   :  { %v2523_v52 = vpop.f32.mrb[28].mxu0  ;;  %8134 = vmatprep.mubr.msk.bf16.mxu1 %vm9898_vm0, %v14605_v26 }
 0x580   :  { %v7622_v56 = vpop.f32.mrb[29].mxu0  ;;  %v9128_v32 = vadd.f32 %v10405_v31, %v2523_v52 }
 0x581   :  { %v2526_v13 = vpop.f32.mrb[30].mxu0 }
 0x582   :  { %v9129_v10 = vadd.f32 %v10405_v31, %v2526_v13  ;;  %v7623_v19 = vpop.f32.mrb[31].mxu0 }
 0x583   :  { %v297_v19 = vld [vmem:[#allocation2 + $0x6e8] sm:$0xff] }
 0x584   :  { %v3473_v0 = vpack.c.bf16 %v9129_v10, %v9128_v32  ;;  %7729 = vmatmul.mubr.bf16.gmra.mrb[136].mxu0 %v930_v45  ;;  %v294_v10 = vld [vmem:[#allocation2 + $0x6d0] sm:$0xff] }
 0x585   :  { %7732 = vmatprep.mubr.msk.bf16.mxu0 %vm9898_vm0, %v14605_v26  ;;  %v936_v3 = vpack.c.bf16 %v297_v19, %v294_v10 }
 0x586   :  { %8135 = vmatmul.mubr.msk.bf16.gmra.mrb[28].mxu1 %vm3650_vm2, %v3473_v0 }
 0x587   :  { %v2531_v58 = vpop.f32.mrb[32].mxu0  ;;  %8138 = vmatprep.mubr.msk.bf16.mxu1 %vm9898_vm0, %v14605_v26 }
 0x588   :  { %v7626_v8 = vpop.f32.mrb[33].mxu0  ;;  %v9130_v52 = vadd.f32 %v10405_v31, %v2531_v58 }
 0x589   :  { %v2534_v56 = vpop.f32.mrb[34].mxu0 }
 0x58a   :  { %v9131_v13 = vadd.f32 %v10405_v31, %v2534_v56  ;;  %v7627_v32 = vpop.f32.mrb[35].mxu0 }
 0x58b   :  { %v303_v32 = vld [vmem:[#allocation2 + $0x718] sm:$0xff] }
 0x58c   :  { %v3474_v45 = vpack.c.bf16 %v9131_v13, %v9130_v52  ;;  %7733 = vmatmul.mubr.bf16.gmra.mrb[140].mxu0 %v933_v20  ;;  %v300_v13 = vld [vmem:[#allocation2 + $0x700] sm:$0xff] }
 0x58d   :  { %7736 = vmatprep.mubr.msk.bf16.mxu0 %vm9898_vm0, %v14605_v26  ;;  %v939_v19 = vpack.c.bf16 %v303_v32, %v300_v13 }
 0x58e   :  { %8139 = vmatmul.mubr.msk.bf16.gmra.mrb[32].mxu1 %vm3650_vm2, %v3474_v45 }
 0x58f   :  { %v2539_v0 = vpop.f32.mrb[36].mxu0  ;;  %8142 = vmatprep.mubr.msk.bf16.mxu1 %vm9898_vm0, %v14605_v26 }
 0x590   :  { %v7630_v28 = vpop.f32.mrb[37].mxu0  ;;  %v9132_v58 = vadd.f32 %v10405_v31, %v2539_v0 }
 0x591   :  { %v2542_v8 = vpop.f32.mrb[38].mxu0 }
 0x592   :  { %v9133_v56 = vadd.f32 %v10405_v31, %v2542_v8  ;;  %v7631_v52 = vpop.f32.mrb[39].mxu0 }
 0x593   :  { %v309_v52 = vld [vmem:[#allocation2 + $0x748] sm:$0xff] }
 0x594   :  { %v3475_v20 = vpack.c.bf16 %v9133_v56, %v9132_v58  ;;  %7737 = vmatmul.mubr.bf16.gmra.mrb[144].mxu0 %v936_v3  ;;  %v306_v56 = vld [vmem:[#allocation2 + $0x730] sm:$0xff] }
 0x595   :  { %7740 = vmatprep.mubr.msk.bf16.mxu0 %vm9898_vm0, %v14605_v26  ;;  %v942_v32 = vpack.c.bf16 %v309_v52, %v306_v56 }
 0x596   :  { %8143 = vmatmul.mubr.msk.bf16.gmra.mrb[36].mxu1 %vm3650_vm2, %v3475_v20 }
 0x597   :  { %v2547_v45 = vpop.f32.mrb[40].mxu0  ;;  %8146 = vmatprep.mubr.msk.bf16.mxu1 %vm9898_vm0, %v14605_v26 }
 0x598   :  { %v7634_v10 = vpop.f32.mrb[41].mxu0  ;;  %v9134_v0 = vadd.f32 %v10405_v31, %v2547_v45 }
 0x599   :  { %v2550_v28 = vpop.f32.mrb[42].mxu0 }
 0x59a   :  { %v9135_v8 = vadd.f32 %v10405_v31, %v2550_v28  ;;  %v7635_v58 = vpop.f32.mrb[43].mxu0 }
 0x59b   :  { %v315_v58 = vld [vmem:[#allocation2 + $0x778] sm:$0xff] }
 0x59c   :  { %v3476_v3 = vpack.c.bf16 %v9135_v8, %v9134_v0  ;;  %7741 = vmatmul.mubr.bf16.gmra.mrb[0].mxu0 %v939_v19  ;;  %v312_v8 = vld [vmem:[#allocation2 + $0x760] sm:$0xff] }
 0x59d   :  { %7744 = vmatprep.mubr.msk.bf16.mxu0 %vm9898_vm0, %v14605_v26  ;;  %v945_v52 = vpack.c.bf16 %v315_v58, %v312_v8 }
 0x59e   :  { %8147 = vmatmul.mubr.msk.bf16.gmra.mrb[40].mxu1 %vm3650_vm2, %v3476_v3 }
 0x59f   :  { %v2555_v20 = vpop.f32.mrb[44].mxu0  ;;  %8150 = vmatprep.mubr.msk.bf16.mxu1 %vm9898_vm0, %v14605_v26 }
 0x5a0   :  { %v7638_v13 = vpop.f32.mrb[45].mxu0  ;;  %v9136_v45 = vadd.f32 %v10405_v31, %v2555_v20 }
 0x5a1   :  { %v2558_v10 = vpop.f32.mrb[46].mxu0 }
 0x5a2   :  { %v9137_v28 = vadd.f32 %v10405_v31, %v2558_v10  ;;  %v7639_v0 = vpop.f32.mrb[47].mxu0 }
 0x5a3   :  { %v321_v0 = vld [vmem:[#allocation2 + $0x7a8] sm:$0xff] }
 0x5a4   :  { %v3477_v19 = vpack.c.bf16 %v9137_v28, %v9136_v45  ;;  %7745 = vmatmul.mubr.bf16.gmra.mrb[4].mxu0 %v942_v32  ;;  %v318_v28 = vld [vmem:[#allocation2 + $0x790] sm:$0xff] }
 0x5a5   :  { %7748 = vmatprep.mubr.msk.bf16.mxu0 %vm9898_vm0, %v14605_v26  ;;  %v948_v58 = vpack.c.bf16 %v321_v0, %v318_v28 }
 0x5a6   :  { %8151 = vmatmul.mubr.msk.bf16.gmra.mrb[44].mxu1 %vm3650_vm2, %v3477_v19 }
 0x5a7   :  { %v2563_v3 = vpop.f32.mrb[48].mxu0  ;;  %8154 = vmatprep.mubr.msk.bf16.mxu1 %vm9898_vm0, %v14605_v26 }
 0x5a8   :  { %v7642_v56 = vpop.f32.mrb[49].mxu0  ;;  %v9138_v20 = vadd.f32 %v10405_v31, %v2563_v3 }
 0x5a9   :  { %v2566_v13 = vpop.f32.mrb[50].mxu0 }
 0x5aa   :  { %v9139_v10 = vadd.f32 %v10405_v31, %v2566_v13  ;;  %v7643_v45 = vpop.f32.mrb[51].mxu0 }
 0x5ab   :  { %v327_v45 = vld [vmem:[#allocation2 + $0x7d8] sm:$0xff] }
 0x5ac   :  { %v3478_v32 = vpack.c.bf16 %v9139_v10, %v9138_v20  ;;  %7749 = vmatmul.mubr.bf16.gmra.mrb[8].mxu0 %v945_v52  ;;  %v324_v10 = vld [vmem:[#allocation2 + $0x7c0] sm:$0xff] }
 0x5ad   :  { %7752 = vmatprep.mubr.msk.bf16.mxu0 %vm9898_vm0, %v14605_v26  ;;  %v951_v0 = vpack.c.bf16 %v327_v45, %v324_v10 }
 0x5ae   :  { %8155 = vmatmul.mubr.msk.bf16.gmra.mrb[48].mxu1 %vm3650_vm2, %v3478_v32 }
 0x5af   :  { %v2571_v19 = vpop.f32.mrb[52].mxu0  ;;  %8158 = vmatprep.mubr.msk.bf16.mxu1 %vm9898_vm0, %v14605_v26 }
 0x5b0   :  { %v7646_v8 = vpop.f32.mrb[53].mxu0  ;;  %v9140_v3 = vadd.f32 %v10405_v31, %v2571_v19 }
 0x5b1   :  { %v2574_v56 = vpop.f32.mrb[54].mxu0 }
 0x5b2   :  { %v9141_v13 = vadd.f32 %v10405_v31, %v2574_v56  ;;  %v7647_v20 = vpop.f32.mrb[55].mxu0 }
 0x5b3   :  { %v333_v20 = vld [vmem:[#allocation2 + $0x808] sm:$0xff] }
 0x5b4   :  { %v3479_v52 = vpack.c.bf16 %v9141_v13, %v9140_v3  ;;  %7753 = vmatmul.mubr.bf16.gmra.mrb[12].mxu0 %v948_v58  ;;  %v330_v13 = vld [vmem:[#allocation2 + $0x7f0] sm:$0xff] }
 0x5b5   :  { %7756 = vmatprep.mubr.msk.bf16.mxu0 %vm9898_vm0, %v14605_v26  ;;  %v954_v45 = vpack.c.bf16 %v333_v20, %v330_v13 }
 0x5b6   :  { %8159 = vmatmul.mubr.msk.bf16.gmra.mrb[52].mxu1 %vm3650_vm2, %v3479_v52 }
 0x5b7   :  { %v2579_v32 = vpop.f32.mrb[56].mxu0  ;;  %8162 = vmatprep.mubr.msk.bf16.mxu1 %vm9898_vm0, %v14605_v26 }
 0x5b8   :  { %v7650_v28 = vpop.f32.mrb[57].mxu0  ;;  %v9142_v19 = vadd.f32 %v10405_v31, %v2579_v32 }
 0x5b9   :  { %v2582_v8 = vpop.f32.mrb[58].mxu0 }
 0x5ba   :  { %v9143_v56 = vadd.f32 %v10405_v31, %v2582_v8  ;;  %v7651_v3 = vpop.f32.mrb[59].mxu0 }
 0x5bb   :  { %v339_v3 = vld [vmem:[#allocation2 + $0x838] sm:$0xff] }
 0x5bc   :  { %v3480_v58 = vpack.c.bf16 %v9143_v56, %v9142_v19  ;;  %7757 = vmatmul.mubr.bf16.gmra.mrb[16].mxu0 %v951_v0  ;;  %v336_v56 = vld [vmem:[#allocation2 + $0x820] sm:$0xff] }
 0x5bd   :  { %7760 = vmatprep.mubr.msk.bf16.mxu0 %vm9898_vm0, %v14605_v26  ;;  %v957_v20 = vpack.c.bf16 %v339_v3, %v336_v56 }
 0x5be   :  { %8163 = vmatmul.mubr.msk.bf16.gmra.mrb[56].mxu1 %vm3650_vm2, %v3480_v58 }
 0x5bf   :  { %v2587_v52 = vpop.f32.mrb[60].mxu0  ;;  %8166 = vmatprep.mubr.msk.bf16.mxu1 %vm9898_vm0, %v14605_v26 }
 0x5c0   :  { %v7654_v10 = vpop.f32.mrb[61].mxu0  ;;  %v9144_v32 = vadd.f32 %v10405_v31, %v2587_v52 }
 0x5c1   :  { %v2590_v28 = vpop.f32.mrb[62].mxu0 }
 0x5c2   :  { %v9145_v8 = vadd.f32 %v10405_v31, %v2590_v28  ;;  %v7655_v19 = vpop.f32.mrb[63].mxu0 }
 0x5c3   :  { %v342_v19 = vld [vmem:[#allocation2 + $0x850] sm:$0xff] }
 0x5c4   :  { %v3481_v0 = vpack.c.bf16 %v9145_v8, %v9144_v32  ;;  %7761 = vmatmul.mubr.bf16.gmra.mrb[20].mxu0 %v954_v45  ;;  %v9783_v8 = vld [vmem:[%s14390_s5 + $0x8] sm:$0xff]  }
 0x5c5   :  { %7764 = vmatprep.mubr.msk.bf16.mxu0 %vm9898_vm0, %v14605_v26  ;;  %8609 = vmatpush3.bf16.msra.mxu1 %v9783_v8 }
 0x5c6   :  { %8167 = vmatmul.mubr.msk.bf16.gmra.mrb[60].mxu1 %vm3650_vm2, %v3481_v0  ;;  %v345_v0 = vld [vmem:[#allocation2 + $0x868] sm:$0xff]  ;;  %8610 = vmatprep.subr.bf16.mxu1 %v14605_v26 }
 0x5c7   :  { %v2595_v58 = vpop.f32.mrb[64].mxu0  ;;  %8170 = vmatprep.mubr.msk.bf16.mxu1 %vm9898_vm0, %v14605_v26 }
 0x5c8   :  { %v7658_v13 = vpop.f32.mrb[65].mxu0  ;;  %v9146_v52 = vadd.f32 %v10405_v31, %v2595_v58  ;;  %v960_v58 = vpack.c.bf16 %v345_v0, %v342_v19 }
 0x5c9   :  { %v2598_v10 = vpop.f32.mrb[66].mxu0 }
 0x5ca   :  { %v9147_v28 = vadd.f32 %v10405_v31, %v2598_v10  ;;  %v7659_v32 = vpop.f32.mrb[67].mxu0 }
 0x5cb   :  { %v348_v32 = vld [vmem:[#allocation2 + $0x880] sm:$0xff] }
 0x5cc   :  { %v3482_v45 = vpack.c.bf16 %v9147_v28, %v9146_v52  ;;  %7765 = vmatmul.mubr.bf16.gmra.mrb[24].mxu0 %v957_v20 }
 0x5cd   :  { %7768 = vmatprep.mubr.msk.bf16.mxu0 %vm9898_vm0, %v14605_v26 }
 0x5ce   :  { %8171 = vmatmul.mubr.msk.bf16.gmra.mrb[64].mxu1 %vm3650_vm2, %v3482_v45  ;;  %v351_v45 = vld [vmem:[#allocation2 + $0x898] sm:$0xff] }
 0x5cf   :  { %v2603_v56 = vpop.f32.mrb[68].mxu0  ;;  %8174 = vmatprep.mubr.msk.bf16.mxu1 %vm9898_vm0, %v14605_v26  ;;  %v963_v0 = vpack.c.bf16 %v351_v45, %v348_v32 }
 0x5d0   :  { %v7662_v3 = vpop.f32.mrb[69].mxu0  ;;  %v9148_v20 = vadd.f32 %v10405_v31, %v2603_v56 }
 0x5d1   :  { %v2606_v13 = vpop.f32.mrb[70].mxu0 }
 0x5d2   :  { %v9149_v10 = vadd.f32 %v10405_v31, %v2606_v13  ;;  %v7663_v52 = vpop.f32.mrb[71].mxu0 }
 0x5d3   :  { %v357_v52 = vld [vmem:[#allocation2 + $0x8c8] sm:$0xff] }
 0x5d4   :  { %v3483_v28 = vpack.c.bf16 %v9149_v10, %v9148_v20  ;;  %7769 = vmatmul.mubr.bf16.gmra.mrb[28].mxu0 %v960_v58  ;;  %v354_v10 = vld [vmem:[#allocation2 + $0x8b0] sm:$0xff] }
 0x5d5   :  { %7772 = vmatprep.mubr.msk.bf16.mxu0 %vm9898_vm0, %v14605_v26  ;;  %v966_v45 = vpack.c.bf16 %v357_v52, %v354_v10 }
 0x5d6   :  { %8175 = vmatmul.mubr.msk.bf16.gmra.mrb[68].mxu1 %vm3650_vm2, %v3483_v28 }
 0x5d7   :  { %v2611_v8 = vpop.f32.mrb[72].mxu0  ;;  %8178 = vmatprep.mubr.msk.bf16.mxu1 %vm9898_vm0, %v14605_v26 }
 0x5d8   :  { %v7666_v19 = vpop.f32.mrb[73].mxu0  ;;  %v9150_v56 = vadd.f32 %v10405_v31, %v2611_v8 }
 0x5d9   :  { %v2614_v3 = vpop.f32.mrb[74].mxu0 }
 0x5da   :  { %v9151_v13 = vadd.f32 %v10405_v31, %v2614_v3  ;;  %v7667_v20 = vpop.f32.mrb[75].mxu0 }
 0x5db   :  { %v363_v20 = vld [vmem:[#allocation2 + $0x8f8] sm:$0xff] }
 0x5dc   :  { %v3484_v58 = vpack.c.bf16 %v9151_v13, %v9150_v56  ;;  %7773 = vmatmul.mubr.bf16.gmra.mrb[32].mxu0 %v963_v0  ;;  %v360_v13 = vld [vmem:[#allocation2 + $0x8e0] sm:$0xff] }
 0x5dd   :  { %7776 = vmatprep.mubr.msk.bf16.mxu0 %vm9898_vm0, %v14605_v26  ;;  %v969_v52 = vpack.c.bf16 %v363_v20, %v360_v13 }
 0x5de   :  { %8179 = vmatmul.mubr.msk.bf16.gmra.mrb[72].mxu1 %vm3650_vm2, %v3484_v58 }
 0x5df   :  { %v2619_v28 = vpop.f32.mrb[76].mxu0  ;;  %8182 = vmatprep.mubr.msk.bf16.mxu1 %vm9898_vm0, %v14605_v26 }
 0x5e0   :  { %v7670_v32 = vpop.f32.mrb[77].mxu0  ;;  %v9152_v8 = vadd.f32 %v10405_v31, %v2619_v28 }
 0x5e1   :  { %v2622_v19 = vpop.f32.mrb[78].mxu0 }
 0x5e2   :  { %v9153_v3 = vadd.f32 %v10405_v31, %v2622_v19  ;;  %v7671_v56 = vpop.f32.mrb[79].mxu0 }
 0x5e3   :  { %v369_v56 = vld [vmem:[#allocation2 + $0x928] sm:$0xff] }
 0x5e4   :  { %v3485_v0 = vpack.c.bf16 %v9153_v3, %v9152_v8  ;;  %7777 = vmatmul.mubr.bf16.gmra.mrb[36].mxu0 %v966_v45  ;;  %v366_v3 = vld [vmem:[#allocation2 + $0x910] sm:$0xff] }
 0x5e5   :  { %7780 = vmatprep.mubr.msk.bf16.mxu0 %vm9898_vm0, %v14605_v26  ;;  %v972_v20 = vpack.c.bf16 %v369_v56, %v366_v3 }
 0x5e6   :  { %8183 = vmatmul.mubr.msk.bf16.gmra.mrb[76].mxu1 %vm3650_vm2, %v3485_v0 }
 0x5e7   :  { %v2627_v58 = vpop.f32.mrb[80].mxu0  ;;  %8186 = vmatprep.mubr.msk.bf16.mxu1 %vm9898_vm0, %v14605_v26 }
 0x5e8   :  { %v7674_v10 = vpop.f32.mrb[81].mxu0  ;;  %v9154_v28 = vadd.f32 %v10405_v31, %v2627_v58 }
 0x5e9   :  { %v2630_v32 = vpop.f32.mrb[82].mxu0 }
 0x5ea   :  { %v9155_v19 = vadd.f32 %v10405_v31, %v2630_v32  ;;  %v7675_v8 = vpop.f32.mrb[83].mxu0 }
 0x5eb   :  { %v375_v8 = vld [vmem:[#allocation2 + $0x958] sm:$0xff] }
 0x5ec   :  { %v3486_v45 = vpack.c.bf16 %v9155_v19, %v9154_v28  ;;  %7781 = vmatmul.mubr.bf16.gmra.mrb[40].mxu0 %v969_v52  ;;  %v372_v19 = vld [vmem:[#allocation2 + $0x940] sm:$0xff] }
 0x5ed   :  { %7784 = vmatprep.mubr.msk.bf16.mxu0 %vm9898_vm0, %v14605_v26  ;;  %v975_v56 = vpack.c.bf16 %v375_v8, %v372_v19 }
 0x5ee   :  { %8187 = vmatmul.mubr.msk.bf16.gmra.mrb[80].mxu1 %vm3650_vm2, %v3486_v45 }
 0x5ef   :  { %v2635_v0 = vpop.f32.mrb[84].mxu0  ;;  %8190 = vmatprep.mubr.msk.bf16.mxu1 %vm9898_vm0, %v14605_v26 }
 0x5f0   :  { %v7678_v13 = vpop.f32.mrb[85].mxu0  ;;  %v9156_v58 = vadd.f32 %v10405_v31, %v2635_v0 }
 0x5f1   :  { %v2638_v10 = vpop.f32.mrb[86].mxu0 }
 0x5f2   :  { %v9157_v32 = vadd.f32 %v10405_v31, %v2638_v10  ;;  %v7679_v28 = vpop.f32.mrb[87].mxu0 }
 0x5f3   :  { %v381_v28 = vld [vmem:[#allocation2 + $0x988] sm:$0xff] }
 0x5f4   :  { %v3487_v52 = vpack.c.bf16 %v9157_v32, %v9156_v58  ;;  %7785 = vmatmul.mubr.bf16.gmra.mrb[44].mxu0 %v972_v20  ;;  %v378_v32 = vld [vmem:[#allocation2 + $0x970] sm:$0xff] }
 0x5f5   :  { %7788 = vmatprep.mubr.msk.bf16.mxu0 %vm9898_vm0, %v14605_v26  ;;  %v978_v8 = vpack.c.bf16 %v381_v28, %v378_v32 }
 0x5f6   :  { %8191 = vmatmul.mubr.msk.bf16.gmra.mrb[84].mxu1 %vm3650_vm2, %v3487_v52 }
 0x5f7   :  { %v2643_v45 = vpop.f32.mrb[88].mxu0  ;;  %8194 = vmatprep.mubr.msk.bf16.mxu1 %vm9898_vm0, %v14605_v26 }
 0x5f8   :  { %v7682_v3 = vpop.f32.mrb[89].mxu0  ;;  %v9158_v0 = vadd.f32 %v10405_v31, %v2643_v45 }
 0x5f9   :  { %v2646_v13 = vpop.f32.mrb[90].mxu0 }
 0x5fa   :  { %v9159_v10 = vadd.f32 %v10405_v31, %v2646_v13  ;;  %v7683_v58 = vpop.f32.mrb[91].mxu0 }
 0x5fb   :  { %v387_v58 = vld [vmem:[#allocation2 + $0x9b8] sm:$0xff] }
 0x5fc   :  { %v3488_v20 = vpack.c.bf16 %v9159_v10, %v9158_v0  ;;  %7789 = vmatmul.mubr.bf16.gmra.mrb[48].mxu0 %v975_v56  ;;  %v384_v10 = vld [vmem:[#allocation2 + $0x9a0] sm:$0xff] }
 0x5fd   :  { %7792 = vmatprep.mubr.msk.bf16.mxu0 %vm9898_vm0, %v14605_v26  ;;  %v981_v28 = vpack.c.bf16 %v387_v58, %v384_v10 }
 0x5fe   :  { %8195 = vmatmul.mubr.msk.bf16.gmra.mrb[88].mxu1 %vm3650_vm2, %v3488_v20 }
 0x5ff   :  { %v2651_v52 = vpop.f32.mrb[92].mxu0  ;;  %8198 = vmatprep.mubr.msk.bf16.mxu1 %vm9898_vm0, %v14605_v26 }
 0x600   :  { %v7686_v19 = vpop.f32.mrb[93].mxu0  ;;  %v9160_v45 = vadd.f32 %v10405_v31, %v2651_v52 }
 0x601   :  { %v2654_v3 = vpop.f32.mrb[94].mxu0 }
 0x602   :  { %v9161_v13 = vadd.f32 %v10405_v31, %v2654_v3  ;;  %v7687_v0 = vpop.f32.mrb[95].mxu0 }
 0x603   :  { %v393_v0 = vld [vmem:[#allocation2 + $0x9e8] sm:$0xff] }
 0x604   :  { %v3489_v56 = vpack.c.bf16 %v9161_v13, %v9160_v45  ;;  %7793 = vmatmul.mubr.bf16.gmra.mrb[52].mxu0 %v978_v8  ;;  %v390_v13 = vld [vmem:[#allocation2 + $0x9d0] sm:$0xff] }
 0x605   :  { %7796 = vmatprep.mubr.msk.bf16.mxu0 %vm9898_vm0, %v14605_v26  ;;  %v984_v58 = vpack.c.bf16 %v393_v0, %v390_v13 }
 0x606   :  { %8199 = vmatmul.mubr.msk.bf16.gmra.mrb[92].mxu1 %vm3650_vm2, %v3489_v56 }
 0x607   :  { %v2659_v20 = vpop.f32.mrb[96].mxu0  ;;  %8202 = vmatprep.mubr.msk.bf16.mxu1 %vm9898_vm0, %v14605_v26 }
 0x608   :  { %v7690_v32 = vpop.f32.mrb[97].mxu0  ;;  %v9162_v52 = vadd.f32 %v10405_v31, %v2659_v20 }
 0x609   :  { %v2662_v19 = vpop.f32.mrb[98].mxu0 }
 0x60a   :  { %v9163_v3 = vadd.f32 %v10405_v31, %v2662_v19  ;;  %v7691_v45 = vpop.f32.mrb[99].mxu0 }
 0x60b   :  { %v399_v45 = vld [vmem:[#allocation2 + $0xa18] sm:$0xff] }
 0x60c   :  { %v3490_v8 = vpack.c.bf16 %v9163_v3, %v9162_v52  ;;  %7797 = vmatmul.mubr.bf16.gmra.mrb[56].mxu0 %v981_v28  ;;  %v396_v3 = vld [vmem:[#allocation2 + $0xa00] sm:$0xff] }
 0x60d   :  { %7800 = vmatprep.mubr.msk.bf16.mxu0 %vm9898_vm0, %v14605_v26  ;;  %v987_v0 = vpack.c.bf16 %v399_v45, %v396_v3 }
 0x60e   :  { %8203 = vmatmul.mubr.msk.bf16.gmra.mrb[96].mxu1 %vm3650_vm2, %v3490_v8 }
 0x60f   :  { %v2667_v56 = vpop.f32.mrb[100].mxu0  ;;  %8206 = vmatprep.mubr.msk.bf16.mxu1 %vm9898_vm0, %v14605_v26 }
 0x610   :  { %v7694_v10 = vpop.f32.mrb[101].mxu0  ;;  %v9164_v20 = vadd.f32 %v10405_v31, %v2667_v56 }
 0x611   :  { %v2670_v32 = vpop.f32.mrb[102].mxu0 }
 0x612   :  { %v9165_v19 = vadd.f32 %v10405_v31, %v2670_v32  ;;  %v7695_v52 = vpop.f32.mrb[103].mxu0 }
 0x613   :  { %v405_v52 = vld [vmem:[#allocation2 + $0xa48] sm:$0xff] }
 0x614   :  { %v3491_v28 = vpack.c.bf16 %v9165_v19, %v9164_v20  ;;  %7801 = vmatmul.mubr.bf16.gmra.mrb[60].mxu0 %v984_v58  ;;  %v402_v19 = vld [vmem:[#allocation2 + $0xa30] sm:$0xff] }
 0x615   :  { %7804 = vmatprep.mubr.msk.bf16.mxu0 %vm9898_vm0, %v14605_v26  ;;  %v990_v45 = vpack.c.bf16 %v405_v52, %v402_v19  ;;  %v408_v52 = vld [vmem:[#allocation2 + $0xa60] sm:$0xff] }
 0x616   :  { %8207 = vmatmul.mubr.msk.bf16.gmra.mrb[100].mxu1 %vm3650_vm2, %v3491_v28 }
 0x617   :  { %v2675_v8 = vpop.f32.mrb[104].mxu0  ;;  %8210 = vmatprep.mubr.msk.bf16.mxu1 %vm9898_vm0, %v14605_v26 }
 0x618   :  { %v7698_v13 = vpop.f32.mrb[105].mxu0  ;;  %v9166_v56 = vadd.f32 %v10405_v31, %v2675_v8  ;;  %v10604_v8 = vld [vmem:[#allocation6] ss:$0 sm:$0xff] }
 0x619   :  { %v2678_v10 = vpop.f32.mrb[106].mxu0 }
 0x61a   :  { %v9167_v32 = vadd.f32 %v10405_v31, %v2678_v10  ;;  %v7699_v20 = vpop.f32.mrb[107].mxu0 }
 0x61c   :  { %v3492_v58 = vpack.c.bf16 %v9167_v32, %v9166_v56  ;;  %7805 = vmatmul.mubr.bf16.gmra.mrb[64].mxu0 %v987_v0 }
 0x61d   :  { %7808 = vmatprep.mubr.msk.bf16.mxu0 %vm9898_vm0, %v14605_v26 }
 0x61e   :  { %8211 = vmatmul.mubr.msk.bf16.gmra.mrb[104].mxu1 %vm3650_vm2, %v3492_v58 }
 0x61f   :  { %v2683_v28 = vpop.f32.mrb[108].mxu0  ;;  %8214 = vmatprep.mubr.msk.bf16.mxu1 %vm9898_vm0, %v14605_v26 }
 0x620   :  { %v7702_v3 = vpop.f32.mrb[109].mxu0  ;;  %v9168_v56 = vadd.f32 %v10405_v31, %v2683_v28 }
 0x621   :  { %v2686_v13 = vpop.f32.mrb[110].mxu0  ;;  %v4064_v10 = vpop.f32.mrb[0].mxu1  ;;  %v411_v3 = vld [vmem:[#allocation2 + $0xa78] sm:$0xff] }
 0x622   :  { %v9169_v0 = vadd.f32 %v10405_v31, %v2686_v13  ;;  %v7703_v32 = vpop.f32.mrb[111].mxu0  ;;  %v8108_v20 = vpop.f32.mrb[1].mxu1  ;;  %v10609_v58 = vadd.f32 %v10604_v8, %v4064_v10 }
 0x623   :  { %v4067_v44 = vpop.f32.mrb[2].mxu1 }
 0x624   :  { %v3493_v29 = vpack.c.bf16 %v9169_v0, %v9168_v56  ;;  %14638 = vst [vmem:[#allocation91_spill] sm:$0xff] %v10609_v58  ;;  %v10612_v5 = vadd.f32 %v10604_v8, %v4067_v44  ;;  %7809 = vmatmul.mubr.bf16.gmra.mrb[68].mxu0 %v990_v45  ;;  %v8109_v19 = vpop.f32.mrb[3].mxu1  ;;  %v993_v56 = vpack.c.bf16 %v411_v3, %v408_v52  ;;  %v414_v52 = vld [vmem:[#allocation2 + $0xa90] sm:$0xff]  ;;  %v417_v3 = vld [vmem:[#allocation2 + $0xaa8] sm:$0xff] }
 0x625   :  { %7812 = vmatprep.mubr.msk.bf16.mxu0 %vm9898_vm0, %v14605_v26 }
 0x626   :  { %14639 = vst [vmem:[#allocation92_spill] sm:$0xff] %v10612_v5  ;;  %8215 = vmatmul.mubr.msk.bf16.gmra.mrb[108].mxu1 %vm3650_vm2, %v3493_v29 }
 0x627   :  { %v2691_v13 = vpop.f32.mrb[112].mxu0  ;;  %8218 = vmatprep.mubr.msk.bf16.mxu1 %vm9898_vm0, %v14605_v26 }
 0x628   :  { %v7706_v10 = vpop.f32.mrb[113].mxu0  ;;  %v9170_v45 = vadd.f32 %v10405_v31, %v2691_v13 }
 0x629   :  { %v2694_v44 = vpop.f32.mrb[114].mxu0  ;;  %v4072_v0 = vpop.f32.mrb[4].mxu1 }
 0x62a   :  { %v9171_v32 = vadd.f32 %v10405_v31, %v2694_v44  ;;  %v7707_v20 = vpop.f32.mrb[115].mxu0  ;;  %v8112_v19 = vpop.f32.mrb[5].mxu1  ;;  %v10624_v28 = vadd.f32 %v10604_v8, %v4072_v0  ;;  %v996_v0 = vpack.c.bf16 %v417_v3, %v414_v52  ;;  %v420_v52 = vld [vmem:[#allocation2 + $0xac0] sm:$0xff]  ;;  %v423_v3 = vld [vmem:[#allocation2 + $0xad8] sm:$0xff] }
 0x62b   :  { %v4075_v41 = vpop.f32.mrb[6].mxu1 }
 0x62c   :  { %v3494_v1 = vpack.c.bf16 %v9171_v32, %v9170_v45  ;;  %14640 = vst [vmem:[#allocation93_spill] sm:$0xff] %v10624_v28  ;;  %v10627_v29 = vadd.f32 %v10604_v8, %v4075_v41  ;;  %7813 = vmatmul.mubr.bf16.gmra.mrb[72].mxu0 %v993_v56  ;;  %v8113_v58 = vpop.f32.mrb[7].mxu1 }
 0x62d   :  { %7816 = vmatprep.mubr.msk.bf16.mxu0 %vm9898_vm0, %v14605_v26 }
 0x62e   :  { %14641 = vst [vmem:[#allocation94_spill] sm:$0xff] %v10627_v29  ;;  %8219 = vmatmul.mubr.msk.bf16.gmra.mrb[112].mxu1 %vm3650_vm2, %v3494_v1 }
 0x62f   :  { %v2699_v10 = vpop.f32.mrb[116].mxu0  ;;  %8222 = vmatprep.mubr.msk.bf16.mxu1 %vm9898_vm0, %v14605_v26 }
 0x630   :  { %v7710_v44 = vpop.f32.mrb[117].mxu0  ;;  %v9172_v58 = vadd.f32 %v10405_v31, %v2699_v10 }
 0x631   :  { %v2702_v41 = vpop.f32.mrb[118].mxu0  ;;  %v4080_v45 = vpop.f32.mrb[8].mxu1 }
 0x632   :  { %v9173_v56 = vadd.f32 %v10405_v31, %v2702_v41  ;;  %v7711_v32 = vpop.f32.mrb[119].mxu0  ;;  %v8116_v20 = vpop.f32.mrb[9].mxu1  ;;  %v10639_v13 = vadd.f32 %v10604_v8, %v4080_v45  ;;  %v999_v45 = vpack.c.bf16 %v423_v3, %v420_v52  ;;  %v426_v52 = vld [vmem:[#allocation2 + $0xaf0] sm:$0xff]  ;;  %v429_v3 = vld [vmem:[#allocation2 + $0xb08] sm:$0xff] }
 0x633   :  { %v4083_v19 = vpop.f32.mrb[10].mxu1 }
 0x634   :  { %v3495_v5 = vpack.c.bf16 %v9173_v56, %v9172_v58  ;;  %14642 = vst [vmem:[#allocation95_spill] sm:$0xff] %v10639_v13  ;;  %v10642_v1 = vadd.f32 %v10604_v8, %v4083_v19  ;;  %7817 = vmatmul.mubr.bf16.gmra.mrb[76].mxu0 %v996_v0  ;;  %v8117_v28 = vpop.f32.mrb[11].mxu1 }
 0x635   :  { %7820 = vmatprep.mubr.msk.bf16.mxu0 %vm9898_vm0, %v14605_v26 }
 0x636   :  { %14643 = vst [vmem:[#allocation96_spill] sm:$0xff] %v10642_v1  ;;  %8223 = vmatmul.mubr.msk.bf16.gmra.mrb[116].mxu1 %vm3650_vm2, %v3495_v5 }
 0x637   :  { %v2707_v44 = vpop.f32.mrb[120].mxu0  ;;  %8226 = vmatprep.mubr.msk.bf16.mxu1 %vm9898_vm0, %v14605_v26 }
 0x638   :  { %v7714_v41 = vpop.f32.mrb[121].mxu0  ;;  %v9174_v28 = vadd.f32 %v10405_v31, %v2707_v44 }
 0x639   :  { %v2710_v58 = vpop.f32.mrb[122].mxu0  ;;  %v4088_v56 = vpop.f32.mrb[12].mxu1 }
 0x63a   :  { %v9175_v0 = vadd.f32 %v10405_v31, %v2710_v58  ;;  %v7715_v32 = vpop.f32.mrb[123].mxu0  ;;  %v8120_v20 = vpop.f32.mrb[13].mxu1  ;;  %v10654_v10 = vadd.f32 %v10604_v8, %v4088_v56  ;;  %v1002_v56 = vpack.c.bf16 %v429_v3, %v426_v52  ;;  %v432_v52 = vld [vmem:[#allocation2 + $0xb20] sm:$0xff]  ;;  %v435_v3 = vld [vmem:[#allocation2 + $0xb38] sm:$0xff] }
 0x63b   :  { %v4091_v19 = vpop.f32.mrb[14].mxu1 }
 0x63c   :  { %v3496_v29 = vpack.c.bf16 %v9175_v0, %v9174_v28  ;;  %14644 = vst [vmem:[#allocation97_spill] sm:$0xff] %v10654_v10  ;;  %v10657_v5 = vadd.f32 %v10604_v8, %v4091_v19  ;;  %7821 = vmatmul.mubr.bf16.gmra.mrb[80].mxu0 %v999_v45  ;;  %v8121_v13 = vpop.f32.mrb[15].mxu1 }
 0x63d   :  { %7824 = vmatprep.mubr.msk.bf16.mxu0 %vm9898_vm0, %v14605_v26 }
 0x63e   :  { %14645 = vst [vmem:[#allocation98_spill] sm:$0xff] %v10657_v5  ;;  %8227 = vmatmul.mubr.msk.bf16.gmra.mrb[120].mxu1 %vm3650_vm2, %v3496_v29 }
 0x63f   :  { %v2715_v41 = vpop.f32.mrb[124].mxu0  ;;  %8230 = vmatprep.mubr.msk.bf16.mxu1 %vm9898_vm0, %v14605_v26 }
 0x640   :  { %v7718_v58 = vpop.f32.mrb[125].mxu0  ;;  %v9176_v13 = vadd.f32 %v10405_v31, %v2715_v41 }
 0x641   :  { %v2718_v28 = vpop.f32.mrb[126].mxu0  ;;  %v4096_v0 = vpop.f32.mrb[16].mxu1 }
 0x642   :  { %v9177_v45 = vadd.f32 %v10405_v31, %v2718_v28  ;;  %v7719_v32 = vpop.f32.mrb[127].mxu0  ;;  %v8124_v20 = vpop.f32.mrb[17].mxu1  ;;  %v10669_v44 = vadd.f32 %v10604_v8, %v4096_v0  ;;  %v1005_v0 = vpack.c.bf16 %v435_v3, %v432_v52  ;;  %v438_v52 = vld [vmem:[#allocation2 + $0xb50] sm:$0xff]  ;;  %v441_v3 = vld [vmem:[#allocation2 + $0xb68] sm:$0xff] }
 0x643   :  { %v4099_v19 = vpop.f32.mrb[18].mxu1 }
 0x644   :  { %v3497_v1 = vpack.c.bf16 %v9177_v45, %v9176_v13  ;;  %14646 = vst [vmem:[#allocation99_spill] sm:$0xff] %v10669_v44  ;;  %v10672_v29 = vadd.f32 %v10604_v8, %v4099_v19  ;;  %7825 = vmatmul.mubr.bf16.gmra.mrb[84].mxu0 %v1002_v56  ;;  %v8125_v10 = vpop.f32.mrb[19].mxu1 }
 0x645   :  { %7828 = vmatprep.mubr.msk.bf16.mxu0 %vm9898_vm0, %v14605_v26 }
 0x646   :  { %14647 = vst [vmem:[#allocation100_spill] sm:$0xff] %v10672_v29  ;;  %8231 = vmatmul.mubr.msk.bf16.gmra.mrb[124].mxu1 %vm3650_vm2, %v3497_v1 }
 0x647   :  { %v2723_v58 = vpop.f32.mrb[128].mxu0  ;;  %8234 = vmatprep.mubr.msk.bf16.mxu1 %vm9898_vm0, %v14605_v26 }
 0x648   :  { %v7722_v28 = vpop.f32.mrb[129].mxu0  ;;  %v9178_v10 = vadd.f32 %v10405_v31, %v2723_v58 }
 0x649   :  { %v2726_v13 = vpop.f32.mrb[130].mxu0  ;;  %v4104_v45 = vpop.f32.mrb[20].mxu1 }
 0x64a   :  { %v9179_v56 = vadd.f32 %v10405_v31, %v2726_v13  ;;  %v7723_v32 = vpop.f32.mrb[131].mxu0  ;;  %v8128_v20 = vpop.f32.mrb[21].mxu1  ;;  %v10684_v41 = vadd.f32 %v10604_v8, %v4104_v45  ;;  %v1008_v13 = vpack.c.bf16 %v441_v3, %v438_v52  ;;  %v444_v3 = vld [vmem:[#allocation2 + $0xb80] sm:$0xff] }
 0x64b   :  { %v4107_v19 = vpop.f32.mrb[22].mxu1 }
 0x64c   :  { %v3498_v5 = vpack.c.bf16 %v9179_v56, %v9178_v10  ;;  %14648 = vst [vmem:[#allocation101_spill] sm:$0xff] %v10684_v41  ;;  %v10687_v1 = vadd.f32 %v10604_v8, %v4107_v19  ;;  %7829 = vmatmul.mubr.bf16.gmra.mrb[88].mxu0 %v1005_v0  ;;  %v8129_v44 = vpop.f32.mrb[23].mxu1  ;;  %v10696_v0 = vld [vmem:[#allocation4] ss:$0 sm:$0xff] }
 0x64d   :  { %7832 = vmatprep.mubr.msk.bf16.mxu0 %vm9898_vm0, %v14605_v26 }
 0x64e   :  { %14649 = vst [vmem:[#allocation102_spill] sm:$0xff] %v10687_v1  ;;  %8235 = vmatmul.mubr.msk.bf16.gmra.mrb[128].mxu1 %vm3650_vm2, %v3498_v5 }
 0x64f   :  { %v2731_v58 = vpop.f32.mrb[132].mxu0  ;;  %8238 = vmatprep.mubr.msk.bf16.mxu1 %vm9898_vm0, %v14605_v26 }
 0x650   :  { %v7726_v28 = vpop.f32.mrb[133].mxu0  ;;  %v9180_v44 = vadd.f32 %v10696_v0, %v2731_v58 }
 0x651   :  { %v2734_v45 = vpop.f32.mrb[134].mxu0  ;;  %v4112_v10 = vpop.f32.mrb[24].mxu1  ;;  %v447_v28 = vld [vmem:[#allocation2 + $0xb98] sm:$0xff] }
 0x652   :  { %v9181_v56 = vadd.f32 %v10696_v0, %v2734_v45  ;;  %v7727_v32 = vpop.f32.mrb[135].mxu0  ;;  %v8132_v20 = vpop.f32.mrb[25].mxu1  ;;  %v10701_v5 = vadd.f32 %v10604_v8, %v4112_v10 }
 0x653   :  { %v4115_v19 = vpop.f32.mrb[26].mxu1 }
 0x654   :  { %v3499_v31 = vpack.c.bf16 %v9181_v56, %v9180_v44  ;;  %14650 = vst [vmem:[#allocation103_spill] sm:$0xff] %v10701_v5  ;;  %v10704_v41 = vadd.f32 %v10604_v8, %v4115_v19  ;;  %7833 = vmatmul.mubr.bf16.gmra.mrb[92].mxu0 %v1008_v13  ;;  %v8133_v52 = vpop.f32.mrb[27].mxu1  ;;  %v1011_v44 = vpack.c.bf16 %v447_v28, %v444_v3  ;;  %v450_v3 = vld [vmem:[#allocation2 + $0xbb0] sm:$0xff]  ;;  %v453_v28 = vld [vmem:[#allocation2 + $0xbc8] sm:$0xff] }
 0x655   :  { %7836 = vmatprep.mubr.msk.bf16.mxu0 %vm9898_vm0, %v14605_v26 }
 0x656   :  { %14651 = vst [vmem:[#allocation104_spill] sm:$0xff] %v10704_v41  ;;  %8239 = vmatmul.mubr.msk.bf16.gmra.mrb[132].mxu1 %vm3650_vm2, %v3499_v31 }
 0x657   :  { %v2739_v45 = vpop.f32.mrb[136].mxu0  ;;  %8242 = vmatprep.mubr.msk.bf16.mxu1 %vm9898_vm0, %v14605_v26 }
 0x658   :  { %v7730_v10 = vpop.f32.mrb[137].mxu0  ;;  %v9182_v13 = vadd.f32 %v10696_v0, %v2739_v45 }
 0x659   :  { %v2742_v56 = vpop.f32.mrb[138].mxu0  ;;  %v4120_v32 = vpop.f32.mrb[28].mxu1 }
 0x65a   :  { %v9183_v20 = vadd.f32 %v10696_v0, %v2742_v56  ;;  %v7731_v19 = vpop.f32.mrb[139].mxu0  ;;  %v8136_v52 = vpop.f32.mrb[29].mxu1  ;;  %v10716_v58 = vadd.f32 %v10604_v8, %v4120_v32  ;;  %v1014_v32 = vpack.c.bf16 %v453_v28, %v450_v3  ;;  %v456_v3 = vld [vmem:[#allocation2 + $0xbe0] sm:$0xff]  ;;  %v459_v28 = vld [vmem:[#allocation2 + $0xbf8] sm:$0xff] }
 0x65b   :  { %v4123_v1 = vpop.f32.mrb[30].mxu1 }
 0x65c   :  { %v3500_v29 = vpack.c.bf16 %v9183_v20, %v9182_v13  ;;  %14652 = vst [vmem:[#allocation105_spill] sm:$0xff] %v10716_v58  ;;  %v10719_v31 = vadd.f32 %v10604_v8, %v4123_v1  ;;  %7837 = vmatmul.mubr.bf16.gmra.mrb[96].mxu0 %v1011_v44  ;;  %v8137_v5 = vpop.f32.mrb[31].mxu1 }
 0x65d   :  { %7840 = vmatprep.mubr.msk.bf16.mxu0 %vm9898_vm0, %v14605_v26 }
 0x65e   :  { %14653 = vst [vmem:[#allocation106_spill] sm:$0xff] %v10719_v31  ;;  %8243 = vmatmul.mubr.msk.bf16.gmra.mrb[136].mxu1 %vm3650_vm2, %v3500_v29 }
 0x65f   :  { %v2747_v10 = vpop.f32.mrb[140].mxu0  ;;  %8246 = vmatprep.mubr.msk.bf16.mxu1 %vm9898_vm0, %v14605_v26 }
 0x660   :  { %v7734_v56 = vpop.f32.mrb[141].mxu0  ;;  %v9184_v5 = vadd.f32 %v10696_v0, %v2747_v10 }
 0x661   :  { %v2750_v1 = vpop.f32.mrb[142].mxu0  ;;  %v4128_v13 = vpop.f32.mrb[32].mxu1 }
 0x662   :  { %v9185_v44 = vadd.f32 %v10696_v0, %v2750_v1  ;;  %v7735_v20 = vpop.f32.mrb[143].mxu0  ;;  %v8140_v19 = vpop.f32.mrb[33].mxu1  ;;  %v10731_v45 = vadd.f32 %v10604_v8, %v4128_v13  ;;  %v1017_v13 = vpack.c.bf16 %v459_v28, %v456_v3  ;;  %v462_v3 = vld [vmem:[#allocation2 + $0xc10] sm:$0xff]  ;;  %v465_v28 = vld [vmem:[#allocation2 + $0xc28] sm:$0xff] }
 0x663   :  { %v4131_v52 = vpop.f32.mrb[34].mxu1 }
 0x664   :  { %v3501_v41 = vpack.c.bf16 %v9185_v44, %v9184_v5  ;;  %14654 = vst [vmem:[#allocation107_spill] sm:$0xff] %v10731_v45  ;;  %v10734_v29 = vadd.f32 %v10604_v8, %v4131_v52  ;;  %7841 = vmatmul.mubr.bf16.gmra.mrb[100].mxu0 %v1014_v32  ;;  %v8141_v58 = vpop.f32.mrb[35].mxu1 }
 0x665   :  { %7844 = vmatprep.mubr.msk.bf16.mxu0 %vm9898_vm0, %v14605_v26 }
 0x666   :  { %14655 = vst [vmem:[#allocation108_spill] sm:$0xff] %v10734_v29  ;;  %8247 = vmatmul.mubr.msk.bf16.gmra.mrb[140].mxu1 %vm3650_vm2, %v3501_v41 }
 0x667   :  { %v2755_v56 = vpop.f32.mrb[144].mxu0  ;;  %8250 = vmatprep.mubr.msk.bf16.mxu1 %vm9898_vm0, %v14605_v26 }
 0x668   :  { %v7738_v1 = vpop.f32.mrb[145].mxu0  ;;  %v9186_v58 = vadd.f32 %v10696_v0, %v2755_v56  ;;  %v1731_v56 = vadd.f32 %v10696_v0, %v10068_v37 }
 0x669   :  { %v2758_v5 = vpop.f32.mrb[146].mxu0  ;;  %v4136_v44 = vpop.f32.mrb[36].mxu1 }
 0x66a   :  { %v9187_v32 = vadd.f32 %v10696_v0, %v2758_v5  ;;  %v7739_v20 = vpop.f32.mrb[147].mxu0  ;;  %v8144_v19 = vpop.f32.mrb[37].mxu1  ;;  %v10746_v10 = vadd.f32 %v10604_v8, %v4136_v44 }
 0x66b   :  { %v4139_v52 = vpop.f32.mrb[38].mxu1 }
 0x66c   :  { %v3502_v31 = vpack.c.bf16 %v9187_v32, %v9186_v58  ;;  %14656 = vst [vmem:[#allocation109_spill] sm:$0xff] %v10746_v10  ;;  %v10749_v41 = vadd.f32 %v10604_v8, %v4139_v52  ;;  %7845 = vmatmul.mubr.bf16.gmra.mrb[104].mxu0 %v1017_v13  ;;  %v8145_v45 = vpop.f32.mrb[39].mxu1  ;;  %v1020_v58 = vpack.c.bf16 %v465_v28, %v462_v3  ;;  %v471_v3 = vld [vmem:[#allocation2 + $0xc58] sm:$0xff] }
 0x66d   :  { %7848 = vmatprep.mubr.msk.bf16.mxu0 %vm9898_vm0, %v14605_v26  ;;  %v1734_v45 = vadd.f32 %v10696_v0, %v10070_v40  ;;  %v468_v40 = vld [vmem:[#allocation2 + $0xc40] sm:$0xff]  ;;  %v1739_v28 = vadd.f32 %v10696_v0, %v10072_v47 }
 0x66e   :  { %8251 = vmatmul.mubr.msk.bf16.gmra.mrb[144].mxu1 %vm3650_vm2, %v3502_v31 }
 0x66f   :  { %v2763_v5 = vpop.f32.mrb[0].mxu0  ;;  %8254 = vmatprep.mubr.msk.bf16.mxu1 %vm9898_vm0, %v14605_v26 }
 0x670   :  { %v2764_v13 = vadd.f32 %v2763_v5, %v1731_v56  ;;  %v7742_v44 = vpop.f32.mrb[1].mxu0 }
 0x671   :  { %v2766_v32 = vpop.f32.mrb[2].mxu0  ;;  %v4144_v20 = vpop.f32.mrb[40].mxu1 }
 0x672   :  { %v2767_v19 = vadd.f32 %v2766_v32, %v1734_v45  ;;  %v7743_v52 = vpop.f32.mrb[3].mxu0  ;;  %v8148_v37 = vpop.f32.mrb[41].mxu1  ;;  %v10763_v1 = vadd.f32 %v10604_v8, %v4144_v20 }
 0x673   :  { %v4147_v29 = vpop.f32.mrb[42].mxu1 }
 0x674   :  { %v3503_v48 = vpack.c.bf16 %v2767_v19, %v2764_v13  ;;  %v10766_v31 = vadd.f32 %v10604_v8, %v4147_v29  ;;  %7849 = vmatmul.mubr.bf16.gmra.mrb[108].mxu0 %v1020_v58  ;;  %v8149_v10 = vpop.f32.mrb[43].mxu1  ;;  %v1742_v29 = vadd.f32 %v10696_v0, %v10074_v50  ;;  %v1023_v13 = vpack.c.bf16 %v471_v3, %v468_v40  ;;  %v474_v50 = vld [vmem:[#allocation2 + $0xc70] sm:$0xff]  ;;  %v477_v40 = vld [vmem:[#allocation2 + $0xc88] sm:$0xff] }
 0x675   :  { %7852 = vmatprep.mubr.msk.bf16.mxu0 %vm9898_vm0, %v14605_v26  ;;  %v1747_v3 = vadd.f32 %v10696_v0, %v10076_v57 }
 0x676   :  { %8255 = vmatmul.mubr.msk.bf16.gmra.mrb[148].mxu1 %vm3650_vm2, %v3503_v48 }
 0x677   :  { %v2771_v5 = vpop.f32.mrb[4].mxu0  ;;  %8258 = vmatprep.mubr.msk.bf16.mxu1 %vm9898_vm0, %v14605_v26 }
 0x678   :  { %v2772_v10 = vadd.f32 %v2771_v5, %v1739_v28  ;;  %v7746_v45 = vpop.f32.mrb[5].mxu0 }
 0x679   :  { %v2774_v44 = vpop.f32.mrb[6].mxu0  ;;  %v4152_v58 = vpop.f32.mrb[44].mxu1  ;;  %v1026_v45 = vpack.c.bf16 %v477_v40, %v474_v50  ;;  %v483_v50 = vld [vmem:[#allocation2 + $0xcb8] sm:$0xff]  ;;  %v1755_v40 = vadd.f32 %v10696_v0, %v10080_v4 }
 0x67a   :  { %v2775_v32 = vadd.f32 %v2774_v44, %v1742_v29  ;;  %v7747_v20 = vpop.f32.mrb[7].mxu0  ;;  %v8152_v47 = vpop.f32.mrb[45].mxu1  ;;  %v10780_v37 = vadd.f32 %v10604_v8, %v4152_v58 }
 0x67b   :  { %v4155_v19 = vpop.f32.mrb[46].mxu1 }
 0x67c   :  { %v3504_v52 = vpack.c.bf16 %v2775_v32, %v2772_v10  ;;  %v10783_v48 = vadd.f32 %v10604_v8, %v4155_v19  ;;  %7853 = vmatmul.mubr.bf16.gmra.mrb[112].mxu0 %v1023_v13  ;;  %v8153_v56 = vpop.f32.mrb[47].mxu1 }
 0x67d   :  { %7856 = vmatprep.mubr.msk.bf16.mxu0 %vm9898_vm0, %v14605_v26  ;;  %v1750_v56 = vadd.f32 %v10696_v0, %v10078_v60  ;;  %v480_v60 = vld [vmem:[#allocation2 + $0xca0] sm:$0xff] }
 0x67e   :  { %8259 = vmatmul.mubr.msk.bf16.gmra.mrb[152].mxu1 %vm3650_vm2, %v3504_v52 }
 0x67f   :  { %v2779_v5 = vpop.f32.mrb[8].mxu0  ;;  %8262 = vmatprep.mubr.msk.bf16.mxu1 %vm9898_vm0, %v14605_v26 }
 0x680   :  { %v2780_v29 = vadd.f32 %v2779_v5, %v1747_v3  ;;  %v7750_v10 = vpop.f32.mrb[9].mxu0 }
 0x681   :  { %v2782_v13 = vpop.f32.mrb[10].mxu0  ;;  %v4160_v44 = vpop.f32.mrb[48].mxu1  ;;  %v1029_v10 = vpack.c.bf16 %v483_v50, %v480_v60  ;;  %v489_v60 = vld [vmem:[#allocation2 + $0xce8] sm:$0xff]  ;;  %v1763_v50 = vadd.f32 %v10696_v0, %v10084_v14 }
 0x682   :  { %v2783_v58 = vadd.f32 %v2782_v13, %v1750_v56  ;;  %v7751_v32 = vpop.f32.mrb[11].mxu0  ;;  %v8156_v57 = vpop.f32.mrb[49].mxu1  ;;  %v10797_v19 = vadd.f32 %v10604_v8, %v4160_v44 }
 0x683   :  { %v4163_v20 = vpop.f32.mrb[50].mxu1 }
 0x684   :  { %v3505_v47 = vpack.c.bf16 %v2783_v58, %v2780_v29  ;;  %v10800_v52 = vadd.f32 %v10604_v8, %v4163_v20  ;;  %7857 = vmatmul.mubr.bf16.gmra.mrb[116].mxu0 %v1026_v45  ;;  %v8157_v28 = vpop.f32.mrb[51].mxu1 }
 0x685   :  { %7860 = vmatprep.mubr.msk.bf16.mxu0 %vm9898_vm0, %v14605_v26  ;;  %v1758_v28 = vadd.f32 %v10696_v0, %v10082_v7  ;;  %v486_v7 = vld [vmem:[#allocation2 + $0xcd0] sm:$0xff] }
 0x686   :  { %8263 = vmatmul.mubr.msk.bf16.gmra.mrb[156].mxu1 %vm3650_vm2, %v3505_v47 }
 0x687   :  { %v2787_v5 = vpop.f32.mrb[12].mxu0  ;;  %8266 = vmatprep.mubr.msk.bf16.mxu1 %vm9898_vm0, %v14605_v26 }
 0x688   :  { %v2788_v56 = vadd.f32 %v2787_v5, %v1755_v40  ;;  %v7754_v29 = vpop.f32.mrb[13].mxu0 }
 0x689   :  { %v2790_v45 = vpop.f32.mrb[14].mxu0  ;;  %v4168_v13 = vpop.f32.mrb[52].mxu1  ;;  %v1032_v29 = vpack.c.bf16 %v489_v60, %v486_v7  ;;  %v495_v7 = vld [vmem:[#allocation2 + $0xd18] sm:$0xff]  ;;  %v1771_v60 = vadd.f32 %v10696_v0, %v10088_v24 }
 0x68a   :  { %v2791_v44 = vadd.f32 %v2790_v45, %v1758_v28  ;;  %v7755_v58 = vpop.f32.mrb[15].mxu0  ;;  %v8160_v4 = vpop.f32.mrb[53].mxu1  ;;  %v10814_v20 = vadd.f32 %v10604_v8, %v4168_v13 }
 0x68b   :  { %v4171_v32 = vpop.f32.mrb[54].mxu1 }
 0x68c   :  { %v3506_v57 = vpack.c.bf16 %v2791_v44, %v2788_v56  ;;  %v10817_v47 = vadd.f32 %v10604_v8, %v4171_v32  ;;  %7861 = vmatmul.mubr.bf16.gmra.mrb[120].mxu0 %v1029_v10  ;;  %v8161_v3 = vpop.f32.mrb[55].mxu1 }
 0x68d   :  { %7864 = vmatprep.mubr.msk.bf16.mxu0 %vm9898_vm0, %v14605_v26  ;;  %v1766_v3 = vadd.f32 %v10696_v0, %v10086_v17  ;;  %v492_v17 = vld [vmem:[#allocation2 + $0xd00] sm:$0xff] }
 0x68e   :  { %8267 = vmatmul.mubr.msk.bf16.gmra.mrb[160].mxu1 %vm3650_vm2, %v3506_v57 }
 0x68f   :  { %v2795_v5 = vpop.f32.mrb[16].mxu0  ;;  %8270 = vmatprep.mubr.msk.bf16.mxu1 %vm9898_vm0, %v14605_v26 }
 0x690   :  { %v2796_v28 = vadd.f32 %v2795_v5, %v1763_v50  ;;  %v7758_v56 = vpop.f32.mrb[17].mxu0 }
 0x691   :  { %v2798_v10 = vpop.f32.mrb[18].mxu0  ;;  %v4176_v45 = vpop.f32.mrb[56].mxu1  ;;  %v1035_v56 = vpack.c.bf16 %v495_v7, %v492_v17  ;;  %v501_v17 = vld [vmem:[#allocation2 + $0xd48] sm:$0xff]  ;;  %v1779_v7 = vadd.f32 %v10696_v0, %v10092_v34 }
 0x692   :  { %v2799_v13 = vadd.f32 %v2798_v10, %v1766_v3  ;;  %v7759_v44 = vpop.f32.mrb[19].mxu0  ;;  %v8164_v14 = vpop.f32.mrb[57].mxu1  ;;  %v10831_v32 = vadd.f32 %v10604_v8, %v4176_v45 }
 0x693   :  { %v4179_v58 = vpop.f32.mrb[58].mxu1 }
 0x694   :  { %v3507_v4 = vpack.c.bf16 %v2799_v13, %v2796_v28  ;;  %v10834_v57 = vadd.f32 %v10604_v8, %v4179_v58  ;;  %7865 = vmatmul.mubr.bf16.gmra.mrb[124].mxu0 %v1032_v29  ;;  %v8165_v40 = vpop.f32.mrb[59].mxu1 }
 0x695   :  { %7868 = vmatprep.mubr.msk.bf16.mxu0 %vm9898_vm0, %v14605_v26  ;;  %v1774_v40 = vadd.f32 %v10696_v0, %v10090_v27  ;;  %v498_v27 = vld [vmem:[#allocation2 + $0xd30] sm:$0xff] }
 0x696   :  { %8271 = vmatmul.mubr.msk.bf16.gmra.mrb[164].mxu1 %vm3650_vm2, %v3507_v4 }
 0x697   :  { %v2803_v5 = vpop.f32.mrb[20].mxu0  ;;  %8274 = vmatprep.mubr.msk.bf16.mxu1 %vm9898_vm0, %v14605_v26 }
 0x698   :  { %v2804_v3 = vadd.f32 %v2803_v5, %v1771_v60  ;;  %v7762_v28 = vpop.f32.mrb[21].mxu0 }
 0x699   :  { %v2806_v29 = vpop.f32.mrb[22].mxu0  ;;  %v4184_v10 = vpop.f32.mrb[60].mxu1  ;;  %v1038_v28 = vpack.c.bf16 %v501_v17, %v498_v27  ;;  %v507_v27 = vld [vmem:[#allocation2 + $0xd78] sm:$0xff]  ;;  %v1787_v17 = vadd.f32 %v10696_v0, %v10096_v46 }
 0x69a   :  { %v2807_v45 = vadd.f32 %v2806_v29, %v1774_v40  ;;  %v7763_v13 = vpop.f32.mrb[23].mxu0  ;;  %v8168_v24 = vpop.f32.mrb[61].mxu1  ;;  %v10848_v58 = vadd.f32 %v10604_v8, %v4184_v10 }
 0x69b   :  { %v4187_v44 = vpop.f32.mrb[62].mxu1 }
 0x69c   :  { %v3508_v14 = vpack.c.bf16 %v2807_v45, %v2804_v3  ;;  %v10851_v4 = vadd.f32 %v10604_v8, %v4187_v44  ;;  %7869 = vmatmul.mubr.bf16.gmra.mrb[128].mxu0 %v1035_v56  ;;  %v8169_v50 = vpop.f32.mrb[63].mxu1 }
 0x69d   :  { %7872 = vmatprep.mubr.msk.bf16.mxu0 %vm9898_vm0, %v14605_v26  ;;  %v1782_v50 = vadd.f32 %v10696_v0, %v10094_v38  ;;  %v504_v38 = vld [vmem:[#allocation2 + $0xd60] sm:$0xff] }
 0x69e   :  { %8275 = vmatmul.mubr.msk.bf16.gmra.mrb[168].mxu1 %vm3650_vm2, %v3508_v14 }
 0x69f   :  { %v2811_v5 = vpop.f32.mrb[24].mxu0  ;;  %8278 = vmatprep.mubr.msk.bf16.mxu1 %vm9898_vm0, %v14605_v26 }
 0x6a0   :  { %v2812_v40 = vadd.f32 %v2811_v5, %v1779_v7  ;;  %v7766_v3 = vpop.f32.mrb[25].mxu0 }
 0x6a1   :  { %v2814_v56 = vpop.f32.mrb[26].mxu0  ;;  %v4192_v29 = vpop.f32.mrb[64].mxu1  ;;  %v1041_v3 = vpack.c.bf16 %v507_v27, %v504_v38  ;;  %v513_v38 = vld [vmem:[#allocation2 + $0xda8] sm:$0xff]  ;;  %v1795_v27 = vadd.f32 %v10696_v0, %v10100_v59 }
 0x6a2   :  { %v2815_v10 = vadd.f32 %v2814_v56, %v1782_v50  ;;  %v7767_v45 = vpop.f32.mrb[27].mxu0  ;;  %v8172_v34 = vpop.f32.mrb[65].mxu1  ;;  %v10865_v44 = vadd.f32 %v10604_v8, %v4192_v29 }
 0x6a3   :  { %v4195_v13 = vpop.f32.mrb[66].mxu1 }
 0x6a4   :  { %v3509_v24 = vpack.c.bf16 %v2815_v10, %v2812_v40  ;;  %v10868_v14 = vadd.f32 %v10604_v8, %v4195_v13  ;;  %7873 = vmatmul.mubr.bf16.gmra.mrb[132].mxu0 %v1038_v28  ;;  %v8173_v60 = vpop.f32.mrb[67].mxu1 }
 0x6a5   :  { %7876 = vmatprep.mubr.msk.bf16.mxu0 %vm9898_vm0, %v14605_v26  ;;  %v1790_v60 = vadd.f32 %v10696_v0, %v10098_v51  ;;  %v510_v51 = vld [vmem:[#allocation2 + $0xd90] sm:$0xff] }
 0x6a6   :  { %8279 = vmatmul.mubr.msk.bf16.gmra.mrb[172].mxu1 %vm3650_vm2, %v3509_v24 }
 0x6a7   :  { %v2819_v5 = vpop.f32.mrb[28].mxu0  ;;  %8282 = vmatprep.mubr.msk.bf16.mxu1 %vm9898_vm0, %v14605_v26 }
 0x6a8   :  { %v2820_v50 = vadd.f32 %v2819_v5, %v1787_v17  ;;  %v7770_v40 = vpop.f32.mrb[29].mxu0 }
 0x6a9   :  { %v2822_v28 = vpop.f32.mrb[30].mxu0  ;;  %v4200_v56 = vpop.f32.mrb[68].mxu1  ;;  %v1044_v40 = vpack.c.bf16 %v513_v38, %v510_v51  ;;  %v519_v51 = vld [vmem:[#allocation2 + $0xdd8] sm:$0xff]  ;;  %v1803_v38 = vadd.f32 %v10696_v0, %v10104_v9 }
 0x6aa   :  { %v2823_v29 = vadd.f32 %v2822_v28, %v1790_v60  ;;  %v7771_v10 = vpop.f32.mrb[31].mxu0  ;;  %v8176_v46 = vpop.f32.mrb[69].mxu1  ;;  %v10882_v13 = vadd.f32 %v10604_v8, %v4200_v56 }
 0x6ab   :  { %v4203_v45 = vpop.f32.mrb[70].mxu1 }
 0x6ac   :  { %v3510_v34 = vpack.c.bf16 %v2823_v29, %v2820_v50  ;;  %v10885_v24 = vadd.f32 %v10604_v8, %v4203_v45  ;;  %7877 = vmatmul.mubr.bf16.gmra.mrb[136].mxu0 %v1041_v3  ;;  %v8177_v7 = vpop.f32.mrb[71].mxu1 }
 0x6ad   :  { %7880 = vmatprep.mubr.msk.bf16.mxu0 %vm9898_vm0, %v14605_v26  ;;  %v1798_v7 = vadd.f32 %v10696_v0, %v10102_v63  ;;  %v516_v63 = vld [vmem:[#allocation2 + $0xdc0] sm:$0xff] }
 0x6ae   :  { %8283 = vmatmul.mubr.msk.bf16.gmra.mrb[176].mxu1 %vm3650_vm2, %v3510_v34 }
 0x6af   :  { %v2827_v5 = vpop.f32.mrb[32].mxu0  ;;  %8286 = vmatprep.mubr.msk.bf16.mxu1 %vm9898_vm0, %v14605_v26 }
 0x6b0   :  { %v2828_v60 = vadd.f32 %v2827_v5, %v1795_v27  ;;  %v7774_v50 = vpop.f32.mrb[33].mxu0 }
 0x6b1   :  { %v2830_v3 = vpop.f32.mrb[34].mxu0  ;;  %v4208_v28 = vpop.f32.mrb[72].mxu1  ;;  %v1047_v50 = vpack.c.bf16 %v519_v51, %v516_v63  ;;  %v525_v63 = vld [vmem:[#allocation2 + $0xe08] sm:$0xff]  ;;  %v1811_v51 = vadd.f32 %v10696_v0, %v10108_v21 }
 0x6b2   :  { %v2831_v56 = vadd.f32 %v2830_v3, %v1798_v7  ;;  %v7775_v29 = vpop.f32.mrb[35].mxu0  ;;  %v8180_v59 = vpop.f32.mrb[73].mxu1  ;;  %v10899_v45 = vadd.f32 %v10604_v8, %v4208_v28 }
 0x6b3   :  { %v4211_v10 = vpop.f32.mrb[74].mxu1 }
 0x6b4   :  { %v3511_v46 = vpack.c.bf16 %v2831_v56, %v2828_v60  ;;  %v10902_v34 = vadd.f32 %v10604_v8, %v4211_v10  ;;  %7881 = vmatmul.mubr.bf16.gmra.mrb[140].mxu0 %v1044_v40  ;;  %v8181_v17 = vpop.f32.mrb[75].mxu1 }
 0x6b5   :  { %7884 = vmatprep.mubr.msk.bf16.mxu0 %vm9898_vm0, %v14605_v26  ;;  %v1806_v17 = vadd.f32 %v10696_v0, %v10106_v12  ;;  %v522_v12 = vld [vmem:[#allocation2 + $0xdf0] sm:$0xff] }
 0x6b6   :  { %8287 = vmatmul.mubr.msk.bf16.gmra.mrb[180].mxu1 %vm3650_vm2, %v3511_v46 }
 0x6b7   :  { %v2835_v5 = vpop.f32.mrb[36].mxu0  ;;  %8290 = vmatprep.mubr.msk.bf16.mxu1 %vm9898_vm0, %v14605_v26 }
 0x6b8   :  { %v2836_v7 = vadd.f32 %v2835_v5, %v1803_v38  ;;  %v7778_v60 = vpop.f32.mrb[37].mxu0 }
 0x6b9   :  { %v2838_v40 = vpop.f32.mrb[38].mxu0  ;;  %v4216_v3 = vpop.f32.mrb[76].mxu1  ;;  %v1050_v60 = vpack.c.bf16 %v525_v63, %v522_v12  ;;  %v531_v12 = vld [vmem:[#allocation2 + $0xe38] sm:$0xff]  ;;  %v1819_v63 = vadd.f32 %v10696_v0, %v10112_v33 }
 0x6ba   :  { %v2839_v28 = vadd.f32 %v2838_v40, %v1806_v17  ;;  %v7779_v56 = vpop.f32.mrb[39].mxu0  ;;  %v8184_v9 = vpop.f32.mrb[77].mxu1  ;;  %v10916_v10 = vadd.f32 %v10604_v8, %v4216_v3 }
 0x6bb   :  { %v4219_v29 = vpop.f32.mrb[78].mxu1 }
 0x6bc   :  { %v3512_v59 = vpack.c.bf16 %v2839_v28, %v2836_v7  ;;  %v10919_v46 = vadd.f32 %v10604_v8, %v4219_v29  ;;  %7885 = vmatmul.mubr.bf16.gmra.mrb[144].mxu0 %v1047_v50  ;;  %v8185_v27 = vpop.f32.mrb[79].mxu1 }
 0x6bd   :  { %7888 = vmatprep.mubr.msk.bf16.mxu0 %vm9898_vm0, %v14605_v26  ;;  %v1814_v27 = vadd.f32 %v10696_v0, %v10110_v25  ;;  %v528_v25 = vld [vmem:[#allocation2 + $0xe20] sm:$0xff] }
 0x6be   :  { %8291 = vmatmul.mubr.msk.bf16.gmra.mrb[184].mxu1 %vm3650_vm2, %v3512_v59 }
 0x6bf   :  { %v2843_v5 = vpop.f32.mrb[40].mxu0  ;;  %8294 = vmatprep.mubr.msk.bf16.mxu1 %vm9898_vm0, %v14605_v26 }
 0x6c0   :  { %v2844_v17 = vadd.f32 %v2843_v5, %v1811_v51  ;;  %v7782_v7 = vpop.f32.mrb[41].mxu0  ;;  %v9784_v5 = vld [vmem:[%s14390_s5 + $0x10] sm:$0xff]  }
 0x6c1   :  { %v2846_v50 = vpop.f32.mrb[42].mxu0  ;;  %v4224_v40 = vpop.f32.mrb[80].mxu1  ;;  %8611 = vmatpush3.bf16.msra.mxu1 %v9784_v5 }
 0x6c2   :  { %v2847_v3 = vadd.f32 %v2846_v50, %v1814_v27  ;;  %v7783_v28 = vpop.f32.mrb[43].mxu0  ;;  %v8188_v21 = vpop.f32.mrb[81].mxu1  ;;  %v10933_v29 = vadd.f32 %v10604_v8, %v4224_v40  ;;  %8612 = vmatprep.subr.bf16.mxu1 %v14605_v26 }
 0x6c3   :  { %v4227_v56 = vpop.f32.mrb[82].mxu1 }
 0x6c4   :  { %v3513_v9 = vpack.c.bf16 %v2847_v3, %v2844_v17  ;;  %v10936_v59 = vadd.f32 %v10604_v8, %v4227_v56  ;;  %7889 = vmatmul.mubr.bf16.gmra.mrb[0].mxu0 %v1050_v60  ;;  %v8189_v38 = vpop.f32.mrb[83].mxu1  ;;  %v1053_v60 = vpack.c.bf16 %v531_v12, %v528_v25  ;;  %v534_v25 = vld [vmem:[#allocation2 + $0xe50] sm:$0xff]  ;;  %v537_v12 = vld [vmem:[#allocation2 + $0xe68] sm:$0xff] }
 0x6c5   :  { %7892 = vmatprep.mubr.msk.bf16.mxu0 %vm9898_vm0, %v14605_v26  ;;  %v1822_v38 = vadd.f32 %v10696_v0, %v10114_v39 }
 0x6c6   :  { %8295 = vmatmul.mubr.msk.bf16.gmra.mrb[188].mxu1 %vm3650_vm2, %v3513_v9 }
 0x6c7   :  { %v2851_v27 = vpop.f32.mrb[44].mxu0  ;;  %8298 = vmatprep.mubr.msk.bf16.mxu1 %vm9898_vm0, %v14605_v26 }
 0x6c8   :  { %v2852_v17 = vadd.f32 %v2851_v27, %v1819_v63  ;;  %v7786_v7 = vpop.f32.mrb[45].mxu0  ;;  %v1827_v63 = vadd.f32 %v10696_v0, %v10116_v49 }
 0x6c9   :  { %v2854_v33 = vpop.f32.mrb[46].mxu0  ;;  %v4232_v50 = vpop.f32.mrb[84].mxu1 }
 0x6ca   :  { %v2855_v40 = vadd.f32 %v2854_v33, %v1822_v38  ;;  %v7787_v3 = vpop.f32.mrb[47].mxu0  ;;  %v8192_v28 = vpop.f32.mrb[85].mxu1  ;;  %v10954_v9 = vadd.f32 %v10604_v8, %v4232_v50  ;;  %v1830_v38 = vadd.f32 %v10696_v0, %v10118_v54  ;;  %v540_v54 = vld [vmem:[#allocation2 + $0xe80] sm:$0xff] }
 0x6cb   :  { %v4235_v21 = vpop.f32.mrb[86].mxu1 }
 0x6cc   :  { %v3514_v56 = vpack.c.bf16 %v2855_v40, %v2852_v17  ;;  %v10957_v51 = vadd.f32 %v10604_v8, %v4235_v21  ;;  %7893 = vmatmul.mubr.bf16.gmra.mrb[4].mxu0 %v1053_v60  ;;  %v8193_v39 = vpop.f32.mrb[87].mxu1  ;;  %v1056_v60 = vpack.c.bf16 %v537_v12, %v534_v25  ;;  %v543_v25 = vld [vmem:[#allocation2 + $0xe98] sm:$0xff]  ;;  %v1835_v12 = vadd.f32 %v10696_v0, %v10120_v2 }
 0x6cd   :  { %7896 = vmatprep.mubr.msk.bf16.mxu0 %vm9898_vm0, %v14605_v26 }
 0x6ce   :  { %8299 = vmatmul.mubr.msk.bf16.gmra.mrb[192].mxu1 %vm3650_vm2, %v3514_v56 }
 0x6cf   :  { %v2859_v27 = vpop.f32.mrb[48].mxu0  ;;  %8302 = vmatprep.mubr.msk.bf16.mxu1 %vm9898_vm0, %v14605_v26 }
 0x6d0   :  { %v2860_v17 = vadd.f32 %v2859_v27, %v1827_v63  ;;  %v7790_v7 = vpop.f32.mrb[49].mxu0 }
 0x6d1   :  { %v2862_v33 = vpop.f32.mrb[50].mxu0  ;;  %v4240_v50 = vpop.f32.mrb[88].mxu1 }
 0x6d2   :  { %v2863_v40 = vadd.f32 %v2862_v33, %v1830_v38  ;;  %v7791_v3 = vpop.f32.mrb[51].mxu0  ;;  %v8196_v49 = vpop.f32.mrb[89].mxu1  ;;  %v10971_v39 = vadd.f32 %v10604_v8, %v4240_v50 }
 0x6d3   :  { %v4243_v28 = vpop.f32.mrb[90].mxu1  ;;  %v10987_v49 = vld [vmem:[#allocation6] ss:$0 sm:$0xff] }
 0x6d4   :  { %v3515_v21 = vpack.c.bf16 %v2863_v40, %v2860_v17  ;;  %v10974_v56 = vadd.f32 %v10604_v8, %v4243_v28  ;;  %7897 = vmatmul.mubr.bf16.gmra.mrb[8].mxu0 %v1056_v60  ;;  %v8197_v5 = vpop.f32.mrb[91].mxu1  ;;  %v1838_v8 = vadd.f32 %v10696_v0, %v10122_v6  ;;  %v1059_v17 = vpack.c.bf16 %v543_v25, %v540_v54  ;;  %v546_v54 = vld [vmem:[#allocation2 + $0xeb0] sm:$0xff]  ;;  %v549_v25 = vld [vmem:[#allocation2 + $0xec8] sm:$0xff] }
 0x6d5   :  { %7900 = vmatprep.mubr.msk.bf16.mxu0 %vm9898_vm0, %v14605_v26 }
 0x6d6   :  { %8303 = vmatmul.mubr.msk.bf16.gmra.mrb[196].mxu1 %vm3650_vm2, %v3515_v21 }
 0x6d7   :  { %v2867_v27 = vpop.f32.mrb[52].mxu0  ;;  %8306 = vmatprep.mubr.msk.bf16.mxu1 %vm9898_vm0, %v14605_v26 }
 0x6d8   :  { %v2868_v5 = vadd.f32 %v2867_v27, %v1835_v12  ;;  %v7794_v38 = vpop.f32.mrb[53].mxu0  ;;  %v1843_v12 = vadd.f32 %v10696_v0, %v10124_v18 }
 0x6d9   :  { %v2870_v7 = vpop.f32.mrb[54].mxu0  ;;  %v4248_v60 = vpop.f32.mrb[92].mxu1 }
 0x6da   :  { %v2871_v33 = vadd.f32 %v2870_v7, %v1838_v8  ;;  %v7795_v50 = vpop.f32.mrb[55].mxu0  ;;  %v8200_v2 = vpop.f32.mrb[93].mxu1  ;;  %v10990_v28 = vadd.f32 %v10987_v49, %v4248_v60  ;;  %v1062_v7 = vpack.c.bf16 %v549_v25, %v546_v54  ;;  %v555_v54 = vld [vmem:[#allocation2 + $0xef8] sm:$0xff]  ;;  %v1851_v25 = vadd.f32 %v10696_v0, %v10132_v35 }
 0x6db   :  { %v4251_v40 = vpop.f32.mrb[94].mxu1 }
 0x6dc   :  { %v3516_v3 = vpack.c.bf16 %v2871_v33, %v2868_v5  ;;  %v10993_v21 = vadd.f32 %v10987_v49, %v4251_v40  ;;  %7901 = vmatmul.mubr.bf16.gmra.mrb[12].mxu0 %v1059_v17  ;;  %v8201_v6 = vpop.f32.mrb[95].mxu1  ;;  %v1846_v5 = vadd.f32 %v10696_v0, %v10126_v22  ;;  %v552_v22 = vld [vmem:[#allocation2 + $0xee0] sm:$0xff] }
 0x6dd   :  { %7904 = vmatprep.mubr.msk.bf16.mxu0 %vm9898_vm0, %v14605_v26 }
 0x6de   :  { %8307 = vmatmul.mubr.msk.bf16.gmra.mrb[200].mxu1 %vm3650_vm2, %v3516_v3 }
 0x6df   :  { %v2875_v8 = vpop.f32.mrb[56].mxu0  ;;  %8310 = vmatprep.mubr.msk.bf16.mxu1 %vm9898_vm0, %v14605_v26 }
 0x6e0   :  { %v2876_v38 = vadd.f32 %v2875_v8, %v1843_v12  ;;  %v7798_v17 = vpop.f32.mrb[57].mxu0 }
 0x6e1   :  { %v2878_v60 = vpop.f32.mrb[58].mxu0  ;;  %v4256_v33 = vpop.f32.mrb[96].mxu1  ;;  %v1065_v17 = vpack.c.bf16 %v555_v54, %v552_v22  ;;  %v561_v22 = vld [vmem:[#allocation2 + $0xf28] sm:$0xff]  ;;  %v1859_v54 = vadd.f32 %v10696_v0, %v10136_v55 }
 0x6e2   :  { %v2879_v50 = vadd.f32 %v2878_v60, %v1846_v5  ;;  %v7799_v2 = vpop.f32.mrb[59].mxu0  ;;  %v8204_v18 = vpop.f32.mrb[97].mxu1  ;;  %v11007_v27 = vadd.f32 %v10987_v49, %v4256_v33 }
 0x6e3   :  { %v4259_v40 = vpop.f32.mrb[98].mxu1 }
 0x6e4   :  { %v3517_v6 = vpack.c.bf16 %v2879_v50, %v2876_v38  ;;  %v11010_v3 = vadd.f32 %v10987_v49, %v4259_v40  ;;  %7905 = vmatmul.mubr.bf16.gmra.mrb[16].mxu0 %v1062_v7  ;;  %v8205_v63 = vpop.f32.mrb[99].mxu1 }
 0x6e5   :  { %7908 = vmatprep.mubr.msk.bf16.mxu0 %vm9898_vm0, %v14605_v26  ;;  %v1854_v63 = vadd.f32 %v10696_v0, %v10134_v42  ;;  %v558_v42 = vld [vmem:[#allocation2 + $0xf10] sm:$0xff] }
 0x6e6   :  { %8311 = vmatmul.mubr.msk.bf16.gmra.mrb[204].mxu1 %vm3650_vm2, %v3517_v6 }
 0x6e7   :  { %v2883_v8 = vpop.f32.mrb[60].mxu0  ;;  %8314 = vmatprep.mubr.msk.bf16.mxu1 %vm9898_vm0, %v14605_v26 }
 0x6e8   :  { %v2884_v5 = vadd.f32 %v2883_v8, %v1851_v25  ;;  %v7802_v38 = vpop.f32.mrb[61].mxu0 }
 0x6e9   :  { %v2886_v7 = vpop.f32.mrb[62].mxu0  ;;  %v4264_v60 = vpop.f32.mrb[100].mxu1  ;;  %v1068_v38 = vpack.c.bf16 %v561_v22, %v558_v42  ;;  %v567_v42 = vld [vmem:[#allocation2 + $0xf58] sm:$0xff]  ;;  %v1867_v22 = vadd.f32 %v10696_v0, %v10140_v11 }
 0x6ea   :  { %v2887_v33 = vadd.f32 %v2886_v7, %v1854_v63  ;;  %v7803_v50 = vpop.f32.mrb[63].mxu0  ;;  %v8208_v35 = vpop.f32.mrb[101].mxu1  ;;  %v11024_v40 = vadd.f32 %v10987_v49, %v4264_v60 }
 0x6eb   :  { %v4267_v2 = vpop.f32.mrb[102].mxu1 }
 0x6ec   :  { %v3518_v18 = vpack.c.bf16 %v2887_v33, %v2884_v5  ;;  %v11027_v6 = vadd.f32 %v10987_v49, %v4267_v2  ;;  %7909 = vmatmul.mubr.bf16.gmra.mrb[20].mxu0 %v1065_v17  ;;  %v8209_v12 = vpop.f32.mrb[103].mxu1 }
 0x6ed   :  { %7912 = vmatprep.mubr.msk.bf16.mxu0 %vm9898_vm0, %v14605_v26  ;;  %v1862_v12 = vadd.f32 %v10696_v0, %v10138_v61  ;;  %v564_v61 = vld [vmem:[#allocation2 + $0xf40] sm:$0xff] }
 0x6ee   :  { %8315 = vmatmul.mubr.msk.bf16.gmra.mrb[208].mxu1 %vm3650_vm2, %v3518_v18 }
 0x6ef   :  { %v2891_v8 = vpop.f32.mrb[64].mxu0  ;;  %8318 = vmatprep.mubr.msk.bf16.mxu1 %vm9898_vm0, %v14605_v26 }
 0x6f0   :  { %v2892_v63 = vadd.f32 %v2891_v8, %v1859_v54  ;;  %v7806_v5 = vpop.f32.mrb[65].mxu0 }
 0x6f1   :  { %v2894_v17 = vpop.f32.mrb[66].mxu0  ;;  %v4272_v7 = vpop.f32.mrb[104].mxu1  ;;  %v1071_v5 = vpack.c.bf16 %v567_v42, %v564_v61  ;;  %v573_v61 = vld [vmem:[#allocation2 + $0xf88] sm:$0xff]  ;;  %v1875_v42 = vadd.f32 %v10696_v0, %v10144_v30 }
 0x6f2   :  { %v2895_v60 = vadd.f32 %v2894_v17, %v1862_v12  ;;  %v7807_v33 = vpop.f32.mrb[67].mxu0  ;;  %v8212_v55 = vpop.f32.mrb[105].mxu1  ;;  %v11041_v2 = vadd.f32 %v10987_v49, %v4272_v7 }
 0x6f3   :  { %v4275_v50 = vpop.f32.mrb[106].mxu1 }
 0x6f4   :  { %v3519_v35 = vpack.c.bf16 %v2895_v60, %v2892_v63  ;;  %v11044_v18 = vadd.f32 %v10987_v49, %v4275_v50  ;;  %7913 = vmatmul.mubr.bf16.gmra.mrb[24].mxu0 %v1068_v38  ;;  %v8213_v25 = vpop.f32.mrb[107].mxu1 }
 0x6f5   :  { %7916 = vmatprep.mubr.msk.bf16.mxu0 %vm9898_vm0, %v14605_v26  ;;  %v1870_v25 = vadd.f32 %v10696_v0, %v10142_v16  ;;  %v570_v16 = vld [vmem:[#allocation2 + $0xf70] sm:$0xff] }
 0x6f6   :  { %8319 = vmatmul.mubr.msk.bf16.gmra.mrb[212].mxu1 %vm3650_vm2, %v3519_v35 }
 0x6f7   :  { %v2899_v8 = vpop.f32.mrb[68].mxu0  ;;  %8322 = vmatprep.mubr.msk.bf16.mxu1 %vm9898_vm0, %v14605_v26 }
 0x6f8   :  { %v2900_v12 = vadd.f32 %v2899_v8, %v1867_v22  ;;  %v7810_v63 = vpop.f32.mrb[69].mxu0 }
 0x6f9   :  { %v2902_v38 = vpop.f32.mrb[70].mxu0  ;;  %v4280_v17 = vpop.f32.mrb[108].mxu1  ;;  %v1074_v63 = vpack.c.bf16 %v573_v61, %v570_v16  ;;  %v11082_v16 = vld [vmem:[#allocation4] ss:$0 sm:$0xff] }
 0x6fa   :  { %v2903_v7 = vadd.f32 %v2902_v38, %v1870_v25  ;;  %v7811_v60 = vpop.f32.mrb[71].mxu0  ;;  %v8216_v11 = vpop.f32.mrb[109].mxu1  ;;  %v11058_v50 = vadd.f32 %v10987_v49, %v4280_v17  ;;  %v1883_v61 = vadd.f32 %v11082_v16, %v10148_v53 }
 0x6fb   :  { %v4283_v33 = vpop.f32.mrb[110].mxu1 }
 0x6fc   :  { %v3520_v55 = vpack.c.bf16 %v2903_v7, %v2900_v12  ;;  %v11061_v35 = vadd.f32 %v10987_v49, %v4283_v33  ;;  %7917 = vmatmul.mubr.bf16.gmra.mrb[28].mxu0 %v1071_v5  ;;  %v8217_v54 = vpop.f32.mrb[111].mxu1 }
 0x6fd   :  { %7920 = vmatprep.mubr.msk.bf16.mxu0 %vm9898_vm0, %v14605_v26  ;;  %v1878_v54 = vadd.f32 %v10696_v0, %v10146_v36  ;;  %v576_v36 = vld [vmem:[#allocation2 + $0xfa0] sm:$0xff]  ;;  %v579_v0 = vld [vmem:[#allocation2 + $0xfb8] sm:$0xff] }
 0x6fe   :  { %8323 = vmatmul.mubr.msk.bf16.gmra.mrb[216].mxu1 %vm3650_vm2, %v3520_v55 }
 0x6ff   :  { %v2907_v8 = vpop.f32.mrb[72].mxu0  ;;  %8326 = vmatprep.mubr.msk.bf16.mxu1 %vm9898_vm0, %v14605_v26 }
 0x700   :  { %v2908_v25 = vadd.f32 %v2907_v8, %v1875_v42  ;;  %v7814_v12 = vpop.f32.mrb[73].mxu0 }
 0x701   :  { %v2910_v5 = vpop.f32.mrb[74].mxu0  ;;  %v4288_v38 = vpop.f32.mrb[112].mxu1  ;;  %v1077_v12 = vpack.c.bf16 %v579_v0, %v576_v36  ;;  %v585_v36 = vld [vmem:[#allocation2 + $0xfe8] sm:$0xff]  ;;  %v1891_v0 = vadd.f32 %v11082_v16, %v10152_v15 }
 0x702   :  { %v2911_v17 = vadd.f32 %v2910_v5, %v1878_v54  ;;  %v7815_v7 = vpop.f32.mrb[75].mxu0  ;;  %v8220_v30 = vpop.f32.mrb[113].mxu1  ;;  %v11075_v33 = vadd.f32 %v10987_v49, %v4288_v38 }
 0x703   :  { %v4291_v60 = vpop.f32.mrb[114].mxu1 }
 0x704   :  { %v3521_v11 = vpack.c.bf16 %v2911_v17, %v2908_v25  ;;  %v11078_v55 = vadd.f32 %v10987_v49, %v4291_v60  ;;  %7921 = vmatmul.mubr.bf16.gmra.mrb[32].mxu0 %v1074_v63  ;;  %v8221_v22 = vpop.f32.mrb[115].mxu1 }
 0x705   :  { %7924 = vmatprep.mubr.msk.bf16.mxu0 %vm9898_vm0, %v14605_v26  ;;  %v1886_v22 = vadd.f32 %v11082_v16, %v10150_v62  ;;  %v582_v62 = vld [vmem:[#allocation2 + $0xfd0] sm:$0xff] }
 0x706   :  { %8327 = vmatmul.mubr.msk.bf16.gmra.mrb[220].mxu1 %vm3650_vm2, %v3521_v11 }
 0x707   :  { %v2915_v8 = vpop.f32.mrb[76].mxu0  ;;  %8330 = vmatprep.mubr.msk.bf16.mxu1 %vm9898_vm0, %v14605_v26 }
 0x708   :  { %v2916_v54 = vadd.f32 %v2915_v8, %v1883_v61  ;;  %v7818_v25 = vpop.f32.mrb[77].mxu0 }
 0x709   :  { %v2918_v63 = vpop.f32.mrb[78].mxu0  ;;  %v4296_v5 = vpop.f32.mrb[116].mxu1  ;;  %v1080_v25 = vpack.c.bf16 %v585_v36, %v582_v62  ;;  %v591_v62 = vld [vmem:[#allocation2 + $0x1018] sm:$0xff]  ;;  %v1899_v36 = vadd.f32 %v11082_v16, %v10156_v43 }
 0x70a   :  { %v2919_v38 = vadd.f32 %v2918_v63, %v1886_v22  ;;  %v7819_v17 = vpop.f32.mrb[79].mxu0  ;;  %v8224_v53 = vpop.f32.mrb[117].mxu1  ;;  %v11094_v60 = vadd.f32 %v10987_v49, %v4296_v5 }
 0x70b   :  { %v4299_v7 = vpop.f32.mrb[118].mxu1 }
 0x70c   :  { %v3522_v30 = vpack.c.bf16 %v2919_v38, %v2916_v54  ;;  %v11097_v11 = vadd.f32 %v10987_v49, %v4299_v7  ;;  %7925 = vmatmul.mubr.bf16.gmra.mrb[36].mxu0 %v1077_v12  ;;  %v8225_v42 = vpop.f32.mrb[119].mxu1 }
 0x70d   :  { %7928 = vmatprep.mubr.msk.bf16.mxu0 %vm9898_vm0, %v14605_v26  ;;  %v1894_v42 = vadd.f32 %v11082_v16, %v10154_v23  ;;  %v588_v23 = vld [vmem:[#allocation2 + $0x1000] sm:$0xff] }
 0x70e   :  { %8331 = vmatmul.mubr.msk.bf16.gmra.mrb[224].mxu1 %vm3650_vm2, %v3522_v30 }
 0x70f   :  { %v2923_v8 = vpop.f32.mrb[80].mxu0  ;;  %8334 = vmatprep.mubr.msk.bf16.mxu1 %vm9898_vm0, %v14605_v26 }
 0x710   :  { %v2924_v22 = vadd.f32 %v2923_v8, %v1891_v0  ;;  %v7822_v54 = vpop.f32.mrb[81].mxu0 }
 0x711   :  { %v2926_v12 = vpop.f32.mrb[82].mxu0  ;;  %v4304_v63 = vpop.f32.mrb[120].mxu1 }
 0x712   :  { %v2927_v5 = vadd.f32 %v2926_v12, %v1894_v42  ;;  %v7823_v38 = vpop.f32.mrb[83].mxu0  ;;  %v8228_v15 = vpop.f32.mrb[121].mxu1  ;;  %v11111_v7 = vadd.f32 %v10987_v49, %v4304_v63  ;;  %v14659_v42 = vld [vmem:[#allocation12_spill] sm:$0xff] }
 0x713   :  { %v4307_v17 = vpop.f32.mrb[122].mxu1 }
 0x714   :  { %v3523_v53 = vpack.c.bf16 %v2927_v5, %v2924_v22  ;;  %14657 = vst [vmem:[#allocation110_spill] sm:$0xff] %v11111_v7  ;;  %v11114_v30 = vadd.f32 %v10987_v49, %v4307_v17  ;;  %7929 = vmatmul.mubr.bf16.gmra.mrb[40].mxu0 %v1080_v25  ;;  %v8229_v61 = vpop.f32.mrb[123].mxu1  ;;  %v1083_v25 = vpack.c.bf16 %v591_v62, %v588_v23  ;;  %v597_v23 = vld [vmem:[#allocation2 + $0x1048] sm:$0xff]  ;;  %v14662_v62 = vld [vmem:[#allocation13_spill] sm:$0xff] }
 0x715   :  { %7932 = vmatprep.mubr.msk.bf16.mxu0 %vm9898_vm0, %v14605_v26  ;;  %v1902_v61 = vadd.f32 %v11082_v16, %v14659_v42 }
 0x716   :  { %14658 = vst [vmem:[#allocation111_spill] sm:$0xff] %v11114_v30  ;;  %8335 = vmatmul.mubr.msk.bf16.gmra.mrb[228].mxu1 %vm3650_vm2, %v3523_v53 }
 0x717   :  { %v2931_v8 = vpop.f32.mrb[84].mxu0  ;;  %8338 = vmatprep.mubr.msk.bf16.mxu1 %vm9898_vm0, %v14605_v26 }
 0x718   :  { %v2932_v22 = vadd.f32 %v2931_v8, %v1899_v36  ;;  %v7826_v54 = vpop.f32.mrb[85].mxu0  ;;  %v594_v36 = vld [vmem:[#allocation2 + $0x1030] sm:$0xff]  ;;  %v1907_v8 = vadd.f32 %v11082_v16, %v14662_v62 }
 0x719   :  { %v2934_v12 = vpop.f32.mrb[86].mxu0  ;;  %v4312_v63 = vpop.f32.mrb[124].mxu1 }
 0x71a   :  { %v2935_v5 = vadd.f32 %v2934_v12, %v1902_v61  ;;  %v7827_v38 = vpop.f32.mrb[87].mxu0  ;;  %v8232_v43 = vpop.f32.mrb[125].mxu1  ;;  %v11128_v0 = vadd.f32 %v10987_v49, %v4312_v63  ;;  %v1086_v12 = vpack.c.bf16 %v597_v23, %v594_v36  ;;  %v603_v36 = vld [vmem:[#allocation2 + $0x1078] sm:$0xff]  ;;  %v14666_v23 = vld [vmem:[#allocation15_spill] sm:$0xff] }
 0x71b   :  { %v4315_v15 = vpop.f32.mrb[126].mxu1 }
 0x71c   :  { %v3524_v17 = vpack.c.bf16 %v2935_v5, %v2932_v22  ;;  %14660 = vst [vmem:[#allocation12_spill] sm:$0xff] %v11128_v0  ;;  %v11131_v53 = vadd.f32 %v10987_v49, %v4315_v15  ;;  %7933 = vmatmul.mubr.bf16.gmra.mrb[44].mxu0 %v1083_v25  ;;  %v8233_v7 = vpop.f32.mrb[127].mxu1  ;;  %v14663_v22 = vld [vmem:[#allocation14_spill] sm:$0xff] }
 0x71d   :  { %7936 = vmatprep.mubr.msk.bf16.mxu0 %vm9898_vm0, %v14605_v26  ;;  %v1910_v7 = vadd.f32 %v11082_v16, %v14663_v22 }
 0x71e   :  { %14661 = vst [vmem:[#allocation112_spill] sm:$0xff] %v11131_v53  ;;  %8339 = vmatmul.mubr.msk.bf16.gmra.mrb[232].mxu1 %vm3650_vm2, %v3524_v17 }
 0x71f   :  { %v2939_v61 = vpop.f32.mrb[88].mxu0  ;;  %8342 = vmatprep.mubr.msk.bf16.mxu1 %vm9898_vm0, %v14605_v26 }
 0x720   :  { %v2940_v54 = vadd.f32 %v2939_v61, %v1907_v8  ;;  %v7830_v25 = vpop.f32.mrb[89].mxu0  ;;  %v600_v8 = vld [vmem:[#allocation2 + $0x1060] sm:$0xff]  ;;  %v1915_v61 = vadd.f32 %v11082_v16, %v14666_v23 }
 0x721   :  { %v2942_v63 = vpop.f32.mrb[90].mxu0  ;;  %v4320_v5 = vpop.f32.mrb[128].mxu1 }
 0x722   :  { %v2943_v38 = vadd.f32 %v2942_v63, %v1910_v7  ;;  %v7831_v43 = vpop.f32.mrb[91].mxu0  ;;  %v8236_v15 = vpop.f32.mrb[129].mxu1  ;;  %v11145_v42 = vadd.f32 %v10987_v49, %v4320_v5  ;;  %v1089_v63 = vpack.c.bf16 %v603_v36, %v600_v8  ;;  %v609_v8 = vld [vmem:[#allocation2 + $0x10a8] sm:$0xff] }
 0x723   :  { %v4323_v62 = vpop.f32.mrb[130].mxu1 }
 0x724   :  { %v3525_v30 = vpack.c.bf16 %v2943_v38, %v2940_v54  ;;  %14664 = vst [vmem:[#allocation13_spill] sm:$0xff] %v11145_v42  ;;  %v11148_v17 = vadd.f32 %v10987_v49, %v4323_v62  ;;  %7937 = vmatmul.mubr.bf16.gmra.mrb[48].mxu0 %v1086_v12  ;;  %v8237_v0 = vpop.f32.mrb[131].mxu1  ;;  %v14667_v54 = vld [vmem:[#allocation16_spill] sm:$0xff] }
 0x725   :  { %7940 = vmatprep.mubr.msk.bf16.mxu0 %vm9898_vm0, %v14605_v26  ;;  %v1918_v0 = vadd.f32 %v11082_v16, %v14667_v54 }
 0x726   :  { %14665 = vst [vmem:[#allocation14_spill] sm:$0xff] %v11148_v17  ;;  %8343 = vmatmul.mubr.msk.bf16.gmra.mrb[236].mxu1 %vm3650_vm2, %v3525_v30 }
 0x727   :  { %v2947_v7 = vpop.f32.mrb[92].mxu0  ;;  %8346 = vmatprep.mubr.msk.bf16.mxu1 %vm9898_vm0, %v14605_v26 }
 0x728   :  { %v2948_v25 = vadd.f32 %v2947_v7, %v1915_v61  ;;  %v7834_v12 = vpop.f32.mrb[93].mxu0  ;;  %v606_v61 = vld [vmem:[#allocation2 + $0x1090] sm:$0xff]  ;;  %v14670_v7 = vld [vmem:[#allocation17_spill] sm:$0xff] }
 0x729   :  { %v2950_v5 = vpop.f32.mrb[94].mxu0  ;;  %v4328_v38 = vpop.f32.mrb[132].mxu1  ;;  %v1923_v54 = vadd.f32 %v11082_v16, %v14670_v7 }
 0x72a   :  { %v2951_v43 = vadd.f32 %v2950_v5, %v1918_v0  ;;  %v7835_v15 = vpop.f32.mrb[95].mxu0  ;;  %v8240_v62 = vpop.f32.mrb[133].mxu1  ;;  %v11162_v22 = vadd.f32 %v10987_v49, %v4328_v38  ;;  %v1092_v5 = vpack.c.bf16 %v609_v8, %v606_v61  ;;  %v615_v61 = vld [vmem:[#allocation2 + $0x10d8] sm:$0xff] }
 0x72b   :  { %v4331_v23 = vpop.f32.mrb[134].mxu1 }
 0x72c   :  { %v3526_v53 = vpack.c.bf16 %v2951_v43, %v2948_v25  ;;  %14668 = vst [vmem:[#allocation15_spill] sm:$0xff] %v11162_v22  ;;  %v11165_v30 = vadd.f32 %v10987_v49, %v4331_v23  ;;  %7941 = vmatmul.mubr.bf16.gmra.mrb[52].mxu0 %v1089_v63  ;;  %v8241_v42 = vpop.f32.mrb[135].mxu1 }
 0x72d   :  { %7944 = vmatprep.mubr.msk.bf16.mxu0 %vm9898_vm0, %v14605_v26  ;;  %v14671_v42 = vld [vmem:[#allocation18_spill] sm:$0xff] }
 0x72e   :  { %14669 = vst [vmem:[#allocation16_spill] sm:$0xff] %v11165_v30  ;;  %8347 = vmatmul.mubr.msk.bf16.gmra.mrb[240].mxu1 %vm3650_vm2, %v3526_v53  ;;  %v1926_v63 = vadd.f32 %v11082_v16, %v14671_v42 }
 0x72f   :  { %v2955_v0 = vpop.f32.mrb[96].mxu0  ;;  %8350 = vmatprep.mubr.msk.bf16.mxu1 %vm9898_vm0, %v14605_v26 }
 0x730   :  { %v2956_v25 = vadd.f32 %v2955_v0, %v1923_v54  ;;  %v7838_v12 = vpop.f32.mrb[97].mxu0  ;;  %v612_v0 = vld [vmem:[#allocation2 + $0x10c0] sm:$0xff] }
 0x731   :  { %v2958_v38 = vpop.f32.mrb[98].mxu0  ;;  %v4336_v43 = vpop.f32.mrb[136].mxu1  ;;  %v14674_v12 = vld [vmem:[#allocation19_spill] sm:$0xff] }
 0x732   :  { %v2959_v15 = vadd.f32 %v2958_v38, %v1926_v63  ;;  %v7839_v62 = vpop.f32.mrb[99].mxu0  ;;  %v8244_v23 = vpop.f32.mrb[137].mxu1  ;;  %v11179_v22 = vadd.f32 %v10987_v49, %v4336_v43  ;;  %v1095_v43 = vpack.c.bf16 %v615_v61, %v612_v0  ;;  %v621_v0 = vld [vmem:[#allocation2 + $0x1108] sm:$0xff] }
 0x733   :  { %v4339_v36 = vpop.f32.mrb[138].mxu1 }
 0x734   :  { %v3527_v53 = vpack.c.bf16 %v2959_v15, %v2956_v25  ;;  %14672 = vst [vmem:[#allocation17_spill] sm:$0xff] %v11179_v22  ;;  %v11182_v7 = vadd.f32 %v10987_v49, %v4339_v36  ;;  %7945 = vmatmul.mubr.bf16.gmra.mrb[56].mxu0 %v1092_v5  ;;  %v8245_v54 = vpop.f32.mrb[139].mxu1  ;;  %v1931_v25 = vadd.f32 %v11082_v16, %v14674_v12  ;;  %v14675_v5 = vld [vmem:[#allocation20_spill] sm:$0xff] }
 0x735   :  { %7948 = vmatprep.mubr.msk.bf16.mxu0 %vm9898_vm0, %v14605_v26  ;;  %v1934_v38 = vadd.f32 %v11082_v16, %v14675_v5 }
 0x736   :  { %14673 = vst [vmem:[#allocation18_spill] sm:$0xff] %v11182_v7  ;;  %8351 = vmatmul.mubr.msk.bf16.gmra.mrb[244].mxu1 %vm3650_vm2, %v3527_v53 }
 0x737   :  { %v2963_v42 = vpop.f32.mrb[100].mxu0  ;;  %8354 = vmatprep.mubr.msk.bf16.mxu1 %vm9898_vm0, %v14605_v26 }
 0x738   :  { %v2964_v36 = vadd.f32 %v2963_v42, %v1931_v25  ;;  %v7842_v63 = vpop.f32.mrb[101].mxu0  ;;  %v618_v42 = vld [vmem:[#allocation2 + $0x10f0] sm:$0xff] }
 0x739   :  { %v2966_v15 = vpop.f32.mrb[102].mxu0  ;;  %v4344_v62 = vpop.f32.mrb[140].mxu1 }
 0x73a   :  { %v2967_v23 = vadd.f32 %v2966_v15, %v1934_v38  ;;  %v7843_v54 = vpop.f32.mrb[103].mxu0  ;;  %v8248_v8 = vpop.f32.mrb[141].mxu1  ;;  %v11196_v7 = vadd.f32 %v10987_v49, %v4344_v62  ;;  %v14679_v38 = vld [vmem:[#allocation22_spill] sm:$0xff]  ;;  %v1098_v15 = vpack.c.bf16 %v621_v0, %v618_v42  ;;  %v627_v42 = vld [vmem:[#allocation2 + $0x1138] sm:$0xff] }
 0x73b   :  { %v4347_v22 = vpop.f32.mrb[142].mxu1  ;;  %v14678_v8 = vld [vmem:[#allocation21_spill] sm:$0xff] }
 0x73c   :  { %v3528_v53 = vpack.c.bf16 %v2967_v23, %v2964_v36  ;;  %14676 = vst [vmem:[#allocation19_spill] sm:$0xff] %v11196_v7  ;;  %v11199_v12 = vadd.f32 %v10987_v49, %v4347_v22  ;;  %7949 = vmatmul.mubr.bf16.gmra.mrb[60].mxu0 %v1095_v43  ;;  %v8249_v25 = vpop.f32.mrb[143].mxu1  ;;  %v1939_v36 = vadd.f32 %v11082_v16, %v14678_v8 }
 0x73d   :  { %7952 = vmatprep.mubr.msk.bf16.mxu0 %vm9898_vm0, %v14605_v26  ;;  %v1942_v43 = vadd.f32 %v11082_v16, %v14679_v38 }
 0x73e   :  { %14677 = vst [vmem:[#allocation20_spill] sm:$0xff] %v11199_v12  ;;  %8355 = vmatmul.mubr.msk.bf16.gmra.mrb[248].mxu1 %vm3650_vm2, %v3528_v53 }
 0x73f   :  { %v2971_v63 = vpop.f32.mrb[104].mxu0  ;;  %8358 = vmatprep.mubr.msk.bf16.mxu1 %vm9898_vm0, %v14605_v26 }
 0x740   :  { %v2972_v22 = vadd.f32 %v2971_v63, %v1939_v36  ;;  %v7846_v5 = vpop.f32.mrb[105].mxu0  ;;  %v624_v63 = vld [vmem:[#allocation2 + $0x1120] sm:$0xff] }
 0x741   :  { %v2974_v62 = vpop.f32.mrb[106].mxu0  ;;  %v4352_v23 = vpop.f32.mrb[144].mxu1 }
 0x742   :  { %v2975_v54 = vadd.f32 %v2974_v62, %v1942_v43  ;;  %v7847_v25 = vpop.f32.mrb[107].mxu0  ;;  %v8252_v61 = vpop.f32.mrb[145].mxu1  ;;  %v11213_v12 = vadd.f32 %v10987_v49, %v4352_v23  ;;  %v14683_v43 = vld [vmem:[#allocation24_spill] sm:$0xff]  ;;  %v1101_v62 = vpack.c.bf16 %v627_v42, %v624_v63  ;;  %v633_v63 = vld [vmem:[#allocation2 + $0x1168] sm:$0xff] }
 0x743   :  { %v4355_v7 = vpop.f32.mrb[146].mxu1  ;;  %v14682_v61 = vld [vmem:[#allocation23_spill] sm:$0xff] }
 0x744   :  { %v3529_v53 = vpack.c.bf16 %v2975_v54, %v2972_v22  ;;  %14680 = vst [vmem:[#allocation21_spill] sm:$0xff] %v11213_v12  ;;  %v11216_v8 = vadd.f32 %v10987_v49, %v4355_v7  ;;  %7953 = vmatmul.mubr.bf16.gmra.mrb[64].mxu0 %v1098_v15  ;;  %v8253_v36 = vpop.f32.mrb[147].mxu1  ;;  %v1947_v22 = vadd.f32 %v11082_v16, %v14682_v61 }
 0x745   :  { %7956 = vmatprep.mubr.msk.bf16.mxu0 %vm9898_vm0, %v14605_v26  ;;  %v1950_v15 = vadd.f32 %v11082_v16, %v14683_v43 }
 0x746   :  { %14681 = vst [vmem:[#allocation22_spill] sm:$0xff] %v11216_v8  ;;  %8359 = vmatmul.mubr.msk.bf16.gmra.mrb[252].mxu1 %vm3650_vm2, %v3529_v53 }
 0x747   :  { %v2979_v5 = vpop.f32.mrb[108].mxu0  ;;  %8362 = vmatprep.mubr.msk.bf16.mxu1 %vm9898_vm0, %v14605_v26 }
 0x748   :  { %v2980_v7 = vadd.f32 %v2979_v5, %v1947_v22  ;;  %v7850_v38 = vpop.f32.mrb[109].mxu0  ;;  %v630_v5 = vld [vmem:[#allocation2 + $0x1150] sm:$0xff] }
 0x749   :  { %v2982_v23 = vpop.f32.mrb[110].mxu0  ;;  %v4360_v54 = vpop.f32.mrb[148].mxu1 }
 0x74a   :  { %v2983_v25 = vadd.f32 %v2982_v23, %v1950_v15  ;;  %v7851_v36 = vpop.f32.mrb[111].mxu0  ;;  %v8256_v0 = vpop.f32.mrb[149].mxu1  ;;  %v11230_v8 = vadd.f32 %v10987_v49, %v4360_v54  ;;  %v14687_v15 = vld [vmem:[#allocation26_spill] sm:$0xff]  ;;  %v1104_v23 = vpack.c.bf16 %v633_v63, %v630_v5  ;;  %v639_v5 = vld [vmem:[#allocation2 + $0x1198] sm:$0xff] }
 0x74b   :  { %v4363_v12 = vpop.f32.mrb[150].mxu1  ;;  %v14686_v0 = vld [vmem:[#allocation25_spill] sm:$0xff] }
 0x74c   :  { %v3530_v53 = vpack.c.bf16 %v2983_v25, %v2980_v7  ;;  %14684 = vst [vmem:[#allocation23_spill] sm:$0xff] %v11230_v8  ;;  %v11233_v61 = vadd.f32 %v10987_v49, %v4363_v12  ;;  %7957 = vmatmul.mubr.bf16.gmra.mrb[68].mxu0 %v1101_v62  ;;  %v8257_v22 = vpop.f32.mrb[151].mxu1  ;;  %v1955_v7 = vadd.f32 %v11082_v16, %v14686_v0 }
 0x74d   :  { %7960 = vmatprep.mubr.msk.bf16.mxu0 %vm9898_vm0, %v14605_v26  ;;  %v1958_v62 = vadd.f32 %v11082_v16, %v14687_v15 }
 0x74e   :  { %14685 = vst [vmem:[#allocation24_spill] sm:$0xff] %v11233_v61  ;;  %8363 = vmatmul.mubr.msk.bf16.gmra.mrb[0].mxu1 %vm3650_vm2, %v3530_v53 }
 0x74f   :  { %v2987_v38 = vpop.f32.mrb[112].mxu0  ;;  %8366 = vmatprep.mubr.msk.bf16.mxu1 %vm9898_vm0, %v14605_v26 }
 0x750   :  { %v2988_v12 = vadd.f32 %v2987_v38, %v1955_v7  ;;  %v7854_v43 = vpop.f32.mrb[113].mxu0  ;;  %v636_v38 = vld [vmem:[#allocation2 + $0x1180] sm:$0xff] }
 0x751   :  { %v2990_v54 = vpop.f32.mrb[114].mxu0  ;;  %v4368_v25 = vpop.f32.mrb[152].mxu1 }
 0x752   :  { %v2991_v36 = vadd.f32 %v2990_v54, %v1958_v62  ;;  %v7855_v22 = vpop.f32.mrb[115].mxu0  ;;  %v8260_v42 = vpop.f32.mrb[153].mxu1  ;;  %v11247_v61 = vadd.f32 %v10987_v49, %v4368_v25  ;;  %v14691_v62 = vld [vmem:[#allocation28_spill] sm:$0xff]  ;;  %v1107_v54 = vpack.c.bf16 %v639_v5, %v636_v38  ;;  %v645_v38 = vld [vmem:[#allocation2 + $0x11c8] sm:$0xff] }
 0x753   :  { %v4371_v8 = vpop.f32.mrb[154].mxu1  ;;  %v14690_v42 = vld [vmem:[#allocation27_spill] sm:$0xff] }
 0x754   :  { %v3531_v53 = vpack.c.bf16 %v2991_v36, %v2988_v12  ;;  %14688 = vst [vmem:[#allocation25_spill] sm:$0xff] %v11247_v61  ;;  %v11250_v0 = vadd.f32 %v10987_v49, %v4371_v8  ;;  %7961 = vmatmul.mubr.bf16.gmra.mrb[72].mxu0 %v1104_v23  ;;  %v8261_v7 = vpop.f32.mrb[155].mxu1  ;;  %v1963_v12 = vadd.f32 %v11082_v16, %v14690_v42 }
 0x755   :  { %7964 = vmatprep.mubr.msk.bf16.mxu0 %vm9898_vm0, %v14605_v26  ;;  %v1966_v23 = vadd.f32 %v11082_v16, %v14691_v62 }
 0x756   :  { %14689 = vst [vmem:[#allocation26_spill] sm:$0xff] %v11250_v0  ;;  %8367 = vmatmul.mubr.msk.bf16.gmra.mrb[4].mxu1 %vm3650_vm2, %v3531_v53 }
 0x757   :  { %v2995_v43 = vpop.f32.mrb[116].mxu0  ;;  %8370 = vmatprep.mubr.msk.bf16.mxu1 %vm9898_vm0, %v14605_v26 }
 0x758   :  { %v2996_v8 = vadd.f32 %v2995_v43, %v1963_v12  ;;  %v7858_v15 = vpop.f32.mrb[117].mxu0  ;;  %v642_v43 = vld [vmem:[#allocation2 + $0x11b0] sm:$0xff] }
 0x759   :  { %v2998_v25 = vpop.f32.mrb[118].mxu0  ;;  %v4376_v36 = vpop.f32.mrb[156].mxu1 }
 0x75a   :  { %v2999_v22 = vadd.f32 %v2998_v25, %v1966_v23  ;;  %v7859_v7 = vpop.f32.mrb[119].mxu0  ;;  %v8264_v63 = vpop.f32.mrb[157].mxu1  ;;  %v11264_v0 = vadd.f32 %v10987_v49, %v4376_v36  ;;  %v14695_v23 = vld [vmem:[#allocation30_spill] sm:$0xff]  ;;  %v1110_v25 = vpack.c.bf16 %v645_v38, %v642_v43  ;;  %v651_v43 = vld [vmem:[#allocation2 + $0x11f8] sm:$0xff] }
 0x75b   :  { %v4379_v61 = vpop.f32.mrb[158].mxu1  ;;  %v14694_v63 = vld [vmem:[#allocation29_spill] sm:$0xff] }
 0x75c   :  { %v3532_v53 = vpack.c.bf16 %v2999_v22, %v2996_v8  ;;  %14692 = vst [vmem:[#allocation27_spill] sm:$0xff] %v11264_v0  ;;  %v11267_v42 = vadd.f32 %v10987_v49, %v4379_v61  ;;  %7965 = vmatmul.mubr.bf16.gmra.mrb[76].mxu0 %v1107_v54  ;;  %v8265_v12 = vpop.f32.mrb[159].mxu1  ;;  %v1971_v8 = vadd.f32 %v11082_v16, %v14694_v63 }
 0x75d   :  { %7968 = vmatprep.mubr.msk.bf16.mxu0 %vm9898_vm0, %v14605_v26  ;;  %v1974_v54 = vadd.f32 %v11082_v16, %v14695_v23 }
 0x75e   :  { %14693 = vst [vmem:[#allocation28_spill] sm:$0xff] %v11267_v42  ;;  %8371 = vmatmul.mubr.msk.bf16.gmra.mrb[8].mxu1 %vm3650_vm2, %v3532_v53 }
 0x75f   :  { %v3003_v15 = vpop.f32.mrb[120].mxu0  ;;  %8374 = vmatprep.mubr.msk.bf16.mxu1 %vm9898_vm0, %v14605_v26 }
 0x760   :  { %v3004_v61 = vadd.f32 %v3003_v15, %v1971_v8  ;;  %v7862_v62 = vpop.f32.mrb[121].mxu0  ;;  %v648_v15 = vld [vmem:[#allocation2 + $0x11e0] sm:$0xff] }
 0x761   :  { %v3006_v36 = vpop.f32.mrb[122].mxu0  ;;  %v4384_v22 = vpop.f32.mrb[160].mxu1 }
 0x762   :  { %v3007_v7 = vadd.f32 %v3006_v36, %v1974_v54  ;;  %v7863_v12 = vpop.f32.mrb[123].mxu0  ;;  %v8268_v5 = vpop.f32.mrb[161].mxu1  ;;  %v11281_v42 = vadd.f32 %v10987_v49, %v4384_v22  ;;  %v14699_v54 = vld [vmem:[#allocation32_spill] sm:$0xff]  ;;  %v1113_v36 = vpack.c.bf16 %v651_v43, %v648_v15  ;;  %v657_v15 = vld [vmem:[#allocation2 + $0x1228] sm:$0xff] }
 0x763   :  { %v4387_v0 = vpop.f32.mrb[162].mxu1  ;;  %v14698_v5 = vld [vmem:[#allocation31_spill] sm:$0xff] }
 0x764   :  { %v3533_v53 = vpack.c.bf16 %v3007_v7, %v3004_v61  ;;  %14696 = vst [vmem:[#allocation29_spill] sm:$0xff] %v11281_v42  ;;  %v11284_v63 = vadd.f32 %v10987_v49, %v4387_v0  ;;  %7969 = vmatmul.mubr.bf16.gmra.mrb[80].mxu0 %v1110_v25  ;;  %v8269_v8 = vpop.f32.mrb[163].mxu1  ;;  %v1979_v61 = vadd.f32 %v11082_v16, %v14698_v5 }
 0x765   :  { %7972 = vmatprep.mubr.msk.bf16.mxu0 %vm9898_vm0, %v14605_v26  ;;  %v1982_v25 = vadd.f32 %v11082_v16, %v14699_v54 }
 0x766   :  { %14697 = vst [vmem:[#allocation30_spill] sm:$0xff] %v11284_v63  ;;  %8375 = vmatmul.mubr.msk.bf16.gmra.mrb[12].mxu1 %vm3650_vm2, %v3533_v53 }
 0x767   :  { %v3011_v62 = vpop.f32.mrb[124].mxu0  ;;  %8378 = vmatprep.mubr.msk.bf16.mxu1 %vm9898_vm0, %v14605_v26 }
 0x768   :  { %v3012_v0 = vadd.f32 %v3011_v62, %v1979_v61  ;;  %v7866_v23 = vpop.f32.mrb[125].mxu0  ;;  %v654_v62 = vld [vmem:[#allocation2 + $0x1210] sm:$0xff] }
 0x769   :  { %v3014_v22 = vpop.f32.mrb[126].mxu0  ;;  %v4392_v7 = vpop.f32.mrb[164].mxu1 }
 0x76a   :  { %v3015_v12 = vadd.f32 %v3014_v22, %v1982_v25  ;;  %v7867_v8 = vpop.f32.mrb[127].mxu0  ;;  %v8272_v38 = vpop.f32.mrb[165].mxu1  ;;  %v11298_v63 = vadd.f32 %v10987_v49, %v4392_v7  ;;  %v14703_v25 = vld [vmem:[#allocation34_spill] sm:$0xff]  ;;  %v1116_v22 = vpack.c.bf16 %v657_v15, %v654_v62  ;;  %v663_v62 = vld [vmem:[#allocation2 + $0x1258] sm:$0xff] }
 0x76b   :  { %v4395_v42 = vpop.f32.mrb[166].mxu1  ;;  %v14702_v38 = vld [vmem:[#allocation33_spill] sm:$0xff] }
 0x76c   :  { %v3534_v53 = vpack.c.bf16 %v3015_v12, %v3012_v0  ;;  %14700 = vst [vmem:[#allocation31_spill] sm:$0xff] %v11298_v63  ;;  %v11301_v5 = vadd.f32 %v10987_v49, %v4395_v42  ;;  %7973 = vmatmul.mubr.bf16.gmra.mrb[84].mxu0 %v1113_v36  ;;  %v8273_v61 = vpop.f32.mrb[167].mxu1  ;;  %v1987_v0 = vadd.f32 %v11082_v16, %v14702_v38 }
 0x76d   :  { %7976 = vmatprep.mubr.msk.bf16.mxu0 %vm9898_vm0, %v14605_v26  ;;  %v1990_v36 = vadd.f32 %v11082_v16, %v14703_v25 }
 0x76e   :  { %14701 = vst [vmem:[#allocation32_spill] sm:$0xff] %v11301_v5  ;;  %8379 = vmatmul.mubr.msk.bf16.gmra.mrb[16].mxu1 %vm3650_vm2, %v3534_v53 }
 0x76f   :  { %v3019_v23 = vpop.f32.mrb[128].mxu0  ;;  %8382 = vmatprep.mubr.msk.bf16.mxu1 %vm9898_vm0, %v14605_v26 }
 0x770   :  { %v3020_v42 = vadd.f32 %v3019_v23, %v1987_v0  ;;  %v7870_v54 = vpop.f32.mrb[129].mxu0  ;;  %v660_v23 = vld [vmem:[#allocation2 + $0x1240] sm:$0xff] }
 0x771   :  { %v3022_v7 = vpop.f32.mrb[130].mxu0  ;;  %v4400_v12 = vpop.f32.mrb[168].mxu1 }
 0x772   :  { %v3023_v8 = vadd.f32 %v3022_v7, %v1990_v36  ;;  %v7871_v61 = vpop.f32.mrb[131].mxu0  ;;  %v8276_v43 = vpop.f32.mrb[169].mxu1  ;;  %v11315_v5 = vadd.f32 %v10987_v49, %v4400_v12  ;;  %v14707_v36 = vld [vmem:[#allocation36_spill] sm:$0xff]  ;;  %v1119_v7 = vpack.c.bf16 %v663_v62, %v660_v23  ;;  %v669_v23 = vld [vmem:[#allocation2 + $0x1288] sm:$0xff] }
 0x773   :  { %v4403_v63 = vpop.f32.mrb[170].mxu1  ;;  %v14706_v43 = vld [vmem:[#allocation35_spill] sm:$0xff] }
 0x774   :  { %v3535_v53 = vpack.c.bf16 %v3023_v8, %v3020_v42  ;;  %14704 = vst [vmem:[#allocation33_spill] sm:$0xff] %v11315_v5  ;;  %v11318_v38 = vadd.f32 %v10987_v49, %v4403_v63  ;;  %7977 = vmatmul.mubr.bf16.gmra.mrb[88].mxu0 %v1116_v22  ;;  %v8277_v0 = vpop.f32.mrb[171].mxu1  ;;  %v1995_v42 = vadd.f32 %v11082_v16, %v14706_v43 }
 0x775   :  { %7980 = vmatprep.mubr.msk.bf16.mxu0 %vm9898_vm0, %v14605_v26  ;;  %v1998_v22 = vadd.f32 %v11082_v16, %v14707_v36 }
 0x776   :  { %14705 = vst [vmem:[#allocation34_spill] sm:$0xff] %v11318_v38  ;;  %8383 = vmatmul.mubr.msk.bf16.gmra.mrb[20].mxu1 %vm3650_vm2, %v3535_v53 }
 0x777   :  { %v3027_v54 = vpop.f32.mrb[132].mxu0  ;;  %8386 = vmatprep.mubr.msk.bf16.mxu1 %vm9898_vm0, %v14605_v26 }
 0x778   :  { %v3028_v63 = vadd.f32 %v3027_v54, %v1995_v42  ;;  %v7874_v25 = vpop.f32.mrb[133].mxu0  ;;  %v666_v54 = vld [vmem:[#allocation2 + $0x1270] sm:$0xff] }
 0x779   :  { %v3030_v12 = vpop.f32.mrb[134].mxu0  ;;  %v4408_v8 = vpop.f32.mrb[172].mxu1 }
 0x77a   :  { %v3031_v61 = vadd.f32 %v3030_v12, %v1998_v22  ;;  %v7875_v0 = vpop.f32.mrb[135].mxu0  ;;  %v8280_v15 = vpop.f32.mrb[173].mxu1  ;;  %v11332_v38 = vadd.f32 %v10987_v49, %v4408_v8  ;;  %v14711_v22 = vld [vmem:[#allocation38_spill] sm:$0xff]  ;;  %v1122_v12 = vpack.c.bf16 %v669_v23, %v666_v54  ;;  %v675_v54 = vld [vmem:[#allocation2 + $0x12b8] sm:$0xff] }
 0x77b   :  { %v4411_v5 = vpop.f32.mrb[174].mxu1  ;;  %v14710_v15 = vld [vmem:[#allocation37_spill] sm:$0xff] }
 0x77c   :  { %v3536_v53 = vpack.c.bf16 %v3031_v61, %v3028_v63  ;;  %14708 = vst [vmem:[#allocation35_spill] sm:$0xff] %v11332_v38  ;;  %v11335_v43 = vadd.f32 %v10987_v49, %v4411_v5  ;;  %7981 = vmatmul.mubr.bf16.gmra.mrb[92].mxu0 %v1119_v7  ;;  %v8281_v42 = vpop.f32.mrb[175].mxu1  ;;  %v2003_v63 = vadd.f32 %v11082_v16, %v14710_v15 }
 0x77d   :  { %7984 = vmatprep.mubr.msk.bf16.mxu0 %vm9898_vm0, %v14605_v26  ;;  %v2006_v7 = vadd.f32 %v11082_v16, %v14711_v22 }
 0x77e   :  { %14709 = vst [vmem:[#allocation36_spill] sm:$0xff] %v11335_v43  ;;  %8387 = vmatmul.mubr.msk.bf16.gmra.mrb[24].mxu1 %vm3650_vm2, %v3536_v53 }
 0x77f   :  { %v3035_v25 = vpop.f32.mrb[136].mxu0  ;;  %8390 = vmatprep.mubr.msk.bf16.mxu1 %vm9898_vm0, %v14605_v26 }
 0x780   :  { %v3036_v5 = vadd.f32 %v3035_v25, %v2003_v63  ;;  %v7878_v36 = vpop.f32.mrb[137].mxu0  ;;  %v672_v25 = vld [vmem:[#allocation2 + $0x12a0] sm:$0xff] }
 0x781   :  { %v3038_v8 = vpop.f32.mrb[138].mxu0  ;;  %v4416_v61 = vpop.f32.mrb[176].mxu1 }
 0x782   :  { %v3039_v0 = vadd.f32 %v3038_v8, %v2006_v7  ;;  %v7879_v42 = vpop.f32.mrb[139].mxu0  ;;  %v8284_v62 = vpop.f32.mrb[177].mxu1  ;;  %v11349_v43 = vadd.f32 %v10987_v49, %v4416_v61  ;;  %v14715_v7 = vld [vmem:[#allocation40_spill] sm:$0xff]  ;;  %v1125_v8 = vpack.c.bf16 %v675_v54, %v672_v25  ;;  %v681_v25 = vld [vmem:[#allocation2 + $0x12e8] sm:$0xff] }
 0x783   :  { %v4419_v38 = vpop.f32.mrb[178].mxu1  ;;  %v14714_v62 = vld [vmem:[#allocation39_spill] sm:$0xff] }
 0x784   :  { %v3537_v53 = vpack.c.bf16 %v3039_v0, %v3036_v5  ;;  %14712 = vst [vmem:[#allocation37_spill] sm:$0xff] %v11349_v43  ;;  %v11352_v15 = vadd.f32 %v10987_v49, %v4419_v38  ;;  %7985 = vmatmul.mubr.bf16.gmra.mrb[176].mxu0 %v1122_v12  ;;  %v8285_v63 = vpop.f32.mrb[179].mxu1  ;;  %v2011_v5 = vadd.f32 %v11082_v16, %v14714_v62 }
 0x785   :  { %7988 = vmatprep.mubr.msk.bf16.mxu0 %vm9898_vm0, %v14605_v26  ;;  %v2014_v12 = vadd.f32 %v11082_v16, %v14715_v7  ;;  %v14719_v7 = vld [vmem:[#allocation42_spill] sm:$0xff] }
 0x786   :  { %14713 = vst [vmem:[#allocation38_spill] sm:$0xff] %v11352_v15  ;;  %8391 = vmatmul.mubr.msk.bf16.gmra.mrb[28].mxu1 %vm3650_vm2, %v3537_v53 }
 0x787   :  { %v3043_v36 = vpop.f32.mrb[140].mxu0  ;;  %8394 = vmatprep.mubr.msk.bf16.mxu1 %vm9898_vm0, %v14605_v26 }
 0x788   :  { %v3044_v38 = vadd.f32 %v3043_v36, %v2011_v5  ;;  %v7882_v22 = vpop.f32.mrb[141].mxu0  ;;  %v678_v36 = vld [vmem:[#allocation2 + $0x12d0] sm:$0xff] }
 0x789   :  { %v3046_v61 = vpop.f32.mrb[142].mxu0  ;;  %v4424_v0 = vpop.f32.mrb[180].mxu1 }
 0x78a   :  { %v3047_v42 = vadd.f32 %v3046_v61, %v2014_v12  ;;  %v7883_v63 = vpop.f32.mrb[143].mxu0  ;;  %v8288_v23 = vpop.f32.mrb[181].mxu1  ;;  %v11366_v15 = vadd.f32 %v10987_v49, %v4424_v0  ;;  %v2022_v12 = vadd.f32 %v11082_v16, %v14719_v7 }
 0x78b   :  { %v4427_v43 = vpop.f32.mrb[182].mxu1  ;;  %v14718_v23 = vld [vmem:[#allocation41_spill] sm:$0xff] }
 0x78c   :  { %v3538_v53 = vpack.c.bf16 %v3047_v42, %v3044_v38  ;;  %14716 = vst [vmem:[#allocation39_spill] sm:$0xff] %v11366_v15  ;;  %v11369_v62 = vadd.f32 %v10987_v49, %v4427_v43  ;;  %7989 = vmatmul.mubr.bf16.gmra.mrb[180].mxu0 %v1125_v8  ;;  %v8289_v5 = vpop.f32.mrb[183].mxu1  ;;  %v2019_v38 = vadd.f32 %v11082_v16, %v14718_v23  ;;  %v11382_v15 = vld [vmem:[#allocation6] ss:$0 sm:$0xff] }
 0x78d   :  { %7992 = vmatprep.mubr.msk.bf16.mxu0 %vm9898_vm0, %v14605_v26  ;;  %v1128_v8 = vpack.c.bf16 %v681_v25, %v678_v36  ;;  %v684_v36 = vld [vmem:[#allocation2 + $0x1300] sm:$0xff]  ;;  %v687_v25 = vld [vmem:[#allocation2 + $0x1318] sm:$0xff] }
 0x78e   :  { %14717 = vst [vmem:[#allocation40_spill] sm:$0xff] %v11369_v62  ;;  %8395 = vmatmul.mubr.msk.bf16.gmra.mrb[32].mxu1 %vm3650_vm2, %v3538_v53 }
 0x78f   :  { %v3051_v22 = vpop.f32.mrb[144].mxu0  ;;  %8398 = vmatprep.mubr.msk.bf16.mxu1 %vm9898_vm0, %v14605_v26 }
 0x790   :  { %v3052_v49 = vadd.f32 %v3051_v22, %v2019_v38  ;;  %v7886_v43 = vpop.f32.mrb[145].mxu0 }
 0x791   :  { %v3054_v61 = vpop.f32.mrb[146].mxu0  ;;  %v4432_v0 = vpop.f32.mrb[184].mxu1 }
 0x792   :  { %v3055_v42 = vadd.f32 %v3054_v61, %v2022_v12  ;;  %v7887_v63 = vpop.f32.mrb[147].mxu0  ;;  %v8292_v5 = vpop.f32.mrb[185].mxu1  ;;  %v11385_v23 = vadd.f32 %v11382_v15, %v4432_v0  ;;  %v1131_v0 = vpack.c.bf16 %v687_v25, %v684_v36  ;;  %v693_v36 = vld [vmem:[#allocation2 + $0x1348] sm:$0xff] }
 0x793   :  { %v4435_v54 = vpop.f32.mrb[186].mxu1 }
 0x794   :  { %v3539_v53 = vpack.c.bf16 %v3055_v42, %v3052_v49  ;;  %14720 = vst [vmem:[#allocation41_spill] sm:$0xff] %v11385_v23  ;;  %v11388_v62 = vadd.f32 %v11382_v15, %v4435_v54  ;;  %7993 = vmatmul.mubr.bf16.gmra.mrb[184].mxu0 %v1128_v8  ;;  %v8293_v38 = vpop.f32.mrb[187].mxu1  ;;  %v14722_v49 = vld [vmem:[#allocation43_spill] sm:$0xff]  ;;  %v14723_v8 = vld [vmem:[#allocation44_spill] sm:$0xff] }
 0x795   :  { %7996 = vmatprep.mubr.msk.bf16.mxu0 %vm9898_vm0, %v14605_v26  ;;  %v2027_v43 = vadd.f32 %v11082_v16, %v14722_v49  ;;  %v2030_v61 = vadd.f32 %v11082_v16, %v14723_v8 }
 0x796   :  { %14721 = vst [vmem:[#allocation42_spill] sm:$0xff] %v11388_v62  ;;  %8399 = vmatmul.mubr.msk.bf16.gmra.mrb[36].mxu1 %vm3650_vm2, %v3539_v53 }
 0x797   :  { %v3059_v7 = vpop.f32.mrb[0].mxu0  ;;  %8402 = vmatprep.mubr.msk.bf16.mxu1 %vm9898_vm0, %v14605_v26 }
 0x798   :  { %v3060_v54 = vadd.f32 %v3059_v7, %v2027_v43  ;;  %v7890_v12 = vpop.f32.mrb[1].mxu0  ;;  %v690_v7 = vld [vmem:[#allocation2 + $0x1330] sm:$0xff] }
 0x799   :  { %v3062_v42 = vpop.f32.mrb[2].mxu0  ;;  %v4440_v63 = vpop.f32.mrb[188].mxu1 }
 0x79a   :  { %v3063_v5 = vadd.f32 %v3062_v42, %v2030_v61  ;;  %v7891_v38 = vpop.f32.mrb[3].mxu0  ;;  %v8296_v22 = vpop.f32.mrb[189].mxu1  ;;  %v11402_v62 = vadd.f32 %v11382_v15, %v4440_v63  ;;  %v14727_v61 = vld [vmem:[#allocation46_spill] sm:$0xff]  ;;  %v1134_v42 = vpack.c.bf16 %v693_v36, %v690_v7  ;;  %v699_v7 = vld [vmem:[#allocation2 + $0x1378] sm:$0xff] }
 0x79b   :  { %v4443_v23 = vpop.f32.mrb[190].mxu1  ;;  %v14726_v22 = vld [vmem:[#allocation45_spill] sm:$0xff] }
 0x79c   :  { %v3540_v53 = vpack.c.bf16 %v3063_v5, %v3060_v54  ;;  %14724 = vst [vmem:[#allocation43_spill] sm:$0xff] %v11402_v62  ;;  %v11405_v49 = vadd.f32 %v11382_v15, %v4443_v23  ;;  %7997 = vmatmul.mubr.bf16.gmra.mrb[188].mxu0 %v1131_v0  ;;  %v8297_v43 = vpop.f32.mrb[191].mxu1  ;;  %v2035_v54 = vadd.f32 %v11082_v16, %v14726_v22 }
 0x79d   :  { %8000 = vmatprep.mubr.msk.bf16.mxu0 %vm9898_vm0, %v14605_v26  ;;  %v2038_v0 = vadd.f32 %v11082_v16, %v14727_v61 }
 0x79e   :  { %14725 = vst [vmem:[#allocation44_spill] sm:$0xff] %v11405_v49  ;;  %8403 = vmatmul.mubr.msk.bf16.gmra.mrb[40].mxu1 %vm3650_vm2, %v3540_v53 }
 0x79f   :  { %v3067_v12 = vpop.f32.mrb[4].mxu0  ;;  %8406 = vmatprep.mubr.msk.bf16.mxu1 %vm9898_vm0, %v14605_v26 }
 0x7a0   :  { %v3068_v23 = vadd.f32 %v3067_v12, %v2035_v54  ;;  %v7894_v8 = vpop.f32.mrb[5].mxu0  ;;  %v696_v12 = vld [vmem:[#allocation2 + $0x1360] sm:$0xff] }
 0x7a1   :  { %v3070_v63 = vpop.f32.mrb[6].mxu0  ;;  %v4448_v5 = vpop.f32.mrb[192].mxu1 }
 0x7a2   :  { %v3071_v38 = vadd.f32 %v3070_v63, %v2038_v0  ;;  %v7895_v43 = vpop.f32.mrb[7].mxu0  ;;  %v8300_v25 = vpop.f32.mrb[193].mxu1  ;;  %v11419_v49 = vadd.f32 %v11382_v15, %v4448_v5  ;;  %v14731_v0 = vld [vmem:[#allocation48_spill] sm:$0xff]  ;;  %v1137_v63 = vpack.c.bf16 %v699_v7, %v696_v12  ;;  %v705_v12 = vld [vmem:[#allocation2 + $0x13a8] sm:$0xff] }
 0x7a3   :  { %v4451_v62 = vpop.f32.mrb[194].mxu1  ;;  %v14730_v25 = vld [vmem:[#allocation47_spill] sm:$0xff] }
 0x7a4   :  { %v3541_v53 = vpack.c.bf16 %v3071_v38, %v3068_v23  ;;  %14728 = vst [vmem:[#allocation45_spill] sm:$0xff] %v11419_v49  ;;  %v11422_v22 = vadd.f32 %v11382_v15, %v4451_v62  ;;  %8001 = vmatmul.mubr.bf16.gmra.mrb[192].mxu0 %v1134_v42  ;;  %v8301_v54 = vpop.f32.mrb[195].mxu1  ;;  %v2043_v23 = vadd.f32 %v11082_v16, %v14730_v25 }
 0x7a5   :  { %8004 = vmatprep.mubr.msk.bf16.mxu0 %vm9898_vm0, %v14605_v26  ;;  %v2046_v42 = vadd.f32 %v11082_v16, %v14731_v0 }
 0x7a6   :  { %14729 = vst [vmem:[#allocation46_spill] sm:$0xff] %v11422_v22  ;;  %8407 = vmatmul.mubr.msk.bf16.gmra.mrb[44].mxu1 %vm3650_vm2, %v3541_v53 }
 0x7a7   :  { %v3075_v8 = vpop.f32.mrb[8].mxu0  ;;  %8410 = vmatprep.mubr.msk.bf16.mxu1 %vm9898_vm0, %v14605_v26 }
 0x7a8   :  { %v3076_v62 = vadd.f32 %v3075_v8, %v2043_v23  ;;  %v7898_v61 = vpop.f32.mrb[9].mxu0  ;;  %v702_v8 = vld [vmem:[#allocation2 + $0x1390] sm:$0xff] }
 0x7a9   :  { %v3078_v5 = vpop.f32.mrb[10].mxu0  ;;  %v4456_v38 = vpop.f32.mrb[196].mxu1 }
 0x7aa   :  { %v3079_v43 = vadd.f32 %v3078_v5, %v2046_v42  ;;  %v7899_v54 = vpop.f32.mrb[11].mxu0  ;;  %v8304_v36 = vpop.f32.mrb[197].mxu1  ;;  %v11436_v22 = vadd.f32 %v11382_v15, %v4456_v38  ;;  %v14735_v42 = vld [vmem:[#allocation50_spill] sm:$0xff]  ;;  %v1140_v5 = vpack.c.bf16 %v705_v12, %v702_v8  ;;  %v711_v8 = vld [vmem:[#allocation2 + $0x13d8] sm:$0xff] }
 0x7ab   :  { %v4459_v49 = vpop.f32.mrb[198].mxu1  ;;  %v14734_v36 = vld [vmem:[#allocation49_spill] sm:$0xff] }
 0x7ac   :  { %v3542_v53 = vpack.c.bf16 %v3079_v43, %v3076_v62  ;;  %14732 = vst [vmem:[#allocation47_spill] sm:$0xff] %v11436_v22  ;;  %v11439_v25 = vadd.f32 %v11382_v15, %v4459_v49  ;;  %8005 = vmatmul.mubr.bf16.gmra.mrb[196].mxu0 %v1137_v63  ;;  %v8305_v23 = vpop.f32.mrb[199].mxu1  ;;  %v2051_v62 = vadd.f32 %v11082_v16, %v14734_v36 }
 0x7ad   :  { %8008 = vmatprep.mubr.msk.bf16.mxu0 %vm9898_vm0, %v14605_v26  ;;  %v2054_v63 = vadd.f32 %v11082_v16, %v14735_v42 }
 0x7ae   :  { %14733 = vst [vmem:[#allocation48_spill] sm:$0xff] %v11439_v25  ;;  %8411 = vmatmul.mubr.msk.bf16.gmra.mrb[48].mxu1 %vm3650_vm2, %v3542_v53 }
 0x7af   :  { %v3083_v61 = vpop.f32.mrb[12].mxu0  ;;  %8414 = vmatprep.mubr.msk.bf16.mxu1 %vm9898_vm0, %v14605_v26 }
 0x7b0   :  { %v3084_v49 = vadd.f32 %v3083_v61, %v2051_v62  ;;  %v7902_v0 = vpop.f32.mrb[13].mxu0  ;;  %v708_v61 = vld [vmem:[#allocation2 + $0x13c0] sm:$0xff] }
 0x7b1   :  { %v3086_v38 = vpop.f32.mrb[14].mxu0  ;;  %v4464_v43 = vpop.f32.mrb[200].mxu1 }
 0x7b2   :  { %v3087_v54 = vadd.f32 %v3086_v38, %v2054_v63  ;;  %v7903_v23 = vpop.f32.mrb[15].mxu0  ;;  %v8308_v7 = vpop.f32.mrb[201].mxu1  ;;  %v11453_v25 = vadd.f32 %v11382_v15, %v4464_v43  ;;  %v11467_v63 = vld [vmem:[#allocation4] ss:$0 sm:$0xff]  ;;  %v1143_v43 = vpack.c.bf16 %v711_v8, %v708_v61  ;;  %v717_v61 = vld [vmem:[#allocation2 + $0x1408] sm:$0xff] }
 0x7b3   :  { %v4467_v22 = vpop.f32.mrb[202].mxu1  ;;  %v14738_v7 = vld [vmem:[#allocation51_spill] sm:$0xff] }
 0x7b4   :  { %v3543_v53 = vpack.c.bf16 %v3087_v54, %v3084_v49  ;;  %14736 = vst [vmem:[#allocation49_spill] sm:$0xff] %v11453_v25  ;;  %v11456_v36 = vadd.f32 %v11382_v15, %v4467_v22  ;;  %8009 = vmatmul.mubr.bf16.gmra.mrb[200].mxu0 %v1140_v5  ;;  %v8309_v62 = vpop.f32.mrb[203].mxu1  ;;  %v2059_v49 = vadd.f32 %v11082_v16, %v14738_v7  ;;  %v14739_v5 = vld [vmem:[#allocation52_spill] sm:$0xff] }
 0x7b5   :  { %8012 = vmatprep.mubr.msk.bf16.mxu0 %vm9898_vm0, %v14605_v26  ;;  %v2062_v38 = vadd.f32 %v11467_v63, %v14739_v5 }
 0x7b6   :  { %14737 = vst [vmem:[#allocation50_spill] sm:$0xff] %v11456_v36  ;;  %8415 = vmatmul.mubr.msk.bf16.gmra.mrb[52].mxu1 %vm3650_vm2, %v3543_v53 }
 0x7b7   :  { %v3091_v0 = vpop.f32.mrb[16].mxu0  ;;  %8418 = vmatprep.mubr.msk.bf16.mxu1 %vm9898_vm0, %v14605_v26 }
 0x7b8   :  { %v3092_v22 = vadd.f32 %v3091_v0, %v2059_v49  ;;  %v7906_v42 = vpop.f32.mrb[17].mxu0  ;;  %v714_v0 = vld [vmem:[#allocation2 + $0x13f0] sm:$0xff] }
 0x7b9   :  { %v3094_v54 = vpop.f32.mrb[18].mxu0  ;;  %v4472_v23 = vpop.f32.mrb[204].mxu1 }
 0x7ba   :  { %v3095_v62 = vadd.f32 %v3094_v54, %v2062_v38  ;;  %v7907_v12 = vpop.f32.mrb[19].mxu0  ;;  %v8312_v53 = vpop.f32.mrb[205].mxu1  ;;  %v11472_v16 = vadd.f32 %v11382_v15, %v4472_v23  ;;  %v1146_v23 = vpack.c.bf16 %v717_v61, %v714_v0  ;;  %v720_v0 = vld [vmem:[#allocation2 + $0x1420] sm:$0xff]  ;;  %v723_v61 = vld [vmem:[#allocation2 + $0x1438] sm:$0xff] }
 0x7bb   :  { %v4475_v25 = vpop.f32.mrb[206].mxu1  ;;  %v14742_v12 = vld [vmem:[#allocation53_spill] sm:$0xff] }
 0x7bc   :  { %v3544_v36 = vpack.c.bf16 %v3095_v62, %v3092_v22  ;;  %14740 = vst [vmem:[#allocation51_spill] sm:$0xff] %v11472_v16  ;;  %v11475_v7 = vadd.f32 %v11382_v15, %v4475_v25  ;;  %8013 = vmatmul.mubr.bf16.gmra.mrb[204].mxu0 %v1143_v43  ;;  %v8313_v49 = vpop.f32.mrb[207].mxu1  ;;  %v2067_v22 = vadd.f32 %v11467_v63, %v14742_v12  ;;  %v9785_v25 = vld [vmem:[%s14390_s5 + $0x18] ss:$0 sps:$4 sm:$0x11]   ;;  %v14743_v43 = vld [vmem:[#allocation54_spill] sm:$0xff] }
 0x7bd   :  { %8016 = vmatprep.mubr.msk.bf16.mxu0 %vm9898_vm0, %v14605_v26  ;;  %v2070_v54 = vadd.f32 %v11467_v63, %v14743_v43  ;;  %v5601_v62 = vsel %vm5599_vm3, %v9785_v25, 0  ;;  %v14745_v43 = vld [vmem:[#allocation56_spill] sm:$0xff] }
 0x7be   :  { %14741 = vst [vmem:[#allocation52_spill] sm:$0xff] %v11475_v7  ;;  %8419 = vmatmul.mubr.msk.bf16.gmra.mrb[56].mxu1 %vm3650_vm2, %v3544_v36 }
 0x7bf   :  { %v3099_v42 = vpop.f32.mrb[20].mxu0  ;;  %8422 = vmatprep.mubr.msk.bf16.mxu1 %vm9898_vm0, %v14605_v26  ;;  %8613 = vmatpush3.bf16.msra.mxu1 %v5601_v62 }
 0x7c0   :  { %v3100_v5 = vadd.f32 %v3099_v42, %v2067_v22  ;;  %v7910_v38 = vpop.f32.mrb[21].mxu0 }
 0x7c1   :  { %v3102_v36 = vpop.f32.mrb[22].mxu0  ;;  %v4480_v53 = vpop.f32.mrb[208].mxu1 }
 0x7c2   :  { %v3103_v49 = vadd.f32 %v3102_v36, %v2070_v54  ;;  %v7911_v12 = vpop.f32.mrb[23].mxu0  ;;  %v8316_v8 = vpop.f32.mrb[209].mxu1  ;;  %v11492_v30 = vadd.f32 %v11382_v15, %v4480_v53  ;;  %v2078_v54 = vadd.f32 %v11467_v63, %v14745_v43 }
 0x7c3   :  { %v4483_v16 = vpop.f32.mrb[210].mxu1  ;;  %v14744_v8 = vld [vmem:[#allocation55_spill] sm:$0xff] }
 0x7c4   :  { %v3545_v7 = vpack.c.bf16 %v3103_v49, %v3100_v5  ;;  %v11495_v17 = vadd.f32 %v11382_v15, %v4483_v16  ;;  %8017 = vmatmul.mubr.bf16.gmra.mrb[208].mxu0 %v1146_v23  ;;  %v8317_v22 = vpop.f32.mrb[211].mxu1  ;;  %v2075_v42 = vadd.f32 %v11467_v63, %v14744_v8  ;;  %v1149_v23 = vpack.c.bf16 %v723_v61, %v720_v0  ;;  %v729_v0 = vld [vmem:[#allocation2 + $0x1468] sm:$0xff] }
 0x7c5   :  { %8020 = vmatprep.mubr.msk.bf16.mxu0 %vm9898_vm0, %v14605_v26 }
 0x7c6   :  { %8423 = vmatmul.mubr.msk.bf16.gmra.mrb[60].mxu1 %vm3650_vm2, %v3545_v7 }
 0x7c7   :  { %v3107_v5 = vpop.f32.mrb[24].mxu0  ;;  %8426 = vmatprep.mubr.msk.bf16.mxu1 %vm9898_vm0, %v14605_v26 }
 0x7c8   :  { %v3108_v16 = vadd.f32 %v3107_v5, %v2075_v42  ;;  %v7914_v38 = vpop.f32.mrb[25].mxu0  ;;  %v726_v5 = vld [vmem:[#allocation2 + $0x1450] sm:$0xff] }
 0x7c9   :  { %v3110_v62 = vpop.f32.mrb[26].mxu0  ;;  %v4488_v36 = vpop.f32.mrb[212].mxu1  ;;  %v14748_v38 = vld [vmem:[#allocation57_spill] sm:$0xff] }
 0x7ca   :  { %v3111_v53 = vadd.f32 %v3110_v62, %v2078_v54  ;;  %v7915_v49 = vpop.f32.mrb[27].mxu0  ;;  %v8320_v12 = vpop.f32.mrb[213].mxu1  ;;  %v11509_v25 = vadd.f32 %v11382_v15, %v4488_v36  ;;  %v14749_v62 = vld [vmem:[#allocation58_spill] sm:$0xff] }
 0x7cb   :  { %v4491_v22 = vpop.f32.mrb[214].mxu1  ;;  %v2086_v36 = vadd.f32 %v11467_v63, %v14749_v62 }
 0x7cc   :  { %v3546_v7 = vpack.c.bf16 %v3111_v53, %v3108_v16  ;;  %14746 = vst [vmem:[#allocation53_spill] sm:$0xff] %v11509_v25  ;;  %v11512_v8 = vadd.f32 %v11382_v15, %v4491_v22  ;;  %8021 = vmatmul.mubr.bf16.gmra.mrb[212].mxu0 %v1149_v23  ;;  %v8321_v42 = vpop.f32.mrb[215].mxu1  ;;  %v2083_v16 = vadd.f32 %v11467_v63, %v14748_v38 }
 0x7cd   :  { %8024 = vmatprep.mubr.msk.bf16.mxu0 %vm9898_vm0, %v14605_v26  ;;  %v1152_v53 = vpack.c.bf16 %v729_v0, %v726_v5  ;;  %v735_v5 = vld [vmem:[#allocation2 + $0x1498] sm:$0xff] }
 0x7ce   :  { %14747 = vst [vmem:[#allocation54_spill] sm:$0xff] %v11512_v8  ;;  %8427 = vmatmul.mubr.msk.bf16.gmra.mrb[64].mxu1 %vm3650_vm2, %v3546_v7 }
 0x7cf   :  { %v3115_v43 = vpop.f32.mrb[28].mxu0  ;;  %8430 = vmatprep.mubr.msk.bf16.mxu1 %vm9898_vm0, %v14605_v26 }
 0x7d0   :  { %v3116_v54 = vadd.f32 %v3115_v43, %v2083_v16  ;;  %v7918_v23 = vpop.f32.mrb[29].mxu0  ;;  %v732_v43 = vld [vmem:[#allocation2 + $0x1480] sm:$0xff] }
 0x7d1   :  { %v3118_v49 = vpop.f32.mrb[30].mxu0  ;;  %v4496_v12 = vpop.f32.mrb[216].mxu1 }
 0x7d2   :  { %v3119_v22 = vadd.f32 %v3118_v49, %v2086_v36  ;;  %v7919_v42 = vpop.f32.mrb[31].mxu0  ;;  %v8324_v61 = vpop.f32.mrb[217].mxu1  ;;  %v11526_v8 = vadd.f32 %v11382_v15, %v4496_v12  ;;  %v14753_v36 = vld [vmem:[#allocation60_spill] sm:$0xff]  ;;  %v1155_v49 = vpack.c.bf16 %v735_v5, %v732_v43  ;;  %v741_v43 = vld [vmem:[#allocation2 + $0x14c8] sm:$0xff] }
 0x7d3   :  { %v4499_v25 = vpop.f32.mrb[218].mxu1  ;;  %v14752_v61 = vld [vmem:[#allocation59_spill] sm:$0xff] }
 0x7d4   :  { %v3547_v7 = vpack.c.bf16 %v3119_v22, %v3116_v54  ;;  %14750 = vst [vmem:[#allocation55_spill] sm:$0xff] %v11526_v8  ;;  %v11529_v38 = vadd.f32 %v11382_v15, %v4499_v25  ;;  %8025 = vmatmul.mubr.bf16.gmra.mrb[216].mxu0 %v1152_v53  ;;  %v8325_v16 = vpop.f32.mrb[219].mxu1  ;;  %v2091_v54 = vadd.f32 %v11467_v63, %v14752_v61 }
 0x7d5   :  { %8028 = vmatprep.mubr.msk.bf16.mxu0 %vm9898_vm0, %v14605_v26  ;;  %v2094_v53 = vadd.f32 %v11467_v63, %v14753_v36 }
 0x7d6   :  { %14751 = vst [vmem:[#allocation56_spill] sm:$0xff] %v11529_v38  ;;  %8431 = vmatmul.mubr.msk.bf16.gmra.mrb[68].mxu1 %vm3650_vm2, %v3547_v7 }
 0x7d7   :  { %v3123_v23 = vpop.f32.mrb[32].mxu0  ;;  %8434 = vmatprep.mubr.msk.bf16.mxu1 %vm9898_vm0, %v14605_v26 }
 0x7d8   :  { %v3124_v25 = vadd.f32 %v3123_v23, %v2091_v54  ;;  %v7922_v62 = vpop.f32.mrb[33].mxu0  ;;  %v738_v23 = vld [vmem:[#allocation2 + $0x14b0] sm:$0xff] }
 0x7d9   :  { %v3126_v12 = vpop.f32.mrb[34].mxu0  ;;  %v4504_v22 = vpop.f32.mrb[220].mxu1 }
 0x7da   :  { %v3127_v42 = vadd.f32 %v3126_v12, %v2094_v53  ;;  %v7923_v16 = vpop.f32.mrb[35].mxu0  ;;  %v8328_v0 = vpop.f32.mrb[221].mxu1  ;;  %v11543_v38 = vadd.f32 %v11382_v15, %v4504_v22  ;;  %v14757_v53 = vld [vmem:[#allocation62_spill] sm:$0xff]  ;;  %v1158_v12 = vpack.c.bf16 %v741_v43, %v738_v23  ;;  %v747_v23 = vld [vmem:[#allocation2 + $0x14f8] sm:$0xff] }
 0x7db   :  { %v4507_v8 = vpop.f32.mrb[222].mxu1  ;;  %v14756_v0 = vld [vmem:[#allocation61_spill] sm:$0xff] }
 0x7dc   :  { %v3548_v7 = vpack.c.bf16 %v3127_v42, %v3124_v25  ;;  %14754 = vst [vmem:[#allocation57_spill] sm:$0xff] %v11543_v38  ;;  %v11546_v61 = vadd.f32 %v11382_v15, %v4507_v8  ;;  %8029 = vmatmul.mubr.bf16.gmra.mrb[220].mxu0 %v1155_v49  ;;  %v8329_v54 = vpop.f32.mrb[223].mxu1  ;;  %v2099_v25 = vadd.f32 %v11467_v63, %v14756_v0 }
 0x7dd   :  { %8032 = vmatprep.mubr.msk.bf16.mxu0 %vm9898_vm0, %v14605_v26  ;;  %v2102_v49 = vadd.f32 %v11467_v63, %v14757_v53 }
 0x7de   :  { %14755 = vst [vmem:[#allocation58_spill] sm:$0xff] %v11546_v61  ;;  %8435 = vmatmul.mubr.msk.bf16.gmra.mrb[72].mxu1 %vm3650_vm2, %v3548_v7 }
 0x7df   :  { %v3131_v62 = vpop.f32.mrb[36].mxu0  ;;  %8438 = vmatprep.mubr.msk.bf16.mxu1 %vm9898_vm0, %v14605_v26 }
 0x7e0   :  { %v3132_v8 = vadd.f32 %v3131_v62, %v2099_v25  ;;  %v7926_v36 = vpop.f32.mrb[37].mxu0  ;;  %v744_v62 = vld [vmem:[#allocation2 + $0x14e0] sm:$0xff] }
 0x7e1   :  { %v3134_v22 = vpop.f32.mrb[38].mxu0  ;;  %v4512_v42 = vpop.f32.mrb[224].mxu1 }
 0x7e2   :  { %v3135_v16 = vadd.f32 %v3134_v22, %v2102_v49  ;;  %v7927_v54 = vpop.f32.mrb[39].mxu0  ;;  %v8332_v5 = vpop.f32.mrb[225].mxu1  ;;  %v11560_v61 = vadd.f32 %v11382_v15, %v4512_v42  ;;  %v14761_v49 = vld [vmem:[#allocation64_spill] sm:$0xff]  ;;  %v1161_v22 = vpack.c.bf16 %v747_v23, %v744_v62  ;;  %v753_v62 = vld [vmem:[#allocation2 + $0x1528] sm:$0xff] }
 0x7e3   :  { %v4515_v38 = vpop.f32.mrb[226].mxu1  ;;  %v14760_v5 = vld [vmem:[#allocation63_spill] sm:$0xff] }
 0x7e4   :  { %v3549_v7 = vpack.c.bf16 %v3135_v16, %v3132_v8  ;;  %14758 = vst [vmem:[#allocation59_spill] sm:$0xff] %v11560_v61  ;;  %v11563_v0 = vadd.f32 %v11382_v15, %v4515_v38  ;;  %8033 = vmatmul.mubr.bf16.gmra.mrb[224].mxu0 %v1158_v12  ;;  %v8333_v25 = vpop.f32.mrb[227].mxu1  ;;  %v2107_v8 = vadd.f32 %v11467_v63, %v14760_v5 }
 0x7e5   :  { %8036 = vmatprep.mubr.msk.bf16.mxu0 %vm9898_vm0, %v14605_v26  ;;  %v2110_v12 = vadd.f32 %v11467_v63, %v14761_v49 }
 0x7e6   :  { %14759 = vst [vmem:[#allocation60_spill] sm:$0xff] %v11563_v0  ;;  %8439 = vmatmul.mubr.msk.bf16.gmra.mrb[76].mxu1 %vm3650_vm2, %v3549_v7 }
 0x7e7   :  { %v3139_v36 = vpop.f32.mrb[40].mxu0  ;;  %8442 = vmatprep.mubr.msk.bf16.mxu1 %vm9898_vm0, %v14605_v26 }
 0x7e8   :  { %v3140_v38 = vadd.f32 %v3139_v36, %v2107_v8  ;;  %v7930_v53 = vpop.f32.mrb[41].mxu0  ;;  %v750_v36 = vld [vmem:[#allocation2 + $0x1510] sm:$0xff] }
 0x7e9   :  { %v3142_v42 = vpop.f32.mrb[42].mxu0  ;;  %v4520_v16 = vpop.f32.mrb[228].mxu1 }
 0x7ea   :  { %v3143_v54 = vadd.f32 %v3142_v42, %v2110_v12  ;;  %v7931_v25 = vpop.f32.mrb[43].mxu0  ;;  %v8336_v43 = vpop.f32.mrb[229].mxu1  ;;  %v11577_v0 = vadd.f32 %v11382_v15, %v4520_v16  ;;  %v14765_v12 = vld [vmem:[#allocation66_spill] sm:$0xff]  ;;  %v1164_v42 = vpack.c.bf16 %v753_v62, %v750_v36  ;;  %v759_v36 = vld [vmem:[#allocation2 + $0x1558] sm:$0xff] }
 0x7eb   :  { %v4523_v61 = vpop.f32.mrb[230].mxu1  ;;  %v14764_v43 = vld [vmem:[#allocation65_spill] sm:$0xff] }
 0x7ec   :  { %v3550_v7 = vpack.c.bf16 %v3143_v54, %v3140_v38  ;;  %14762 = vst [vmem:[#allocation61_spill] sm:$0xff] %v11577_v0  ;;  %v11580_v5 = vadd.f32 %v11382_v15, %v4523_v61  ;;  %8037 = vmatmul.mubr.bf16.gmra.mrb[228].mxu0 %v1161_v22  ;;  %v8337_v8 = vpop.f32.mrb[231].mxu1  ;;  %v2115_v38 = vadd.f32 %v11467_v63, %v14764_v43 }
 0x7ed   :  { %8040 = vmatprep.mubr.msk.bf16.mxu0 %vm9898_vm0, %v14605_v26  ;;  %v2118_v22 = vadd.f32 %v11467_v63, %v14765_v12 }
 0x7ee   :  { %14763 = vst [vmem:[#allocation62_spill] sm:$0xff] %v11580_v5  ;;  %8443 = vmatmul.mubr.msk.bf16.gmra.mrb[80].mxu1 %vm3650_vm2, %v3550_v7 }
 0x7ef   :  { %v3147_v53 = vpop.f32.mrb[44].mxu0  ;;  %8446 = vmatprep.mubr.msk.bf16.mxu1 %vm9898_vm0, %v14605_v26 }
 0x7f0   :  { %v3148_v61 = vadd.f32 %v3147_v53, %v2115_v38  ;;  %v7934_v49 = vpop.f32.mrb[45].mxu0  ;;  %v756_v53 = vld [vmem:[#allocation2 + $0x1540] sm:$0xff] }
 0x7f1   :  { %v3150_v16 = vpop.f32.mrb[46].mxu0  ;;  %v4528_v54 = vpop.f32.mrb[232].mxu1 }
 0x7f2   :  { %v3151_v25 = vadd.f32 %v3150_v16, %v2118_v22  ;;  %v7935_v8 = vpop.f32.mrb[47].mxu0  ;;  %v8340_v23 = vpop.f32.mrb[233].mxu1  ;;  %v11594_v5 = vadd.f32 %v11382_v15, %v4528_v54  ;;  %v14769_v22 = vld [vmem:[#allocation68_spill] sm:$0xff]  ;;  %v1167_v16 = vpack.c.bf16 %v759_v36, %v756_v53  ;;  %v765_v53 = vld [vmem:[#allocation2 + $0x1588] sm:$0xff] }
 0x7f3   :  { %v4531_v0 = vpop.f32.mrb[234].mxu1  ;;  %v14768_v23 = vld [vmem:[#allocation67_spill] sm:$0xff] }
 0x7f4   :  { %v3551_v7 = vpack.c.bf16 %v3151_v25, %v3148_v61  ;;  %14766 = vst [vmem:[#allocation63_spill] sm:$0xff] %v11594_v5  ;;  %v11597_v43 = vadd.f32 %v11382_v15, %v4531_v0  ;;  %8041 = vmatmul.mubr.bf16.gmra.mrb[232].mxu0 %v1164_v42  ;;  %v8341_v38 = vpop.f32.mrb[235].mxu1  ;;  %v2123_v61 = vadd.f32 %v11467_v63, %v14768_v23 }
 0x7f5   :  { %8044 = vmatprep.mubr.msk.bf16.mxu0 %vm9898_vm0, %v14605_v26  ;;  %v2126_v42 = vadd.f32 %v11467_v63, %v14769_v22 }
 0x7f6   :  { %14767 = vst [vmem:[#allocation64_spill] sm:$0xff] %v11597_v43  ;;  %8447 = vmatmul.mubr.msk.bf16.gmra.mrb[84].mxu1 %vm3650_vm2, %v3551_v7 }
 0x7f7   :  { %v3155_v49 = vpop.f32.mrb[48].mxu0  ;;  %8450 = vmatprep.mubr.msk.bf16.mxu1 %vm9898_vm0, %v14605_v26 }
 0x7f8   :  { %v3156_v0 = vadd.f32 %v3155_v49, %v2123_v61  ;;  %v7938_v12 = vpop.f32.mrb[49].mxu0  ;;  %v762_v49 = vld [vmem:[#allocation2 + $0x1570] sm:$0xff] }
 0x7f9   :  { %v3158_v54 = vpop.f32.mrb[50].mxu0  ;;  %v4536_v25 = vpop.f32.mrb[236].mxu1 }
 0x7fa   :  { %v3159_v8 = vadd.f32 %v3158_v54, %v2126_v42  ;;  %v7939_v38 = vpop.f32.mrb[51].mxu0  ;;  %v8344_v62 = vpop.f32.mrb[237].mxu1  ;;  %v11611_v43 = vadd.f32 %v11382_v15, %v4536_v25  ;;  %v14773_v42 = vld [vmem:[#allocation70_spill] sm:$0xff]  ;;  %v1170_v54 = vpack.c.bf16 %v765_v53, %v762_v49  ;;  %v771_v49 = vld [vmem:[#allocation2 + $0x15b8] sm:$0xff] }
 0x7fb   :  { %v4539_v5 = vpop.f32.mrb[238].mxu1  ;;  %v14772_v62 = vld [vmem:[#allocation69_spill] sm:$0xff] }
 0x7fc   :  { %v3552_v7 = vpack.c.bf16 %v3159_v8, %v3156_v0  ;;  %14770 = vst [vmem:[#allocation65_spill] sm:$0xff] %v11611_v43  ;;  %v11614_v23 = vadd.f32 %v11382_v15, %v4539_v5  ;;  %8045 = vmatmul.mubr.bf16.gmra.mrb[236].mxu0 %v1167_v16  ;;  %v8345_v61 = vpop.f32.mrb[239].mxu1  ;;  %v2131_v0 = vadd.f32 %v11467_v63, %v14772_v62 }
 0x7fd   :  { %8048 = vmatprep.mubr.msk.bf16.mxu0 %vm9898_vm0, %v14605_v26  ;;  %v2134_v16 = vadd.f32 %v11467_v63, %v14773_v42 }
 0x7fe   :  { %14771 = vst [vmem:[#allocation66_spill] sm:$0xff] %v11614_v23  ;;  %8451 = vmatmul.mubr.msk.bf16.gmra.mrb[88].mxu1 %vm3650_vm2, %v3552_v7 }
 0x7ff   :  { %v3163_v12 = vpop.f32.mrb[52].mxu0  ;;  %8454 = vmatprep.mubr.msk.bf16.mxu1 %vm9898_vm0, %v14605_v26 }
 0x800   :  { %v3164_v5 = vadd.f32 %v3163_v12, %v2131_v0  ;;  %v7942_v22 = vpop.f32.mrb[53].mxu0  ;;  %v768_v12 = vld [vmem:[#allocation2 + $0x15a0] sm:$0xff] }
 0x801   :  { %v3166_v25 = vpop.f32.mrb[54].mxu0  ;;  %v4544_v8 = vpop.f32.mrb[240].mxu1 }
 0x802   :  { %v3167_v38 = vadd.f32 %v3166_v25, %v2134_v16  ;;  %v7943_v61 = vpop.f32.mrb[55].mxu0  ;;  %v8348_v36 = vpop.f32.mrb[241].mxu1  ;;  %v11628_v23 = vadd.f32 %v11382_v15, %v4544_v8  ;;  %v14777_v16 = vld [vmem:[#allocation72_spill] sm:$0xff]  ;;  %v1173_v25 = vpack.c.bf16 %v771_v49, %v768_v12  ;;  %v777_v12 = vld [vmem:[#allocation2 + $0x15e8] sm:$0xff] }
 0x803   :  { %v4547_v43 = vpop.f32.mrb[242].mxu1  ;;  %v14776_v36 = vld [vmem:[#allocation71_spill] sm:$0xff] }
 0x804   :  { %v3553_v7 = vpack.c.bf16 %v3167_v38, %v3164_v5  ;;  %14774 = vst [vmem:[#allocation67_spill] sm:$0xff] %v11628_v23  ;;  %v11631_v62 = vadd.f32 %v11382_v15, %v4547_v43  ;;  %8049 = vmatmul.mubr.bf16.gmra.mrb[240].mxu0 %v1170_v54  ;;  %v8349_v0 = vpop.f32.mrb[243].mxu1  ;;  %v2139_v5 = vadd.f32 %v11467_v63, %v14776_v36 }
 0x805   :  { %8052 = vmatprep.mubr.msk.bf16.mxu0 %vm9898_vm0, %v14605_v26  ;;  %v2142_v54 = vadd.f32 %v11467_v63, %v14777_v16 }
 0x806   :  { %14775 = vst [vmem:[#allocation68_spill] sm:$0xff] %v11631_v62  ;;  %8455 = vmatmul.mubr.msk.bf16.gmra.mrb[92].mxu1 %vm3650_vm2, %v3553_v7 }
 0x807   :  { %v3171_v22 = vpop.f32.mrb[56].mxu0  ;;  %8458 = vmatprep.mubr.msk.bf16.mxu1 %vm9898_vm0, %v14605_v26 }
 0x808   :  { %v3172_v43 = vadd.f32 %v3171_v22, %v2139_v5  ;;  %v7946_v42 = vpop.f32.mrb[57].mxu0  ;;  %v774_v22 = vld [vmem:[#allocation2 + $0x15d0] sm:$0xff] }
 0x809   :  { %v3174_v8 = vpop.f32.mrb[58].mxu0  ;;  %v4552_v38 = vpop.f32.mrb[244].mxu1 }
 0x80a   :  { %v3175_v61 = vadd.f32 %v3174_v8, %v2142_v54  ;;  %v7947_v0 = vpop.f32.mrb[59].mxu0  ;;  %v8352_v53 = vpop.f32.mrb[245].mxu1  ;;  %v11645_v62 = vadd.f32 %v11382_v15, %v4552_v38  ;;  %v14781_v54 = vld [vmem:[#allocation74_spill] sm:$0xff]  ;;  %v1176_v8 = vpack.c.bf16 %v777_v12, %v774_v22  ;;  %v783_v22 = vld [vmem:[#allocation2 + $0x1618] sm:$0xff] }
 0x80b   :  { %v4555_v23 = vpop.f32.mrb[246].mxu1  ;;  %v14780_v53 = vld [vmem:[#allocation73_spill] sm:$0xff] }
 0x80c   :  { %v3554_v7 = vpack.c.bf16 %v3175_v61, %v3172_v43  ;;  %14778 = vst [vmem:[#allocation69_spill] sm:$0xff] %v11645_v62  ;;  %v11648_v36 = vadd.f32 %v11382_v15, %v4555_v23  ;;  %8053 = vmatmul.mubr.bf16.gmra.mrb[244].mxu0 %v1173_v25  ;;  %v8353_v5 = vpop.f32.mrb[247].mxu1  ;;  %v2147_v43 = vadd.f32 %v11467_v63, %v14780_v53 }
 0x80d   :  { %8056 = vmatprep.mubr.msk.bf16.mxu0 %vm9898_vm0, %v14605_v26  ;;  %v2150_v25 = vadd.f32 %v11467_v63, %v14781_v54 }
 0x80e   :  { %14779 = vst [vmem:[#allocation70_spill] sm:$0xff] %v11648_v36  ;;  %8459 = vmatmul.mubr.msk.bf16.gmra.mrb[96].mxu1 %vm3650_vm2, %v3554_v7 }
 0x80f   :  { %v3179_v42 = vpop.f32.mrb[60].mxu0  ;;  %8462 = vmatprep.mubr.msk.bf16.mxu1 %vm9898_vm0, %v14605_v26 }
 0x810   :  { %v3180_v23 = vadd.f32 %v3179_v42, %v2147_v43  ;;  %v7950_v16 = vpop.f32.mrb[61].mxu0  ;;  %v780_v42 = vld [vmem:[#allocation2 + $0x1600] sm:$0xff] }
 0x811   :  { %v3182_v38 = vpop.f32.mrb[62].mxu0  ;;  %v4560_v61 = vpop.f32.mrb[248].mxu1 }
 0x812   :  { %v3183_v0 = vadd.f32 %v3182_v38, %v2150_v25  ;;  %v7951_v5 = vpop.f32.mrb[63].mxu0  ;;  %v8356_v49 = vpop.f32.mrb[249].mxu1  ;;  %v11662_v36 = vadd.f32 %v11382_v15, %v4560_v61  ;;  %v14785_v25 = vld [vmem:[#allocation76_spill] sm:$0xff]  ;;  %v1179_v38 = vpack.c.bf16 %v783_v22, %v780_v42  ;;  %v789_v42 = vld [vmem:[#allocation2 + $0x1648] sm:$0xff] }
 0x813   :  { %v4563_v62 = vpop.f32.mrb[250].mxu1  ;;  %v14784_v49 = vld [vmem:[#allocation75_spill] sm:$0xff] }
 0x814   :  { %v3555_v7 = vpack.c.bf16 %v3183_v0, %v3180_v23  ;;  %14782 = vst [vmem:[#allocation71_spill] sm:$0xff] %v11662_v36  ;;  %v11665_v53 = vadd.f32 %v11382_v15, %v4563_v62  ;;  %8057 = vmatmul.mubr.bf16.gmra.mrb[248].mxu0 %v1176_v8  ;;  %v8357_v43 = vpop.f32.mrb[251].mxu1  ;;  %v2155_v23 = vadd.f32 %v11467_v63, %v14784_v49 }
 0x815   :  { %8060 = vmatprep.mubr.msk.bf16.mxu0 %vm9898_vm0, %v14605_v26  ;;  %v2158_v8 = vadd.f32 %v11467_v63, %v14785_v25 }
 0x816   :  { %14783 = vst [vmem:[#allocation72_spill] sm:$0xff] %v11665_v53  ;;  %8463 = vmatmul.mubr.msk.bf16.gmra.mrb[100].mxu1 %vm3650_vm2, %v3555_v7 }
 0x817   :  { %v3187_v16 = vpop.f32.mrb[64].mxu0  ;;  %8466 = vmatprep.mubr.msk.bf16.mxu1 %vm9898_vm0, %v14605_v26 }
 0x818   :  { %v3188_v62 = vadd.f32 %v3187_v16, %v2155_v23  ;;  %v7954_v54 = vpop.f32.mrb[65].mxu0  ;;  %v786_v16 = vld [vmem:[#allocation2 + $0x1630] sm:$0xff] }
 0x819   :  { %v3190_v61 = vpop.f32.mrb[66].mxu0  ;;  %v4568_v0 = vpop.f32.mrb[252].mxu1 }
 0x81a   :  { %v3191_v5 = vadd.f32 %v3190_v61, %v2158_v8  ;;  %v7955_v43 = vpop.f32.mrb[67].mxu0  ;;  %v8360_v12 = vpop.f32.mrb[253].mxu1  ;;  %v11679_v53 = vadd.f32 %v11382_v15, %v4568_v0  ;;  %v14789_v8 = vld [vmem:[#allocation78_spill] sm:$0xff]  ;;  %v1182_v61 = vpack.c.bf16 %v789_v42, %v786_v16  ;;  %v795_v16 = vld [vmem:[#allocation2 + $0x1678] sm:$0xff] }
 0x81b   :  { %v4571_v36 = vpop.f32.mrb[254].mxu1  ;;  %v14788_v12 = vld [vmem:[#allocation77_spill] sm:$0xff] }
 0x81c   :  { %v3556_v7 = vpack.c.bf16 %v3191_v5, %v3188_v62  ;;  %14786 = vst [vmem:[#allocation73_spill] sm:$0xff] %v11679_v53  ;;  %v11682_v49 = vadd.f32 %v11382_v15, %v4571_v36  ;;  %8061 = vmatmul.mubr.bf16.gmra.mrb[252].mxu0 %v1179_v38  ;;  %v8361_v23 = vpop.f32.mrb[255].mxu1  ;;  %v2163_v62 = vadd.f32 %v11467_v63, %v14788_v12 }
 0x81d   :  { %8064 = vmatprep.mubr.msk.bf16.mxu0 %vm9898_vm0, %v14605_v26  ;;  %v2166_v38 = vadd.f32 %v11467_v63, %v14789_v8 }
 0x81e   :  { %14787 = vst [vmem:[#allocation74_spill] sm:$0xff] %v11682_v49  ;;  %8467 = vmatmul.mubr.msk.bf16.gmra.mrb[104].mxu1 %vm3650_vm2, %v3556_v7 }
 0x81f   :  { %v3195_v54 = vpop.f32.mrb[68].mxu0  ;;  %8470 = vmatprep.mubr.msk.bf16.mxu1 %vm9898_vm0, %v14605_v26 }
 0x820   :  { %v3196_v36 = vadd.f32 %v3195_v54, %v2163_v62  ;;  %v7958_v25 = vpop.f32.mrb[69].mxu0  ;;  %v792_v54 = vld [vmem:[#allocation2 + $0x1660] sm:$0xff] }
 0x821   :  { %v3198_v0 = vpop.f32.mrb[70].mxu0  ;;  %v4576_v5 = vpop.f32.mrb[0].mxu1 }
 0x822   :  { %v3199_v43 = vadd.f32 %v3198_v0, %v2166_v38  ;;  %v7959_v23 = vpop.f32.mrb[71].mxu0  ;;  %v8364_v22 = vpop.f32.mrb[1].mxu1  ;;  %v11696_v49 = vadd.f32 %v11382_v15, %v4576_v5  ;;  %v14793_v38 = vld [vmem:[#allocation80_spill] sm:$0xff]  ;;  %v1185_v0 = vpack.c.bf16 %v795_v16, %v792_v54  ;;  %v801_v54 = vld [vmem:[#allocation2 + $0x16a8] sm:$0xff] }
 0x823   :  { %v4579_v53 = vpop.f32.mrb[2].mxu1  ;;  %v14792_v22 = vld [vmem:[#allocation79_spill] sm:$0xff] }
 0x824   :  { %v3557_v7 = vpack.c.bf16 %v3199_v43, %v3196_v36  ;;  %14790 = vst [vmem:[#allocation75_spill] sm:$0xff] %v11696_v49  ;;  %v11699_v12 = vadd.f32 %v11382_v15, %v4579_v53  ;;  %8065 = vmatmul.mubr.bf16.gmra.mrb[148].mxu0 %v1182_v61  ;;  %v8365_v62 = vpop.f32.mrb[3].mxu1  ;;  %v2171_v36 = vadd.f32 %v11467_v63, %v14792_v22 }
 0x825   :  { %8068 = vmatprep.mubr.msk.bf16.mxu0 %vm9898_vm0, %v14605_v26  ;;  %v2174_v61 = vadd.f32 %v11467_v63, %v14793_v38 }
 0x826   :  { %14791 = vst [vmem:[#allocation76_spill] sm:$0xff] %v11699_v12  ;;  %8471 = vmatmul.mubr.msk.bf16.gmra.mrb[108].mxu1 %vm3650_vm2, %v3557_v7 }
 0x827   :  { %v3203_v25 = vpop.f32.mrb[72].mxu0  ;;  %8474 = vmatprep.mubr.msk.bf16.mxu1 %vm9898_vm0, %v14605_v26 }
 0x828   :  { %v3204_v53 = vadd.f32 %v3203_v25, %v2171_v36  ;;  %v7962_v8 = vpop.f32.mrb[73].mxu0  ;;  %v798_v25 = vld [vmem:[#allocation2 + $0x1690] sm:$0xff] }
 0x829   :  { %v3206_v5 = vpop.f32.mrb[74].mxu0  ;;  %v4584_v43 = vpop.f32.mrb[4].mxu1 }
 0x82a   :  { %v3207_v23 = vadd.f32 %v3206_v5, %v2174_v61  ;;  %v7963_v62 = vpop.f32.mrb[75].mxu0  ;;  %v8368_v42 = vpop.f32.mrb[5].mxu1  ;;  %v11713_v12 = vadd.f32 %v11382_v15, %v4584_v43  ;;  %v14797_v61 = vld [vmem:[#allocation82_spill] sm:$0xff]  ;;  %v1188_v5 = vpack.c.bf16 %v801_v54, %v798_v25  ;;  %v807_v25 = vld [vmem:[#allocation2 + $0x16d8] sm:$0xff] }
 0x82b   :  { %v4587_v49 = vpop.f32.mrb[6].mxu1  ;;  %v14796_v42 = vld [vmem:[#allocation81_spill] sm:$0xff] }
 0x82c   :  { %v3558_v7 = vpack.c.bf16 %v3207_v23, %v3204_v53  ;;  %14794 = vst [vmem:[#allocation77_spill] sm:$0xff] %v11713_v12  ;;  %v11716_v22 = vadd.f32 %v11382_v15, %v4587_v49  ;;  %8069 = vmatmul.mubr.bf16.gmra.mrb[152].mxu0 %v1185_v0  ;;  %v8369_v36 = vpop.f32.mrb[7].mxu1  ;;  %v2179_v53 = vadd.f32 %v11467_v63, %v14796_v42 }
 0x82d   :  { %8072 = vmatprep.mubr.msk.bf16.mxu0 %vm9898_vm0, %v14605_v26  ;;  %v2182_v0 = vadd.f32 %v11467_v63, %v14797_v61 }
 0x82e   :  { %14795 = vst [vmem:[#allocation78_spill] sm:$0xff] %v11716_v22  ;;  %8475 = vmatmul.mubr.msk.bf16.gmra.mrb[112].mxu1 %vm3650_vm2, %v3558_v7 }
 0x82f   :  { %v3211_v8 = vpop.f32.mrb[76].mxu0  ;;  %8478 = vmatprep.mubr.msk.bf16.mxu1 %vm9898_vm0, %v14605_v26 }
 0x830   :  { %v3212_v49 = vadd.f32 %v3211_v8, %v2179_v53  ;;  %v7966_v38 = vpop.f32.mrb[77].mxu0  ;;  %v804_v8 = vld [vmem:[#allocation2 + $0x16c0] sm:$0xff] }
 0x831   :  { %v3214_v43 = vpop.f32.mrb[78].mxu0  ;;  %v4592_v23 = vpop.f32.mrb[8].mxu1 }
 0x832   :  { %v3215_v62 = vadd.f32 %v3214_v43, %v2182_v0  ;;  %v7967_v36 = vpop.f32.mrb[79].mxu0  ;;  %v8372_v16 = vpop.f32.mrb[9].mxu1  ;;  %v11730_v22 = vadd.f32 %v11382_v15, %v4592_v23  ;;  %v14801_v0 = vld [vmem:[#allocation84_spill] sm:$0xff]  ;;  %v1191_v43 = vpack.c.bf16 %v807_v25, %v804_v8  ;;  %v813_v8 = vld [vmem:[#allocation2 + $0x1708] sm:$0xff] }
 0x833   :  { %v4595_v12 = vpop.f32.mrb[10].mxu1  ;;  %v14800_v16 = vld [vmem:[#allocation83_spill] sm:$0xff] }
 0x834   :  { %v3559_v7 = vpack.c.bf16 %v3215_v62, %v3212_v49  ;;  %14798 = vst [vmem:[#allocation79_spill] sm:$0xff] %v11730_v22  ;;  %v11733_v42 = vadd.f32 %v11382_v15, %v4595_v12  ;;  %8073 = vmatmul.mubr.bf16.gmra.mrb[156].mxu0 %v1188_v5  ;;  %v8373_v53 = vpop.f32.mrb[11].mxu1  ;;  %v2187_v49 = vadd.f32 %v11467_v63, %v14800_v16 }
 0x835   :  { %8076 = vmatprep.mubr.msk.bf16.mxu0 %vm9898_vm0, %v14605_v26  ;;  %v2190_v5 = vadd.f32 %v11467_v63, %v14801_v0 }
 0x836   :  { %14799 = vst [vmem:[#allocation80_spill] sm:$0xff] %v11733_v42  ;;  %8479 = vmatmul.mubr.msk.bf16.gmra.mrb[116].mxu1 %vm3650_vm2, %v3559_v7 }
 0x837   :  { %v3219_v38 = vpop.f32.mrb[80].mxu0  ;;  %8482 = vmatprep.mubr.msk.bf16.mxu1 %vm9898_vm0, %v14605_v26 }
 0x838   :  { %v3220_v12 = vadd.f32 %v3219_v38, %v2187_v49  ;;  %v7970_v61 = vpop.f32.mrb[81].mxu0  ;;  %v810_v38 = vld [vmem:[#allocation2 + $0x16f0] sm:$0xff] }
 0x839   :  { %v3222_v23 = vpop.f32.mrb[82].mxu0  ;;  %v4600_v62 = vpop.f32.mrb[12].mxu1 }
 0x83a   :  { %v3223_v36 = vadd.f32 %v3222_v23, %v2190_v5  ;;  %v7971_v53 = vpop.f32.mrb[83].mxu0  ;;  %v8376_v54 = vpop.f32.mrb[13].mxu1  ;;  %v11747_v42 = vadd.f32 %v11382_v15, %v4600_v62  ;;  %v14805_v5 = vld [vmem:[#allocation86_spill] sm:$0xff]  ;;  %v1194_v23 = vpack.c.bf16 %v813_v8, %v810_v38  ;;  %v819_v38 = vld [vmem:[#allocation2 + $0x1738] sm:$0xff] }
 0x83b   :  { %v4603_v22 = vpop.f32.mrb[14].mxu1  ;;  %v14804_v54 = vld [vmem:[#allocation85_spill] sm:$0xff] }
 0x83c   :  { %v3560_v7 = vpack.c.bf16 %v3223_v36, %v3220_v12  ;;  %14802 = vst [vmem:[#allocation81_spill] sm:$0xff] %v11747_v42  ;;  %v11750_v16 = vadd.f32 %v11382_v15, %v4603_v22  ;;  %8077 = vmatmul.mubr.bf16.gmra.mrb[160].mxu0 %v1191_v43  ;;  %v8377_v49 = vpop.f32.mrb[15].mxu1  ;;  %v2195_v12 = vadd.f32 %v11467_v63, %v14804_v54 }
 0x83d   :  { %8080 = vmatprep.mubr.msk.bf16.mxu0 %vm9898_vm0, %v14605_v26  ;;  %v2198_v43 = vadd.f32 %v11467_v63, %v14805_v5  ;;  %v14809_v5 = vld [vmem:[#allocation88_spill] sm:$0xff] }
 0x83e   :  { %14803 = vst [vmem:[#allocation82_spill] sm:$0xff] %v11750_v16  ;;  %8483 = vmatmul.mubr.msk.bf16.gmra.mrb[120].mxu1 %vm3650_vm2, %v3560_v7 }
 0x83f   :  { %v3227_v61 = vpop.f32.mrb[84].mxu0  ;;  %8486 = vmatprep.mubr.msk.bf16.mxu1 %vm9898_vm0, %v14605_v26 }
 0x840   :  { %v3228_v22 = vadd.f32 %v3227_v61, %v2195_v12  ;;  %v7974_v0 = vpop.f32.mrb[85].mxu0  ;;  %v816_v61 = vld [vmem:[#allocation2 + $0x1720] sm:$0xff] }
 0x841   :  { %v3230_v62 = vpop.f32.mrb[86].mxu0  ;;  %v4608_v36 = vpop.f32.mrb[16].mxu1 }
 0x842   :  { %v3231_v53 = vadd.f32 %v3230_v62, %v2198_v43  ;;  %v7975_v49 = vpop.f32.mrb[87].mxu0  ;;  %v8380_v25 = vpop.f32.mrb[17].mxu1  ;;  %v11764_v16 = vadd.f32 %v11382_v15, %v4608_v36  ;;  %v2206_v43 = vadd.f32 %v11467_v63, %v14809_v5 }
 0x843   :  { %v4611_v42 = vpop.f32.mrb[18].mxu1  ;;  %v14808_v25 = vld [vmem:[#allocation87_spill] sm:$0xff] }
 0x844   :  { %v3561_v7 = vpack.c.bf16 %v3231_v53, %v3228_v22  ;;  %14806 = vst [vmem:[#allocation83_spill] sm:$0xff] %v11764_v16  ;;  %v11767_v54 = vadd.f32 %v11382_v15, %v4611_v42  ;;  %8081 = vmatmul.mubr.bf16.gmra.mrb[164].mxu0 %v1194_v23  ;;  %v8381_v12 = vpop.f32.mrb[19].mxu1  ;;  %v2203_v22 = vadd.f32 %v11467_v63, %v14808_v25  ;;  %v11780_v16 = vld [vmem:[#allocation6] ss:$0 sm:$0xff] }
 0x845   :  { %8084 = vmatprep.mubr.msk.bf16.mxu0 %vm9898_vm0, %v14605_v26  ;;  %v1197_v23 = vpack.c.bf16 %v819_v38, %v816_v61  ;;  %v822_v61 = vld [vmem:[#allocation2 + $0x1750] sm:$0xff]  ;;  %v825_v38 = vld [vmem:[#allocation2 + $0x1768] sm:$0xff] }
 0x846   :  { %14807 = vst [vmem:[#allocation84_spill] sm:$0xff] %v11767_v54  ;;  %8487 = vmatmul.mubr.msk.bf16.gmra.mrb[124].mxu1 %vm3650_vm2, %v3561_v7 }
 0x847   :  { %v3235_v0 = vpop.f32.mrb[88].mxu0  ;;  %8490 = vmatprep.mubr.msk.bf16.mxu1 %vm9898_vm0, %v14605_v26 }
 0x848   :  { %v3236_v15 = vadd.f32 %v3235_v0, %v2203_v22  ;;  %v7978_v42 = vpop.f32.mrb[89].mxu0 }
 0x849   :  { %v3238_v62 = vpop.f32.mrb[90].mxu0  ;;  %v4616_v36 = vpop.f32.mrb[20].mxu1 }
 0x84a   :  { %v3239_v53 = vadd.f32 %v3238_v62, %v2206_v43  ;;  %v7979_v49 = vpop.f32.mrb[91].mxu0  ;;  %v8384_v12 = vpop.f32.mrb[21].mxu1  ;;  %v11783_v25 = vadd.f32 %v11780_v16, %v4616_v36  ;;  %v1200_v36 = vpack.c.bf16 %v825_v38, %v822_v61 }
 0x84b   :  { %v4619_v8 = vpop.f32.mrb[22].mxu1 }
 0x84c   :  { %v3562_v7 = vpack.c.bf16 %v3239_v53, %v3236_v15  ;;  %14810 = vst [vmem:[#allocation85_spill] sm:$0xff] %v11783_v25  ;;  %v11786_v54 = vadd.f32 %v11780_v16, %v4619_v8  ;;  %8085 = vmatmul.mubr.bf16.gmra.mrb[168].mxu0 %v1197_v23  ;;  %v8385_v22 = vpop.f32.mrb[23].mxu1  ;;  %v14812_v15 = vld [vmem:[#allocation89_spill] sm:$0xff]  ;;  %v14813_v23 = vld [vmem:[#allocation90_spill] sm:$0xff] }
 0x84d   :  { %8088 = vmatprep.mubr.msk.bf16.mxu0 %vm9898_vm0, %v14605_v26  ;;  %v2211_v42 = vadd.f32 %v11467_v63, %v14812_v15  ;;  %v2214_v62 = vadd.f32 %v11467_v63, %v14813_v23 }
 0x84e   :  { %14811 = vst [vmem:[#allocation86_spill] sm:$0xff] %v11786_v54  ;;  %8491 = vmatmul.mubr.msk.bf16.gmra.mrb[128].mxu1 %vm3650_vm2, %v3562_v7 }
 0x84f   :  { %v3243_v5 = vpop.f32.mrb[92].mxu0  ;;  %8494 = vmatprep.mubr.msk.bf16.mxu1 %vm9898_vm0, %v14605_v26 }
 0x850   :  { %v3244_v8 = vadd.f32 %v3243_v5, %v2211_v42  ;;  %v7982_v43 = vpop.f32.mrb[93].mxu0 }
 0x851   :  { %v3246_v53 = vpop.f32.mrb[94].mxu0  ;;  %v4624_v49 = vpop.f32.mrb[24].mxu1 }
 0x852   :  { %v3247_v12 = vadd.f32 %v3246_v53, %v2214_v62  ;;  %v7983_v22 = vpop.f32.mrb[95].mxu0  ;;  %v8388_v0 = vpop.f32.mrb[25].mxu1  ;;  %v11800_v54 = vadd.f32 %v11780_v16, %v4624_v49 }
 0x853   :  { %v4627_v25 = vpop.f32.mrb[26].mxu1 }
 0x854   :  { %v3563_v7 = vpack.c.bf16 %v3247_v12, %v3244_v8  ;;  %v11803_v15 = vadd.f32 %v11780_v16, %v4627_v25  ;;  %8089 = vmatmul.mubr.bf16.gmra.mrb[172].mxu0 %v1200_v36  ;;  %v8389_v42 = vpop.f32.mrb[27].mxu1 }
 0x856   :  { %8495 = vmatmul.mubr.msk.bf16.gmra.mrb[132].mxu1 %vm3650_vm2, %v3563_v7 }
 0x857   :  { %v3251_v61 = vpop.f32.mrb[176].mxu0  ;;  %8498 = vmatprep.mubr.msk.bf16.mxu1 %vm9898_vm0, %v14605_v26 }
 0x858   :  { %v7986_v38 = vpop.f32.mrb[177].mxu0  ;;  %v9432_v43 = vadd.f32 %v11467_v63, %v3251_v61 }
 0x859   :  { %v3254_v0 = vpop.f32.mrb[178].mxu0  ;;  %v4632_v8 = vpop.f32.mrb[28].mxu1 }
 0x85a   :  { %v9433_v23 = vadd.f32 %v11467_v63, %v3254_v0  ;;  %v7987_v25 = vpop.f32.mrb[179].mxu0  ;;  %v8392_v62 = vpop.f32.mrb[29].mxu1  ;;  %v11813_v49 = vadd.f32 %v11780_v16, %v4632_v8 }
 0x85b   :  { %v4635_v36 = vpop.f32.mrb[30].mxu1 }
 0x85c   :  { %v3564_v53 = vpack.c.bf16 %v9433_v23, %v9432_v43  ;;  %14814 = vst [vmem:[#allocation87_spill] sm:$0xff] %v11813_v49  ;;  %v11816_v12 = vadd.f32 %v11780_v16, %v4635_v36  ;;  %v8393_v22 = vpop.f32.mrb[31].mxu1 }
 0x85e   :  { %8499 = vmatmul.mubr.msk.bf16.gmra.mrb[136].mxu1 %vm3650_vm2, %v3564_v53 }
 0x85f   :  { %v3259_v42 = vpop.f32.mrb[180].mxu0  ;;  %8502 = vmatprep.mubr.msk.bf16.mxu1 %vm9898_vm0, %v14605_v26 }
 0x860   :  { %v7990_v61 = vpop.f32.mrb[181].mxu0  ;;  %v9434_v43 = vadd.f32 %v11467_v63, %v3259_v42 }
 0x861   :  { %v3262_v38 = vpop.f32.mrb[182].mxu0  ;;  %v4640_v0 = vpop.f32.mrb[32].mxu1 }
 0x862   :  { %v9435_v8 = vadd.f32 %v11467_v63, %v3262_v38  ;;  %v7991_v23 = vpop.f32.mrb[183].mxu0  ;;  %v8396_v25 = vpop.f32.mrb[33].mxu1  ;;  %v11826_v22 = vadd.f32 %v11780_v16, %v4640_v0 }
 0x863   :  { %v4643_v62 = vpop.f32.mrb[34].mxu1 }
 0x864   :  { %v3565_v36 = vpack.c.bf16 %v9435_v8, %v9434_v43  ;;  %14815 = vst [vmem:[#allocation88_spill] sm:$0xff] %v11826_v22  ;;  %v11829_v53 = vadd.f32 %v11780_v16, %v4643_v62  ;;  %v8397_v7 = vpop.f32.mrb[35].mxu1 }
 0x866   :  { %14816 = vst [vmem:[#allocation89_spill] sm:$0xff] %v11829_v53  ;;  %8503 = vmatmul.mubr.msk.bf16.gmra.mrb[140].mxu1 %vm3650_vm2, %v3565_v36 }
 0x867   :  { %v3267_v5 = vpop.f32.mrb[184].mxu0  ;;  %8506 = vmatprep.mubr.msk.bf16.mxu1 %vm9898_vm0, %v14605_v26 }
 0x868   :  { %v7994_v42 = vpop.f32.mrb[185].mxu0  ;;  %v9436_v43 = vadd.f32 %v11467_v63, %v3267_v5 }
 0x869   :  { %v3270_v38 = vpop.f32.mrb[186].mxu0  ;;  %v4648_v23 = vpop.f32.mrb[36].mxu1 }
 0x86a   :  { %v9437_v0 = vadd.f32 %v11467_v63, %v3270_v38  ;;  %v7995_v8 = vpop.f32.mrb[187].mxu0  ;;  %v8400_v25 = vpop.f32.mrb[37].mxu1  ;;  %v11839_v49 = vadd.f32 %v11780_v16, %v4648_v23 }
 0x86b   :  { %v4651_v62 = vpop.f32.mrb[38].mxu1 }
 0x86c   :  { %v3566_v7 = vpack.c.bf16 %v9437_v0, %v9436_v43  ;;  %14817 = vst [vmem:[#allocation90_spill] sm:$0xff] %v11839_v49  ;;  %v11842_v36 = vadd.f32 %v11780_v16, %v4651_v62  ;;  %v8401_v61 = vpop.f32.mrb[39].mxu1 }
 0x86e   :  { %14818 = vst [vmem:[#allocation113_spill] sm:$0xff] %v11842_v36  ;;  %8507 = vmatmul.mubr.msk.bf16.gmra.mrb[144].mxu1 %vm3650_vm2, %v3566_v7 }
 0x86f   :  { %v3275_v22 = vpop.f32.mrb[188].mxu0  ;;  %8510 = vmatprep.mubr.msk.bf16.mxu1 %vm9898_vm0, %v14605_v26 }
 0x870   :  { %v7998_v5 = vpop.f32.mrb[189].mxu0  ;;  %v9438_v43 = vadd.f32 %v11467_v63, %v3275_v22 }
 0x871   :  { %v3278_v38 = vpop.f32.mrb[190].mxu0  ;;  %v4656_v8 = vpop.f32.mrb[40].mxu1 }
 0x872   :  { %v9439_v23 = vadd.f32 %v11467_v63, %v3278_v38  ;;  %v7999_v0 = vpop.f32.mrb[191].mxu0  ;;  %v8404_v25 = vpop.f32.mrb[41].mxu1  ;;  %v11852_v53 = vadd.f32 %v11780_v16, %v4656_v8 }
 0x873   :  { %v4659_v62 = vpop.f32.mrb[42].mxu1 }
 0x874   :  { %v3567_v61 = vpack.c.bf16 %v9439_v23, %v9438_v43  ;;  %14819 = vst [vmem:[#allocation114_spill] sm:$0xff] %v11852_v53  ;;  %v11855_v7 = vadd.f32 %v11780_v16, %v4659_v62  ;;  %v8405_v42 = vpop.f32.mrb[43].mxu1  ;;  %v11862_v43 = vld [vmem:[#allocation4] ss:$0 sm:$0xff] }
 0x876   :  { %14820 = vst [vmem:[#allocation115_spill] sm:$0xff] %v11855_v7  ;;  %8511 = vmatmul.mubr.msk.bf16.gmra.mrb[148].mxu1 %vm3650_vm2, %v3567_v61 }
 0x877   :  { %v3283_v49 = vpop.f32.mrb[192].mxu0  ;;  %8514 = vmatprep.mubr.msk.bf16.mxu1 %vm9898_vm0, %v14605_v26 }
 0x878   :  { %v8002_v63 = vpop.f32.mrb[193].mxu0  ;;  %v9440_v8 = vadd.f32 %v11862_v43, %v3283_v49 }
 0x879   :  { %v3286_v22 = vpop.f32.mrb[194].mxu0  ;;  %v4664_v38 = vpop.f32.mrb[44].mxu1 }
 0x87a   :  { %v9441_v23 = vadd.f32 %v11862_v43, %v3286_v22  ;;  %v8003_v0 = vpop.f32.mrb[195].mxu0  ;;  %v8408_v42 = vpop.f32.mrb[45].mxu1  ;;  %v11867_v5 = vadd.f32 %v11780_v16, %v4664_v38 }
 0x87b   :  { %v4667_v25 = vpop.f32.mrb[46].mxu1 }
 0x87c   :  { %v3568_v62 = vpack.c.bf16 %v9441_v23, %v9440_v8  ;;  %14821 = vst [vmem:[#allocation116_spill] sm:$0xff] %v11867_v5  ;;  %v11870_v61 = vadd.f32 %v11780_v16, %v4667_v25  ;;  %v8409_v53 = vpop.f32.mrb[47].mxu1 }
 0x87e   :  { %14822 = vst [vmem:[#allocation117_spill] sm:$0xff] %v11870_v61  ;;  %8515 = vmatmul.mubr.msk.bf16.gmra.mrb[152].mxu1 %vm3650_vm2, %v3568_v62 }
 0x87f   :  { %v3291_v7 = vpop.f32.mrb[196].mxu0  ;;  %8518 = vmatprep.mubr.msk.bf16.mxu1 %vm9898_vm0, %v14605_v26 }
 0x880   :  { %v8006_v49 = vpop.f32.mrb[197].mxu0  ;;  %v9442_v8 = vadd.f32 %v11862_v43, %v3291_v7 }
 0x881   :  { %v3294_v22 = vpop.f32.mrb[198].mxu0  ;;  %v4672_v0 = vpop.f32.mrb[48].mxu1 }
 0x882   :  { %v9443_v38 = vadd.f32 %v11862_v43, %v3294_v22  ;;  %v8007_v23 = vpop.f32.mrb[199].mxu0  ;;  %v8412_v42 = vpop.f32.mrb[49].mxu1  ;;  %v11880_v36 = vadd.f32 %v11780_v16, %v4672_v0 }
 0x883   :  { %v4675_v25 = vpop.f32.mrb[50].mxu1 }
 0x884   :  { %v3569_v53 = vpack.c.bf16 %v9443_v38, %v9442_v8  ;;  %14823 = vst [vmem:[#allocation118_spill] sm:$0xff] %v11880_v36  ;;  %v11883_v62 = vadd.f32 %v11780_v16, %v4675_v25  ;;  %v8413_v63 = vpop.f32.mrb[51].mxu1 }
 0x886   :  { %14824 = vst [vmem:[#allocation119_spill] sm:$0xff] %v11883_v62  ;;  %8519 = vmatmul.mubr.msk.bf16.gmra.mrb[156].mxu1 %vm3650_vm2, %v3569_v53 }
 0x887   :  { %v3299_v5 = vpop.f32.mrb[200].mxu0  ;;  %8522 = vmatprep.mubr.msk.bf16.mxu1 %vm9898_vm0, %v14605_v26 }
 0x888   :  { %v8010_v7 = vpop.f32.mrb[201].mxu0  ;;  %v9444_v8 = vadd.f32 %v11862_v43, %v3299_v5 }
 0x889   :  { %v3302_v22 = vpop.f32.mrb[202].mxu0  ;;  %v4680_v23 = vpop.f32.mrb[52].mxu1 }
 0x88a   :  { %v9445_v0 = vadd.f32 %v11862_v43, %v3302_v22  ;;  %v8011_v38 = vpop.f32.mrb[203].mxu0  ;;  %v8416_v42 = vpop.f32.mrb[53].mxu1  ;;  %v11893_v61 = vadd.f32 %v11780_v16, %v4680_v23 }
 0x88b   :  { %v4683_v25 = vpop.f32.mrb[54].mxu1 }
 0x88c   :  { %v3570_v63 = vpack.c.bf16 %v9445_v0, %v9444_v8  ;;  %14825 = vst [vmem:[#allocation120_spill] sm:$0xff] %v11893_v61  ;;  %v11896_v53 = vadd.f32 %v11780_v16, %v4683_v25  ;;  %v8417_v49 = vpop.f32.mrb[55].mxu1 }
 0x88e   :  { %14826 = vst [vmem:[#allocation121_spill] sm:$0xff] %v11896_v53  ;;  %8523 = vmatmul.mubr.msk.bf16.gmra.mrb[160].mxu1 %vm3650_vm2, %v3570_v63 }
 0x88f   :  { %v3307_v36 = vpop.f32.mrb[204].mxu0  ;;  %8526 = vmatprep.mubr.msk.bf16.mxu1 %vm9898_vm0, %v14605_v26 }
 0x890   :  { %v8014_v5 = vpop.f32.mrb[205].mxu0  ;;  %v9446_v8 = vadd.f32 %v11862_v43, %v3307_v36 }
 0x891   :  { %v3310_v22 = vpop.f32.mrb[206].mxu0  ;;  %v4688_v38 = vpop.f32.mrb[56].mxu1 }
 0x892   :  { %v9447_v23 = vadd.f32 %v11862_v43, %v3310_v22  ;;  %v8015_v0 = vpop.f32.mrb[207].mxu0  ;;  %v8420_v42 = vpop.f32.mrb[57].mxu1  ;;  %v11906_v62 = vadd.f32 %v11780_v16, %v4688_v38 }
 0x893   :  { %v4691_v25 = vpop.f32.mrb[58].mxu1 }
 0x894   :  { %v3571_v49 = vpack.c.bf16 %v9447_v23, %v9446_v8  ;;  %14827 = vst [vmem:[#allocation122_spill] sm:$0xff] %v11906_v62  ;;  %v11909_v63 = vadd.f32 %v11780_v16, %v4691_v25  ;;  %v8421_v7 = vpop.f32.mrb[59].mxu1 }
 0x896   :  { %14828 = vst [vmem:[#allocation123_spill] sm:$0xff] %v11909_v63  ;;  %8527 = vmatmul.mubr.msk.bf16.gmra.mrb[164].mxu1 %vm3650_vm2, %v3571_v49 }
 0x897   :  { %v3315_v61 = vpop.f32.mrb[208].mxu0  ;;  %8530 = vmatprep.mubr.msk.bf16.mxu1 %vm9898_vm0, %v14605_v26 }
 0x898   :  { %v8018_v36 = vpop.f32.mrb[209].mxu0  ;;  %v9448_v8 = vadd.f32 %v11862_v43, %v3315_v61 }
 0x899   :  { %v3318_v22 = vpop.f32.mrb[210].mxu0  ;;  %v4696_v0 = vpop.f32.mrb[60].mxu1 }
 0x89a   :  { %v9449_v38 = vadd.f32 %v11862_v43, %v3318_v22  ;;  %v8019_v23 = vpop.f32.mrb[211].mxu0  ;;  %v8424_v42 = vpop.f32.mrb[61].mxu1  ;;  %v11919_v53 = vadd.f32 %v11780_v16, %v4696_v0 }
 0x89b   :  { %v4699_v25 = vpop.f32.mrb[62].mxu1 }
 0x89c   :  { %v3572_v7 = vpack.c.bf16 %v9449_v38, %v9448_v8  ;;  %14829 = vst [vmem:[#allocation124_spill] sm:$0xff] %v11919_v53  ;;  %v11922_v49 = vadd.f32 %v11780_v16, %v4699_v25  ;;  %v8425_v5 = vpop.f32.mrb[63].mxu1 }
 0x89e   :  { %14830 = vst [vmem:[#allocation125_spill] sm:$0xff] %v11922_v49  ;;  %8531 = vmatmul.mubr.msk.bf16.gmra.mrb[168].mxu1 %vm3650_vm2, %v3572_v7 }
 0x89f   :  { %v3323_v62 = vpop.f32.mrb[212].mxu0  ;;  %8534 = vmatprep.mubr.msk.bf16.mxu1 %vm9898_vm0, %v14605_v26 }
 0x8a0   :  { %v8022_v61 = vpop.f32.mrb[213].mxu0  ;;  %v9450_v8 = vadd.f32 %v11862_v43, %v3323_v62 }
 0x8a1   :  { %v3326_v22 = vpop.f32.mrb[214].mxu0  ;;  %v4704_v23 = vpop.f32.mrb[64].mxu1 }
 0x8a2   :  { %v9451_v0 = vadd.f32 %v11862_v43, %v3326_v22  ;;  %v8023_v38 = vpop.f32.mrb[215].mxu0  ;;  %v8428_v42 = vpop.f32.mrb[65].mxu1  ;;  %v11932_v63 = vadd.f32 %v11780_v16, %v4704_v23 }
 0x8a3   :  { %v4707_v25 = vpop.f32.mrb[66].mxu1 }
 0x8a4   :  { %v3573_v5 = vpack.c.bf16 %v9451_v0, %v9450_v8  ;;  %14831 = vst [vmem:[#allocation126_spill] sm:$0xff] %v11932_v63  ;;  %v11935_v7 = vadd.f32 %v11780_v16, %v4707_v25  ;;  %v8429_v36 = vpop.f32.mrb[67].mxu1 }
 0x8a6   :  { %14832 = vst [vmem:[#allocation127_spill] sm:$0xff] %v11935_v7  ;;  %8535 = vmatmul.mubr.msk.bf16.gmra.mrb[172].mxu1 %vm3650_vm2, %v3573_v5 }
 0x8a7   :  { %v3331_v53 = vpop.f32.mrb[216].mxu0  ;;  %8538 = vmatprep.mubr.msk.bf16.mxu1 %vm9898_vm0, %v14605_v26 }
 0x8a8   :  { %v8026_v62 = vpop.f32.mrb[217].mxu0  ;;  %v9452_v8 = vadd.f32 %v11862_v43, %v3331_v53 }
 0x8a9   :  { %v3334_v22 = vpop.f32.mrb[218].mxu0  ;;  %v4712_v38 = vpop.f32.mrb[68].mxu1 }
 0x8aa   :  { %v9453_v23 = vadd.f32 %v11862_v43, %v3334_v22  ;;  %v8027_v0 = vpop.f32.mrb[219].mxu0  ;;  %v8432_v42 = vpop.f32.mrb[69].mxu1  ;;  %v11945_v49 = vadd.f32 %v11780_v16, %v4712_v38 }
 0x8ab   :  { %v4715_v25 = vpop.f32.mrb[70].mxu1 }
 0x8ac   :  { %v3574_v36 = vpack.c.bf16 %v9453_v23, %v9452_v8  ;;  %14833 = vst [vmem:[#allocation128_spill] sm:$0xff] %v11945_v49  ;;  %v11948_v5 = vadd.f32 %v11780_v16, %v4715_v25  ;;  %v8433_v61 = vpop.f32.mrb[71].mxu1 }
 0x8ae   :  { %14834 = vst [vmem:[#allocation129_spill] sm:$0xff] %v11948_v5  ;;  %8539 = vmatmul.mubr.msk.bf16.gmra.mrb[176].mxu1 %vm3650_vm2, %v3574_v36 }
 0x8af   :  { %v3339_v63 = vpop.f32.mrb[220].mxu0  ;;  %8542 = vmatprep.mubr.msk.bf16.mxu1 %vm9898_vm0, %v14605_v26 }
 0x8b0   :  { %v8030_v53 = vpop.f32.mrb[221].mxu0  ;;  %v9454_v8 = vadd.f32 %v11862_v43, %v3339_v63 }
 0x8b1   :  { %v3342_v22 = vpop.f32.mrb[222].mxu0  ;;  %v4720_v0 = vpop.f32.mrb[72].mxu1 }
 0x8b2   :  { %v9455_v38 = vadd.f32 %v11862_v43, %v3342_v22  ;;  %v8031_v23 = vpop.f32.mrb[223].mxu0  ;;  %v8436_v42 = vpop.f32.mrb[73].mxu1  ;;  %v11958_v7 = vadd.f32 %v11780_v16, %v4720_v0 }
 0x8b3   :  { %v4723_v25 = vpop.f32.mrb[74].mxu1 }
 0x8b4   :  { %v3575_v61 = vpack.c.bf16 %v9455_v38, %v9454_v8  ;;  %14835 = vst [vmem:[#allocation130_spill] sm:$0xff] %v11958_v7  ;;  %v11961_v36 = vadd.f32 %v11780_v16, %v4723_v25  ;;  %v8437_v62 = vpop.f32.mrb[75].mxu1 }
 0x8b6   :  { %14836 = vst [vmem:[#allocation131_spill] sm:$0xff] %v11961_v36  ;;  %8543 = vmatmul.mubr.msk.bf16.gmra.mrb[180].mxu1 %vm3650_vm2, %v3575_v61 }
 0x8b7   :  { %v3347_v49 = vpop.f32.mrb[224].mxu0  ;;  %8546 = vmatprep.mubr.msk.bf16.mxu1 %vm9898_vm0, %v14605_v26 }
 0x8b8   :  { %v8034_v63 = vpop.f32.mrb[225].mxu0  ;;  %v9456_v8 = vadd.f32 %v11862_v43, %v3347_v49 }
 0x8b9   :  { %v3350_v22 = vpop.f32.mrb[226].mxu0  ;;  %v4728_v23 = vpop.f32.mrb[76].mxu1 }
 0x8ba   :  { %v9457_v0 = vadd.f32 %v11862_v43, %v3350_v22  ;;  %v8035_v38 = vpop.f32.mrb[227].mxu0  ;;  %v8440_v42 = vpop.f32.mrb[77].mxu1  ;;  %v11971_v5 = vadd.f32 %v11780_v16, %v4728_v23 }
 0x8bb   :  { %v4731_v25 = vpop.f32.mrb[78].mxu1 }
 0x8bc   :  { %v3576_v62 = vpack.c.bf16 %v9457_v0, %v9456_v8  ;;  %14837 = vst [vmem:[#allocation132_spill] sm:$0xff] %v11971_v5  ;;  %v11974_v61 = vadd.f32 %v11780_v16, %v4731_v25  ;;  %v8441_v53 = vpop.f32.mrb[79].mxu1 }
 0x8be   :  { %14838 = vst [vmem:[#allocation133_spill] sm:$0xff] %v11974_v61  ;;  %8547 = vmatmul.mubr.msk.bf16.gmra.mrb[184].mxu1 %vm3650_vm2, %v3576_v62 }
 0x8bf   :  { %v3355_v7 = vpop.f32.mrb[228].mxu0  ;;  %8550 = vmatprep.mubr.msk.bf16.mxu1 %vm9898_vm0, %v14605_v26 }
 0x8c0   :  { %v8038_v49 = vpop.f32.mrb[229].mxu0  ;;  %v9458_v8 = vadd.f32 %v11862_v43, %v3355_v7 }
 0x8c1   :  { %v3358_v22 = vpop.f32.mrb[230].mxu0  ;;  %v4736_v38 = vpop.f32.mrb[80].mxu1 }
 0x8c2   :  { %v9459_v23 = vadd.f32 %v11862_v43, %v3358_v22  ;;  %v8039_v0 = vpop.f32.mrb[231].mxu0  ;;  %v8444_v42 = vpop.f32.mrb[81].mxu1  ;;  %v11984_v36 = vadd.f32 %v11780_v16, %v4736_v38 }
 0x8c3   :  { %v4739_v25 = vpop.f32.mrb[82].mxu1 }
 0x8c4   :  { %v3577_v53 = vpack.c.bf16 %v9459_v23, %v9458_v8  ;;  %14839 = vst [vmem:[#allocation134_spill] sm:$0xff] %v11984_v36  ;;  %v11987_v62 = vadd.f32 %v11780_v16, %v4739_v25  ;;  %v8445_v63 = vpop.f32.mrb[83].mxu1 }
 0x8c6   :  { %14840 = vst [vmem:[#allocation135_spill] sm:$0xff] %v11987_v62  ;;  %8551 = vmatmul.mubr.msk.bf16.gmra.mrb[188].mxu1 %vm3650_vm2, %v3577_v53 }
 0x8c7   :  { %v3363_v5 = vpop.f32.mrb[232].mxu0  ;;  %8554 = vmatprep.mubr.msk.bf16.mxu1 %vm9898_vm0, %v14605_v26 }
 0x8c8   :  { %v8042_v7 = vpop.f32.mrb[233].mxu0  ;;  %v9460_v8 = vadd.f32 %v11862_v43, %v3363_v5 }
 0x8c9   :  { %v3366_v22 = vpop.f32.mrb[234].mxu0  ;;  %v4744_v0 = vpop.f32.mrb[84].mxu1 }
 0x8ca   :  { %v9461_v38 = vadd.f32 %v11862_v43, %v3366_v22  ;;  %v8043_v23 = vpop.f32.mrb[235].mxu0  ;;  %v8448_v42 = vpop.f32.mrb[85].mxu1  ;;  %v11997_v61 = vadd.f32 %v11780_v16, %v4744_v0 }
 0x8cb   :  { %v4747_v25 = vpop.f32.mrb[86].mxu1 }
 0x8cc   :  { %v3578_v63 = vpack.c.bf16 %v9461_v38, %v9460_v8  ;;  %14841 = vst [vmem:[#allocation136_spill] sm:$0xff] %v11997_v61  ;;  %v12000_v53 = vadd.f32 %v11780_v16, %v4747_v25  ;;  %v8449_v49 = vpop.f32.mrb[87].mxu1 }
 0x8ce   :  { %14842 = vst [vmem:[#allocation137_spill] sm:$0xff] %v12000_v53  ;;  %8555 = vmatmul.mubr.msk.bf16.gmra.mrb[192].mxu1 %vm3650_vm2, %v3578_v63 }
 0x8cf   :  { %v3371_v36 = vpop.f32.mrb[236].mxu0  ;;  %8558 = vmatprep.mubr.msk.bf16.mxu1 %vm9898_vm0, %v14605_v26 }
 0x8d0   :  { %v8046_v5 = vpop.f32.mrb[237].mxu0  ;;  %v9462_v8 = vadd.f32 %v11862_v43, %v3371_v36 }
 0x8d1   :  { %v3374_v22 = vpop.f32.mrb[238].mxu0  ;;  %v4752_v23 = vpop.f32.mrb[88].mxu1 }
 0x8d2   :  { %v9463_v0 = vadd.f32 %v11862_v43, %v3374_v22  ;;  %v8047_v38 = vpop.f32.mrb[239].mxu0  ;;  %v8452_v42 = vpop.f32.mrb[89].mxu1  ;;  %v12010_v62 = vadd.f32 %v11780_v16, %v4752_v23 }
 0x8d3   :  { %v4755_v25 = vpop.f32.mrb[90].mxu1 }
 0x8d4   :  { %v3579_v49 = vpack.c.bf16 %v9463_v0, %v9462_v8  ;;  %14843 = vst [vmem:[#allocation138_spill] sm:$0xff] %v12010_v62  ;;  %v12013_v63 = vadd.f32 %v11780_v16, %v4755_v25  ;;  %v8453_v7 = vpop.f32.mrb[91].mxu1 }
 0x8d6   :  { %14844 = vst [vmem:[#allocation139_spill] sm:$0xff] %v12013_v63  ;;  %8559 = vmatmul.mubr.msk.bf16.gmra.mrb[196].mxu1 %vm3650_vm2, %v3579_v49 }
 0x8d7   :  { %v3379_v61 = vpop.f32.mrb[240].mxu0  ;;  %8562 = vmatprep.mubr.msk.bf16.mxu1 %vm9898_vm0, %v14605_v26 }
 0x8d8   :  { %v8050_v36 = vpop.f32.mrb[241].mxu0  ;;  %v9464_v8 = vadd.f32 %v11862_v43, %v3379_v61 }
 0x8d9   :  { %v3382_v22 = vpop.f32.mrb[242].mxu0  ;;  %v4760_v38 = vpop.f32.mrb[92].mxu1 }
 0x8da   :  { %v9465_v23 = vadd.f32 %v11862_v43, %v3382_v22  ;;  %v8051_v0 = vpop.f32.mrb[243].mxu0  ;;  %v8456_v42 = vpop.f32.mrb[93].mxu1  ;;  %v12023_v53 = vadd.f32 %v11780_v16, %v4760_v38 }
 0x8db   :  { %v4763_v25 = vpop.f32.mrb[94].mxu1 }
 0x8dc   :  { %v3580_v7 = vpack.c.bf16 %v9465_v23, %v9464_v8  ;;  %14845 = vst [vmem:[#allocation140_spill] sm:$0xff] %v12023_v53  ;;  %v12026_v49 = vadd.f32 %v11780_v16, %v4763_v25  ;;  %v8457_v5 = vpop.f32.mrb[95].mxu1 }
 0x8de   :  { %14846 = vst [vmem:[#allocation141_spill] sm:$0xff] %v12026_v49  ;;  %8563 = vmatmul.mubr.msk.bf16.gmra.mrb[200].mxu1 %vm3650_vm2, %v3580_v7 }
 0x8df   :  { %v3387_v62 = vpop.f32.mrb[244].mxu0  ;;  %8566 = vmatprep.mubr.msk.bf16.mxu1 %vm9898_vm0, %v14605_v26 }
 0x8e0   :  { %v8054_v61 = vpop.f32.mrb[245].mxu0  ;;  %v9466_v8 = vadd.f32 %v11862_v43, %v3387_v62 }
 0x8e1   :  { %v3390_v22 = vpop.f32.mrb[246].mxu0  ;;  %v4768_v0 = vpop.f32.mrb[96].mxu1 }
 0x8e2   :  { %v9467_v38 = vadd.f32 %v11862_v43, %v3390_v22  ;;  %v8055_v23 = vpop.f32.mrb[247].mxu0  ;;  %v8460_v42 = vpop.f32.mrb[97].mxu1  ;;  %v12036_v63 = vadd.f32 %v11780_v16, %v4768_v0 }
 0x8e3   :  { %v4771_v25 = vpop.f32.mrb[98].mxu1 }
 0x8e4   :  { %v3581_v5 = vpack.c.bf16 %v9467_v38, %v9466_v8  ;;  %14847 = vst [vmem:[#allocation142_spill] sm:$0xff] %v12036_v63  ;;  %v12039_v7 = vadd.f32 %v11780_v16, %v4771_v25  ;;  %v8461_v36 = vpop.f32.mrb[99].mxu1 }
 0x8e6   :  { %14848 = vst [vmem:[#allocation143_spill] sm:$0xff] %v12039_v7  ;;  %8567 = vmatmul.mubr.msk.bf16.gmra.mrb[204].mxu1 %vm3650_vm2, %v3581_v5 }
 0x8e7   :  { %v3395_v53 = vpop.f32.mrb[248].mxu0  ;;  %8570 = vmatprep.mubr.msk.bf16.mxu1 %vm9898_vm0, %v14605_v26 }
 0x8e8   :  { %v8058_v62 = vpop.f32.mrb[249].mxu0  ;;  %v9468_v8 = vadd.f32 %v11862_v43, %v3395_v53 }
 0x8e9   :  { %v3398_v22 = vpop.f32.mrb[250].mxu0  ;;  %v4776_v23 = vpop.f32.mrb[100].mxu1 }
 0x8ea   :  { %v9469_v0 = vadd.f32 %v11862_v43, %v3398_v22  ;;  %v8059_v38 = vpop.f32.mrb[251].mxu0  ;;  %v8464_v42 = vpop.f32.mrb[101].mxu1  ;;  %v12049_v49 = vadd.f32 %v11780_v16, %v4776_v23 }
 0x8eb   :  { %v4779_v25 = vpop.f32.mrb[102].mxu1 }
 0x8ec   :  { %v3582_v36 = vpack.c.bf16 %v9469_v0, %v9468_v8  ;;  %14849 = vst [vmem:[#allocation144_spill] sm:$0xff] %v12049_v49  ;;  %v12052_v5 = vadd.f32 %v11780_v16, %v4779_v25  ;;  %v8465_v61 = vpop.f32.mrb[103].mxu1 }
 0x8ee   :  { %14850 = vst [vmem:[#allocation145_spill] sm:$0xff] %v12052_v5  ;;  %8571 = vmatmul.mubr.msk.bf16.gmra.mrb[208].mxu1 %vm3650_vm2, %v3582_v36 }
 0x8ef   :  { %v3403_v63 = vpop.f32.mrb[252].mxu0  ;;  %8574 = vmatprep.mubr.msk.bf16.mxu1 %vm9898_vm0, %v14605_v26 }
 0x8f0   :  { %v8062_v53 = vpop.f32.mrb[253].mxu0  ;;  %v9470_v8 = vadd.f32 %v11862_v43, %v3403_v63 }
 0x8f1   :  { %v3406_v22 = vpop.f32.mrb[254].mxu0  ;;  %v4784_v38 = vpop.f32.mrb[104].mxu1 }
 0x8f2   :  { %v9471_v23 = vadd.f32 %v11862_v43, %v3406_v22  ;;  %v8063_v0 = vpop.f32.mrb[255].mxu0  ;;  %v8468_v42 = vpop.f32.mrb[105].mxu1  ;;  %v12062_v7 = vadd.f32 %v11780_v16, %v4784_v38 }
 0x8f3   :  { %v4787_v25 = vpop.f32.mrb[106].mxu1 }
 0x8f4   :  { %v3583_v61 = vpack.c.bf16 %v9471_v23, %v9470_v8  ;;  %14851 = vst [vmem:[#allocation146_spill] sm:$0xff] %v12062_v7  ;;  %v12065_v36 = vadd.f32 %v11780_v16, %v4787_v25  ;;  %v8469_v62 = vpop.f32.mrb[107].mxu1 }
 0x8f6   :  { %14852 = vst [vmem:[#allocation147_spill] sm:$0xff] %v12065_v36  ;;  %8575 = vmatmul.mubr.msk.bf16.gmra.mrb[212].mxu1 %vm3650_vm2, %v3583_v61 }
 0x8f7   :  { %v3411_v49 = vpop.f32.mrb[148].mxu0  ;;  %8578 = vmatprep.mubr.msk.bf16.mxu1 %vm9898_vm0, %v14605_v26 }
 0x8f8   :  { %v8066_v63 = vpop.f32.mrb[149].mxu0  ;;  %v9472_v8 = vadd.f32 %v11862_v43, %v3411_v49 }
 0x8f9   :  { %v3414_v22 = vpop.f32.mrb[150].mxu0  ;;  %v4792_v0 = vpop.f32.mrb[108].mxu1 }
 0x8fa   :  { %v9473_v38 = vadd.f32 %v11862_v43, %v3414_v22  ;;  %v8067_v23 = vpop.f32.mrb[151].mxu0  ;;  %v8472_v42 = vpop.f32.mrb[109].mxu1  ;;  %v12075_v5 = vadd.f32 %v11780_v16, %v4792_v0 }
 0x8fb   :  { %v4795_v25 = vpop.f32.mrb[110].mxu1 }
 0x8fc   :  { %v3584_v62 = vpack.c.bf16 %v9473_v38, %v9472_v8  ;;  %14853 = vst [vmem:[#allocation148_spill] sm:$0xff] %v12075_v5  ;;  %v12078_v61 = vadd.f32 %v11780_v16, %v4795_v25  ;;  %v8473_v53 = vpop.f32.mrb[111].mxu1 }
 0x8fe   :  { %14854 = vst [vmem:[#allocation149_spill] sm:$0xff] %v12078_v61  ;;  %8579 = vmatmul.mubr.msk.bf16.gmra.mrb[216].mxu1 %vm3650_vm2, %v3584_v62 }
 0x8ff   :  { %v3419_v7 = vpop.f32.mrb[152].mxu0  ;;  %8582 = vmatprep.mubr.msk.bf16.mxu1 %vm9898_vm0, %v14605_v26 }
 0x900   :  { %v8070_v49 = vpop.f32.mrb[153].mxu0  ;;  %v9474_v8 = vadd.f32 %v11862_v43, %v3419_v7 }
 0x901   :  { %v3422_v22 = vpop.f32.mrb[154].mxu0  ;;  %v4800_v23 = vpop.f32.mrb[112].mxu1 }
 0x902   :  { %v9475_v0 = vadd.f32 %v11862_v43, %v3422_v22  ;;  %v8071_v38 = vpop.f32.mrb[155].mxu0  ;;  %v8476_v42 = vpop.f32.mrb[113].mxu1  ;;  %v12088_v36 = vadd.f32 %v11780_v16, %v4800_v23 }
 0x903   :  { %v4803_v25 = vpop.f32.mrb[114].mxu1 }
 0x904   :  { %v3585_v53 = vpack.c.bf16 %v9475_v0, %v9474_v8  ;;  %14855 = vst [vmem:[#allocation150_spill] sm:$0xff] %v12088_v36  ;;  %v12091_v62 = vadd.f32 %v11780_v16, %v4803_v25  ;;  %v8477_v63 = vpop.f32.mrb[115].mxu1 }
 0x906   :  { %14856 = vst [vmem:[#allocation151_spill] sm:$0xff] %v12091_v62  ;;  %8583 = vmatmul.mubr.msk.bf16.gmra.mrb[220].mxu1 %vm3650_vm2, %v3585_v53 }
 0x907   :  { %v3427_v5 = vpop.f32.mrb[156].mxu0  ;;  %8586 = vmatprep.mubr.msk.bf16.mxu1 %vm9898_vm0, %v14605_v26 }
 0x908   :  { %v8074_v7 = vpop.f32.mrb[157].mxu0  ;;  %v9476_v8 = vadd.f32 %v11862_v43, %v3427_v5 }
 0x909   :  { %v3430_v22 = vpop.f32.mrb[158].mxu0  ;;  %v4808_v38 = vpop.f32.mrb[116].mxu1 }
 0x90a   :  { %v9477_v23 = vadd.f32 %v11862_v43, %v3430_v22  ;;  %v8075_v0 = vpop.f32.mrb[159].mxu0  ;;  %v8480_v42 = vpop.f32.mrb[117].mxu1  ;;  %v12101_v61 = vadd.f32 %v11780_v16, %v4808_v38 }
 0x90b   :  { %v4811_v25 = vpop.f32.mrb[118].mxu1 }
 0x90c   :  { %v3586_v63 = vpack.c.bf16 %v9477_v23, %v9476_v8  ;;  %14857 = vst [vmem:[#allocation152_spill] sm:$0xff] %v12101_v61  ;;  %v12104_v53 = vadd.f32 %v11780_v16, %v4811_v25  ;;  %v8481_v49 = vpop.f32.mrb[119].mxu1 }
 0x90e   :  { %14858 = vst [vmem:[#allocation153_spill] sm:$0xff] %v12104_v53  ;;  %8587 = vmatmul.mubr.msk.bf16.gmra.mrb[224].mxu1 %vm3650_vm2, %v3586_v63 }
 0x90f   :  { %v3435_v36 = vpop.f32.mrb[160].mxu0  ;;  %8590 = vmatprep.mubr.msk.bf16.mxu1 %vm9898_vm0, %v14605_v26 }
 0x910   :  { %v8078_v5 = vpop.f32.mrb[161].mxu0  ;;  %v9478_v8 = vadd.f32 %v11862_v43, %v3435_v36 }
 0x911   :  { %v3438_v22 = vpop.f32.mrb[162].mxu0  ;;  %v4816_v0 = vpop.f32.mrb[120].mxu1 }
 0x912   :  { %v9479_v38 = vadd.f32 %v11862_v43, %v3438_v22  ;;  %v8079_v23 = vpop.f32.mrb[163].mxu0  ;;  %v8484_v42 = vpop.f32.mrb[121].mxu1  ;;  %v12114_v62 = vadd.f32 %v11780_v16, %v4816_v0 }
 0x913   :  { %v4819_v25 = vpop.f32.mrb[122].mxu1 }
 0x914   :  { %v3587_v49 = vpack.c.bf16 %v9479_v38, %v9478_v8  ;;  %14859 = vst [vmem:[#allocation154_spill] sm:$0xff] %v12114_v62  ;;  %v12117_v63 = vadd.f32 %v11780_v16, %v4819_v25  ;;  %v8485_v7 = vpop.f32.mrb[123].mxu1 }
 0x916   :  { %14860 = vst [vmem:[#allocation155_spill] sm:$0xff] %v12117_v63  ;;  %8591 = vmatmul.mubr.msk.bf16.gmra.mrb[228].mxu1 %vm3650_vm2, %v3587_v49 }
 0x917   :  { %v3443_v61 = vpop.f32.mrb[164].mxu0  ;;  %8594 = vmatprep.mubr.msk.bf16.mxu1 %vm9898_vm0, %v14605_v26 }
 0x918   :  { %v8082_v36 = vpop.f32.mrb[165].mxu0  ;;  %v9480_v8 = vadd.f32 %v11862_v43, %v3443_v61 }
 0x919   :  { %v3446_v22 = vpop.f32.mrb[166].mxu0  ;;  %v4824_v23 = vpop.f32.mrb[124].mxu1 }
 0x91a   :  { %v9481_v0 = vadd.f32 %v11862_v43, %v3446_v22  ;;  %v8083_v38 = vpop.f32.mrb[167].mxu0  ;;  %v8488_v42 = vpop.f32.mrb[125].mxu1  ;;  %v12127_v53 = vadd.f32 %v11780_v16, %v4824_v23 }
 0x91b   :  { %v4827_v25 = vpop.f32.mrb[126].mxu1 }
 0x91c   :  { %v3588_v7 = vpack.c.bf16 %v9481_v0, %v9480_v8  ;;  %14861 = vst [vmem:[#allocation156_spill] sm:$0xff] %v12127_v53  ;;  %v12130_v49 = vadd.f32 %v11780_v16, %v4827_v25  ;;  %v8489_v5 = vpop.f32.mrb[127].mxu1 }
 0x91e   :  { %14862 = vst [vmem:[#allocation157_spill] sm:$0xff] %v12130_v49  ;;  %8595 = vmatmul.mubr.msk.bf16.gmra.mrb[232].mxu1 %vm3650_vm2, %v3588_v7 }
 0x91f   :  { %v3451_v62 = vpop.f32.mrb[168].mxu0  ;;  %8598 = vmatprep.mubr.msk.bf16.mxu1 %vm9898_vm0, %v14605_v26 }
 0x920   :  { %v8086_v61 = vpop.f32.mrb[169].mxu0  ;;  %v9482_v8 = vadd.f32 %v11862_v43, %v3451_v62 }
 0x921   :  { %v3454_v22 = vpop.f32.mrb[170].mxu0  ;;  %v4832_v38 = vpop.f32.mrb[128].mxu1 }
 0x922   :  { %v9483_v23 = vadd.f32 %v11862_v43, %v3454_v22  ;;  %v8087_v0 = vpop.f32.mrb[171].mxu0  ;;  %v8492_v42 = vpop.f32.mrb[129].mxu1  ;;  %v12140_v63 = vadd.f32 %v11780_v16, %v4832_v38 }
 0x923   :  { %v4835_v25 = vpop.f32.mrb[130].mxu1 }
 0x924   :  { %v3589_v5 = vpack.c.bf16 %v9483_v23, %v9482_v8  ;;  %v12143_v7 = vadd.f32 %v11780_v16, %v4835_v25  ;;  %v8493_v36 = vpop.f32.mrb[131].mxu1 }
 0x926   :  { %8599 = vmatmul.mubr.msk.bf16.gmra.mrb[236].mxu1 %vm3650_vm2, %v3589_v5 }
 0x927   :  { %v3459_v53 = vpop.f32.mrb[172].mxu0  ;;  %8602 = vmatprep.mubr.msk.bf16.mxu1 %vm9898_vm0, %v14605_v26 }
 0x928   :  { %v8090_v62 = vpop.f32.mrb[173].mxu0  ;;  %v9484_v8 = vadd.f32 %v11862_v43, %v3459_v53 }
 0x929   :  { %v3462_v22 = vpop.f32.mrb[174].mxu0  ;;  %v4840_v0 = vpop.f32.mrb[132].mxu1 }
 0x92a   :  { %v9485_v38 = vadd.f32 %v11862_v43, %v3462_v22  ;;  %v8091_v23 = vpop.f32.mrb[175].mxu0  ;;  %v8496_v42 = vpop.f32.mrb[133].mxu1  ;;  %v12153_v49 = vadd.f32 %v11780_v16, %v4840_v0 }
 0x92b   :  { %v4843_v25 = vpop.f32.mrb[134].mxu1  ;;  %v14865_v23 = vld [vmem:[#allocation92_spill] sm:$0xff]  ;;  %v14866_v42 = vld [vmem:[#allocation91_spill] sm:$0xff] }
 0x92c   :  { %v3590_v36 = vpack.c.bf16 %v9485_v38, %v9484_v8  ;;  %v12156_v5 = vadd.f32 %v11780_v16, %v4843_v25  ;;  %v8497_v61 = vpop.f32.mrb[135].mxu1  ;;  %v14867_v25 = vpack.c.bf16 %v14865_v23, %v14866_v42  ;;  %v14871_v23 = vld [vmem:[#allocation93_spill] sm:$0xff] }
 0x92e   :  { %8603 = vmatmul.mubr.msk.bf16.gmra.mrb[240].mxu1 %vm3650_vm2, %v3590_v36 }
 0x92f   :  { %8614 = vmatprep.mubr.msk.bf16.mxu1 %vm9898_vm0, %v14605_v26 }
 0x931   :  { %v4848_v43 = vpop.f32.mrb[136].mxu1 }
 0x932   :  { %v8500_v53 = vpop.f32.mrb[137].mxu1  ;;  %v12164_v8 = vadd.f32 %v11780_v16, %v4848_v43 }
 0x933   :  { %v4851_v22 = vpop.f32.mrb[138].mxu1 }
 0x934   :  { %14863 = vst [vmem:[#allocation158_spill] sm:$0xff] %v12164_v8  ;;  %v12167_v0 = vadd.f32 %v11780_v16, %v4851_v22  ;;  %v8501_v38 = vpop.f32.mrb[139].mxu1  ;;  %v14870_v8 = vld [vmem:[#allocation94_spill] sm:$0xff] }
 0x935   :  { %v14872_v42 = vpack.c.bf16 %v14870_v8, %v14871_v23  ;;  %v14876_v8 = vld [vmem:[#allocation95_spill] sm:$0xff] }
 0x936   :  { %14864 = vst [vmem:[#allocation159_spill] sm:$0xff] %v12167_v0  ;;  %8615 = vmatmul.mubr.msk.bf16.vlgmr.msra.gmra.mrb[244].mxu1 %vm5223_vm4, %v14867_v25 }
 0x937   :  { %8618 = vmatprep.mubr.msk.bf16.mxu1 %vm9898_vm0, %v14605_v26 }
 0x939   :  { %v4856_v36 = vpop.f32.mrb[140].mxu1 }
 0x93a   :  { %v8504_v53 = vpop.f32.mrb[141].mxu1  ;;  %v12178_v43 = vadd.f32 %v11780_v16, %v4856_v36 }
 0x93b   :  { %v4859_v62 = vpop.f32.mrb[142].mxu1 }
 0x93c   :  { %14868 = vst [vmem:[#allocation92_spill] sm:$0xff] %v12178_v43  ;;  %v12181_v22 = vadd.f32 %v11780_v16, %v4859_v62  ;;  %v8505_v38 = vpop.f32.mrb[143].mxu1  ;;  %v14875_v43 = vld [vmem:[#allocation96_spill] sm:$0xff] }
 0x93d   :  { %v14877_v23 = vpack.c.bf16 %v14875_v43, %v14876_v8  ;;  %v14881_v43 = vld [vmem:[#allocation97_spill] sm:$0xff] }
 0x93e   :  { %14869 = vst [vmem:[#allocation91_spill] sm:$0xff] %v12181_v22  ;;  %8619 = vmatmul.mubr.msk.bf16.gmra.mrb[248].mxu1 %vm5223_vm4, %v14872_v42 }
 0x93f   :  { %8622 = vmatprep.mubr.msk.bf16.mxu1 %vm9898_vm0, %v14605_v26 }
 0x941   :  { %v4864_v25 = vpop.f32.mrb[144].mxu1 }
 0x942   :  { %v8508_v53 = vpop.f32.mrb[145].mxu1  ;;  %v12192_v36 = vadd.f32 %v11780_v16, %v4864_v25 }
 0x943   :  { %v4867_v0 = vpop.f32.mrb[146].mxu1 }
 0x944   :  { %14873 = vst [vmem:[#allocation94_spill] sm:$0xff] %v12192_v36  ;;  %v12195_v62 = vadd.f32 %v11780_v16, %v4867_v0  ;;  %v8509_v38 = vpop.f32.mrb[147].mxu1  ;;  %v14880_v36 = vld [vmem:[#allocation98_spill] sm:$0xff] }
 0x945   :  { %v14882_v8 = vpack.c.bf16 %v14880_v36, %v14881_v43  ;;  %v14886_v36 = vld [vmem:[#allocation99_spill] sm:$0xff] }
 0x946   :  { %14874 = vst [vmem:[#allocation93_spill] sm:$0xff] %v12195_v62  ;;  %8623 = vmatmul.mubr.msk.bf16.gmra.mrb[252].mxu1 %vm5223_vm4, %v14877_v23 }
 0x947   :  { %8626 = vmatprep.mubr.msk.bf16.mxu1 %vm9898_vm0, %v14605_v26 }
 0x949   :  { %v4872_v42 = vpop.f32.mrb[148].mxu1 }
 0x94a   :  { %v8512_v53 = vpop.f32.mrb[149].mxu1  ;;  %v12206_v25 = vadd.f32 %v11780_v16, %v4872_v42 }
 0x94b   :  { %v4875_v22 = vpop.f32.mrb[150].mxu1 }
 0x94c   :  { %14878 = vst [vmem:[#allocation96_spill] sm:$0xff] %v12206_v25  ;;  %v12209_v0 = vadd.f32 %v11780_v16, %v4875_v22  ;;  %v8513_v38 = vpop.f32.mrb[151].mxu1  ;;  %v14885_v25 = vld [vmem:[#allocation100_spill] sm:$0xff] }
 0x94d   :  { %v14887_v43 = vpack.c.bf16 %v14885_v25, %v14886_v36  ;;  %v14890_v36 = vld [vmem:[#allocation102_spill] sm:$0xff] }
 0x94e   :  { %14879 = vst [vmem:[#allocation95_spill] sm:$0xff] %v12209_v0  ;;  %8627 = vmatmul.mubr.msk.bf16.gmra.mrb[0].mxu1 %vm5223_vm4, %v14882_v8 }
 0x94f   :  { %8630 = vmatprep.mubr.msk.bf16.mxu1 %vm9898_vm0, %v14605_v26 }
 0x951   :  { %v4880_v23 = vpop.f32.mrb[152].mxu1 }
 0x952   :  { %v8516_v53 = vpop.f32.mrb[153].mxu1  ;;  %v12220_v42 = vadd.f32 %v11780_v16, %v4880_v23 }
 0x953   :  { %v4883_v62 = vpop.f32.mrb[154].mxu1 }
 0x954   :  { %14883 = vst [vmem:[#allocation98_spill] sm:$0xff] %v12220_v42  ;;  %v12223_v22 = vadd.f32 %v11780_v16, %v4883_v62  ;;  %v8517_v38 = vpop.f32.mrb[155].mxu1  ;;  %v12236_v62 = vld [vmem:[#allocation6] ss:$0 sm:$0xff] }
 0x956   :  { %14884 = vst [vmem:[#allocation97_spill] sm:$0xff] %v12223_v22  ;;  %8631 = vmatmul.mubr.msk.bf16.gmra.mrb[4].mxu1 %vm5223_vm4, %v14887_v43  ;;  %v14891_v43 = vld [vmem:[#allocation101_spill] sm:$0xff] }
 0x957   :  { %8634 = vmatprep.mubr.msk.bf16.mxu1 %vm9898_vm0, %v14605_v26  ;;  %v14892_v42 = vpack.c.bf16 %v14890_v36, %v14891_v43  ;;  %v14896_v36 = vld [vmem:[#allocation103_spill] sm:$0xff] }
 0x959   :  { %v4888_v8 = vpop.f32.mrb[156].mxu1 }
 0x95a   :  { %v8520_v53 = vpop.f32.mrb[157].mxu1  ;;  %v12234_v23 = vadd.f32 %v11780_v16, %v4888_v8 }
 0x95b   :  { %v4891_v0 = vpop.f32.mrb[158].mxu1 }
 0x95c   :  { %14888 = vst [vmem:[#allocation100_spill] sm:$0xff] %v12234_v23  ;;  %v12239_v38 = vadd.f32 %v12236_v62, %v4891_v0  ;;  %v8521_v61 = vpop.f32.mrb[159].mxu1  ;;  %v14895_v23 = vld [vmem:[#allocation104_spill] sm:$0xff] }
 0x95d   :  { %v14897_v43 = vpack.c.bf16 %v14895_v23, %v14896_v36  ;;  %v14901_v23 = vld [vmem:[#allocation105_spill] sm:$0xff] }
 0x95e   :  { %14889 = vst [vmem:[#allocation99_spill] sm:$0xff] %v12239_v38  ;;  %8635 = vmatmul.mubr.msk.bf16.gmra.mrb[8].mxu1 %vm5223_vm4, %v14892_v42 }
 0x95f   :  { %8638 = vmatprep.mubr.msk.bf16.mxu1 %vm9898_vm0, %v14605_v26 }
 0x961   :  { %v4896_v53 = vpop.f32.mrb[160].mxu1 }
 0x962   :  { %v8524_v16 = vpop.f32.mrb[161].mxu1  ;;  %v12250_v22 = vadd.f32 %v12236_v62, %v4896_v53 }
 0x963   :  { %v4899_v8 = vpop.f32.mrb[162].mxu1 }
 0x964   :  { %14893 = vst [vmem:[#allocation102_spill] sm:$0xff] %v12250_v22  ;;  %v12253_v0 = vadd.f32 %v12236_v62, %v4899_v8  ;;  %v8525_v61 = vpop.f32.mrb[163].mxu1  ;;  %v14900_v22 = vld [vmem:[#allocation106_spill] sm:$0xff] }
 0x965   :  { %v14902_v36 = vpack.c.bf16 %v14900_v22, %v14901_v23  ;;  %v14905_v22 = vld [vmem:[#allocation107_spill] sm:$0xff] }
 0x966   :  { %14894 = vst [vmem:[#allocation101_spill] sm:$0xff] %v12253_v0  ;;  %8639 = vmatmul.mubr.msk.bf16.gmra.mrb[12].mxu1 %vm5223_vm4, %v14897_v43 }
 0x967   :  { %8642 = vmatprep.mubr.msk.bf16.mxu1 %vm9898_vm0, %v14605_v26 }
 0x969   :  { %v4904_v42 = vpop.f32.mrb[164].mxu1 }
 0x96a   :  { %v8528_v16 = vpop.f32.mrb[165].mxu1  ;;  %v12264_v53 = vadd.f32 %v12236_v62, %v4904_v42 }
 0x96b   :  { %v4907_v38 = vpop.f32.mrb[166].mxu1 }
 0x96c   :  { %14898 = vst [vmem:[#allocation104_spill] sm:$0xff] %v12264_v53  ;;  %v12267_v8 = vadd.f32 %v12236_v62, %v4907_v38  ;;  %v8529_v61 = vpop.f32.mrb[167].mxu1  ;;  %v14904_v53 = vld [vmem:[#allocation108_spill] sm:$0xff] }
 0x96d   :  { %v14906_v23 = vpack.c.bf16 %v14904_v53, %v14905_v22  ;;  %v14907_v53 = vld [vmem:[#allocation109_spill] sm:$0xff] }
 0x96e   :  { %14899 = vst [vmem:[#allocation103_spill] sm:$0xff] %v12267_v8  ;;  %8643 = vmatmul.mubr.msk.bf16.gmra.mrb[16].mxu1 %vm5223_vm4, %v14902_v36  ;;  %v14908_v22 = vpack.c.bf16 %v10749_v41, %v14907_v53  ;;  %v14909_v41 = vpack.c.bf16 %v10766_v31, %v10763_v1  ;;  %v14910_v1 = vpack.c.bf16 %v10783_v48, %v10780_v37 }
 0x96f   :  { %8646 = vmatprep.mubr.msk.bf16.mxu1 %vm9898_vm0, %v14605_v26  ;;  %v14911_v37 = vpack.c.bf16 %v10800_v52, %v10797_v19  ;;  %v14912_v19 = vpack.c.bf16 %v10817_v47, %v10814_v20  ;;  %v14913_v20 = vpack.c.bf16 %v10834_v57, %v10831_v32  ;;  %v14914_v32 = vpack.c.bf16 %v10851_v4, %v10848_v58 }
 0x970   :  { %v14915_v58 = vpack.c.bf16 %v10868_v14, %v10865_v44  ;;  %v14916_v44 = vpack.c.bf16 %v10885_v24, %v10882_v13  ;;  %v14917_v13 = vpack.c.bf16 %v10902_v34, %v10899_v45  ;;  %v14918_v45 = vpack.c.bf16 %v10919_v46, %v10916_v10 }
 0x971   :  { %v4912_v43 = vpop.f32.mrb[168].mxu1  ;;  %v14919_v10 = vpack.c.bf16 %v10936_v59, %v10933_v29  ;;  %v14920_v29 = vpack.c.bf16 %v10957_v51, %v10954_v9  ;;  %v14921_v51 = vpack.c.bf16 %v10974_v56, %v10971_v39  ;;  %v14922_v39 = vpack.c.bf16 %v10993_v21, %v10990_v28 }
 0x972   :  { %v8532_v16 = vpop.f32.mrb[169].mxu1  ;;  %v12278_v42 = vadd.f32 %v12236_v62, %v4912_v43  ;;  %v14923_v28 = vpack.c.bf16 %v11010_v3, %v11007_v27  ;;  %v14924_v27 = vpack.c.bf16 %v11027_v6, %v11024_v40  ;;  %v14925_v40 = vpack.c.bf16 %v11044_v18, %v11041_v2  ;;  %v12541_v6 = vld [vmem:[#allocation7] ss:$0 sm:$0xff] }
 0x973   :  { %v4915_v0 = vpop.f32.mrb[170].mxu1 }
 0x974   :  { %14903 = vst [vmem:[#allocation106_spill] sm:$0xff] %v12278_v42  ;;  %v12281_v38 = vadd.f32 %v12236_v62, %v4915_v0  ;;  %v8533_v61 = vpop.f32.mrb[171].mxu1 }
 0x976   :  { %8647 = vmatmul.mubr.msk.bf16.gmra.mrb[20].mxu1 %vm5223_vm4, %v14906_v23 }
 0x977   :  { %8650 = vmatprep.mubr.msk.bf16.mxu1 %vm9898_vm0, %v14605_v26 }
 0x979   :  { %v4920_v36 = vpop.f32.mrb[172].mxu1 }
 0x97a   :  { %v8536_v16 = vpop.f32.mrb[173].mxu1  ;;  %v12292_v43 = vadd.f32 %v12236_v62, %v4920_v36 }
 0x97b   :  { %v4923_v8 = vpop.f32.mrb[174].mxu1 }
 0x97c   :  { %v12295_v0 = vadd.f32 %v12236_v62, %v4923_v8  ;;  %v8537_v61 = vpop.f32.mrb[175].mxu1 }
 0x97e   :  { %8651 = vmatmul.mubr.msk.bf16.gmra.mrb[24].mxu1 %vm5223_vm4, %v14908_v22 }
 0x97f   :  { %8654 = vmatprep.mubr.msk.bf16.mxu1 %vm9898_vm0, %v14605_v26 }
 0x981   :  { %v4928_v23 = vpop.f32.mrb[176].mxu1 }
 0x982   :  { %v8540_v16 = vpop.f32.mrb[177].mxu1  ;;  %v12306_v36 = vadd.f32 %v12236_v62, %v4928_v23 }
 0x983   :  { %v4931_v42 = vpop.f32.mrb[178].mxu1 }
 0x984   :  { %v12309_v8 = vadd.f32 %v12236_v62, %v4931_v42  ;;  %v8541_v61 = vpop.f32.mrb[179].mxu1 }
 0x986   :  { %8655 = vmatmul.mubr.msk.bf16.gmra.mrb[28].mxu1 %vm5223_vm4, %v14909_v41 }
 0x987   :  { %8658 = vmatprep.mubr.msk.bf16.mxu1 %vm9898_vm0, %v14605_v26 }
 0x989   :  { %v4936_v53 = vpop.f32.mrb[180].mxu1 }
 0x98a   :  { %v8544_v22 = vpop.f32.mrb[181].mxu1  ;;  %v12320_v23 = vadd.f32 %v12236_v62, %v4936_v53 }
 0x98b   :  { %v4939_v16 = vpop.f32.mrb[182].mxu1 }
 0x98c   :  { %v12323_v42 = vadd.f32 %v12236_v62, %v4939_v16  ;;  %v8545_v61 = vpop.f32.mrb[183].mxu1 }
 0x98e   :  { %8659 = vmatmul.mubr.msk.bf16.gmra.mrb[32].mxu1 %vm5223_vm4, %v14910_v1 }
 0x98f   :  { %8662 = vmatprep.mubr.msk.bf16.mxu1 %vm9898_vm0, %v14605_v26 }
 0x991   :  { %v4944_v31 = vpop.f32.mrb[184].mxu1 }
 0x992   :  { %v8548_v41 = vpop.f32.mrb[185].mxu1  ;;  %v12334_v53 = vadd.f32 %v12236_v62, %v4944_v31 }
 0x993   :  { %v4947_v22 = vpop.f32.mrb[186].mxu1 }
 0x994   :  { %v12337_v16 = vadd.f32 %v12236_v62, %v4947_v22  ;;  %v8549_v61 = vpop.f32.mrb[187].mxu1 }
 0x996   :  { %8663 = vmatmul.mubr.msk.bf16.gmra.mrb[36].mxu1 %vm5223_vm4, %v14911_v37 }
 0x997   :  { %8666 = vmatprep.mubr.msk.bf16.mxu1 %vm9898_vm0, %v14605_v26 }
 0x999   :  { %v4952_v48 = vpop.f32.mrb[188].mxu1 }
 0x99a   :  { %v8552_v1 = vpop.f32.mrb[189].mxu1  ;;  %v12348_v31 = vadd.f32 %v12236_v62, %v4952_v48 }
 0x99b   :  { %v4955_v41 = vpop.f32.mrb[190].mxu1 }
 0x99c   :  { %v12351_v22 = vadd.f32 %v12236_v62, %v4955_v41  ;;  %v8553_v61 = vpop.f32.mrb[191].mxu1 }
 0x99e   :  { %8667 = vmatmul.mubr.msk.bf16.gmra.mrb[40].mxu1 %vm5223_vm4, %v14912_v19 }
 0x99f   :  { %8670 = vmatprep.mubr.msk.bf16.mxu1 %vm9898_vm0, %v14605_v26 }
 0x9a1   :  { %v4960_v52 = vpop.f32.mrb[192].mxu1 }
 0x9a2   :  { %v8556_v37 = vpop.f32.mrb[193].mxu1  ;;  %v12362_v48 = vadd.f32 %v12236_v62, %v4960_v52 }
 0x9a3   :  { %v4963_v1 = vpop.f32.mrb[194].mxu1 }
 0x9a4   :  { %v12365_v41 = vadd.f32 %v12236_v62, %v4963_v1  ;;  %v8557_v61 = vpop.f32.mrb[195].mxu1 }
 0x9a6   :  { %8671 = vmatmul.mubr.msk.bf16.gmra.mrb[44].mxu1 %vm5223_vm4, %v14913_v20 }
 0x9a7   :  { %8674 = vmatprep.mubr.msk.bf16.mxu1 %vm9898_vm0, %v14605_v26 }
 0x9a9   :  { %v4968_v47 = vpop.f32.mrb[196].mxu1 }
 0x9aa   :  { %v8560_v19 = vpop.f32.mrb[197].mxu1  ;;  %v12376_v52 = vadd.f32 %v12236_v62, %v4968_v47 }
 0x9ab   :  { %v4971_v37 = vpop.f32.mrb[198].mxu1 }
 0x9ac   :  { %v12379_v1 = vadd.f32 %v12236_v62, %v4971_v37  ;;  %v8561_v61 = vpop.f32.mrb[199].mxu1 }
 0x9ae   :  { %8675 = vmatmul.mubr.msk.bf16.gmra.mrb[48].mxu1 %vm5223_vm4, %v14914_v32 }
 0x9af   :  { %8678 = vmatprep.mubr.msk.bf16.mxu1 %vm9898_vm0, %v14605_v26 }
 0x9b1   :  { %v4976_v57 = vpop.f32.mrb[200].mxu1 }
 0x9b2   :  { %v8564_v20 = vpop.f32.mrb[201].mxu1  ;;  %v12390_v47 = vadd.f32 %v12236_v62, %v4976_v57 }
 0x9b3   :  { %v4979_v19 = vpop.f32.mrb[202].mxu1 }
 0x9b4   :  { %v12393_v37 = vadd.f32 %v12236_v62, %v4979_v19  ;;  %v8565_v61 = vpop.f32.mrb[203].mxu1 }
 0x9b6   :  { %8679 = vmatmul.mubr.msk.bf16.gmra.mrb[52].mxu1 %vm5223_vm4, %v14915_v58 }
 0x9b7   :  { %8682 = vmatprep.mubr.msk.bf16.mxu1 %vm9898_vm0, %v14605_v26 }
 0x9b9   :  { %v4984_v4 = vpop.f32.mrb[204].mxu1 }
 0x9ba   :  { %v8568_v32 = vpop.f32.mrb[205].mxu1  ;;  %v12404_v57 = vadd.f32 %v12236_v62, %v4984_v4 }
 0x9bb   :  { %v4987_v20 = vpop.f32.mrb[206].mxu1 }
 0x9bc   :  { %v12407_v19 = vadd.f32 %v12236_v62, %v4987_v20  ;;  %v8569_v61 = vpop.f32.mrb[207].mxu1 }
 0x9be   :  { %8683 = vmatmul.mubr.msk.bf16.gmra.mrb[56].mxu1 %vm5223_vm4, %v14916_v44 }
 0x9bf   :  { %8686 = vmatprep.mubr.msk.bf16.mxu1 %vm9898_vm0, %v14605_v26 }
 0x9c1   :  { %v4992_v14 = vpop.f32.mrb[208].mxu1 }
 0x9c2   :  { %v8572_v58 = vpop.f32.mrb[209].mxu1  ;;  %v12418_v4 = vadd.f32 %v12236_v62, %v4992_v14 }
 0x9c3   :  { %v4995_v32 = vpop.f32.mrb[210].mxu1 }
 0x9c4   :  { %v12421_v20 = vadd.f32 %v12236_v62, %v4995_v32  ;;  %v8573_v61 = vpop.f32.mrb[211].mxu1 }
 0x9c6   :  { %8687 = vmatmul.mubr.msk.bf16.gmra.mrb[60].mxu1 %vm5223_vm4, %v14917_v13 }
 0x9c7   :  { %8690 = vmatprep.mubr.msk.bf16.mxu1 %vm9898_vm0, %v14605_v26 }
 0x9c9   :  { %v5000_v24 = vpop.f32.mrb[212].mxu1 }
 0x9ca   :  { %v8576_v44 = vpop.f32.mrb[213].mxu1  ;;  %v12432_v14 = vadd.f32 %v12236_v62, %v5000_v24 }
 0x9cb   :  { %v5003_v58 = vpop.f32.mrb[214].mxu1 }
 0x9cc   :  { %v12435_v32 = vadd.f32 %v12236_v62, %v5003_v58  ;;  %v8577_v61 = vpop.f32.mrb[215].mxu1 }
 0x9ce   :  { %8691 = vmatmul.mubr.msk.bf16.gmra.mrb[64].mxu1 %vm5223_vm4, %v14918_v45 }
 0x9cf   :  { %8694 = vmatprep.mubr.msk.bf16.mxu1 %vm9898_vm0, %v14605_v26 }
 0x9d1   :  { %v5008_v34 = vpop.f32.mrb[216].mxu1 }
 0x9d2   :  { %v8580_v13 = vpop.f32.mrb[217].mxu1  ;;  %v12446_v24 = vadd.f32 %v12236_v62, %v5008_v34 }
 0x9d3   :  { %v5011_v44 = vpop.f32.mrb[218].mxu1 }
 0x9d4   :  { %v12449_v58 = vadd.f32 %v12236_v62, %v5011_v44  ;;  %v8581_v61 = vpop.f32.mrb[219].mxu1 }
 0x9d6   :  { %8695 = vmatmul.mubr.msk.bf16.gmra.mrb[68].mxu1 %vm5223_vm4, %v14919_v10 }
 0x9d7   :  { %8698 = vmatprep.mubr.msk.bf16.mxu1 %vm9898_vm0, %v14605_v26 }
 0x9d9   :  { %v5016_v46 = vpop.f32.mrb[220].mxu1 }
 0x9da   :  { %v8584_v45 = vpop.f32.mrb[221].mxu1  ;;  %v12460_v34 = vadd.f32 %v12236_v62, %v5016_v46 }
 0x9db   :  { %v5019_v13 = vpop.f32.mrb[222].mxu1 }
 0x9dc   :  { %v12463_v44 = vadd.f32 %v12236_v62, %v5019_v13  ;;  %v8585_v61 = vpop.f32.mrb[223].mxu1 }
 0x9de   :  { %8699 = vmatmul.mubr.msk.bf16.gmra.mrb[72].mxu1 %vm5223_vm4, %v14920_v29 }
 0x9df   :  { %8702 = vmatprep.mubr.msk.bf16.mxu1 %vm9898_vm0, %v14605_v26 }
 0x9e1   :  { %v5024_v59 = vpop.f32.mrb[224].mxu1 }
 0x9e2   :  { %v8588_v10 = vpop.f32.mrb[225].mxu1  ;;  %v12474_v46 = vadd.f32 %v12236_v62, %v5024_v59 }
 0x9e3   :  { %v5027_v45 = vpop.f32.mrb[226].mxu1 }
 0x9e4   :  { %v12477_v13 = vadd.f32 %v12236_v62, %v5027_v45  ;;  %v8589_v61 = vpop.f32.mrb[227].mxu1 }
 0x9e6   :  { %8703 = vmatmul.mubr.msk.bf16.gmra.mrb[76].mxu1 %vm5223_vm4, %v14921_v51 }
 0x9e7   :  { %8706 = vmatprep.mubr.msk.bf16.mxu1 %vm9898_vm0, %v14605_v26 }
 0x9e9   :  { %v5032_v9 = vpop.f32.mrb[228].mxu1 }
 0x9ea   :  { %v8592_v29 = vpop.f32.mrb[229].mxu1  ;;  %v12488_v59 = vadd.f32 %v12236_v62, %v5032_v9 }
 0x9eb   :  { %v5035_v10 = vpop.f32.mrb[230].mxu1 }
 0x9ec   :  { %v12491_v45 = vadd.f32 %v12236_v62, %v5035_v10  ;;  %v8593_v61 = vpop.f32.mrb[231].mxu1 }
 0x9ee   :  { %8707 = vmatmul.mubr.msk.bf16.gmra.mrb[80].mxu1 %vm5223_vm4, %v14922_v39 }
 0x9ef   :  { %8710 = vmatprep.mubr.msk.bf16.mxu1 %vm9898_vm0, %v14605_v26 }
 0x9f1   :  { %v5040_v56 = vpop.f32.mrb[232].mxu1 }
 0x9f2   :  { %v8596_v51 = vpop.f32.mrb[233].mxu1  ;;  %v12502_v9 = vadd.f32 %v12236_v62, %v5040_v56 }
 0x9f3   :  { %v5043_v29 = vpop.f32.mrb[234].mxu1 }
 0x9f4   :  { %v12505_v10 = vadd.f32 %v12236_v62, %v5043_v29  ;;  %v8597_v61 = vpop.f32.mrb[235].mxu1 }
 0x9f6   :  { %8711 = vmatmul.mubr.msk.bf16.gmra.mrb[84].mxu1 %vm5223_vm4, %v14923_v28 }
 0x9f7   :  { %8714 = vmatprep.mubr.msk.bf16.mxu1 %vm9898_vm0, %v14605_v26 }
 0x9f9   :  { %v5048_v21 = vpop.f32.mrb[236].mxu1 }
 0x9fa   :  { %v8600_v39 = vpop.f32.mrb[237].mxu1  ;;  %v12516_v56 = vadd.f32 %v12236_v62, %v5048_v21 }
 0x9fb   :  { %v5051_v51 = vpop.f32.mrb[238].mxu1 }
 0x9fc   :  { %v12519_v29 = vadd.f32 %v12236_v62, %v5051_v51  ;;  %v8601_v61 = vpop.f32.mrb[239].mxu1 }
 0x9fe   :  { %8715 = vmatmul.mubr.msk.bf16.gmra.mrb[88].mxu1 %vm5223_vm4, %v14924_v27 }
 0x9ff   :  { %8718 = vmatprep.mubr.msk.bf16.mxu1 %vm9898_vm0, %v14605_v26 }
 0xa01   :  { %v5056_v3 = vpop.f32.mrb[240].mxu1 }
 0xa02   :  { %v8604_v28 = vpop.f32.mrb[241].mxu1  ;;  %v12530_v21 = vadd.f32 %v12236_v62, %v5056_v3 }
 0xa03   :  { %v5059_v39 = vpop.f32.mrb[242].mxu1 }
 0xa04   :  { %v12533_v51 = vadd.f32 %v12236_v62, %v5059_v39  ;;  %v8605_v61 = vpop.f32.mrb[243].mxu1  ;;  %v14926_v39 = vpack.c.bf16 %v11061_v35, %v11058_v50  ;;  %v14927_v50 = vpack.c.bf16 %v11078_v55, %v11075_v33  ;;  %v14928_v33 = vpack.c.bf16 %v11097_v11, %v11094_v60  ;;  %v14929_v60 = vld [vmem:[#allocation111_spill] sm:$0xff]  ;;  %v14930_v11 = vld [vmem:[#allocation110_spill] sm:$0xff] }
 0xa06   :  { %v5187_v25 = vpack.c.bf16 %v12533_v51, %v12530_v21  ;;  %8719 = vmatmul.mubr.msk.bf16.gmra.mrb[92].mxu1 %vm5223_vm4, %v14925_v40 }
 0xa07   :  { %8722 = vmatprep.mubr.msk.bf16.mxu1 %vm9898_vm0, %v14605_v26 }
 0xa09   :  { %v5637_v27 = vpop.f32.mrb[244].mxu1 }
 0xa0a   :  { %v5638_v3 = vadd.f32 %v12541_v6, %v5637_v27  ;;  %v8616_v62 = vpop.f32.mrb[245].mxu1 }
 0xa0b   :  { %v5640_v28 = vpop.f32.mrb[246].mxu1 }
 0xa0c   :  { %6637 = vst.msk [vmem:[%s14392_s7] sm:$0xff] %vm6636_vm5, %v5638_v3  ;;  %v5641_v2 = vadd.f32 %v12541_v6, %v5640_v28  ;;  %v8617_v18 = vpop.f32.mrb[247].mxu1 }
 0xa0e   :  { %6638 = vst.msk [vmem:[%s14392_s7 + $0x8] sm:$0xff] %vm6636_vm5, %v5641_v2  ;;  %8723 = vmatmul.mubr.msk.bf16.gmra.mrb[96].mxu1 %vm5223_vm4, %v14926_v39 }
 0xa0f   :  { %8726 = vmatprep.mubr.msk.bf16.mxu1 %vm9898_vm0, %v14605_v26 }
 0xa11   :  { %v5645_v61 = vpop.f32.mrb[248].mxu1 }
 0xa12   :  { %v5646_v40 = vadd.f32 %v12541_v6, %v5645_v61  ;;  %v8620_v27 = vpop.f32.mrb[249].mxu1 }
 0xa13   :  { %v5648_v3 = vpop.f32.mrb[250].mxu1 }
 0xa14   :  { %6639 = vst.msk [vmem:[%s14392_s7 + $0x10] sm:$0xff] %vm6636_vm5, %v5646_v40  ;;  %v5649_v62 = vadd.f32 %v12541_v6, %v5648_v3  ;;  %v8621_v28 = vpop.f32.mrb[251].mxu1 }
 0xa16   :  { %6640 = vst.msk [vmem:[%s14392_s7 + $0x18] sm:$0xff] %vm6636_vm5, %v5649_v62  ;;  %8727 = vmatmul.mubr.msk.bf16.gmra.mrb[100].mxu1 %vm5223_vm4, %v14927_v50 }
 0xa17   :  { %8730 = vmatprep.mubr.msk.bf16.mxu1 %vm9898_vm0, %v14605_v26 }
 0xa19   :  { %v5653_v35 = vpop.f32.mrb[252].mxu1 }
 0xa1a   :  { %v5654_v2 = vadd.f32 %v12541_v6, %v5653_v35  ;;  %v8624_v18 = vpop.f32.mrb[253].mxu1  ;;  %v14931_v35 = vpack.c.bf16 %v14929_v60, %v14930_v11 }
 0xa1b   :  { %v5656_v39 = vpop.f32.mrb[254].mxu1 }
 0xa1c   :  { %6641 = vst.msk [vmem:[%s14392_s7 + $0x20] sm:$0xff] %vm6636_vm5, %v5654_v2  ;;  %v5657_v61 = vadd.f32 %v12541_v6, %v5656_v39  ;;  %v8625_v40 = vpop.f32.mrb[255].mxu1 }
 0xa1e   :  { %6642 = vst.msk [vmem:[%s14392_s7 + $0x28] sm:$0xff] %vm6636_vm5, %v5657_v61  ;;  %8731 = vmatmul.mubr.msk.bf16.gmra.mrb[104].mxu1 %vm5223_vm4, %v14928_v33 }
 0xa1f   :  { %8734 = vmatprep.mubr.msk.bf16.mxu1 %vm9898_vm0, %v14605_v26 }
 0xa21   :  { %v5661_v55 = vpop.f32.mrb[0].mxu1 }
 0xa22   :  { %v5662_v27 = vadd.f32 %v12541_v6, %v5661_v55  ;;  %v8628_v3 = vpop.f32.mrb[1].mxu1  ;;  %v14932_v55 = vld [vmem:[#allocation112_spill] sm:$0xff] }
 0xa23   :  { %v5664_v62 = vpop.f32.mrb[2].mxu1 }
 0xa24   :  { %6643 = vst.msk [vmem:[%s14392_s7 + $0x30] sm:$0xff] %vm6636_vm5, %v5662_v27  ;;  %v5665_v28 = vadd.f32 %v12541_v6, %v5664_v62  ;;  %v8629_v50 = vpop.f32.mrb[3].mxu1  ;;  %v14933_v27 = vld [vmem:[#allocation12_spill] sm:$0xff] }
 0xa25   :  { %v14934_v3 = vpack.c.bf16 %v14932_v55, %v14933_v27 }
 0xa26   :  { %6644 = vst.msk [vmem:[%s14392_s7 + $0x38] sm:$0xff] %vm6636_vm5, %v5665_v28  ;;  %8735 = vmatmul.mubr.msk.bf16.gmra.mrb[108].mxu1 %vm5223_vm4, %v14931_v35 }
 0xa27   :  { %8738 = vmatprep.mubr.msk.bf16.mxu1 %vm9898_vm0, %v14605_v26 }
 0xa29   :  { %v5669_v2 = vpop.f32.mrb[4].mxu1 }
 0xa2a   :  { %v5670_v18 = vadd.f32 %v12541_v6, %v5669_v2  ;;  %v8632_v39 = vpop.f32.mrb[5].mxu1  ;;  %v14935_v2 = vld [vmem:[#allocation14_spill] sm:$0xff] }
 0xa2b   :  { %v5672_v61 = vpop.f32.mrb[6].mxu1 }
 0xa2c   :  { %6645 = vst.msk [vmem:[%s14392_s7 + $0x40] sm:$0xff] %vm6636_vm5, %v5670_v18  ;;  %v5673_v40 = vadd.f32 %v12541_v6, %v5672_v61  ;;  %v8633_v33 = vpop.f32.mrb[7].mxu1  ;;  %v14936_v18 = vld [vmem:[#allocation13_spill] sm:$0xff] }
 0xa2d   :  { %v14937_v39 = vpack.c.bf16 %v14935_v2, %v14936_v18 }
 0xa2e   :  { %6646 = vst.msk [vmem:[%s14392_s7 + $0x48] sm:$0xff] %vm6636_vm5, %v5673_v40  ;;  %8739 = vmatmul.mubr.msk.bf16.gmra.mrb[112].mxu1 %vm5223_vm4, %v14934_v3 }
 0xa2f   :  { %8742 = vmatprep.mubr.msk.bf16.mxu1 %vm9898_vm0, %v14605_v26 }
 0xa31   :  { %v5677_v62 = vpop.f32.mrb[8].mxu1 }
 0xa32   :  { %v5678_v28 = vadd.f32 %v12541_v6, %v5677_v62  ;;  %v8636_v50 = vpop.f32.mrb[9].mxu1  ;;  %v14938_v62 = vld [vmem:[#allocation16_spill] sm:$0xff] }
 0xa33   :  { %v5680_v60 = vpop.f32.mrb[10].mxu1 }
 0xa34   :  { %6647 = vst.msk [vmem:[%s14392_s7 + $0x50] sm:$0xff] %vm6636_vm5, %v5678_v28  ;;  %v5681_v11 = vadd.f32 %v12541_v6, %v5680_v60  ;;  %v8637_v35 = vpop.f32.mrb[11].mxu1  ;;  %v14939_v28 = vld [vmem:[#allocation15_spill] sm:$0xff] }
 0xa35   :  { %v14940_v50 = vpack.c.bf16 %v14938_v62, %v14939_v28 }
 0xa36   :  { %6648 = vst.msk [vmem:[%s14392_s7 + $0x58] sm:$0xff] %vm6636_vm5, %v5681_v11  ;;  %8743 = vmatmul.mubr.msk.bf16.gmra.mrb[116].mxu1 %vm5223_vm4, %v14937_v39 }
 0xa37   :  { %8746 = vmatprep.mubr.msk.bf16.mxu1 %vm9898_vm0, %v14605_v26 }
 0xa39   :  { %v5685_v61 = vpop.f32.mrb[12].mxu1 }
 0xa3a   :  { %v5686_v40 = vadd.f32 %v12541_v6, %v5685_v61  ;;  %v8640_v33 = vpop.f32.mrb[13].mxu1  ;;  %v14941_v61 = vld [vmem:[#allocation18_spill] sm:$0xff] }
 0xa3b   :  { %v5688_v55 = vpop.f32.mrb[14].mxu1 }
 0xa3c   :  { %6649 = vst.msk [vmem:[%s14392_s7 + $0x60] sm:$0xff] %vm6636_vm5, %v5686_v40  ;;  %v5689_v27 = vadd.f32 %v12541_v6, %v5688_v55  ;;  %v8641_v3 = vpop.f32.mrb[15].mxu1  ;;  %v14942_v40 = vld [vmem:[#allocation17_spill] sm:$0xff] }
 0xa3d   :  { %v14943_v33 = vpack.c.bf16 %v14941_v61, %v14942_v40 }
 0xa3e   :  { %6650 = vst.msk [vmem:[%s14392_s7 + $0x68] sm:$0xff] %vm6636_vm5, %v5689_v27  ;;  %8747 = vmatmul.mubr.msk.bf16.gmra.mrb[120].mxu1 %vm5223_vm4, %v14940_v50 }
 0xa3f   :  { %8750 = vmatprep.mubr.msk.bf16.mxu1 %vm9898_vm0, %v14605_v26 }
 0xa41   :  { %v5693_v60 = vpop.f32.mrb[16].mxu1 }
 0xa42   :  { %v5694_v11 = vadd.f32 %v12541_v6, %v5693_v60  ;;  %v8644_v35 = vpop.f32.mrb[17].mxu1  ;;  %v14944_v60 = vld [vmem:[#allocation20_spill] sm:$0xff] }
 0xa43   :  { %v5696_v2 = vpop.f32.mrb[18].mxu1 }
 0xa44   :  { %6651 = vst.msk [vmem:[%s14392_s7 + $0x70] sm:$0xff] %vm6636_vm5, %v5694_v11  ;;  %v5697_v18 = vadd.f32 %v12541_v6, %v5696_v2  ;;  %v8645_v39 = vpop.f32.mrb[19].mxu1  ;;  %v14945_v11 = vld [vmem:[#allocation19_spill] sm:$0xff] }
 0xa45   :  { %v14946_v35 = vpack.c.bf16 %v14944_v60, %v14945_v11 }
 0xa46   :  { %6652 = vst.msk [vmem:[%s14392_s7 + $0x78] sm:$0xff] %vm6636_vm5, %v5697_v18  ;;  %8751 = vmatmul.mubr.msk.bf16.gmra.mrb[124].mxu1 %vm5223_vm4, %v14943_v33 }
 0xa47   :  { %8754 = vmatprep.mubr.msk.bf16.mxu1 %vm9898_vm0, %v14605_v26 }
 0xa49   :  { %v5701_v55 = vpop.f32.mrb[20].mxu1 }
 0xa4a   :  { %v5702_v27 = vadd.f32 %v12541_v6, %v5701_v55  ;;  %v8648_v3 = vpop.f32.mrb[21].mxu1  ;;  %v14947_v55 = vld [vmem:[#allocation22_spill] sm:$0xff] }
 0xa4b   :  { %v5704_v62 = vpop.f32.mrb[22].mxu1 }
 0xa4c   :  { %6653 = vst.msk [vmem:[%s14392_s7 + $0x80] sm:$0xff] %vm6636_vm5, %v5702_v27  ;;  %v5705_v28 = vadd.f32 %v12541_v6, %v5704_v62  ;;  %v8649_v50 = vpop.f32.mrb[23].mxu1  ;;  %v14948_v27 = vld [vmem:[#allocation21_spill] sm:$0xff] }
 0xa4d   :  { %v14949_v3 = vpack.c.bf16 %v14947_v55, %v14948_v27 }
 0xa4e   :  { %6654 = vst.msk [vmem:[%s14392_s7 + $0x88] sm:$0xff] %vm6636_vm5, %v5705_v28  ;;  %8755 = vmatmul.mubr.msk.bf16.gmra.mrb[128].mxu1 %vm5223_vm4, %v14946_v35 }
 0xa4f   :  { %8758 = vmatprep.mubr.msk.bf16.mxu1 %vm9898_vm0, %v14605_v26 }
 0xa51   :  { %v5709_v2 = vpop.f32.mrb[24].mxu1 }
 0xa52   :  { %v5710_v18 = vadd.f32 %v12541_v6, %v5709_v2  ;;  %v8652_v39 = vpop.f32.mrb[25].mxu1  ;;  %v14950_v2 = vld [vmem:[#allocation24_spill] sm:$0xff] }
 0xa53   :  { %v5712_v61 = vpop.f32.mrb[26].mxu1 }
 0xa54   :  { %6655 = vst.msk [vmem:[%s14392_s7 + $0x90] sm:$0xff] %vm6636_vm5, %v5710_v18  ;;  %v5713_v40 = vadd.f32 %v12541_v6, %v5712_v61  ;;  %v8653_v33 = vpop.f32.mrb[27].mxu1  ;;  %v14951_v18 = vld [vmem:[#allocation23_spill] sm:$0xff] }
 0xa55   :  { %v14952_v39 = vpack.c.bf16 %v14950_v2, %v14951_v18 }
 0xa56   :  { %6656 = vst.msk [vmem:[%s14392_s7 + $0x98] sm:$0xff] %vm6636_vm5, %v5713_v40  ;;  %8759 = vmatmul.mubr.msk.bf16.gmra.mrb[132].mxu1 %vm5223_vm4, %v14949_v3 }
 0xa57   :  { %8762 = vmatprep.mubr.msk.bf16.mxu1 %vm9898_vm0, %v14605_v26 }
 0xa59   :  { %v5717_v62 = vpop.f32.mrb[28].mxu1 }
 0xa5a   :  { %v5718_v28 = vadd.f32 %v12541_v6, %v5717_v62  ;;  %v8656_v50 = vpop.f32.mrb[29].mxu1  ;;  %v14953_v62 = vld [vmem:[#allocation26_spill] sm:$0xff] }
 0xa5b   :  { %v5720_v60 = vpop.f32.mrb[30].mxu1 }
 0xa5c   :  { %6657 = vst.msk [vmem:[%s14392_s7 + $0xa0] sm:$0xff] %vm6636_vm5, %v5718_v28  ;;  %v5721_v11 = vadd.f32 %v12541_v6, %v5720_v60  ;;  %v8657_v35 = vpop.f32.mrb[31].mxu1  ;;  %v14954_v28 = vld [vmem:[#allocation25_spill] sm:$0xff] }
 0xa5d   :  { %v14955_v50 = vpack.c.bf16 %v14953_v62, %v14954_v28 }
 0xa5e   :  { %6658 = vst.msk [vmem:[%s14392_s7 + $0xa8] sm:$0xff] %vm6636_vm5, %v5721_v11  ;;  %8763 = vmatmul.mubr.msk.bf16.gmra.mrb[136].mxu1 %vm5223_vm4, %v14952_v39 }
 0xa5f   :  { %8766 = vmatprep.mubr.msk.bf16.mxu1 %vm9898_vm0, %v14605_v26 }
 0xa61   :  { %v5725_v61 = vpop.f32.mrb[32].mxu1 }
 0xa62   :  { %v5726_v40 = vadd.f32 %v12541_v6, %v5725_v61  ;;  %v8660_v33 = vpop.f32.mrb[33].mxu1  ;;  %v14956_v61 = vld [vmem:[#allocation28_spill] sm:$0xff] }
 0xa63   :  { %v5728_v55 = vpop.f32.mrb[34].mxu1 }
 0xa64   :  { %6659 = vst.msk [vmem:[%s14392_s7 + $0xb0] sm:$0xff] %vm6636_vm5, %v5726_v40  ;;  %v5729_v27 = vadd.f32 %v12541_v6, %v5728_v55  ;;  %v8661_v3 = vpop.f32.mrb[35].mxu1  ;;  %v14957_v40 = vld [vmem:[#allocation27_spill] sm:$0xff] }
 0xa65   :  { %v14958_v33 = vpack.c.bf16 %v14956_v61, %v14957_v40 }
 0xa66   :  { %6660 = vst.msk [vmem:[%s14392_s7 + $0xb8] sm:$0xff] %vm6636_vm5, %v5729_v27  ;;  %8767 = vmatmul.mubr.msk.bf16.gmra.mrb[140].mxu1 %vm5223_vm4, %v14955_v50 }
 0xa67   :  { %8770 = vmatprep.mubr.msk.bf16.mxu1 %vm9898_vm0, %v14605_v26 }
 0xa69   :  { %v5733_v60 = vpop.f32.mrb[36].mxu1 }
 0xa6a   :  { %v5734_v11 = vadd.f32 %v12541_v6, %v5733_v60  ;;  %v8664_v35 = vpop.f32.mrb[37].mxu1  ;;  %v14959_v60 = vld [vmem:[#allocation30_spill] sm:$0xff] }
 0xa6b   :  { %v5736_v2 = vpop.f32.mrb[38].mxu1 }
 0xa6c   :  { %6661 = vst.msk [vmem:[%s14392_s7 + $0xc0] sm:$0xff] %vm6636_vm5, %v5734_v11  ;;  %v5737_v18 = vadd.f32 %v12541_v6, %v5736_v2  ;;  %v8665_v39 = vpop.f32.mrb[39].mxu1  ;;  %v14960_v11 = vld [vmem:[#allocation29_spill] sm:$0xff] }
 0xa6d   :  { %v14961_v35 = vpack.c.bf16 %v14959_v60, %v14960_v11 }
 0xa6e   :  { %6662 = vst.msk [vmem:[%s14392_s7 + $0xc8] sm:$0xff] %vm6636_vm5, %v5737_v18  ;;  %8771 = vmatmul.mubr.msk.bf16.gmra.mrb[144].mxu1 %vm5223_vm4, %v14958_v33 }
 0xa6f   :  { %8774 = vmatprep.mubr.msk.bf16.mxu1 %vm9898_vm0, %v14605_v26 }
 0xa71   :  { %v5741_v55 = vpop.f32.mrb[40].mxu1 }
 0xa72   :  { %v5742_v27 = vadd.f32 %v12541_v6, %v5741_v55  ;;  %v8668_v3 = vpop.f32.mrb[41].mxu1  ;;  %v14962_v55 = vld [vmem:[#allocation32_spill] sm:$0xff] }
 0xa73   :  { %v5744_v62 = vpop.f32.mrb[42].mxu1 }
 0xa74   :  { %6663 = vst.msk [vmem:[%s14392_s7 + $0xd0] sm:$0xff] %vm6636_vm5, %v5742_v27  ;;  %v5745_v28 = vadd.f32 %v12541_v6, %v5744_v62  ;;  %v8669_v50 = vpop.f32.mrb[43].mxu1  ;;  %v14963_v27 = vld [vmem:[#allocation31_spill] sm:$0xff] }
 0xa75   :  { %v14964_v3 = vpack.c.bf16 %v14962_v55, %v14963_v27 }
 0xa76   :  { %6664 = vst.msk [vmem:[%s14392_s7 + $0xd8] sm:$0xff] %vm6636_vm5, %v5745_v28  ;;  %8775 = vmatmul.mubr.msk.bf16.gmra.mrb[148].mxu1 %vm5223_vm4, %v14961_v35 }
 0xa77   :  { %8778 = vmatprep.mubr.msk.bf16.mxu1 %vm9898_vm0, %v14605_v26 }
 0xa79   :  { %v5749_v2 = vpop.f32.mrb[44].mxu1 }
 0xa7a   :  { %v5750_v18 = vadd.f32 %v12541_v6, %v5749_v2  ;;  %v8672_v39 = vpop.f32.mrb[45].mxu1  ;;  %v14965_v2 = vld [vmem:[#allocation34_spill] sm:$0xff] }
 0xa7b   :  { %v5752_v61 = vpop.f32.mrb[46].mxu1 }
 0xa7c   :  { %6665 = vst.msk [vmem:[%s14392_s7 + $0xe0] sm:$0xff] %vm6636_vm5, %v5750_v18  ;;  %v5753_v40 = vadd.f32 %v12541_v6, %v5752_v61  ;;  %v8673_v33 = vpop.f32.mrb[47].mxu1  ;;  %v14966_v18 = vld [vmem:[#allocation33_spill] sm:$0xff] }
 0xa7d   :  { %v14967_v39 = vpack.c.bf16 %v14965_v2, %v14966_v18 }
 0xa7e   :  { %6666 = vst.msk [vmem:[%s14392_s7 + $0xe8] sm:$0xff] %vm6636_vm5, %v5753_v40  ;;  %8779 = vmatmul.mubr.msk.bf16.gmra.mrb[152].mxu1 %vm5223_vm4, %v14964_v3 }
 0xa7f   :  { %8782 = vmatprep.mubr.msk.bf16.mxu1 %vm9898_vm0, %v14605_v26 }
 0xa81   :  { %v5757_v62 = vpop.f32.mrb[48].mxu1 }
 0xa82   :  { %v5758_v28 = vadd.f32 %v12541_v6, %v5757_v62  ;;  %v8676_v50 = vpop.f32.mrb[49].mxu1  ;;  %v14968_v62 = vld [vmem:[#allocation36_spill] sm:$0xff] }
 0xa83   :  { %v5760_v60 = vpop.f32.mrb[50].mxu1 }
 0xa84   :  { %6667 = vst.msk [vmem:[%s14392_s7 + $0xf0] sm:$0xff] %vm6636_vm5, %v5758_v28  ;;  %v5761_v11 = vadd.f32 %v12541_v6, %v5760_v60  ;;  %v8677_v35 = vpop.f32.mrb[51].mxu1  ;;  %v14969_v28 = vld [vmem:[#allocation35_spill] sm:$0xff] }
 0xa85   :  { %v14970_v50 = vpack.c.bf16 %v14968_v62, %v14969_v28 }
 0xa86   :  { %6668 = vst.msk [vmem:[%s14392_s7 + $0xf8] sm:$0xff] %vm6636_vm5, %v5761_v11  ;;  %8783 = vmatmul.mubr.msk.bf16.gmra.mrb[156].mxu1 %vm5223_vm4, %v14967_v39 }
 0xa87   :  { %8786 = vmatprep.mubr.msk.bf16.mxu1 %vm9898_vm0, %v14605_v26 }
 0xa89   :  { %v5765_v61 = vpop.f32.mrb[52].mxu1 }
 0xa8a   :  { %v5766_v40 = vadd.f32 %v12541_v6, %v5765_v61  ;;  %v8680_v33 = vpop.f32.mrb[53].mxu1  ;;  %v14971_v61 = vld [vmem:[#allocation38_spill] sm:$0xff] }
 0xa8b   :  { %v5768_v55 = vpop.f32.mrb[54].mxu1 }
 0xa8c   :  { %6669 = vst.msk [vmem:[%s14392_s7 + $0x100] sm:$0xff] %vm6636_vm5, %v5766_v40  ;;  %v5769_v27 = vadd.f32 %v12541_v6, %v5768_v55  ;;  %v8681_v3 = vpop.f32.mrb[55].mxu1  ;;  %v14972_v40 = vld [vmem:[#allocation37_spill] sm:$0xff] }
 0xa8d   :  { %v14973_v33 = vpack.c.bf16 %v14971_v61, %v14972_v40 }
 0xa8e   :  { %6670 = vst.msk [vmem:[%s14392_s7 + $0x108] sm:$0xff] %vm6636_vm5, %v5769_v27  ;;  %8787 = vmatmul.mubr.msk.bf16.gmra.mrb[160].mxu1 %vm5223_vm4, %v14970_v50 }
 0xa8f   :  { %8790 = vmatprep.mubr.msk.bf16.mxu1 %vm9898_vm0, %v14605_v26 }
 0xa91   :  { %v5773_v60 = vpop.f32.mrb[56].mxu1 }
 0xa92   :  { %v5774_v11 = vadd.f32 %v12541_v6, %v5773_v60  ;;  %v8684_v35 = vpop.f32.mrb[57].mxu1  ;;  %v14974_v60 = vld [vmem:[#allocation40_spill] sm:$0xff] }
 0xa93   :  { %v5776_v2 = vpop.f32.mrb[58].mxu1 }
 0xa94   :  { %6671 = vst.msk [vmem:[%s14392_s7 + $0x110] sm:$0xff] %vm6636_vm5, %v5774_v11  ;;  %v5777_v18 = vadd.f32 %v12541_v6, %v5776_v2  ;;  %v8685_v39 = vpop.f32.mrb[59].mxu1  ;;  %v14975_v11 = vld [vmem:[#allocation39_spill] sm:$0xff] }
 0xa95   :  { %v14976_v35 = vpack.c.bf16 %v14974_v60, %v14975_v11 }
 0xa96   :  { %6672 = vst.msk [vmem:[%s14392_s7 + $0x118] sm:$0xff] %vm6636_vm5, %v5777_v18  ;;  %8791 = vmatmul.mubr.msk.bf16.gmra.mrb[164].mxu1 %vm5223_vm4, %v14973_v33 }
 0xa97   :  { %8794 = vmatprep.mubr.msk.bf16.mxu1 %vm9898_vm0, %v14605_v26 }
 0xa99   :  { %v5781_v55 = vpop.f32.mrb[60].mxu1 }
 0xa9a   :  { %v5782_v27 = vadd.f32 %v12541_v6, %v5781_v55  ;;  %v8688_v3 = vpop.f32.mrb[61].mxu1  ;;  %v14977_v55 = vld [vmem:[#allocation42_spill] sm:$0xff] }
 0xa9b   :  { %v5784_v62 = vpop.f32.mrb[62].mxu1 }
 0xa9c   :  { %6673 = vst.msk [vmem:[%s14392_s7 + $0x120] sm:$0xff] %vm6636_vm5, %v5782_v27  ;;  %v5785_v28 = vadd.f32 %v12541_v6, %v5784_v62  ;;  %v8689_v50 = vpop.f32.mrb[63].mxu1  ;;  %v14978_v27 = vld [vmem:[#allocation41_spill] sm:$0xff] }
 0xa9d   :  { %v14979_v3 = vpack.c.bf16 %v14977_v55, %v14978_v27 }
 0xa9e   :  { %6674 = vst.msk [vmem:[%s14392_s7 + $0x128] sm:$0xff] %vm6636_vm5, %v5785_v28  ;;  %8795 = vmatmul.mubr.msk.bf16.gmra.mrb[168].mxu1 %vm5223_vm4, %v14976_v35 }
 0xa9f   :  { %8798 = vmatprep.mubr.msk.bf16.mxu1 %vm9898_vm0, %v14605_v26 }
 0xaa1   :  { %v5789_v2 = vpop.f32.mrb[64].mxu1 }
 0xaa2   :  { %v5790_v18 = vadd.f32 %v12541_v6, %v5789_v2  ;;  %v8692_v39 = vpop.f32.mrb[65].mxu1  ;;  %v14980_v2 = vld [vmem:[#allocation44_spill] sm:$0xff] }
 0xaa3   :  { %v5792_v61 = vpop.f32.mrb[66].mxu1 }
 0xaa4   :  { %6675 = vst.msk [vmem:[%s14392_s7 + $0x130] sm:$0xff] %vm6636_vm5, %v5790_v18  ;;  %v5793_v40 = vadd.f32 %v12541_v6, %v5792_v61  ;;  %v8693_v33 = vpop.f32.mrb[67].mxu1  ;;  %v14981_v18 = vld [vmem:[#allocation43_spill] sm:$0xff] }
 0xaa5   :  { %v14982_v39 = vpack.c.bf16 %v14980_v2, %v14981_v18 }
 0xaa6   :  { %6676 = vst.msk [vmem:[%s14392_s7 + $0x138] sm:$0xff] %vm6636_vm5, %v5793_v40  ;;  %8799 = vmatmul.mubr.msk.bf16.gmra.mrb[172].mxu1 %vm5223_vm4, %v14979_v3 }
 0xaa7   :  { %8802 = vmatprep.mubr.msk.bf16.mxu1 %vm9898_vm0, %v14605_v26 }
 0xaa9   :  { %v5797_v62 = vpop.f32.mrb[68].mxu1 }
 0xaaa   :  { %v5798_v28 = vadd.f32 %v12541_v6, %v5797_v62  ;;  %v8696_v50 = vpop.f32.mrb[69].mxu1  ;;  %v14983_v62 = vld [vmem:[#allocation46_spill] sm:$0xff] }
 0xaab   :  { %v5800_v60 = vpop.f32.mrb[70].mxu1 }
 0xaac   :  { %6677 = vst.msk [vmem:[%s14392_s7 + $0x140] sm:$0xff] %vm6636_vm5, %v5798_v28  ;;  %v5801_v11 = vadd.f32 %v12541_v6, %v5800_v60  ;;  %v8697_v35 = vpop.f32.mrb[71].mxu1  ;;  %v14984_v28 = vld [vmem:[#allocation45_spill] sm:$0xff] }
 0xaad   :  { %v14985_v50 = vpack.c.bf16 %v14983_v62, %v14984_v28 }
 0xaae   :  { %6678 = vst.msk [vmem:[%s14392_s7 + $0x148] sm:$0xff] %vm6636_vm5, %v5801_v11  ;;  %8803 = vmatmul.mubr.msk.bf16.gmra.mrb[176].mxu1 %vm5223_vm4, %v14982_v39 }
 0xaaf   :  { %8806 = vmatprep.mubr.msk.bf16.mxu1 %vm9898_vm0, %v14605_v26 }
 0xab1   :  { %v5805_v61 = vpop.f32.mrb[72].mxu1 }
 0xab2   :  { %v5806_v40 = vadd.f32 %v12541_v6, %v5805_v61  ;;  %v8700_v33 = vpop.f32.mrb[73].mxu1  ;;  %v14986_v61 = vld [vmem:[#allocation48_spill] sm:$0xff] }
 0xab3   :  { %v5808_v55 = vpop.f32.mrb[74].mxu1 }
 0xab4   :  { %6679 = vst.msk [vmem:[%s14392_s7 + $0x150] sm:$0xff] %vm6636_vm5, %v5806_v40  ;;  %v5809_v27 = vadd.f32 %v12541_v6, %v5808_v55  ;;  %v8701_v3 = vpop.f32.mrb[75].mxu1  ;;  %v14987_v40 = vld [vmem:[#allocation47_spill] sm:$0xff] }
 0xab5   :  { %v14988_v33 = vpack.c.bf16 %v14986_v61, %v14987_v40 }
 0xab6   :  { %6680 = vst.msk [vmem:[%s14392_s7 + $0x158] sm:$0xff] %vm6636_vm5, %v5809_v27  ;;  %8807 = vmatmul.mubr.msk.bf16.gmra.mrb[180].mxu1 %vm5223_vm4, %v14985_v50 }
 0xab7   :  { %8810 = vmatprep.mubr.msk.bf16.mxu1 %vm9898_vm0, %v14605_v26 }
 0xab9   :  { %v5813_v60 = vpop.f32.mrb[76].mxu1 }
 0xaba   :  { %v5814_v11 = vadd.f32 %v12541_v6, %v5813_v60  ;;  %v8704_v35 = vpop.f32.mrb[77].mxu1  ;;  %v14989_v60 = vld [vmem:[#allocation50_spill] sm:$0xff] }
 0xabb   :  { %v5816_v2 = vpop.f32.mrb[78].mxu1 }
 0xabc   :  { %6681 = vst.msk [vmem:[%s14392_s7 + $0x160] sm:$0xff] %vm6636_vm5, %v5814_v11  ;;  %v5817_v18 = vadd.f32 %v12541_v6, %v5816_v2  ;;  %v8705_v39 = vpop.f32.mrb[79].mxu1  ;;  %v14990_v11 = vld [vmem:[#allocation49_spill] sm:$0xff] }
 0xabd   :  { %v14991_v35 = vpack.c.bf16 %v14989_v60, %v14990_v11 }
 0xabe   :  { %6682 = vst.msk [vmem:[%s14392_s7 + $0x168] sm:$0xff] %vm6636_vm5, %v5817_v18  ;;  %8811 = vmatmul.mubr.msk.bf16.gmra.mrb[184].mxu1 %vm5223_vm4, %v14988_v33 }
 0xabf   :  { %8814 = vmatprep.mubr.msk.bf16.mxu1 %vm9898_vm0, %v14605_v26 }
 0xac1   :  { %v5821_v55 = vpop.f32.mrb[80].mxu1 }
 0xac2   :  { %v5822_v27 = vadd.f32 %v12541_v6, %v5821_v55  ;;  %v8708_v3 = vpop.f32.mrb[81].mxu1  ;;  %v14992_v55 = vld [vmem:[#allocation52_spill] sm:$0xff] }
 0xac3   :  { %v5824_v62 = vpop.f32.mrb[82].mxu1 }
 0xac4   :  { %6683 = vst.msk [vmem:[%s14392_s7 + $0x170] sm:$0xff] %vm6636_vm5, %v5822_v27  ;;  %v5825_v28 = vadd.f32 %v12541_v6, %v5824_v62  ;;  %v8709_v50 = vpop.f32.mrb[83].mxu1  ;;  %v14993_v27 = vld [vmem:[#allocation51_spill] sm:$0xff] }
 0xac5   :  { %v14994_v3 = vpack.c.bf16 %v14992_v55, %v14993_v27 }
 0xac6   :  { %6684 = vst.msk [vmem:[%s14392_s7 + $0x178] sm:$0xff] %vm6636_vm5, %v5825_v28  ;;  %8815 = vmatmul.mubr.msk.bf16.gmra.mrb[188].mxu1 %vm5223_vm4, %v14991_v35 }
 0xac7   :  { %8818 = vmatprep.mubr.msk.bf16.mxu1 %vm9898_vm0, %v14605_v26 }
 0xac9   :  { %v5829_v2 = vpop.f32.mrb[84].mxu1 }
 0xaca   :  { %v5830_v18 = vadd.f32 %v12541_v6, %v5829_v2  ;;  %v8712_v39 = vpop.f32.mrb[85].mxu1  ;;  %v14995_v2 = vpack.c.bf16 %v11495_v17, %v11492_v30  ;;  %v14996_v17 = vld [vmem:[#allocation54_spill] sm:$0xff]  ;;  %v14997_v30 = vld [vmem:[#allocation53_spill] sm:$0xff] }
 0xacb   :  { %v5832_v61 = vpop.f32.mrb[86].mxu1  ;;  %v14998_v27 = vpack.c.bf16 %v14996_v17, %v14997_v30  ;;  %v15002_v30 = vld [vmem:[#allocation58_spill] sm:$0xff] }
 0xacc   :  { %6685 = vst.msk [vmem:[%s14392_s7 + $0x180] sm:$0xff] %vm6636_vm5, %v5830_v18  ;;  %v5833_v40 = vadd.f32 %v12541_v6, %v5832_v61  ;;  %v8713_v33 = vpop.f32.mrb[87].mxu1 }
 0xace   :  { %6686 = vst.msk [vmem:[%s14392_s7 + $0x188] sm:$0xff] %vm6636_vm5, %v5833_v40  ;;  %8819 = vmatmul.mubr.msk.bf16.gmra.mrb[192].mxu1 %vm5223_vm4, %v14994_v3 }
 0xacf   :  { %8822 = vmatprep.mubr.msk.bf16.mxu1 %vm9898_vm0, %v14605_v26 }
 0xad1   :  { %v5837_v62 = vpop.f32.mrb[88].mxu1 }
 0xad2   :  { %v5838_v28 = vadd.f32 %v12541_v6, %v5837_v62  ;;  %v8716_v50 = vpop.f32.mrb[89].mxu1 }
 0xad3   :  { %v5840_v60 = vpop.f32.mrb[90].mxu1 }
 0xad4   :  { %6687 = vst.msk [vmem:[%s14392_s7 + $0x190] sm:$0xff] %vm6636_vm5, %v5838_v28  ;;  %v5841_v11 = vadd.f32 %v12541_v6, %v5840_v60  ;;  %v8717_v35 = vpop.f32.mrb[91].mxu1 }
 0xad5   :  { %v14999_v35 = vld [vmem:[#allocation56_spill] sm:$0xff] }
 0xad6   :  { %6688 = vst.msk [vmem:[%s14392_s7 + $0x198] sm:$0xff] %vm6636_vm5, %v5841_v11  ;;  %8823 = vmatmul.mubr.msk.bf16.gmra.mrb[196].mxu1 %vm5223_vm4, %v14995_v2  ;;  %v15000_v2 = vld [vmem:[#allocation55_spill] sm:$0xff] }
 0xad7   :  { %8826 = vmatprep.mubr.msk.bf16.mxu1 %vm9898_vm0, %v14605_v26 }
 0xad9   :  { %v5845_v18 = vpop.f32.mrb[92].mxu1 }
 0xada   :  { %v5846_v39 = vadd.f32 %v12541_v6, %v5845_v18  ;;  %v8720_v61 = vpop.f32.mrb[93].mxu1  ;;  %v15001_v18 = vpack.c.bf16 %v14999_v35, %v15000_v2  ;;  %v15005_v2 = vld [vmem:[#allocation60_spill] sm:$0xff] }
 0xadb   :  { %v5848_v40 = vpop.f32.mrb[94].mxu1 }
 0xadc   :  { %6689 = vst.msk [vmem:[%s14392_s7 + $0x1a0] sm:$0xff] %vm6636_vm5, %v5846_v39  ;;  %v5849_v33 = vadd.f32 %v12541_v6, %v5848_v40  ;;  %v8721_v55 = vpop.f32.mrb[95].mxu1 }
 0xade   :  { %6690 = vst.msk [vmem:[%s14392_s7 + $0x1a8] sm:$0xff] %vm6636_vm5, %v5849_v33  ;;  %8827 = vmatmul.mubr.msk.bf16.gmra.mrb[200].mxu1 %vm5223_vm4, %v14998_v27  ;;  %v15003_v27 = vld [vmem:[#allocation57_spill] sm:$0xff] }
 0xadf   :  { %8830 = vmatprep.mubr.msk.bf16.mxu1 %vm9898_vm0, %v14605_v26 }
 0xae1   :  { %v5853_v3 = vpop.f32.mrb[96].mxu1 }
 0xae2   :  { %v5854_v62 = vadd.f32 %v12541_v6, %v5853_v3  ;;  %v8724_v28 = vpop.f32.mrb[97].mxu1  ;;  %v15004_v3 = vpack.c.bf16 %v15002_v30, %v15003_v27  ;;  %v15008_v27 = vld [vmem:[#allocation62_spill] sm:$0xff] }
 0xae3   :  { %v5856_v50 = vpop.f32.mrb[98].mxu1 }
 0xae4   :  { %6691 = vst.msk [vmem:[%s14392_s7 + $0x1b0] sm:$0xff] %vm6636_vm5, %v5854_v62  ;;  %v5857_v60 = vadd.f32 %v12541_v6, %v5856_v50  ;;  %v8725_v11 = vpop.f32.mrb[99].mxu1 }
 0xae6   :  { %6692 = vst.msk [vmem:[%s14392_s7 + $0x1b8] sm:$0xff] %vm6636_vm5, %v5857_v60  ;;  %8831 = vmatmul.mubr.msk.bf16.gmra.mrb[204].mxu1 %vm5223_vm4, %v15001_v18  ;;  %v15006_v18 = vld [vmem:[#allocation59_spill] sm:$0xff] }
 0xae7   :  { %8834 = vmatprep.mubr.msk.bf16.mxu1 %vm9898_vm0, %v14605_v26 }
 0xae9   :  { %v5861_v39 = vpop.f32.mrb[100].mxu1 }
 0xaea   :  { %v5862_v61 = vadd.f32 %v12541_v6, %v5861_v39  ;;  %v8728_v40 = vpop.f32.mrb[101].mxu1  ;;  %v15007_v39 = vpack.c.bf16 %v15005_v2, %v15006_v18  ;;  %v15011_v18 = vld [vmem:[#allocation64_spill] sm:$0xff] }
 0xaeb   :  { %v5864_v33 = vpop.f32.mrb[102].mxu1 }
 0xaec   :  { %6693 = vst.msk [vmem:[%s14392_s7 + $0x1c0] sm:$0xff] %vm6636_vm5, %v5862_v61  ;;  %v5865_v55 = vadd.f32 %v12541_v6, %v5864_v33  ;;  %v8729_v17 = vpop.f32.mrb[103].mxu1 }
 0xaee   :  { %6694 = vst.msk [vmem:[%s14392_s7 + $0x1c8] sm:$0xff] %vm6636_vm5, %v5865_v55  ;;  %8835 = vmatmul.mubr.msk.bf16.gmra.mrb[208].mxu1 %vm5223_vm4, %v15004_v3  ;;  %v15009_v3 = vld [vmem:[#allocation61_spill] sm:$0xff] }
 0xaef   :  { %8838 = vmatprep.mubr.msk.bf16.mxu1 %vm9898_vm0, %v14605_v26 }
 0xaf1   :  { %v5869_v62 = vpop.f32.mrb[104].mxu1 }
 0xaf2   :  { %v5870_v28 = vadd.f32 %v12541_v6, %v5869_v62  ;;  %v8732_v50 = vpop.f32.mrb[105].mxu1  ;;  %v15010_v62 = vpack.c.bf16 %v15008_v27, %v15009_v3  ;;  %v15014_v3 = vld [vmem:[#allocation66_spill] sm:$0xff] }
 0xaf3   :  { %v5872_v60 = vpop.f32.mrb[106].mxu1 }
 0xaf4   :  { %6695 = vst.msk [vmem:[%s14392_s7 + $0x1d0] sm:$0xff] %vm6636_vm5, %v5870_v28  ;;  %v5873_v11 = vadd.f32 %v12541_v6, %v5872_v60  ;;  %v8733_v35 = vpop.f32.mrb[107].mxu1 }
 0xaf6   :  { %6696 = vst.msk [vmem:[%s14392_s7 + $0x1d8] sm:$0xff] %vm6636_vm5, %v5873_v11  ;;  %8839 = vmatmul.mubr.msk.bf16.gmra.mrb[212].mxu1 %vm5223_vm4, %v15007_v39  ;;  %v15012_v39 = vld [vmem:[#allocation63_spill] sm:$0xff] }
 0xaf7   :  { %8842 = vmatprep.mubr.msk.bf16.mxu1 %vm9898_vm0, %v14605_v26 }
 0xaf9   :  { %v5877_v61 = vpop.f32.mrb[108].mxu1 }
 0xafa   :  { %v5878_v40 = vadd.f32 %v12541_v6, %v5877_v61  ;;  %v8736_v33 = vpop.f32.mrb[109].mxu1  ;;  %v15013_v61 = vpack.c.bf16 %v15011_v18, %v15012_v39  ;;  %v15017_v39 = vld [vmem:[#allocation68_spill] sm:$0xff] }
 0xafb   :  { %v5880_v55 = vpop.f32.mrb[110].mxu1 }
 0xafc   :  { %6697 = vst.msk [vmem:[%s14392_s7 + $0x1e0] sm:$0xff] %vm6636_vm5, %v5878_v40  ;;  %v5881_v17 = vadd.f32 %v12541_v6, %v5880_v55  ;;  %v8737_v30 = vpop.f32.mrb[111].mxu1 }
 0xafe   :  { %6698 = vst.msk [vmem:[%s14392_s7 + $0x1e8] sm:$0xff] %vm6636_vm5, %v5881_v17  ;;  %8843 = vmatmul.mubr.msk.bf16.gmra.mrb[216].mxu1 %vm5223_vm4, %v15010_v62  ;;  %v15015_v62 = vld [vmem:[#allocation65_spill] sm:$0xff] }
 0xaff   :  { %8846 = vmatprep.mubr.msk.bf16.mxu1 %vm9898_vm0, %v14605_v26 }
 0xb01   :  { %v5885_v28 = vpop.f32.mrb[112].mxu1 }
 0xb02   :  { %v5886_v50 = vadd.f32 %v12541_v6, %v5885_v28  ;;  %v8740_v60 = vpop.f32.mrb[113].mxu1  ;;  %v15016_v28 = vpack.c.bf16 %v15014_v3, %v15015_v62  ;;  %v15020_v62 = vld [vmem:[#allocation70_spill] sm:$0xff] }
 0xb03   :  { %v5888_v11 = vpop.f32.mrb[114].mxu1 }
 0xb04   :  { %6699 = vst.msk [vmem:[%s14392_s7 + $0x1f0] sm:$0xff] %vm6636_vm5, %v5886_v50  ;;  %v5889_v35 = vadd.f32 %v12541_v6, %v5888_v11  ;;  %v8741_v2 = vpop.f32.mrb[115].mxu1 }
 0xb06   :  { %6700 = vst.msk [vmem:[%s14392_s7 + $0x1f8] sm:$0xff] %vm6636_vm5, %v5889_v35  ;;  %8847 = vmatmul.mubr.msk.bf16.gmra.mrb[220].mxu1 %vm5223_vm4, %v15013_v61  ;;  %v15018_v61 = vld [vmem:[#allocation67_spill] sm:$0xff] }
 0xb07   :  { %8850 = vmatprep.mubr.msk.bf16.mxu1 %vm9898_vm0, %v14605_v26 }
 0xb09   :  { %v5893_v40 = vpop.f32.mrb[116].mxu1 }
 0xb0a   :  { %v5894_v33 = vadd.f32 %v12541_v6, %v5893_v40  ;;  %v8744_v55 = vpop.f32.mrb[117].mxu1  ;;  %v15019_v40 = vpack.c.bf16 %v15017_v39, %v15018_v61  ;;  %v15023_v61 = vld [vmem:[#allocation72_spill] sm:$0xff] }
 0xb0b   :  { %v5896_v17 = vpop.f32.mrb[118].mxu1 }
 0xb0c   :  { %6701 = vst.msk [vmem:[%s14392_s7 + $0x200] sm:$0xff] %vm6636_vm5, %v5894_v33  ;;  %v5897_v30 = vadd.f32 %v12541_v6, %v5896_v17  ;;  %v8745_v27 = vpop.f32.mrb[119].mxu1 }
 0xb0e   :  { %6702 = vst.msk [vmem:[%s14392_s7 + $0x208] sm:$0xff] %vm6636_vm5, %v5897_v30  ;;  %8851 = vmatmul.mubr.msk.bf16.gmra.mrb[224].mxu1 %vm5223_vm4, %v15016_v28  ;;  %v15021_v28 = vld [vmem:[#allocation69_spill] sm:$0xff] }
 0xb0f   :  { %8854 = vmatprep.mubr.msk.bf16.mxu1 %vm9898_vm0, %v14605_v26 }
 0xb11   :  { %v5901_v50 = vpop.f32.mrb[120].mxu1 }
 0xb12   :  { %v5902_v60 = vadd.f32 %v12541_v6, %v5901_v50  ;;  %v8748_v11 = vpop.f32.mrb[121].mxu1  ;;  %v15022_v50 = vpack.c.bf16 %v15020_v62, %v15021_v28  ;;  %v15026_v28 = vld [vmem:[#allocation74_spill] sm:$0xff] }
 0xb13   :  { %v5904_v35 = vpop.f32.mrb[122].mxu1 }
 0xb14   :  { %6703 = vst.msk [vmem:[%s14392_s7 + $0x210] sm:$0xff] %vm6636_vm5, %v5902_v60  ;;  %v5905_v2 = vadd.f32 %v12541_v6, %v5904_v35  ;;  %v8749_v18 = vpop.f32.mrb[123].mxu1 }
 0xb16   :  { %6704 = vst.msk [vmem:[%s14392_s7 + $0x218] sm:$0xff] %vm6636_vm5, %v5905_v2  ;;  %8855 = vmatmul.mubr.msk.bf16.gmra.mrb[228].mxu1 %vm5223_vm4, %v15019_v40  ;;  %v15024_v40 = vld [vmem:[#allocation71_spill] sm:$0xff] }
 0xb17   :  { %8858 = vmatprep.mubr.msk.bf16.mxu1 %vm9898_vm0, %v14605_v26 }
 0xb19   :  { %v5909_v33 = vpop.f32.mrb[124].mxu1 }
 0xb1a   :  { %v5910_v55 = vadd.f32 %v12541_v6, %v5909_v33  ;;  %v8752_v17 = vpop.f32.mrb[125].mxu1  ;;  %v15025_v33 = vpack.c.bf16 %v15023_v61, %v15024_v40  ;;  %v15029_v40 = vld [vmem:[#allocation76_spill] sm:$0xff] }
 0xb1b   :  { %v5912_v30 = vpop.f32.mrb[126].mxu1 }
 0xb1c   :  { %6705 = vst.msk [vmem:[%s14392_s7 + $0x220] sm:$0xff] %vm6636_vm5, %v5910_v55  ;;  %v5913_v27 = vadd.f32 %v12541_v6, %v5912_v30  ;;  %v8753_v3 = vpop.f32.mrb[127].mxu1 }
 0xb1e   :  { %6706 = vst.msk [vmem:[%s14392_s7 + $0x228] sm:$0xff] %vm6636_vm5, %v5913_v27  ;;  %8859 = vmatmul.mubr.msk.bf16.gmra.mrb[232].mxu1 %vm5223_vm4, %v15022_v50  ;;  %v15027_v50 = vld [vmem:[#allocation73_spill] sm:$0xff] }
 0xb1f   :  { %8862 = vmatprep.mubr.msk.bf16.mxu1 %vm9898_vm0, %v14605_v26 }
 0xb21   :  { %v5917_v60 = vpop.f32.mrb[128].mxu1 }
 0xb22   :  { %v5918_v11 = vadd.f32 %v12541_v6, %v5917_v60  ;;  %v8756_v35 = vpop.f32.mrb[129].mxu1  ;;  %v15028_v60 = vpack.c.bf16 %v15026_v28, %v15027_v50  ;;  %v15032_v50 = vld [vmem:[#allocation78_spill] sm:$0xff] }
 0xb23   :  { %v5920_v2 = vpop.f32.mrb[130].mxu1 }
 0xb24   :  { %6707 = vst.msk [vmem:[%s14392_s7 + $0x230] sm:$0xff] %vm6636_vm5, %v5918_v11  ;;  %v5921_v18 = vadd.f32 %v12541_v6, %v5920_v2  ;;  %v8757_v39 = vpop.f32.mrb[131].mxu1 }
 0xb26   :  { %6708 = vst.msk [vmem:[%s14392_s7 + $0x238] sm:$0xff] %vm6636_vm5, %v5921_v18  ;;  %8863 = vmatmul.mubr.msk.bf16.gmra.mrb[236].mxu1 %vm5223_vm4, %v15025_v33  ;;  %v15030_v33 = vld [vmem:[#allocation75_spill] sm:$0xff] }
 0xb27   :  { %8866 = vmatprep.mubr.msk.bf16.mxu1 %vm9898_vm0, %v14605_v26 }
 0xb29   :  { %v5925_v55 = vpop.f32.mrb[132].mxu1 }
 0xb2a   :  { %v5926_v17 = vadd.f32 %v12541_v6, %v5925_v55  ;;  %v8760_v30 = vpop.f32.mrb[133].mxu1  ;;  %v15031_v55 = vpack.c.bf16 %v15029_v40, %v15030_v33  ;;  %v15035_v33 = vld [vmem:[#allocation80_spill] sm:$0xff] }
 0xb2b   :  { %v5928_v27 = vpop.f32.mrb[134].mxu1 }
 0xb2c   :  { %6709 = vst.msk [vmem:[%s14392_s7 + $0x240] sm:$0xff] %vm6636_vm5, %v5926_v17  ;;  %v5929_v3 = vadd.f32 %v12541_v6, %v5928_v27  ;;  %v8761_v62 = vpop.f32.mrb[135].mxu1 }
 0xb2e   :  { %6710 = vst.msk [vmem:[%s14392_s7 + $0x248] sm:$0xff] %vm6636_vm5, %v5929_v3  ;;  %8867 = vmatmul.mubr.msk.bf16.gmra.mrb[240].mxu1 %vm5223_vm4, %v15028_v60  ;;  %v15033_v60 = vld [vmem:[#allocation77_spill] sm:$0xff] }
 0xb2f   :  { %8870 = vmatprep.mubr.msk.bf16.mxu1 %vm9898_vm0, %v14605_v26 }
 0xb31   :  { %v5933_v11 = vpop.f32.mrb[136].mxu1 }
 0xb32   :  { %v5934_v35 = vadd.f32 %v12541_v6, %v5933_v11  ;;  %v8764_v2 = vpop.f32.mrb[137].mxu1  ;;  %v15034_v11 = vpack.c.bf16 %v15032_v50, %v15033_v60  ;;  %v15038_v60 = vld [vmem:[#allocation82_spill] sm:$0xff] }
 0xb33   :  { %v5936_v18 = vpop.f32.mrb[138].mxu1 }
 0xb34   :  { %6711 = vst.msk [vmem:[%s14392_s7 + $0x250] sm:$0xff] %vm6636_vm5, %v5934_v35  ;;  %v5937_v39 = vadd.f32 %v12541_v6, %v5936_v18  ;;  %v8765_v61 = vpop.f32.mrb[139].mxu1 }
 0xb36   :  { %6712 = vst.msk [vmem:[%s14392_s7 + $0x258] sm:$0xff] %vm6636_vm5, %v5937_v39  ;;  %8871 = vmatmul.mubr.msk.bf16.gmra.mrb[244].mxu1 %vm5223_vm4, %v15031_v55  ;;  %v15036_v55 = vld [vmem:[#allocation79_spill] sm:$0xff] }
 0xb37   :  { %8874 = vmatprep.mubr.msk.bf16.mxu1 %vm9898_vm0, %v14605_v26 }
 0xb39   :  { %v5941_v17 = vpop.f32.mrb[140].mxu1 }
 0xb3a   :  { %v5942_v30 = vadd.f32 %v12541_v6, %v5941_v17  ;;  %v8768_v27 = vpop.f32.mrb[141].mxu1  ;;  %v15037_v17 = vpack.c.bf16 %v15035_v33, %v15036_v55  ;;  %v15041_v55 = vld [vmem:[#allocation84_spill] sm:$0xff] }
 0xb3b   :  { %v5944_v3 = vpop.f32.mrb[142].mxu1 }
 0xb3c   :  { %6713 = vst.msk [vmem:[%s14392_s7 + $0x260] sm:$0xff] %vm6636_vm5, %v5942_v30  ;;  %v5945_v62 = vadd.f32 %v12541_v6, %v5944_v3  ;;  %v8769_v28 = vpop.f32.mrb[143].mxu1 }
 0xb3e   :  { %6714 = vst.msk [vmem:[%s14392_s7 + $0x268] sm:$0xff] %vm6636_vm5, %v5945_v62  ;;  %8875 = vmatmul.mubr.msk.bf16.gmra.mrb[248].mxu1 %vm5223_vm4, %v15034_v11  ;;  %v15039_v11 = vld [vmem:[#allocation81_spill] sm:$0xff] }
 0xb3f   :  { %8878 = vmatprep.mubr.msk.bf16.mxu1 %vm9898_vm0, %v14605_v26 }
 0xb41   :  { %v5949_v35 = vpop.f32.mrb[144].mxu1 }
 0xb42   :  { %v5950_v2 = vadd.f32 %v12541_v6, %v5949_v35  ;;  %v8772_v18 = vpop.f32.mrb[145].mxu1  ;;  %v15040_v35 = vpack.c.bf16 %v15038_v60, %v15039_v11  ;;  %v15044_v11 = vld [vmem:[#allocation86_spill] sm:$0xff] }
 0xb43   :  { %v5952_v39 = vpop.f32.mrb[146].mxu1 }
 0xb44   :  { %6715 = vst.msk [vmem:[%s14392_s7 + $0x270] sm:$0xff] %vm6636_vm5, %v5950_v2  ;;  %v5953_v61 = vadd.f32 %v12541_v6, %v5952_v39  ;;  %v8773_v40 = vpop.f32.mrb[147].mxu1 }
 0xb46   :  { %6716 = vst.msk [vmem:[%s14392_s7 + $0x278] sm:$0xff] %vm6636_vm5, %v5953_v61  ;;  %8879 = vmatmul.mubr.msk.bf16.gmra.mrb[252].mxu1 %vm5223_vm4, %v15037_v17  ;;  %v15042_v17 = vld [vmem:[#allocation83_spill] sm:$0xff] }
 0xb47   :  { %8882 = vmatprep.mubr.msk.bf16.mxu1 %vm9898_vm0, %v14605_v26 }
 0xb49   :  { %v5957_v30 = vpop.f32.mrb[148].mxu1 }
 0xb4a   :  { %v5958_v27 = vadd.f32 %v12541_v6, %v5957_v30  ;;  %v8776_v3 = vpop.f32.mrb[149].mxu1  ;;  %v15043_v30 = vpack.c.bf16 %v15041_v55, %v15042_v17  ;;  %v15047_v17 = vpack.c.bf16 %v11803_v15, %v11800_v54  ;;  %v15048_v54 = vld [vmem:[#allocation87_spill] sm:$0xff] }
 0xb4b   :  { %v5960_v62 = vpop.f32.mrb[150].mxu1  ;;  %v15049_v15 = vpack.c.bf16 %v11816_v12, %v15048_v54  ;;  %v15050_v12 = vld [vmem:[#allocation89_spill] sm:$0xff] }
 0xb4c   :  { %6717 = vst.msk [vmem:[%s14392_s7 + $0x280] sm:$0xff] %vm6636_vm5, %v5958_v27  ;;  %v5961_v28 = vadd.f32 %v12541_v6, %v5960_v62  ;;  %v8777_v50 = vpop.f32.mrb[151].mxu1 }
 0xb4e   :  { %6718 = vst.msk [vmem:[%s14392_s7 + $0x288] sm:$0xff] %vm6636_vm5, %v5961_v28  ;;  %8883 = vmatmul.mubr.msk.bf16.gmra.mrb[0].mxu1 %vm5223_vm4, %v15040_v35  ;;  %v15045_v35 = vld [vmem:[#allocation85_spill] sm:$0xff] }
 0xb4f   :  { %8886 = vmatprep.mubr.msk.bf16.mxu1 %vm9898_vm0, %v14605_v26 }
 0xb51   :  { %v5965_v2 = vpop.f32.mrb[152].mxu1 }
 0xb52   :  { %v5966_v18 = vadd.f32 %v12541_v6, %v5965_v2  ;;  %v8780_v39 = vpop.f32.mrb[153].mxu1  ;;  %v15046_v2 = vpack.c.bf16 %v15044_v11, %v15045_v35 }
 0xb53   :  { %v5968_v61 = vpop.f32.mrb[154].mxu1 }
 0xb54   :  { %6719 = vst.msk [vmem:[%s14392_s7 + $0x290] sm:$0xff] %vm6636_vm5, %v5966_v18  ;;  %v5969_v40 = vadd.f32 %v12541_v6, %v5968_v61  ;;  %v8781_v33 = vpop.f32.mrb[155].mxu1 }
 0xb56   :  { %6720 = vst.msk [vmem:[%s14392_s7 + $0x298] sm:$0xff] %vm6636_vm5, %v5969_v40  ;;  %8887 = vmatmul.mubr.msk.bf16.gmra.mrb[4].mxu1 %vm5223_vm4, %v15043_v30 }
 0xb57   :  { %8890 = vmatprep.mubr.msk.bf16.mxu1 %vm9898_vm0, %v14605_v26 }
 0xb59   :  { %v5973_v27 = vpop.f32.mrb[156].mxu1 }
 0xb5a   :  { %v5974_v3 = vadd.f32 %v12541_v6, %v5973_v27  ;;  %v8784_v62 = vpop.f32.mrb[157].mxu1 }
 0xb5b   :  { %v5976_v28 = vpop.f32.mrb[158].mxu1 }
 0xb5c   :  { %6721 = vst.msk [vmem:[%s14392_s7 + $0x2a0] sm:$0xff] %vm6636_vm5, %v5974_v3  ;;  %v5977_v50 = vadd.f32 %v12541_v6, %v5976_v28  ;;  %v8785_v60 = vpop.f32.mrb[159].mxu1 }
 0xb5e   :  { %6722 = vst.msk [vmem:[%s14392_s7 + $0x2a8] sm:$0xff] %vm6636_vm5, %v5977_v50  ;;  %8891 = vmatmul.mubr.msk.bf16.gmra.mrb[8].mxu1 %vm5223_vm4, %v15046_v2 }
 0xb5f   :  { %8894 = vmatprep.mubr.msk.bf16.mxu1 %vm9898_vm0, %v14605_v26 }
 0xb61   :  { %v5981_v18 = vpop.f32.mrb[160].mxu1 }
 0xb62   :  { %v5982_v39 = vadd.f32 %v12541_v6, %v5981_v18  ;;  %v8788_v61 = vpop.f32.mrb[161].mxu1 }
 0xb63   :  { %v5984_v40 = vpop.f32.mrb[162].mxu1  ;;  %v15051_v61 = vld [vmem:[#allocation88_spill] sm:$0xff] }
 0xb64   :  { %6723 = vst.msk [vmem:[%s14392_s7 + $0x2b0] sm:$0xff] %vm6636_vm5, %v5982_v39  ;;  %v5985_v33 = vadd.f32 %v12541_v6, %v5984_v40  ;;  %v8789_v55 = vpop.f32.mrb[163].mxu1  ;;  %v15052_v40 = vpack.c.bf16 %v15050_v12, %v15051_v61 }
 0xb66   :  { %6724 = vst.msk [vmem:[%s14392_s7 + $0x2b8] sm:$0xff] %vm6636_vm5, %v5985_v33  ;;  %8895 = vmatmul.mubr.msk.bf16.gmra.mrb[12].mxu1 %vm5223_vm4, %v15047_v17 }
 0xb67   :  { %8898 = vmatprep.mubr.msk.bf16.mxu1 %vm9898_vm0, %v14605_v26 }
 0xb69   :  { %v5989_v30 = vpop.f32.mrb[164].mxu1 }
 0xb6a   :  { %v5990_v27 = vadd.f32 %v12541_v6, %v5989_v30  ;;  %v8792_v3 = vpop.f32.mrb[165].mxu1 }
 0xb6b   :  { %v5992_v62 = vpop.f32.mrb[166].mxu1 }
 0xb6c   :  { %6725 = vst.msk [vmem:[%s14392_s7 + $0x2c0] sm:$0xff] %vm6636_vm5, %v5990_v27  ;;  %v5993_v28 = vadd.f32 %v12541_v6, %v5992_v62  ;;  %v8793_v50 = vpop.f32.mrb[167].mxu1  ;;  %v15053_v62 = vld [vmem:[#allocation113_spill] sm:$0xff] }
 0xb6e   :  { %6726 = vst.msk [vmem:[%s14392_s7 + $0x2c8] sm:$0xff] %vm6636_vm5, %v5993_v28  ;;  %8899 = vmatmul.mubr.msk.bf16.gmra.mrb[16].mxu1 %vm5223_vm4, %v15049_v15  ;;  %v15054_v28 = vld [vmem:[#allocation90_spill] sm:$0xff] }
 0xb6f   :  { %8902 = vmatprep.mubr.msk.bf16.mxu1 %vm9898_vm0, %v14605_v26  ;;  %v15055_v50 = vpack.c.bf16 %v15053_v62, %v15054_v28 }
 0xb71   :  { %v5997_v60 = vpop.f32.mrb[168].mxu1 }
 0xb72   :  { %v5998_v11 = vadd.f32 %v12541_v6, %v5997_v60  ;;  %v8796_v35 = vpop.f32.mrb[169].mxu1 }
 0xb73   :  { %v6000_v2 = vpop.f32.mrb[170].mxu1 }
 0xb74   :  { %6727 = vst.msk [vmem:[%s14392_s7 + $0x2d0] sm:$0xff] %vm6636_vm5, %v5998_v11  ;;  %v6001_v18 = vadd.f32 %v12541_v6, %v6000_v2  ;;  %v8797_v39 = vpop.f32.mrb[171].mxu1 }
 0xb75   :  { %v15057_v39 = vld [vmem:[#allocation114_spill] sm:$0xff] }
 0xb76   :  { %6728 = vst.msk [vmem:[%s14392_s7 + $0x2d8] sm:$0xff] %vm6636_vm5, %v6001_v18  ;;  %8903 = vmatmul.mubr.msk.bf16.gmra.mrb[20].mxu1 %vm5223_vm4, %v15052_v40  ;;  %v15056_v18 = vld [vmem:[#allocation115_spill] sm:$0xff] }
 0xb77   :  { %8906 = vmatprep.mubr.msk.bf16.mxu1 %vm9898_vm0, %v14605_v26  ;;  %v15058_v12 = vpack.c.bf16 %v15056_v18, %v15057_v39 }
 0xb79   :  { %v6005_v33 = vpop.f32.mrb[172].mxu1 }
 0xb7a   :  { %v6006_v55 = vadd.f32 %v12541_v6, %v6005_v33  ;;  %v8800_v17 = vpop.f32.mrb[173].mxu1 }
 0xb7b   :  { %v6008_v30 = vpop.f32.mrb[174].mxu1 }
 0xb7c   :  { %6729 = vst.msk [vmem:[%s14392_s7 + $0x2e0] sm:$0xff] %vm6636_vm5, %v6006_v55  ;;  %v6009_v27 = vadd.f32 %v12541_v6, %v6008_v30  ;;  %v8801_v3 = vpop.f32.mrb[175].mxu1 }
 0xb7d   :  { %v15060_v3 = vld [vmem:[#allocation116_spill] sm:$0xff] }
 0xb7e   :  { %6730 = vst.msk [vmem:[%s14392_s7 + $0x2e8] sm:$0xff] %vm6636_vm5, %v6009_v27  ;;  %8907 = vmatmul.mubr.msk.bf16.gmra.mrb[24].mxu1 %vm5223_vm4, %v15055_v50  ;;  %v15059_v27 = vld [vmem:[#allocation117_spill] sm:$0xff] }
 0xb7f   :  { %8910 = vmatprep.mubr.msk.bf16.mxu1 %vm9898_vm0, %v14605_v26  ;;  %v15061_v62 = vpack.c.bf16 %v15059_v27, %v15060_v3 }
 0xb81   :  { %v6013_v54 = vpop.f32.mrb[176].mxu1 }
 0xb82   :  { %v6014_v15 = vadd.f32 %v12541_v6, %v6013_v54  ;;  %v8804_v60 = vpop.f32.mrb[177].mxu1 }
 0xb83   :  { %v6016_v11 = vpop.f32.mrb[178].mxu1 }
 0xb84   :  { %6731 = vst.msk [vmem:[%s14392_s7 + $0x2f0] sm:$0xff] %vm6636_vm5, %v6014_v15  ;;  %v6017_v35 = vadd.f32 %v12541_v6, %v6016_v11  ;;  %v8805_v2 = vpop.f32.mrb[179].mxu1 }
 0xb85   :  { %v15063_v2 = vld [vmem:[#allocation118_spill] sm:$0xff] }
 0xb86   :  { %6732 = vst.msk [vmem:[%s14392_s7 + $0x2f8] sm:$0xff] %vm6636_vm5, %v6017_v35  ;;  %8911 = vmatmul.mubr.msk.bf16.gmra.mrb[28].mxu1 %vm5223_vm4, %v15058_v12  ;;  %v15062_v35 = vld [vmem:[#allocation119_spill] sm:$0xff] }
 0xb87   :  { %8914 = vmatprep.mubr.msk.bf16.mxu1 %vm9898_vm0, %v14605_v26  ;;  %v15064_v18 = vpack.c.bf16 %v15062_v35, %v15063_v2 }
 0xb89   :  { %v6021_v61 = vpop.f32.mrb[180].mxu1 }
 0xb8a   :  { %v6022_v40 = vadd.f32 %v12541_v6, %v6021_v61  ;;  %v8808_v33 = vpop.f32.mrb[181].mxu1 }
 0xb8b   :  { %v6024_v55 = vpop.f32.mrb[182].mxu1 }
 0xb8c   :  { %6733 = vst.msk [vmem:[%s14392_s7 + $0x300] sm:$0xff] %vm6636_vm5, %v6022_v40  ;;  %v6025_v17 = vadd.f32 %v12541_v6, %v6024_v55  ;;  %v8809_v30 = vpop.f32.mrb[183].mxu1 }
 0xb8d   :  { %v15066_v30 = vld [vmem:[#allocation120_spill] sm:$0xff] }
 0xb8e   :  { %6734 = vst.msk [vmem:[%s14392_s7 + $0x308] sm:$0xff] %vm6636_vm5, %v6025_v17  ;;  %8915 = vmatmul.mubr.msk.bf16.gmra.mrb[32].mxu1 %vm5223_vm4, %v15061_v62  ;;  %v15065_v17 = vld [vmem:[#allocation121_spill] sm:$0xff]  ;;  %v13361_v62 = vld [vmem:[#allocation7] ss:$0 sm:$0xff] }
 0xb8f   :  { %8918 = vmatprep.mubr.msk.bf16.mxu1 %vm9898_vm0, %v14605_v26  ;;  %v15067_v27 = vpack.c.bf16 %v15065_v17, %v15066_v30 }
 0xb91   :  { %v6029_v28 = vpop.f32.mrb[184].mxu1 }
 0xb92   :  { %v6030_v50 = vadd.f32 %v12541_v6, %v6029_v28  ;;  %v8812_v54 = vpop.f32.mrb[185].mxu1 }
 0xb93   :  { %v6032_v15 = vpop.f32.mrb[186].mxu1 }
 0xb94   :  { %6735 = vst.msk [vmem:[%s14392_s7 + $0x310] sm:$0xff] %vm6636_vm5, %v6030_v50  ;;  %v6033_v60 = vadd.f32 %v12541_v6, %v6032_v15  ;;  %v8813_v11 = vpop.f32.mrb[187].mxu1 }
 0xb95   :  { %v15069_v11 = vld [vmem:[#allocation122_spill] sm:$0xff] }
 0xb96   :  { %6736 = vst.msk [vmem:[%s14392_s7 + $0x318] sm:$0xff] %vm6636_vm5, %v6033_v60  ;;  %8919 = vmatmul.mubr.msk.bf16.gmra.mrb[36].mxu1 %vm5223_vm4, %v15064_v18  ;;  %v15068_v60 = vld [vmem:[#allocation123_spill] sm:$0xff] }
 0xb97   :  { %8922 = vmatprep.mubr.msk.bf16.mxu1 %vm9898_vm0, %v14605_v26  ;;  %v15070_v35 = vpack.c.bf16 %v15068_v60, %v15069_v11 }
 0xb99   :  { %v6037_v39 = vpop.f32.mrb[188].mxu1 }
 0xb9a   :  { %v6038_v12 = vadd.f32 %v12541_v6, %v6037_v39  ;;  %v8816_v61 = vpop.f32.mrb[189].mxu1 }
 0xb9b   :  { %v6040_v40 = vpop.f32.mrb[190].mxu1 }
 0xb9c   :  { %6737 = vst.msk [vmem:[%s14392_s7 + $0x320] sm:$0xff] %vm6636_vm5, %v6038_v12  ;;  %v6041_v33 = vadd.f32 %v12541_v6, %v6040_v40  ;;  %v8817_v55 = vpop.f32.mrb[191].mxu1 }
 0xb9d   :  { %v15072_v55 = vld [vmem:[#allocation124_spill] sm:$0xff] }
 0xb9e   :  { %6738 = vst.msk [vmem:[%s14392_s7 + $0x328] sm:$0xff] %vm6636_vm5, %v6041_v33  ;;  %8923 = vmatmul.mubr.msk.bf16.gmra.mrb[40].mxu1 %vm5223_vm4, %v15067_v27  ;;  %v15071_v33 = vld [vmem:[#allocation125_spill] sm:$0xff] }
 0xb9f   :  { %8926 = vmatprep.mubr.msk.bf16.mxu1 %vm9898_vm0, %v14605_v26  ;;  %v15073_v17 = vpack.c.bf16 %v15071_v33, %v15072_v55 }
 0xba1   :  { %v6045_v3 = vpop.f32.mrb[192].mxu1 }
 0xba2   :  { %v6046_v28 = vadd.f32 %v13361_v62, %v6045_v3  ;;  %v8820_v6 = vpop.f32.mrb[193].mxu1 }
 0xba3   :  { %v6048_v50 = vpop.f32.mrb[194].mxu1 }
 0xba4   :  { %6739 = vst.msk [vmem:[%s14392_s7 + $0x330] sm:$0xff] %vm6636_vm5, %v6046_v28  ;;  %v6049_v54 = vadd.f32 %v13361_v62, %v6048_v50  ;;  %v8821_v15 = vpop.f32.mrb[195].mxu1 }
 0xba5   :  { %v15075_v15 = vld [vmem:[#allocation126_spill] sm:$0xff] }
 0xba6   :  { %6740 = vst.msk [vmem:[%s14392_s7 + $0x338] sm:$0xff] %vm6636_vm5, %v6049_v54  ;;  %8927 = vmatmul.mubr.msk.bf16.gmra.mrb[44].mxu1 %vm5223_vm4, %v15070_v35  ;;  %v15074_v54 = vld [vmem:[#allocation127_spill] sm:$0xff] }
 0xba7   :  { %8930 = vmatprep.mubr.msk.bf16.mxu1 %vm9898_vm0, %v14605_v26  ;;  %v15076_v60 = vpack.c.bf16 %v15074_v54, %v15075_v15 }
 0xba9   :  { %v6053_v2 = vpop.f32.mrb[196].mxu1 }
 0xbaa   :  { %v6054_v18 = vadd.f32 %v13361_v62, %v6053_v2  ;;  %v8824_v39 = vpop.f32.mrb[197].mxu1 }
 0xbab   :  { %v6056_v12 = vpop.f32.mrb[198].mxu1 }
 0xbac   :  { %6741 = vst.msk [vmem:[%s14392_s7 + $0x340] sm:$0xff] %vm6636_vm5, %v6054_v18  ;;  %v6057_v61 = vadd.f32 %v13361_v62, %v6056_v12  ;;  %v8825_v40 = vpop.f32.mrb[199].mxu1 }
 0xbad   :  { %v15078_v40 = vld [vmem:[#allocation128_spill] sm:$0xff] }
 0xbae   :  { %6742 = vst.msk [vmem:[%s14392_s7 + $0x348] sm:$0xff] %vm6636_vm5, %v6057_v61  ;;  %8931 = vmatmul.mubr.msk.bf16.gmra.mrb[48].mxu1 %vm5223_vm4, %v15073_v17  ;;  %v15077_v61 = vld [vmem:[#allocation129_spill] sm:$0xff] }
 0xbaf   :  { %8934 = vmatprep.mubr.msk.bf16.mxu1 %vm9898_vm0, %v14605_v26  ;;  %v15079_v33 = vpack.c.bf16 %v15077_v61, %v15078_v40 }
 0xbb1   :  { %v6061_v30 = vpop.f32.mrb[200].mxu1 }
 0xbb2   :  { %v6062_v27 = vadd.f32 %v13361_v62, %v6061_v30  ;;  %v8828_v3 = vpop.f32.mrb[201].mxu1 }
 0xbb3   :  { %v6064_v28 = vpop.f32.mrb[202].mxu1 }
 0xbb4   :  { %6743 = vst.msk [vmem:[%s14392_s7 + $0x350] sm:$0xff] %vm6636_vm5, %v6062_v27  ;;  %v6065_v6 = vadd.f32 %v13361_v62, %v6064_v28  ;;  %v8829_v50 = vpop.f32.mrb[203].mxu1 }
 0xbb5   :  { %v15081_v50 = vld [vmem:[#allocation130_spill] sm:$0xff] }
 0xbb6   :  { %6744 = vst.msk [vmem:[%s14392_s7 + $0x358] sm:$0xff] %vm6636_vm5, %v6065_v6  ;;  %8935 = vmatmul.mubr.msk.bf16.gmra.mrb[52].mxu1 %vm5223_vm4, %v15076_v60  ;;  %v15080_v6 = vld [vmem:[#allocation131_spill] sm:$0xff] }
 0xbb7   :  { %8938 = vmatprep.mubr.msk.bf16.mxu1 %vm9898_vm0, %v14605_v26  ;;  %v15082_v54 = vpack.c.bf16 %v15080_v6, %v15081_v50 }
 0xbb9   :  { %v6069_v11 = vpop.f32.mrb[204].mxu1 }
 0xbba   :  { %v6070_v35 = vadd.f32 %v13361_v62, %v6069_v11  ;;  %v8832_v2 = vpop.f32.mrb[205].mxu1 }
 0xbbb   :  { %v6072_v18 = vpop.f32.mrb[206].mxu1 }
 0xbbc   :  { %6745 = vst.msk [vmem:[%s14392_s7 + $0x360] sm:$0xff] %vm6636_vm5, %v6070_v35  ;;  %v6073_v39 = vadd.f32 %v13361_v62, %v6072_v18  ;;  %v8833_v12 = vpop.f32.mrb[207].mxu1 }
 0xbbd   :  { %v15084_v12 = vld [vmem:[#allocation132_spill] sm:$0xff] }
 0xbbe   :  { %6746 = vst.msk [vmem:[%s14392_s7 + $0x368] sm:$0xff] %vm6636_vm5, %v6073_v39  ;;  %8939 = vmatmul.mubr.msk.bf16.gmra.mrb[56].mxu1 %vm5223_vm4, %v15079_v33  ;;  %v15083_v39 = vld [vmem:[#allocation133_spill] sm:$0xff] }
 0xbbf   :  { %8942 = vmatprep.mubr.msk.bf16.mxu1 %vm9898_vm0, %v14605_v26  ;;  %v15085_v61 = vpack.c.bf16 %v15083_v39, %v15084_v12 }
 0xbc1   :  { %v6077_v55 = vpop.f32.mrb[208].mxu1 }
 0xbc2   :  { %v6078_v17 = vadd.f32 %v13361_v62, %v6077_v55  ;;  %v8836_v30 = vpop.f32.mrb[209].mxu1 }
 0xbc3   :  { %v6080_v27 = vpop.f32.mrb[210].mxu1 }
 0xbc4   :  { %6747 = vst.msk [vmem:[%s14392_s7 + $0x370] sm:$0xff] %vm6636_vm5, %v6078_v17  ;;  %v6081_v3 = vadd.f32 %v13361_v62, %v6080_v27  ;;  %v8837_v28 = vpop.f32.mrb[211].mxu1 }
 0xbc5   :  { %v15087_v28 = vld [vmem:[#allocation134_spill] sm:$0xff] }
 0xbc6   :  { %6748 = vst.msk [vmem:[%s14392_s7 + $0x378] sm:$0xff] %vm6636_vm5, %v6081_v3  ;;  %8943 = vmatmul.mubr.msk.bf16.gmra.mrb[60].mxu1 %vm5223_vm4, %v15082_v54  ;;  %v15086_v3 = vld [vmem:[#allocation135_spill] sm:$0xff] }
 0xbc7   :  { %8946 = vmatprep.mubr.msk.bf16.mxu1 %vm9898_vm0, %v14605_v26  ;;  %v15088_v6 = vpack.c.bf16 %v15086_v3, %v15087_v28 }
 0xbc9   :  { %v6085_v15 = vpop.f32.mrb[212].mxu1 }
 0xbca   :  { %v6086_v60 = vadd.f32 %v13361_v62, %v6085_v15  ;;  %v8840_v11 = vpop.f32.mrb[213].mxu1 }
 0xbcb   :  { %v6088_v35 = vpop.f32.mrb[214].mxu1 }
 0xbcc   :  { %6749 = vst.msk [vmem:[%s14392_s7 + $0x380] sm:$0xff] %vm6636_vm5, %v6086_v60  ;;  %v6089_v2 = vadd.f32 %v13361_v62, %v6088_v35  ;;  %v8841_v18 = vpop.f32.mrb[215].mxu1 }
 0xbcd   :  { %v15090_v18 = vld [vmem:[#allocation136_spill] sm:$0xff] }
 0xbce   :  { %6750 = vst.msk [vmem:[%s14392_s7 + $0x388] sm:$0xff] %vm6636_vm5, %v6089_v2  ;;  %8947 = vmatmul.mubr.msk.bf16.gmra.mrb[64].mxu1 %vm5223_vm4, %v15085_v61  ;;  %v15089_v2 = vld [vmem:[#allocation137_spill] sm:$0xff] }
 0xbcf   :  { %8950 = vmatprep.mubr.msk.bf16.mxu1 %vm9898_vm0, %v14605_v26  ;;  %v15091_v39 = vpack.c.bf16 %v15089_v2, %v15090_v18 }
 0xbd1   :  { %v6093_v40 = vpop.f32.mrb[216].mxu1 }
 0xbd2   :  { %v6094_v33 = vadd.f32 %v13361_v62, %v6093_v40  ;;  %v8844_v55 = vpop.f32.mrb[217].mxu1 }
 0xbd3   :  { %v6096_v17 = vpop.f32.mrb[218].mxu1 }
 0xbd4   :  { %6751 = vst.msk [vmem:[%s14392_s7 + $0x390] sm:$0xff] %vm6636_vm5, %v6094_v33  ;;  %v6097_v30 = vadd.f32 %v13361_v62, %v6096_v17  ;;  %v8845_v27 = vpop.f32.mrb[219].mxu1 }
 0xbd5   :  { %v15093_v27 = vld [vmem:[#allocation138_spill] sm:$0xff] }
 0xbd6   :  { %6752 = vst.msk [vmem:[%s14392_s7 + $0x398] sm:$0xff] %vm6636_vm5, %v6097_v30  ;;  %8951 = vmatmul.mubr.msk.bf16.gmra.mrb[68].mxu1 %vm5223_vm4, %v15088_v6  ;;  %v15092_v30 = vld [vmem:[#allocation139_spill] sm:$0xff] }
 0xbd7   :  { %8954 = vmatprep.mubr.msk.bf16.mxu1 %vm9898_vm0, %v14605_v26  ;;  %v15094_v3 = vpack.c.bf16 %v15092_v30, %v15093_v27 }
 0xbd9   :  { %v6101_v50 = vpop.f32.mrb[220].mxu1 }
 0xbda   :  { %v6102_v54 = vadd.f32 %v13361_v62, %v6101_v50  ;;  %v8848_v15 = vpop.f32.mrb[221].mxu1 }
 0xbdb   :  { %v6104_v60 = vpop.f32.mrb[222].mxu1 }
 0xbdc   :  { %6753 = vst.msk [vmem:[%s14392_s7 + $0x3a0] sm:$0xff] %vm6636_vm5, %v6102_v54  ;;  %v6105_v11 = vadd.f32 %v13361_v62, %v6104_v60  ;;  %v8849_v35 = vpop.f32.mrb[223].mxu1 }
 0xbdd   :  { %v15096_v35 = vld [vmem:[#allocation140_spill] sm:$0xff] }
 0xbde   :  { %6754 = vst.msk [vmem:[%s14392_s7 + $0x3a8] sm:$0xff] %vm6636_vm5, %v6105_v11  ;;  %8955 = vmatmul.mubr.msk.bf16.gmra.mrb[72].mxu1 %vm5223_vm4, %v15091_v39  ;;  %v15095_v11 = vld [vmem:[#allocation141_spill] sm:$0xff] }
 0xbdf   :  { %8958 = vmatprep.mubr.msk.bf16.mxu1 %vm9898_vm0, %v14605_v26  ;;  %v15097_v2 = vpack.c.bf16 %v15095_v11, %v15096_v35 }
 0xbe1   :  { %v6109_v12 = vpop.f32.mrb[224].mxu1 }
 0xbe2   :  { %v6110_v61 = vadd.f32 %v13361_v62, %v6109_v12  ;;  %v8852_v40 = vpop.f32.mrb[225].mxu1 }
 0xbe3   :  { %v6112_v33 = vpop.f32.mrb[226].mxu1 }
 0xbe4   :  { %6755 = vst.msk [vmem:[%s14392_s7 + $0x3b0] sm:$0xff] %vm6636_vm5, %v6110_v61  ;;  %v6113_v55 = vadd.f32 %v13361_v62, %v6112_v33  ;;  %v8853_v17 = vpop.f32.mrb[227].mxu1 }
 0xbe5   :  { %v15099_v17 = vld [vmem:[#allocation142_spill] sm:$0xff] }
 0xbe6   :  { %6756 = vst.msk [vmem:[%s14392_s7 + $0x3b8] sm:$0xff] %vm6636_vm5, %v6113_v55  ;;  %8959 = vmatmul.mubr.msk.bf16.gmra.mrb[76].mxu1 %vm5223_vm4, %v15094_v3  ;;  %v15098_v55 = vld [vmem:[#allocation143_spill] sm:$0xff] }
 0xbe7   :  { %8962 = vmatprep.mubr.msk.bf16.mxu1 %vm9898_vm0, %v14605_v26  ;;  %v15100_v30 = vpack.c.bf16 %v15098_v55, %v15099_v17 }
 0xbe9   :  { %v6117_v28 = vpop.f32.mrb[228].mxu1 }
 0xbea   :  { %v6118_v6 = vadd.f32 %v13361_v62, %v6117_v28  ;;  %v8856_v50 = vpop.f32.mrb[229].mxu1 }
 0xbeb   :  { %v6120_v54 = vpop.f32.mrb[230].mxu1 }
 0xbec   :  { %6757 = vst.msk [vmem:[%s14392_s7 + $0x3c0] sm:$0xff] %vm6636_vm5, %v6118_v6  ;;  %v6121_v15 = vadd.f32 %v13361_v62, %v6120_v54  ;;  %v8857_v60 = vpop.f32.mrb[231].mxu1 }
 0xbed   :  { %v15102_v60 = vld [vmem:[#allocation144_spill] sm:$0xff] }
 0xbee   :  { %6758 = vst.msk [vmem:[%s14392_s7 + $0x3c8] sm:$0xff] %vm6636_vm5, %v6121_v15  ;;  %8963 = vmatmul.mubr.msk.bf16.gmra.mrb[80].mxu1 %vm5223_vm4, %v15097_v2  ;;  %v15101_v15 = vld [vmem:[#allocation145_spill] sm:$0xff] }
 0xbef   :  { %8966 = vmatprep.mubr.msk.bf16.mxu1 %vm9898_vm0, %v14605_v26  ;;  %v15103_v11 = vpack.c.bf16 %v15101_v15, %v15102_v60 }
 0xbf1   :  { %v6125_v18 = vpop.f32.mrb[232].mxu1 }
 0xbf2   :  { %v6126_v39 = vadd.f32 %v13361_v62, %v6125_v18  ;;  %v8860_v12 = vpop.f32.mrb[233].mxu1 }
 0xbf3   :  { %v6128_v61 = vpop.f32.mrb[234].mxu1 }
 0xbf4   :  { %6759 = vst.msk [vmem:[%s14392_s7 + $0x3d0] sm:$0xff] %vm6636_vm5, %v6126_v39  ;;  %v6129_v40 = vadd.f32 %v13361_v62, %v6128_v61  ;;  %v8861_v33 = vpop.f32.mrb[235].mxu1 }
 0xbf5   :  { %v15105_v33 = vld [vmem:[#allocation146_spill] sm:$0xff] }
 0xbf6   :  { %6760 = vst.msk [vmem:[%s14392_s7 + $0x3d8] sm:$0xff] %vm6636_vm5, %v6129_v40  ;;  %8967 = vmatmul.mubr.msk.bf16.gmra.mrb[84].mxu1 %vm5223_vm4, %v15100_v30  ;;  %v15104_v40 = vld [vmem:[#allocation147_spill] sm:$0xff] }
 0xbf7   :  { %8970 = vmatprep.mubr.msk.bf16.mxu1 %vm9898_vm0, %v14605_v26  ;;  %v15106_v55 = vpack.c.bf16 %v15104_v40, %v15105_v33 }
 0xbf9   :  { %v6133_v27 = vpop.f32.mrb[236].mxu1 }
 0xbfa   :  { %v6134_v3 = vadd.f32 %v13361_v62, %v6133_v27  ;;  %v8864_v28 = vpop.f32.mrb[237].mxu1 }
 0xbfb   :  { %v6136_v6 = vpop.f32.mrb[238].mxu1 }
 0xbfc   :  { %6761 = vst.msk [vmem:[%s14392_s7 + $0x3e0] sm:$0xff] %vm6636_vm5, %v6134_v3  ;;  %v6137_v50 = vadd.f32 %v13361_v62, %v6136_v6  ;;  %v8865_v54 = vpop.f32.mrb[239].mxu1 }
 0xbfd   :  { %v15108_v54 = vld [vmem:[#allocation148_spill] sm:$0xff] }
 0xbfe   :  { %6762 = vst.msk [vmem:[%s14392_s7 + $0x3e8] sm:$0xff] %vm6636_vm5, %v6137_v50  ;;  %8971 = vmatmul.mubr.msk.bf16.gmra.mrb[88].mxu1 %vm5223_vm4, %v15103_v11  ;;  %v15107_v50 = vld [vmem:[#allocation149_spill] sm:$0xff] }
 0xbff   :  { %8974 = vmatprep.mubr.msk.bf16.mxu1 %vm9898_vm0, %v14605_v26  ;;  %v15109_v15 = vpack.c.bf16 %v15107_v50, %v15108_v54 }
 0xc01   :  { %v6141_v35 = vpop.f32.mrb[240].mxu1 }
 0xc02   :  { %v6142_v2 = vadd.f32 %v13361_v62, %v6141_v35  ;;  %v8868_v18 = vpop.f32.mrb[241].mxu1 }
 0xc03   :  { %v6144_v39 = vpop.f32.mrb[242].mxu1 }
 0xc04   :  { %6763 = vst.msk [vmem:[%s14392_s7 + $0x3f0] sm:$0xff] %vm6636_vm5, %v6142_v2  ;;  %v6145_v12 = vadd.f32 %v13361_v62, %v6144_v39  ;;  %v8869_v61 = vpop.f32.mrb[243].mxu1 }
 0xc05   :  { %v15111_v61 = vld [vmem:[#allocation150_spill] sm:$0xff] }
 0xc06   :  { %6764 = vst.msk [vmem:[%s14392_s7 + $0x3f8] sm:$0xff] %vm6636_vm5, %v6145_v12  ;;  %8975 = vmatmul.mubr.msk.bf16.gmra.mrb[92].mxu1 %vm5223_vm4, %v15106_v55  ;;  %v15110_v12 = vld [vmem:[#allocation151_spill] sm:$0xff] }
 0xc07   :  { %8978 = vmatprep.mubr.msk.bf16.mxu1 %vm9898_vm0, %v14605_v26  ;;  %v15112_v40 = vpack.c.bf16 %v15110_v12, %v15111_v61 }
 0xc09   :  { %v6149_v17 = vpop.f32.mrb[244].mxu1 }
 0xc0a   :  { %v6150_v30 = vadd.f32 %v13361_v62, %v6149_v17  ;;  %v8872_v27 = vpop.f32.mrb[245].mxu1 }
 0xc0b   :  { %v6152_v3 = vpop.f32.mrb[246].mxu1 }
 0xc0c   :  { %6765 = vst.msk [vmem:[%s14392_s7 + $0x400] sm:$0xff] %vm6636_vm5, %v6150_v30  ;;  %v6153_v28 = vadd.f32 %v13361_v62, %v6152_v3  ;;  %v8873_v6 = vpop.f32.mrb[247].mxu1 }
 0xc0d   :  { %v15114_v6 = vld [vmem:[#allocation152_spill] sm:$0xff] }
 0xc0e   :  { %6766 = vst.msk [vmem:[%s14392_s7 + $0x408] sm:$0xff] %vm6636_vm5, %v6153_v28  ;;  %8979 = vmatmul.mubr.msk.bf16.gmra.mrb[96].mxu1 %vm5223_vm4, %v15109_v15  ;;  %v15113_v28 = vld [vmem:[#allocation153_spill] sm:$0xff] }
 0xc0f   :  { %8982 = vmatprep.mubr.msk.bf16.mxu1 %vm9898_vm0, %v14605_v26  ;;  %v15115_v50 = vpack.c.bf16 %v15113_v28, %v15114_v6 }
 0xc11   :  { %v6157_v60 = vpop.f32.mrb[248].mxu1 }
 0xc12   :  { %v6158_v11 = vadd.f32 %v13361_v62, %v6157_v60  ;;  %v8876_v35 = vpop.f32.mrb[249].mxu1 }
 0xc13   :  { %v6160_v2 = vpop.f32.mrb[250].mxu1 }
 0xc14   :  { %6767 = vst.msk [vmem:[%s14392_s7 + $0x410] sm:$0xff] %vm6636_vm5, %v6158_v11  ;;  %v6161_v18 = vadd.f32 %v13361_v62, %v6160_v2  ;;  %v8877_v39 = vpop.f32.mrb[251].mxu1 }
 0xc15   :  { %v15117_v39 = vld [vmem:[#allocation154_spill] sm:$0xff] }
 0xc16   :  { %6768 = vst.msk [vmem:[%s14392_s7 + $0x418] sm:$0xff] %vm6636_vm5, %v6161_v18  ;;  %8983 = vmatmul.mubr.msk.bf16.gmra.mrb[100].mxu1 %vm5223_vm4, %v15112_v40  ;;  %v15116_v18 = vld [vmem:[#allocation155_spill] sm:$0xff] }
 0xc17   :  { %8986 = vmatprep.mubr.msk.bf16.mxu1 %vm9898_vm0, %v14605_v26  ;;  %v15118_v12 = vpack.c.bf16 %v15116_v18, %v15117_v39 }
 0xc19   :  { %v6165_v33 = vpop.f32.mrb[252].mxu1 }
 0xc1a   :  { %v6166_v55 = vadd.f32 %v13361_v62, %v6165_v33  ;;  %v8880_v17 = vpop.f32.mrb[253].mxu1 }
 0xc1b   :  { %v6168_v30 = vpop.f32.mrb[254].mxu1 }
 0xc1c   :  { %6769 = vst.msk [vmem:[%s14392_s7 + $0x420] sm:$0xff] %vm6636_vm5, %v6166_v55  ;;  %v6169_v27 = vadd.f32 %v13361_v62, %v6168_v30  ;;  %v8881_v3 = vpop.f32.mrb[255].mxu1 }
 0xc1d   :  { %v15120_v3 = vld [vmem:[#allocation156_spill] sm:$0xff] }
 0xc1e   :  { %6770 = vst.msk [vmem:[%s14392_s7 + $0x428] sm:$0xff] %vm6636_vm5, %v6169_v27  ;;  %8987 = vmatmul.mubr.msk.bf16.gmra.mrb[104].mxu1 %vm5223_vm4, %v15115_v50  ;;  %v15119_v27 = vld [vmem:[#allocation157_spill] sm:$0xff] }
 0xc1f   :  { %8990 = vmatprep.mubr.msk.bf16.mxu1 %vm9898_vm0, %v14605_v26  ;;  %v15121_v28 = vpack.c.bf16 %v15119_v27, %v15120_v3 }
 0xc21   :  { %v6173_v54 = vpop.f32.mrb[0].mxu1 }
 0xc22   :  { %v6174_v15 = vadd.f32 %v13361_v62, %v6173_v54  ;;  %v8884_v60 = vpop.f32.mrb[1].mxu1 }
 0xc23   :  { %v6176_v11 = vpop.f32.mrb[2].mxu1 }
 0xc24   :  { %6771 = vst.msk [vmem:[%s14392_s7 + $0x430] sm:$0xff] %vm6636_vm5, %v6174_v15  ;;  %v6177_v35 = vadd.f32 %v13361_v62, %v6176_v11  ;;  %v8885_v2 = vpop.f32.mrb[3].mxu1 }
 0xc26   :  { %6772 = vst.msk [vmem:[%s14392_s7 + $0x438] sm:$0xff] %vm6636_vm5, %v6177_v35  ;;  %8991 = vmatmul.mubr.msk.bf16.gmra.mrb[108].mxu1 %vm5223_vm4, %v15118_v12  ;;  %v15122_v35 = vpack.c.bf16 %v12143_v7, %v12140_v63  ;;  %v15123_v63 = vpack.c.bf16 %v12156_v5, %v12153_v49  ;;  %v15124_v49 = vld [vmem:[#allocation159_spill] sm:$0xff]  ;;  %v15125_v5 = vld [vmem:[#allocation158_spill] sm:$0xff] }
 0xc27   :  { %8994 = vmatprep.mubr.msk.bf16.mxu1 %vm9898_vm0, %v14605_v26  ;;  %v15126_v3 = vpack.c.bf16 %v15124_v49, %v15125_v5 }
 0xc29   :  { %v6181_v61 = vpop.f32.mrb[4].mxu1 }
 0xc2a   :  { %v6182_v40 = vadd.f32 %v13361_v62, %v6181_v61  ;;  %v8888_v33 = vpop.f32.mrb[5].mxu1 }
 0xc2b   :  { %v6184_v55 = vpop.f32.mrb[6].mxu1 }
 0xc2c   :  { %6773 = vst.msk [vmem:[%s14392_s7 + $0x440] sm:$0xff] %vm6636_vm5, %v6182_v40  ;;  %v6185_v17 = vadd.f32 %v13361_v62, %v6184_v55  ;;  %v8889_v30 = vpop.f32.mrb[7].mxu1 }
 0xc2e   :  { %6774 = vst.msk [vmem:[%s14392_s7 + $0x448] sm:$0xff] %vm6636_vm5, %v6185_v17  ;;  %8995 = vmatmul.mubr.msk.bf16.gmra.mrb[112].mxu1 %vm5223_vm4, %v15121_v28 }
 0xc2f   :  { %8998 = vmatprep.mubr.msk.bf16.mxu1 %vm9898_vm0, %v14605_v26 }
 0xc31   :  { %v6189_v6 = vpop.f32.mrb[8].mxu1 }
 0xc32   :  { %v6190_v50 = vadd.f32 %v13361_v62, %v6189_v6  ;;  %v8892_v54 = vpop.f32.mrb[9].mxu1 }
 0xc33   :  { %v6192_v15 = vpop.f32.mrb[10].mxu1 }
 0xc34   :  { %6775 = vst.msk [vmem:[%s14392_s7 + $0x450] sm:$0xff] %vm6636_vm5, %v6190_v50  ;;  %v6193_v60 = vadd.f32 %v13361_v62, %v6192_v15  ;;  %v8893_v11 = vpop.f32.mrb[11].mxu1 }
 0xc35   :  { %v15127_v11 = vld [vmem:[#allocation91_spill] sm:$0xff] }
 0xc36   :  { %6776 = vst.msk [vmem:[%s14392_s7 + $0x458] sm:$0xff] %vm6636_vm5, %v6193_v60  ;;  %8999 = vmatmul.mubr.msk.bf16.gmra.mrb[116].mxu1 %vm5223_vm4, %v15122_v35  ;;  %v15128_v35 = vld [vmem:[#allocation92_spill] sm:$0xff] }
 0xc37   :  { %9002 = vmatprep.mubr.msk.bf16.mxu1 %vm9898_vm0, %v14605_v26 }
 0xc39   :  { %v6197_v2 = vpop.f32.mrb[12].mxu1 }
 0xc3a   :  { %v6198_v18 = vadd.f32 %v13361_v62, %v6197_v2  ;;  %v8896_v39 = vpop.f32.mrb[13].mxu1  ;;  %v15129_v2 = vpack.c.bf16 %v15127_v11, %v15128_v35 }
 0xc3b   :  { %v6200_v12 = vpop.f32.mrb[14].mxu1 }
 0xc3c   :  { %6777 = vst.msk [vmem:[%s14392_s7 + $0x460] sm:$0xff] %vm6636_vm5, %v6198_v18  ;;  %v6201_v61 = vadd.f32 %v13361_v62, %v6200_v12  ;;  %v8897_v40 = vpop.f32.mrb[15].mxu1 }
 0xc3e   :  { %6778 = vst.msk [vmem:[%s14392_s7 + $0x468] sm:$0xff] %vm6636_vm5, %v6201_v61  ;;  %9003 = vmatmul.mubr.msk.bf16.gmra.mrb[120].mxu1 %vm5223_vm4, %v15123_v63 }
 0xc3f   :  { %9006 = vmatprep.mubr.msk.bf16.mxu1 %vm9898_vm0, %v14605_v26 }
 0xc41   :  { %v6205_v7 = vpop.f32.mrb[16].mxu1 }
 0xc42   :  { %v6206_v33 = vadd.f32 %v13361_v62, %v6205_v7  ;;  %v8900_v55 = vpop.f32.mrb[17].mxu1  ;;  %v15130_v7 = vld [vmem:[#allocation93_spill] sm:$0xff] }
 0xc43   :  { %v6208_v17 = vpop.f32.mrb[18].mxu1 }
 0xc44   :  { %6779 = vst.msk [vmem:[%s14392_s7 + $0x470] sm:$0xff] %vm6636_vm5, %v6206_v33  ;;  %v6209_v30 = vadd.f32 %v13361_v62, %v6208_v17  ;;  %v8901_v27 = vpop.f32.mrb[19].mxu1  ;;  %v15131_v33 = vld [vmem:[#allocation94_spill] sm:$0xff] }
 0xc45   :  { %v15132_v55 = vpack.c.bf16 %v15130_v7, %v15131_v33 }
 0xc46   :  { %6780 = vst.msk [vmem:[%s14392_s7 + $0x478] sm:$0xff] %vm6636_vm5, %v6209_v30  ;;  %9007 = vmatmul.mubr.msk.bf16.gmra.mrb[124].mxu1 %vm5223_vm4, %v15126_v3 }
 0xc47   :  { %9010 = vmatprep.mubr.msk.bf16.mxu1 %vm9898_vm0, %v14605_v26 }
 0xc49   :  { %v6213_v28 = vpop.f32.mrb[20].mxu1 }
 0xc4a   :  { %v6214_v6 = vadd.f32 %v13361_v62, %v6213_v28  ;;  %v8904_v50 = vpop.f32.mrb[21].mxu1  ;;  %v15133_v28 = vld [vmem:[#allocation95_spill] sm:$0xff] }
 0xc4b   :  { %v6216_v54 = vpop.f32.mrb[22].mxu1 }
 0xc4c   :  { %6781 = vst.msk [vmem:[%s14392_s7 + $0x480] sm:$0xff] %vm6636_vm5, %v6214_v6  ;;  %v6217_v15 = vadd.f32 %v13361_v62, %v6216_v54  ;;  %v8905_v60 = vpop.f32.mrb[23].mxu1  ;;  %v15134_v6 = vld [vmem:[#allocation96_spill] sm:$0xff] }
 0xc4d   :  { %v15135_v50 = vpack.c.bf16 %v15133_v28, %v15134_v6 }
 0xc4e   :  { %6782 = vst.msk [vmem:[%s14392_s7 + $0x488] sm:$0xff] %vm6636_vm5, %v6217_v15  ;;  %9011 = vmatmul.mubr.msk.bf16.gmra.mrb[128].mxu1 %vm5223_vm4, %v15129_v2 }
 0xc4f   :  { %9014 = vmatprep.mubr.msk.bf16.mxu1 %vm9898_vm0, %v14605_v26 }
 0xc51   :  { %v6221_v18 = vpop.f32.mrb[24].mxu1 }
 0xc52   :  { %v6222_v39 = vadd.f32 %v13361_v62, %v6221_v18  ;;  %v8908_v12 = vpop.f32.mrb[25].mxu1  ;;  %v15136_v18 = vld [vmem:[#allocation97_spill] sm:$0xff] }
 0xc53   :  { %v6224_v61 = vpop.f32.mrb[26].mxu1 }
 0xc54   :  { %6783 = vst.msk [vmem:[%s14392_s7 + $0x490] sm:$0xff] %vm6636_vm5, %v6222_v39  ;;  %v6225_v40 = vadd.f32 %v13361_v62, %v6224_v61  ;;  %v8909_v63 = vpop.f32.mrb[27].mxu1  ;;  %v15137_v39 = vld [vmem:[#allocation98_spill] sm:$0xff] }
 0xc55   :  { %v15138_v12 = vpack.c.bf16 %v15136_v18, %v15137_v39 }
 0xc56   :  { %6784 = vst.msk [vmem:[%s14392_s7 + $0x498] sm:$0xff] %vm6636_vm5, %v6225_v40  ;;  %9015 = vmatmul.mubr.msk.bf16.gmra.mrb[132].mxu1 %vm5223_vm4, %v15132_v55 }
 0xc57   :  { %9018 = vmatprep.mubr.msk.bf16.mxu1 %vm9898_vm0, %v14605_v26 }
 0xc59   :  { %v6229_v17 = vpop.f32.mrb[28].mxu1 }
 0xc5a   :  { %v6230_v30 = vadd.f32 %v13361_v62, %v6229_v17  ;;  %v8912_v27 = vpop.f32.mrb[29].mxu1  ;;  %v15139_v17 = vld [vmem:[#allocation99_spill] sm:$0xff] }
 0xc5b   :  { %v6232_v49 = vpop.f32.mrb[30].mxu1 }
 0xc5c   :  { %6785 = vst.msk [vmem:[%s14392_s7 + $0x4a0] sm:$0xff] %vm6636_vm5, %v6230_v30  ;;  %v6233_v5 = vadd.f32 %v13361_v62, %v6232_v49  ;;  %v8913_v3 = vpop.f32.mrb[31].mxu1  ;;  %v15140_v30 = vld [vmem:[#allocation100_spill] sm:$0xff] }
 0xc5d   :  { %v15141_v27 = vpack.c.bf16 %v15139_v17, %v15140_v30 }
 0xc5e   :  { %6786 = vst.msk [vmem:[%s14392_s7 + $0x4a8] sm:$0xff] %vm6636_vm5, %v6233_v5  ;;  %9019 = vmatmul.mubr.msk.bf16.gmra.mrb[136].mxu1 %vm5223_vm4, %v15135_v50 }
 0xc5f   :  { %9022 = vmatprep.mubr.msk.bf16.mxu1 %vm9898_vm0, %v14605_v26 }
 0xc61   :  { %v6237_v54 = vpop.f32.mrb[32].mxu1 }
 0xc62   :  { %v6238_v15 = vadd.f32 %v13361_v62, %v6237_v54  ;;  %v8916_v60 = vpop.f32.mrb[33].mxu1  ;;  %v15142_v54 = vld [vmem:[#allocation101_spill] sm:$0xff] }
 0xc63   :  { %v6240_v11 = vpop.f32.mrb[34].mxu1 }
 0xc64   :  { %6787 = vst.msk [vmem:[%s14392_s7 + $0x4b0] sm:$0xff] %vm6636_vm5, %v6238_v15  ;;  %v6241_v35 = vadd.f32 %v13361_v62, %v6240_v11  ;;  %v8917_v2 = vpop.f32.mrb[35].mxu1  ;;  %v15143_v15 = vld [vmem:[#allocation102_spill] sm:$0xff] }
 0xc65   :  { %v15144_v60 = vpack.c.bf16 %v15142_v54, %v15143_v15 }
 0xc66   :  { %6788 = vst.msk [vmem:[%s14392_s7 + $0x4b8] sm:$0xff] %vm6636_vm5, %v6241_v35  ;;  %9023 = vmatmul.mubr.msk.bf16.gmra.mrb[140].mxu1 %vm5223_vm4, %v15138_v12 }
 0xc67   :  { %9026 = vmatprep.mubr.msk.bf16.mxu1 %vm9898_vm0, %v14605_v26 }
 0xc69   :  { %v6245_v61 = vpop.f32.mrb[36].mxu1 }
 0xc6a   :  { %v6246_v40 = vadd.f32 %v13361_v62, %v6245_v61  ;;  %v8920_v63 = vpop.f32.mrb[37].mxu1  ;;  %v15145_v61 = vld [vmem:[#allocation103_spill] sm:$0xff] }
 0xc6b   :  { %v6248_v7 = vpop.f32.mrb[38].mxu1 }
 0xc6c   :  { %6789 = vst.msk [vmem:[%s14392_s7 + $0x4c0] sm:$0xff] %vm6636_vm5, %v6246_v40  ;;  %v6249_v33 = vadd.f32 %v13361_v62, %v6248_v7  ;;  %v8921_v55 = vpop.f32.mrb[39].mxu1  ;;  %v15146_v40 = vld [vmem:[#allocation104_spill] sm:$0xff] }
 0xc6d   :  { %v15147_v63 = vpack.c.bf16 %v15145_v61, %v15146_v40 }
 0xc6e   :  { %6790 = vst.msk [vmem:[%s14392_s7 + $0x4c8] sm:$0xff] %vm6636_vm5, %v6249_v33  ;;  %9027 = vmatmul.mubr.msk.bf16.gmra.mrb[144].mxu1 %vm5223_vm4, %v15141_v27 }
 0xc6f   :  { %9030 = vmatprep.mubr.msk.bf16.mxu1 %vm9898_vm0, %v14605_v26 }
 0xc71   :  { %v6253_v49 = vpop.f32.mrb[40].mxu1 }
 0xc72   :  { %v6254_v5 = vadd.f32 %v13361_v62, %v6253_v49  ;;  %v8924_v3 = vpop.f32.mrb[41].mxu1  ;;  %v15148_v49 = vld [vmem:[#allocation106_spill] sm:$0xff] }
 0xc73   :  { %v6256_v28 = vpop.f32.mrb[42].mxu1 }
 0xc74   :  { %6791 = vst.msk [vmem:[%s14392_s7 + $0x4d0] sm:$0xff] %vm6636_vm5, %v6254_v5  ;;  %v6257_v6 = vadd.f32 %v13361_v62, %v6256_v28  ;;  %v8925_v50 = vpop.f32.mrb[43].mxu1  ;;  %v15149_v5 = vpack.c.bf16 %v12281_v38, %v15148_v49  ;;  %v15150_v38 = vpack.c.bf16 %v12295_v0, %v12292_v43  ;;  %v15151_v43 = vpack.c.bf16 %v12309_v8, %v12306_v36 }
 0xc75   :  { %v15152_v36 = vpack.c.bf16 %v12323_v42, %v12320_v23  ;;  %v15153_v23 = vpack.c.bf16 %v12337_v16, %v12334_v53  ;;  %v15154_v53 = vpack.c.bf16 %v12351_v22, %v12348_v31  ;;  %v15155_v31 = vpack.c.bf16 %v12365_v41, %v12362_v48 }
 0xc76   :  { %6792 = vst.msk [vmem:[%s14392_s7 + $0x4d8] sm:$0xff] %vm6636_vm5, %v6257_v6  ;;  %9031 = vmatmul.mubr.msk.bf16.gmra.mrb[148].mxu1 %vm5223_vm4, %v15144_v60  ;;  %v15156_v48 = vpack.c.bf16 %v12379_v1, %v12376_v52  ;;  %v15157_v52 = vpack.c.bf16 %v12393_v37, %v12390_v47  ;;  %v15158_v47 = vpack.c.bf16 %v12407_v19, %v12404_v57 }
 0xc77   :  { %9034 = vmatprep.mubr.msk.bf16.mxu1 %vm9898_vm0, %v14605_v26  ;;  %v15159_v57 = vpack.c.bf16 %v12421_v20, %v12418_v4  ;;  %v15160_v4 = vpack.c.bf16 %v12435_v32, %v12432_v14  ;;  %v15161_v14 = vpack.c.bf16 %v12449_v58, %v12446_v24  ;;  %v15162_v24 = vpack.c.bf16 %v12463_v44, %v12460_v34 }
 0xc78   :  { %v15163_v34 = vpack.c.bf16 %v12477_v13, %v12474_v46  ;;  %v15164_v46 = vpack.c.bf16 %v12491_v45, %v12488_v59  ;;  %v15165_v59 = vpack.c.bf16 %v12505_v10, %v12502_v9  ;;  %v15166_v9 = vpack.c.bf16 %v12519_v29, %v12516_v56 }
 0xc79   :  { %v6261_v11 = vpop.f32.mrb[44].mxu1 }
 0xc7a   :  { %v6262_v35 = vadd.f32 %v13361_v62, %v6261_v11  ;;  %v8928_v2 = vpop.f32.mrb[45].mxu1 }
 0xc7b   :  { %v6264_v18 = vpop.f32.mrb[46].mxu1 }
 0xc7c   :  { %6793 = vst.msk [vmem:[%s14392_s7 + $0x4e0] sm:$0xff] %vm6636_vm5, %v6262_v35  ;;  %v6265_v39 = vadd.f32 %v13361_v62, %v6264_v18  ;;  %v8929_v12 = vpop.f32.mrb[47].mxu1 }
 0xc7e   :  { %6794 = vst.msk [vmem:[%s14392_s7 + $0x4e8] sm:$0xff] %vm6636_vm5, %v6265_v39  ;;  %9035 = vmatmul.mubr.msk.bf16.gmra.mrb[152].mxu1 %vm5223_vm4, %v15147_v63 }
 0xc7f   :  { %9038 = vmatprep.mubr.msk.bf16.mxu1 %vm9898_vm0, %v14605_v26 }
 0xc81   :  { %v6269_v7 = vpop.f32.mrb[48].mxu1 }
 0xc82   :  { %v6270_v33 = vadd.f32 %v13361_v62, %v6269_v7  ;;  %v8932_v55 = vpop.f32.mrb[49].mxu1 }
 0xc83   :  { %v6272_v17 = vpop.f32.mrb[50].mxu1 }
 0xc84   :  { %6795 = vst.msk [vmem:[%s14392_s7 + $0x4f0] sm:$0xff] %vm6636_vm5, %v6270_v33  ;;  %v6273_v30 = vadd.f32 %v13361_v62, %v6272_v17  ;;  %v8933_v27 = vpop.f32.mrb[51].mxu1 }
 0xc86   :  { %6796 = vst.msk [vmem:[%s14392_s7 + $0x4f8] sm:$0xff] %vm6636_vm5, %v6273_v30  ;;  %9039 = vmatmul.mubr.msk.bf16.gmra.mrb[156].mxu1 %vm5223_vm4, %v15149_v5 }
 0xc87   :  { %9042 = vmatprep.mubr.msk.bf16.mxu1 %vm9898_vm0, %v14605_v26 }
 0xc89   :  { %v6277_v3 = vpop.f32.mrb[52].mxu1 }
 0xc8a   :  { %v6278_v28 = vadd.f32 %v13361_v62, %v6277_v3  ;;  %v8936_v6 = vpop.f32.mrb[53].mxu1 }
 0xc8b   :  { %v6280_v50 = vpop.f32.mrb[54].mxu1 }
 0xc8c   :  { %6797 = vst.msk [vmem:[%s14392_s7 + $0x500] sm:$0xff] %vm6636_vm5, %v6278_v28  ;;  %v6281_v54 = vadd.f32 %v13361_v62, %v6280_v50  ;;  %v8937_v15 = vpop.f32.mrb[55].mxu1 }
 0xc8e   :  { %6798 = vst.msk [vmem:[%s14392_s7 + $0x508] sm:$0xff] %vm6636_vm5, %v6281_v54  ;;  %9043 = vmatmul.mubr.msk.bf16.gmra.mrb[160].mxu1 %vm5223_vm4, %v15150_v38 }
 0xc8f   :  { %9046 = vmatprep.mubr.msk.bf16.mxu1 %vm9898_vm0, %v14605_v26 }
 0xc91   :  { %v6285_v60 = vpop.f32.mrb[56].mxu1 }
 0xc92   :  { %v6286_v11 = vadd.f32 %v13361_v62, %v6285_v60  ;;  %v8940_v35 = vpop.f32.mrb[57].mxu1 }
 0xc93   :  { %v6288_v2 = vpop.f32.mrb[58].mxu1 }
 0xc94   :  { %6799 = vst.msk [vmem:[%s14392_s7 + $0x510] sm:$0xff] %vm6636_vm5, %v6286_v11  ;;  %v6289_v18 = vadd.f32 %v13361_v62, %v6288_v2  ;;  %v8941_v39 = vpop.f32.mrb[59].mxu1 }
 0xc96   :  { %6800 = vst.msk [vmem:[%s14392_s7 + $0x518] sm:$0xff] %vm6636_vm5, %v6289_v18  ;;  %9047 = vmatmul.mubr.msk.bf16.gmra.mrb[164].mxu1 %vm5223_vm4, %v15151_v43 }
 0xc97   :  { %9050 = vmatprep.mubr.msk.bf16.mxu1 %vm9898_vm0, %v14605_v26 }
 0xc99   :  { %v6293_v0 = vpop.f32.mrb[60].mxu1 }
 0xc9a   :  { %v6294_v12 = vadd.f32 %v13361_v62, %v6293_v0  ;;  %v8944_v61 = vpop.f32.mrb[61].mxu1 }
 0xc9b   :  { %v6296_v40 = vpop.f32.mrb[62].mxu1 }
 0xc9c   :  { %6801 = vst.msk [vmem:[%s14392_s7 + $0x520] sm:$0xff] %vm6636_vm5, %v6294_v12  ;;  %v6297_v63 = vadd.f32 %v13361_v62, %v6296_v40  ;;  %v8945_v7 = vpop.f32.mrb[63].mxu1 }
 0xc9e   :  { %6802 = vst.msk [vmem:[%s14392_s7 + $0x528] sm:$0xff] %vm6636_vm5, %v6297_v63  ;;  %9051 = vmatmul.mubr.msk.bf16.gmra.mrb[168].mxu1 %vm5223_vm4, %v15152_v36 }
 0xc9f   :  { %9054 = vmatprep.mubr.msk.bf16.mxu1 %vm9898_vm0, %v14605_v26 }
 0xca1   :  { %v6301_v8 = vpop.f32.mrb[64].mxu1 }
 0xca2   :  { %v6302_v33 = vadd.f32 %v13361_v62, %v6301_v8  ;;  %v8948_v55 = vpop.f32.mrb[65].mxu1 }
 0xca3   :  { %v6304_v17 = vpop.f32.mrb[66].mxu1 }
 0xca4   :  { %6803 = vst.msk [vmem:[%s14392_s7 + $0x530] sm:$0xff] %vm6636_vm5, %v6302_v33  ;;  %v6305_v30 = vadd.f32 %v13361_v62, %v6304_v17  ;;  %v8949_v27 = vpop.f32.mrb[67].mxu1 }
 0xca6   :  { %6804 = vst.msk [vmem:[%s14392_s7 + $0x538] sm:$0xff] %vm6636_vm5, %v6305_v30  ;;  %9055 = vmatmul.mubr.msk.bf16.gmra.mrb[172].mxu1 %vm5223_vm4, %v15153_v23 }
 0xca7   :  { %9058 = vmatprep.mubr.msk.bf16.mxu1 %vm9898_vm0, %v14605_v26 }
 0xca9   :  { %v6309_v42 = vpop.f32.mrb[68].mxu1 }
 0xcaa   :  { %v6310_v49 = vadd.f32 %v13361_v62, %v6309_v42  ;;  %v8952_v5 = vpop.f32.mrb[69].mxu1 }
 0xcab   :  { %v6312_v3 = vpop.f32.mrb[70].mxu1 }
 0xcac   :  { %6805 = vst.msk [vmem:[%s14392_s7 + $0x540] sm:$0xff] %vm6636_vm5, %v6310_v49  ;;  %v6313_v28 = vadd.f32 %v13361_v62, %v6312_v3  ;;  %v8953_v6 = vpop.f32.mrb[71].mxu1 }
 0xcae   :  { %6806 = vst.msk [vmem:[%s14392_s7 + $0x548] sm:$0xff] %vm6636_vm5, %v6313_v28  ;;  %9059 = vmatmul.mubr.msk.bf16.gmra.mrb[176].mxu1 %vm5223_vm4, %v15154_v53 }
 0xcaf   :  { %9062 = vmatprep.mubr.msk.bf16.mxu1 %vm9898_vm0, %v14605_v26 }
 0xcb1   :  { %v6317_v16 = vpop.f32.mrb[72].mxu1 }
 0xcb2   :  { %v6318_v50 = vadd.f32 %v13361_v62, %v6317_v16  ;;  %v8956_v54 = vpop.f32.mrb[73].mxu1 }
 0xcb3   :  { %v6320_v15 = vpop.f32.mrb[74].mxu1 }
 0xcb4   :  { %6807 = vst.msk [vmem:[%s14392_s7 + $0x550] sm:$0xff] %vm6636_vm5, %v6318_v50  ;;  %v6321_v38 = vadd.f32 %v13361_v62, %v6320_v15  ;;  %v8957_v60 = vpop.f32.mrb[75].mxu1 }
 0xcb6   :  { %6808 = vst.msk [vmem:[%s14392_s7 + $0x558] sm:$0xff] %vm6636_vm5, %v6321_v38  ;;  %9063 = vmatmul.mubr.msk.bf16.gmra.mrb[180].mxu1 %vm5223_vm4, %v15155_v31 }
 0xcb7   :  { %9066 = vmatprep.mubr.msk.bf16.mxu1 %vm9898_vm0, %v14605_v26 }
 0xcb9   :  { %v6325_v22 = vpop.f32.mrb[76].mxu1 }
 0xcba   :  { %v6326_v11 = vadd.f32 %v13361_v62, %v6325_v22  ;;  %v8960_v35 = vpop.f32.mrb[77].mxu1 }
 0xcbb   :  { %v6328_v2 = vpop.f32.mrb[78].mxu1 }
 0xcbc   :  { %6809 = vst.msk [vmem:[%s14392_s7 + $0x560] sm:$0xff] %vm6636_vm5, %v6326_v11  ;;  %v6329_v18 = vadd.f32 %v13361_v62, %v6328_v2  ;;  %v8961_v39 = vpop.f32.mrb[79].mxu1 }
 0xcbe   :  { %6810 = vst.msk [vmem:[%s14392_s7 + $0x568] sm:$0xff] %vm6636_vm5, %v6329_v18  ;;  %9067 = vmatmul.mubr.msk.bf16.gmra.mrb[184].mxu1 %vm5223_vm4, %v15156_v48 }
 0xcbf   :  { %9070 = vmatprep.mubr.msk.bf16.mxu1 %vm9898_vm0, %v14605_v26 }
 0xcc1   :  { %v6333_v41 = vpop.f32.mrb[80].mxu1 }
 0xcc2   :  { %v6334_v43 = vadd.f32 %v13361_v62, %v6333_v41  ;;  %v8964_v0 = vpop.f32.mrb[81].mxu1 }
 0xcc3   :  { %v6336_v12 = vpop.f32.mrb[82].mxu1 }
 0xcc4   :  { %6811 = vst.msk [vmem:[%s14392_s7 + $0x570] sm:$0xff] %vm6636_vm5, %v6334_v43  ;;  %v6337_v61 = vadd.f32 %v13361_v62, %v6336_v12  ;;  %v8965_v40 = vpop.f32.mrb[83].mxu1 }
 0xcc6   :  { %6812 = vst.msk [vmem:[%s14392_s7 + $0x578] sm:$0xff] %vm6636_vm5, %v6337_v61  ;;  %9071 = vmatmul.mubr.msk.bf16.gmra.mrb[188].mxu1 %vm5223_vm4, %v15157_v52 }
 0xcc7   :  { %9074 = vmatprep.mubr.msk.bf16.mxu1 %vm9898_vm0, %v14605_v26 }
 0xcc9   :  { %v6341_v1 = vpop.f32.mrb[84].mxu1 }
 0xcca   :  { %v6342_v63 = vadd.f32 %v13361_v62, %v6341_v1  ;;  %v8968_v7 = vpop.f32.mrb[85].mxu1 }
 0xccb   :  { %v6344_v36 = vpop.f32.mrb[86].mxu1 }
 0xccc   :  { %6813 = vst.msk [vmem:[%s14392_s7 + $0x580] sm:$0xff] %vm6636_vm5, %v6342_v63  ;;  %v6345_v8 = vadd.f32 %v13361_v62, %v6344_v36  ;;  %v8969_v33 = vpop.f32.mrb[87].mxu1 }
 0xcce   :  { %6814 = vst.msk [vmem:[%s14392_s7 + $0x588] sm:$0xff] %vm6636_vm5, %v6345_v8  ;;  %9075 = vmatmul.mubr.msk.bf16.gmra.mrb[192].mxu1 %vm5223_vm4, %v15158_v47 }
 0xccf   :  { %9078 = vmatprep.mubr.msk.bf16.mxu1 %vm9898_vm0, %v14605_v26 }
 0xcd1   :  { %v6349_v37 = vpop.f32.mrb[88].mxu1 }
 0xcd2   :  { %v6350_v55 = vadd.f32 %v13361_v62, %v6349_v37  ;;  %v8972_v17 = vpop.f32.mrb[89].mxu1 }
 0xcd3   :  { %v6352_v30 = vpop.f32.mrb[90].mxu1 }
 0xcd4   :  { %6815 = vst.msk [vmem:[%s14392_s7 + $0x590] sm:$0xff] %vm6636_vm5, %v6350_v55  ;;  %v6353_v27 = vadd.f32 %v13361_v62, %v6352_v30  ;;  %v8973_v23 = vpop.f32.mrb[91].mxu1 }
 0xcd6   :  { %6816 = vst.msk [vmem:[%s14392_s7 + $0x598] sm:$0xff] %vm6636_vm5, %v6353_v27  ;;  %9079 = vmatmul.mubr.msk.bf16.gmra.mrb[196].mxu1 %vm5223_vm4, %v15159_v57 }
 0xcd7   :  { %9082 = vmatprep.mubr.msk.bf16.mxu1 %vm9898_vm0, %v14605_v26 }
 0xcd9   :  { %v6357_v19 = vpop.f32.mrb[92].mxu1 }
 0xcda   :  { %v6358_v42 = vadd.f32 %v13361_v62, %v6357_v19  ;;  %v8976_v49 = vpop.f32.mrb[93].mxu1 }
 0xcdb   :  { %v6360_v5 = vpop.f32.mrb[94].mxu1 }
 0xcdc   :  { %6817 = vst.msk [vmem:[%s14392_s7 + $0x5a0] sm:$0xff] %vm6636_vm5, %v6358_v42  ;;  %v6361_v3 = vadd.f32 %v13361_v62, %v6360_v5  ;;  %v8977_v28 = vpop.f32.mrb[95].mxu1 }
 0xcde   :  { %6818 = vst.msk [vmem:[%s14392_s7 + $0x5a8] sm:$0xff] %vm6636_vm5, %v6361_v3  ;;  %9083 = vmatmul.mubr.msk.bf16.gmra.mrb[200].mxu1 %vm5223_vm4, %v15160_v4 }
 0xcdf   :  { %9086 = vmatprep.mubr.msk.bf16.mxu1 %vm9898_vm0, %v14605_v26 }
 0xce1   :  { %v6365_v20 = vpop.f32.mrb[96].mxu1 }
 0xce2   :  { %v6366_v6 = vadd.f32 %v13361_v62, %v6365_v20  ;;  %v8980_v53 = vpop.f32.mrb[97].mxu1 }
 0xce3   :  { %v6368_v16 = vpop.f32.mrb[98].mxu1 }
 0xce4   :  { %6819 = vst.msk [vmem:[%s14392_s7 + $0x5b0] sm:$0xff] %vm6636_vm5, %v6366_v6  ;;  %v6369_v50 = vadd.f32 %v13361_v62, %v6368_v16  ;;  %v8981_v54 = vpop.f32.mrb[99].mxu1 }
 0xce6   :  { %6820 = vst.msk [vmem:[%s14392_s7 + $0x5b8] sm:$0xff] %vm6636_vm5, %v6369_v50  ;;  %9087 = vmatmul.mubr.msk.bf16.gmra.mrb[204].mxu1 %vm5223_vm4, %v15161_v14 }
 0xce7   :  { %9090 = vmatprep.mubr.msk.bf16.mxu1 %vm9898_vm0, %v14605_v26 }
 0xce9   :  { %v6373_v32 = vpop.f32.mrb[100].mxu1 }
 0xcea   :  { %v6374_v15 = vadd.f32 %v13361_v62, %v6373_v32  ;;  %v8984_v38 = vpop.f32.mrb[101].mxu1 }
 0xceb   :  { %v6376_v60 = vpop.f32.mrb[102].mxu1 }
 0xcec   :  { %6821 = vst.msk [vmem:[%s14392_s7 + $0x5c0] sm:$0xff] %vm6636_vm5, %v6374_v15  ;;  %v6377_v31 = vadd.f32 %v13361_v62, %v6376_v60  ;;  %v8985_v22 = vpop.f32.mrb[103].mxu1 }
 0xcee   :  { %6822 = vst.msk [vmem:[%s14392_s7 + $0x5c8] sm:$0xff] %vm6636_vm5, %v6377_v31  ;;  %9091 = vmatmul.mubr.msk.bf16.gmra.mrb[208].mxu1 %vm5223_vm4, %v15162_v24 }
 0xcef   :  { %9094 = vmatprep.mubr.msk.bf16.mxu1 %vm9898_vm0, %v14605_v26 }
 0xcf1   :  { %v6381_v58 = vpop.f32.mrb[104].mxu1 }
 0xcf2   :  { %v6382_v11 = vadd.f32 %v13361_v62, %v6381_v58  ;;  %v8988_v35 = vpop.f32.mrb[105].mxu1 }
 0xcf3   :  { %v6384_v2 = vpop.f32.mrb[106].mxu1 }
 0xcf4   :  { %6823 = vst.msk [vmem:[%s14392_s7 + $0x5d0] sm:$0xff] %vm6636_vm5, %v6382_v11  ;;  %v6385_v18 = vadd.f32 %v13361_v62, %v6384_v2  ;;  %v8989_v39 = vpop.f32.mrb[107].mxu1 }
 0xcf5   :  { %v14168_v39 = vld [vmem:[#allocation7] ss:$0 sm:$0xff] }
 0xcf6   :  { %6824 = vst.msk [vmem:[%s14392_s7 + $0x5d8] sm:$0xff] %vm6636_vm5, %v6385_v18  ;;  %9095 = vmatmul.mubr.msk.bf16.gmra.mrb[212].mxu1 %vm5223_vm4, %v15163_v34 }
 0xcf7   :  { %9098 = vmatprep.mubr.msk.bf16.mxu1 %vm9898_vm0, %v14605_v26 }
 0xcf9   :  { %v6389_v44 = vpop.f32.mrb[108].mxu1 }
 0xcfa   :  { %v6390_v48 = vadd.f32 %v13361_v62, %v6389_v44  ;;  %v8992_v41 = vpop.f32.mrb[109].mxu1 }
 0xcfb   :  { %v6392_v43 = vpop.f32.mrb[110].mxu1 }
 0xcfc   :  { %6825 = vst.msk [vmem:[%s14392_s7 + $0x5e0] sm:$0xff] %vm6636_vm5, %v6390_v48  ;;  %v6393_v0 = vadd.f32 %v13361_v62, %v6392_v43  ;;  %v8993_v12 = vpop.f32.mrb[111].mxu1 }
 0xcfe   :  { %6826 = vst.msk [vmem:[%s14392_s7 + $0x5e8] sm:$0xff] %vm6636_vm5, %v6393_v0  ;;  %9099 = vmatmul.mubr.msk.bf16.gmra.mrb[216].mxu1 %vm5223_vm4, %v15164_v46 }
 0xcff   :  { %9102 = vmatprep.mubr.msk.bf16.mxu1 %vm9898_vm0, %v14605_v26 }
 0xd01   :  { %v6397_v13 = vpop.f32.mrb[112].mxu1 }
 0xd02   :  { %v6398_v61 = vadd.f32 %v13361_v62, %v6397_v13  ;;  %v8996_v40 = vpop.f32.mrb[113].mxu1 }
 0xd03   :  { %v6400_v52 = vpop.f32.mrb[114].mxu1 }
 0xd04   :  { %6827 = vst.msk [vmem:[%s14392_s7 + $0x5f0] sm:$0xff] %vm6636_vm5, %v6398_v61  ;;  %v6401_v1 = vadd.f32 %v13361_v62, %v6400_v52  ;;  %v8997_v63 = vpop.f32.mrb[115].mxu1 }
 0xd06   :  { %6828 = vst.msk [vmem:[%s14392_s7 + $0x5f8] sm:$0xff] %vm6636_vm5, %v6401_v1  ;;  %9103 = vmatmul.mubr.msk.bf16.gmra.mrb[220].mxu1 %vm5223_vm4, %v15165_v59 }
 0xd07   :  { %9106 = vmatprep.mubr.msk.bf16.mxu1 %vm9898_vm0, %v14605_v26 }
 0xd09   :  { %v6405_v45 = vpop.f32.mrb[116].mxu1 }
 0xd0a   :  { %v6406_v7 = vadd.f32 %v13361_v62, %v6405_v45  ;;  %v9000_v36 = vpop.f32.mrb[117].mxu1 }
 0xd0b   :  { %v6408_v8 = vpop.f32.mrb[118].mxu1 }
 0xd0c   :  { %6829 = vst.msk [vmem:[%s14392_s7 + $0x600] sm:$0xff] %vm6636_vm5, %v6406_v7  ;;  %v6409_v33 = vadd.f32 %v13361_v62, %v6408_v8  ;;  %v9001_v47 = vpop.f32.mrb[119].mxu1 }
 0xd0e   :  { %6830 = vst.msk [vmem:[%s14392_s7 + $0x608] sm:$0xff] %vm6636_vm5, %v6409_v33  ;;  %9107 = vmatmul.mubr.msk.bf16.gmra.mrb[224].mxu1 %vm5223_vm4, %v15166_v9 }
 0xd0f   :  { %9110 = vmatprep.mubr.msk.bf16.mxu1 %vm9898_vm0, %v14605_v26 }
 0xd11   :  { %v6413_v10 = vpop.f32.mrb[120].mxu1 }
 0xd12   :  { %v6414_v37 = vadd.f32 %v13361_v62, %v6413_v10  ;;  %v9004_v55 = vpop.f32.mrb[121].mxu1 }
 0xd13   :  { %v6416_v17 = vpop.f32.mrb[122].mxu1 }
 0xd14   :  { %6831 = vst.msk [vmem:[%s14392_s7 + $0x610] sm:$0xff] %vm6636_vm5, %v6414_v37  ;;  %v6417_v30 = vadd.f32 %v13361_v62, %v6416_v17  ;;  %v9005_v27 = vpop.f32.mrb[123].mxu1 }
 0xd16   :  { %6832 = vst.msk [vmem:[%s14392_s7 + $0x618] sm:$0xff] %vm6636_vm5, %v6417_v30  ;;  %9111 = vmatmul.mubr.msk.bf16.gmra.mrb[228].mxu1 %vm5223_vm4, %v5187_v25 }
 0xd19   :  { %v6421_v26 = vpop.f32.mrb[124].mxu1 }
 0xd1a   :  { %v6422_v56 = vadd.f32 %v13361_v62, %v6421_v26  ;;  %v9008_v29 = vpop.f32.mrb[125].mxu1 }
 0xd1b   :  { %v6424_v23 = vpop.f32.mrb[126].mxu1 }
 0xd1c   :  { %6833 = vst.msk [vmem:[%s14392_s7 + $0x620] sm:$0xff] %vm6636_vm5, %v6422_v56  ;;  %v6425_v57 = vadd.f32 %v13361_v62, %v6424_v23  ;;  %v9009_v19 = vpop.f32.mrb[127].mxu1 }
 0xd1e   :  { %6834 = vst.msk [vmem:[%s14392_s7 + $0x628] sm:$0xff] %vm6636_vm5, %v6425_v57 }
 0xd21   :  { %v6429_v21 = vpop.f32.mrb[128].mxu1 }
 0xd22   :  { %v6430_v25 = vadd.f32 %v13361_v62, %v6429_v21  ;;  %v9012_v51 = vpop.f32.mrb[129].mxu1 }
 0xd23   :  { %v6432_v42 = vpop.f32.mrb[130].mxu1 }
 0xd24   :  { %6835 = vst.msk [vmem:[%s14392_s7 + $0x630] sm:$0xff] %vm6636_vm5, %v6430_v25  ;;  %v6433_v49 = vadd.f32 %v13361_v62, %v6432_v42  ;;  %v9013_v5 = vpop.f32.mrb[131].mxu1 }
 0xd26   :  { %6836 = vst.msk [vmem:[%s14392_s7 + $0x638] sm:$0xff] %vm6636_vm5, %v6433_v49 }
 0xd29   :  { %v6437_v3 = vpop.f32.mrb[132].mxu1 }
 0xd2a   :  { %v6438_v28 = vadd.f32 %v13361_v62, %v6437_v3  ;;  %v9016_v4 = vpop.f32.mrb[133].mxu1 }
 0xd2b   :  { %v6440_v20 = vpop.f32.mrb[134].mxu1 }
 0xd2c   :  { %6837 = vst.msk [vmem:[%s14392_s7 + $0x640] sm:$0xff] %vm6636_vm5, %v6438_v28  ;;  %v6441_v6 = vadd.f32 %v13361_v62, %v6440_v20  ;;  %v9017_v53 = vpop.f32.mrb[135].mxu1 }
 0xd2e   :  { %6838 = vst.msk [vmem:[%s14392_s7 + $0x648] sm:$0xff] %vm6636_vm5, %v6441_v6 }
 0xd31   :  { %v6445_v16 = vpop.f32.mrb[136].mxu1 }
 0xd32   :  { %v6446_v50 = vadd.f32 %v13361_v62, %v6445_v16  ;;  %v9020_v54 = vpop.f32.mrb[137].mxu1 }
 0xd33   :  { %v6448_v14 = vpop.f32.mrb[138].mxu1 }
 0xd34   :  { %6839 = vst.msk [vmem:[%s14392_s7 + $0x650] sm:$0xff] %vm6636_vm5, %v6446_v50  ;;  %v6449_v32 = vadd.f32 %v13361_v62, %v6448_v14  ;;  %v9021_v15 = vpop.f32.mrb[139].mxu1 }
 0xd36   :  { %6840 = vst.msk [vmem:[%s14392_s7 + $0x658] sm:$0xff] %vm6636_vm5, %v6449_v32 }
 0xd39   :  { %v6453_v38 = vpop.f32.mrb[140].mxu1 }
 0xd3a   :  { %v6454_v60 = vadd.f32 %v13361_v62, %v6453_v38  ;;  %v9024_v31 = vpop.f32.mrb[141].mxu1 }
 0xd3b   :  { %v6456_v22 = vpop.f32.mrb[142].mxu1 }
 0xd3c   :  { %6841 = vst.msk [vmem:[%s14392_s7 + $0x660] sm:$0xff] %vm6636_vm5, %v6454_v60  ;;  %v6457_v24 = vadd.f32 %v13361_v62, %v6456_v22  ;;  %v9025_v58 = vpop.f32.mrb[143].mxu1 }
 0xd3e   :  { %6842 = vst.msk [vmem:[%s14392_s7 + $0x668] sm:$0xff] %vm6636_vm5, %v6457_v24 }
 0xd41   :  { %v6461_v11 = vpop.f32.mrb[144].mxu1 }
 0xd42   :  { %v6462_v35 = vadd.f32 %v13361_v62, %v6461_v11  ;;  %v9028_v2 = vpop.f32.mrb[145].mxu1 }
 0xd43   :  { %v6464_v18 = vpop.f32.mrb[146].mxu1 }
 0xd44   :  { %6843 = vst.msk [vmem:[%s14392_s7 + $0x670] sm:$0xff] %vm6636_vm5, %v6462_v35  ;;  %v6465_v34 = vadd.f32 %v14168_v39, %v6464_v18  ;;  %v9029_v44 = vpop.f32.mrb[147].mxu1 }
 0xd46   :  { %6844 = vst.msk [vmem:[%s14392_s7 + $0x678] sm:$0xff] %vm6636_vm5, %v6465_v34 }
 0xd49   :  { %v6469_v48 = vpop.f32.mrb[148].mxu1 }
 0xd4a   :  { %v6470_v62 = vadd.f32 %v14168_v39, %v6469_v48  ;;  %v9032_v41 = vpop.f32.mrb[149].mxu1 }
 0xd4b   :  { %v6472_v43 = vpop.f32.mrb[150].mxu1 }
 0xd4c   :  { %6845 = vst.msk [vmem:[%s14392_s7 + $0x680] sm:$0xff] %vm6636_vm5, %v6470_v62  ;;  %v6473_v0 = vadd.f32 %v14168_v39, %v6472_v43  ;;  %v9033_v12 = vpop.f32.mrb[151].mxu1 }
 0xd4e   :  { %6846 = vst.msk [vmem:[%s14392_s7 + $0x688] sm:$0xff] %vm6636_vm5, %v6473_v0 }
 0xd51   :  { %v6477_v46 = vpop.f32.mrb[152].mxu1 }
 0xd52   :  { %v6478_v13 = vadd.f32 %v14168_v39, %v6477_v46  ;;  %v9036_v61 = vpop.f32.mrb[153].mxu1 }
 0xd53   :  { %v6480_v40 = vpop.f32.mrb[154].mxu1 }
 0xd54   :  { %6847 = vst.msk [vmem:[%s14392_s7 + $0x690] sm:$0xff] %vm6636_vm5, %v6478_v13  ;;  %v6481_v52 = vadd.f32 %v14168_v39, %v6480_v40  ;;  %v9037_v1 = vpop.f32.mrb[155].mxu1 }
 0xd56   :  { %6848 = vst.msk [vmem:[%s14392_s7 + $0x698] sm:$0xff] %vm6636_vm5, %v6481_v52 }
 0xd59   :  { %v6485_v63 = vpop.f32.mrb[156].mxu1 }
 0xd5a   :  { %v6486_v59 = vadd.f32 %v14168_v39, %v6485_v63  ;;  %v9040_v45 = vpop.f32.mrb[157].mxu1 }
 0xd5b   :  { %v6488_v7 = vpop.f32.mrb[158].mxu1 }
 0xd5c   :  { %6849 = vst.msk [vmem:[%s14392_s7 + $0x6a0] sm:$0xff] %vm6636_vm5, %v6486_v59  ;;  %v6489_v36 = vadd.f32 %v14168_v39, %v6488_v7  ;;  %v9041_v8 = vpop.f32.mrb[159].mxu1 }
 0xd5e   :  { %6850 = vst.msk [vmem:[%s14392_s7 + $0x6a8] sm:$0xff] %vm6636_vm5, %v6489_v36 }
 0xd61   :  { %v6493_v33 = vpop.f32.mrb[160].mxu1 }
 0xd62   :  { %v6494_v47 = vadd.f32 %v14168_v39, %v6493_v33  ;;  %v9044_v9 = vpop.f32.mrb[161].mxu1 }
 0xd63   :  { %v6496_v10 = vpop.f32.mrb[162].mxu1 }
 0xd64   :  { %6851 = vst.msk [vmem:[%s14392_s7 + $0x6b0] sm:$0xff] %vm6636_vm5, %v6494_v47  ;;  %v6497_v37 = vadd.f32 %v14168_v39, %v6496_v10  ;;  %v9045_v55 = vpop.f32.mrb[163].mxu1 }
 0xd66   :  { %6852 = vst.msk [vmem:[%s14392_s7 + $0x6b8] sm:$0xff] %vm6636_vm5, %v6497_v37 }
 0xd69   :  { %v6501_v17 = vpop.f32.mrb[164].mxu1 }
 0xd6a   :  { %v6502_v30 = vadd.f32 %v14168_v39, %v6501_v17  ;;  %v9048_v27 = vpop.f32.mrb[165].mxu1 }
 0xd6b   :  { %v6504_v26 = vpop.f32.mrb[166].mxu1 }
 0xd6c   :  { %6853 = vst.msk [vmem:[%s14392_s7 + $0x6c0] sm:$0xff] %vm6636_vm5, %v6502_v30  ;;  %v6505_v56 = vadd.f32 %v14168_v39, %v6504_v26  ;;  %v9049_v29 = vpop.f32.mrb[167].mxu1 }
 0xd6e   :  { %6854 = vst.msk [vmem:[%s14392_s7 + $0x6c8] sm:$0xff] %vm6636_vm5, %v6505_v56 }
 0xd71   :  { %v6509_v23 = vpop.f32.mrb[168].mxu1 }
 0xd72   :  { %v6510_v57 = vadd.f32 %v14168_v39, %v6509_v23  ;;  %v9052_v19 = vpop.f32.mrb[169].mxu1 }
 0xd73   :  { %v6512_v21 = vpop.f32.mrb[170].mxu1 }
 0xd74   :  { %6855 = vst.msk [vmem:[%s14392_s7 + $0x6d0] sm:$0xff] %vm6636_vm5, %v6510_v57  ;;  %v6513_v25 = vadd.f32 %v14168_v39, %v6512_v21  ;;  %v9053_v51 = vpop.f32.mrb[171].mxu1 }
 0xd76   :  { %6856 = vst.msk [vmem:[%s14392_s7 + $0x6d8] sm:$0xff] %vm6636_vm5, %v6513_v25 }
 0xd79   :  { %v6517_v42 = vpop.f32.mrb[172].mxu1 }
 0xd7a   :  { %v6518_v49 = vadd.f32 %v14168_v39, %v6517_v42  ;;  %v9056_v5 = vpop.f32.mrb[173].mxu1 }
 0xd7b   :  { %v6520_v3 = vpop.f32.mrb[174].mxu1 }
 0xd7c   :  { %6857 = vst.msk [vmem:[%s14392_s7 + $0x6e0] sm:$0xff] %vm6636_vm5, %v6518_v49  ;;  %v6521_v28 = vadd.f32 %v14168_v39, %v6520_v3  ;;  %v9057_v4 = vpop.f32.mrb[175].mxu1 }
 0xd7e   :  { %6858 = vst.msk [vmem:[%s14392_s7 + $0x6e8] sm:$0xff] %vm6636_vm5, %v6521_v28 }
 0xd81   :  { %v6525_v20 = vpop.f32.mrb[176].mxu1 }
 0xd82   :  { %v6526_v6 = vadd.f32 %v14168_v39, %v6525_v20  ;;  %v9060_v53 = vpop.f32.mrb[177].mxu1 }
 0xd83   :  { %v6528_v16 = vpop.f32.mrb[178].mxu1 }
 0xd84   :  { %6859 = vst.msk [vmem:[%s14392_s7 + $0x6f0] sm:$0xff] %vm6636_vm5, %v6526_v6  ;;  %v6529_v50 = vadd.f32 %v14168_v39, %v6528_v16  ;;  %v9061_v54 = vpop.f32.mrb[179].mxu1 }
 0xd86   :  { %6860 = vst.msk [vmem:[%s14392_s7 + $0x6f8] sm:$0xff] %vm6636_vm5, %v6529_v50 }
 0xd89   :  { %v6533_v14 = vpop.f32.mrb[180].mxu1 }
 0xd8a   :  { %v6534_v32 = vadd.f32 %v14168_v39, %v6533_v14  ;;  %v9064_v15 = vpop.f32.mrb[181].mxu1 }
 0xd8b   :  { %v6536_v38 = vpop.f32.mrb[182].mxu1 }
 0xd8c   :  { %6861 = vst.msk [vmem:[%s14392_s7 + $0x700] sm:$0xff] %vm6636_vm5, %v6534_v32  ;;  %v6537_v60 = vadd.f32 %v14168_v39, %v6536_v38  ;;  %v9065_v31 = vpop.f32.mrb[183].mxu1 }
 0xd8e   :  { %6862 = vst.msk [vmem:[%s14392_s7 + $0x708] sm:$0xff] %vm6636_vm5, %v6537_v60 }
 0xd91   :  { %v6541_v22 = vpop.f32.mrb[184].mxu1 }
 0xd92   :  { %v6542_v24 = vadd.f32 %v14168_v39, %v6541_v22  ;;  %v9068_v58 = vpop.f32.mrb[185].mxu1 }
 0xd93   :  { %v6544_v11 = vpop.f32.mrb[186].mxu1 }
 0xd94   :  { %6863 = vst.msk [vmem:[%s14392_s7 + $0x710] sm:$0xff] %vm6636_vm5, %v6542_v24  ;;  %v6545_v35 = vadd.f32 %v14168_v39, %v6544_v11  ;;  %v9069_v2 = vpop.f32.mrb[187].mxu1 }
 0xd96   :  { %6864 = vst.msk [vmem:[%s14392_s7 + $0x718] sm:$0xff] %vm6636_vm5, %v6545_v35 }
 0xd99   :  { %v6549_v18 = vpop.f32.mrb[188].mxu1 }
 0xd9a   :  { %v6550_v34 = vadd.f32 %v14168_v39, %v6549_v18  ;;  %v9072_v44 = vpop.f32.mrb[189].mxu1 }
 0xd9b   :  { %v6552_v48 = vpop.f32.mrb[190].mxu1 }
 0xd9c   :  { %6865 = vst.msk [vmem:[%s14392_s7 + $0x720] sm:$0xff] %vm6636_vm5, %v6550_v34  ;;  %v6553_v62 = vadd.f32 %v14168_v39, %v6552_v48  ;;  %v9073_v41 = vpop.f32.mrb[191].mxu1 }
 0xd9e   :  { %6866 = vst.msk [vmem:[%s14392_s7 + $0x728] sm:$0xff] %vm6636_vm5, %v6553_v62 }
 0xda1   :  { %v6557_v43 = vpop.f32.mrb[192].mxu1 }
 0xda2   :  { %v6558_v0 = vadd.f32 %v14168_v39, %v6557_v43  ;;  %v9076_v12 = vpop.f32.mrb[193].mxu1 }
 0xda3   :  { %v6560_v46 = vpop.f32.mrb[194].mxu1 }
 0xda4   :  { %6867 = vst.msk [vmem:[%s14392_s7 + $0x730] sm:$0xff] %vm6636_vm5, %v6558_v0  ;;  %v6561_v13 = vadd.f32 %v14168_v39, %v6560_v46  ;;  %v9077_v61 = vpop.f32.mrb[195].mxu1 }
 0xda6   :  { %6868 = vst.msk [vmem:[%s14392_s7 + $0x738] sm:$0xff] %vm6636_vm5, %v6561_v13 }
 0xda9   :  { %v6565_v40 = vpop.f32.mrb[196].mxu1 }
 0xdaa   :  { %v6566_v52 = vadd.f32 %v14168_v39, %v6565_v40  ;;  %v9080_v1 = vpop.f32.mrb[197].mxu1 }
 0xdab   :  { %v6568_v63 = vpop.f32.mrb[198].mxu1 }
 0xdac   :  { %6869 = vst.msk [vmem:[%s14392_s7 + $0x740] sm:$0xff] %vm6636_vm5, %v6566_v52  ;;  %v6569_v59 = vadd.f32 %v14168_v39, %v6568_v63  ;;  %v9081_v45 = vpop.f32.mrb[199].mxu1 }
 0xdae   :  { %6870 = vst.msk [vmem:[%s14392_s7 + $0x748] sm:$0xff] %vm6636_vm5, %v6569_v59 }
 0xdb1   :  { %v6573_v7 = vpop.f32.mrb[200].mxu1 }
 0xdb2   :  { %v6574_v36 = vadd.f32 %v14168_v39, %v6573_v7  ;;  %v9084_v8 = vpop.f32.mrb[201].mxu1 }
 0xdb3   :  { %v6576_v33 = vpop.f32.mrb[202].mxu1 }
 0xdb4   :  { %6871 = vst.msk [vmem:[%s14392_s7 + $0x750] sm:$0xff] %vm6636_vm5, %v6574_v36  ;;  %v6577_v47 = vadd.f32 %v14168_v39, %v6576_v33  ;;  %v9085_v9 = vpop.f32.mrb[203].mxu1 }
 0xdb6   :  { %6872 = vst.msk [vmem:[%s14392_s7 + $0x758] sm:$0xff] %vm6636_vm5, %v6577_v47 }
 0xdb9   :  { %v6581_v10 = vpop.f32.mrb[204].mxu1 }
 0xdba   :  { %v6582_v37 = vadd.f32 %v14168_v39, %v6581_v10  ;;  %v9088_v55 = vpop.f32.mrb[205].mxu1 }
 0xdbb   :  { %v6584_v17 = vpop.f32.mrb[206].mxu1 }
 0xdbc   :  { %6873 = vst.msk [vmem:[%s14392_s7 + $0x760] sm:$0xff] %vm6636_vm5, %v6582_v37  ;;  %v6585_v30 = vadd.f32 %v14168_v39, %v6584_v17  ;;  %v9089_v27 = vpop.f32.mrb[207].mxu1 }
 0xdbe   :  { %6874 = vst.msk [vmem:[%s14392_s7 + $0x768] sm:$0xff] %vm6636_vm5, %v6585_v30 }
 0xdc1   :  { %v6589_v26 = vpop.f32.mrb[208].mxu1 }
 0xdc2   :  { %v6590_v56 = vadd.f32 %v14168_v39, %v6589_v26  ;;  %v9092_v29 = vpop.f32.mrb[209].mxu1 }
 0xdc3   :  { %v6592_v23 = vpop.f32.mrb[210].mxu1 }
 0xdc4   :  { %6875 = vst.msk [vmem:[%s14392_s7 + $0x770] sm:$0xff] %vm6636_vm5, %v6590_v56  ;;  %v6593_v57 = vadd.f32 %v14168_v39, %v6592_v23  ;;  %v9093_v19 = vpop.f32.mrb[211].mxu1 }
 0xdc6   :  { %6876 = vst.msk [vmem:[%s14392_s7 + $0x778] sm:$0xff] %vm6636_vm5, %v6593_v57 }
 0xdc9   :  { %v6597_v21 = vpop.f32.mrb[212].mxu1 }
 0xdca   :  { %v6598_v25 = vadd.f32 %v14168_v39, %v6597_v21  ;;  %v9096_v51 = vpop.f32.mrb[213].mxu1 }
 0xdcb   :  { %v6600_v42 = vpop.f32.mrb[214].mxu1 }
 0xdcc   :  { %6877 = vst.msk [vmem:[%s14392_s7 + $0x780] sm:$0xff] %vm6636_vm5, %v6598_v25  ;;  %v6601_v49 = vadd.f32 %v14168_v39, %v6600_v42  ;;  %v9097_v5 = vpop.f32.mrb[215].mxu1 }
 0xdce   :  { %6878 = vst.msk [vmem:[%s14392_s7 + $0x788] sm:$0xff] %vm6636_vm5, %v6601_v49 }
 0xdd1   :  { %v6605_v3 = vpop.f32.mrb[216].mxu1 }
 0xdd2   :  { %v6606_v28 = vadd.f32 %v14168_v39, %v6605_v3  ;;  %v9100_v4 = vpop.f32.mrb[217].mxu1 }
 0xdd3   :  { %v6608_v20 = vpop.f32.mrb[218].mxu1 }
 0xdd4   :  { %6879 = vst.msk [vmem:[%s14392_s7 + $0x790] sm:$0xff] %vm6636_vm5, %v6606_v28  ;;  %v6609_v6 = vadd.f32 %v14168_v39, %v6608_v20  ;;  %v9101_v53 = vpop.f32.mrb[219].mxu1 }
 0xdd6   :  { %6880 = vst.msk [vmem:[%s14392_s7 + $0x798] sm:$0xff] %vm6636_vm5, %v6609_v6 }
 0xdd9   :  { %v6613_v16 = vpop.f32.mrb[220].mxu1 }
 0xdda   :  { %v6614_v50 = vadd.f32 %v14168_v39, %v6613_v16  ;;  %v9104_v54 = vpop.f32.mrb[221].mxu1 }
 0xddb   :  { %v6616_v14 = vpop.f32.mrb[222].mxu1 }
 0xddc   :  { %6881 = vst.msk [vmem:[%s14392_s7 + $0x7a0] sm:$0xff] %vm6636_vm5, %v6614_v50  ;;  %v6617_v32 = vadd.f32 %v14168_v39, %v6616_v14  ;;  %v9105_v15 = vpop.f32.mrb[223].mxu1 }
 0xdde   :  { %6882 = vst.msk [vmem:[%s14392_s7 + $0x7a8] sm:$0xff] %vm6636_vm5, %v6617_v32 }
 0xde1   :  { %v6621_v38 = vpop.f32.mrb[224].mxu1 }
 0xde2   :  { %v6622_v60 = vadd.f32 %v14168_v39, %v6621_v38  ;;  %v9108_v31 = vpop.f32.mrb[225].mxu1 }
 0xde3   :  { %v6624_v22 = vpop.f32.mrb[226].mxu1 }
 0xde4   :  { %6883 = vst.msk [vmem:[%s14392_s7 + $0x7b0] sm:$0xff] %vm6636_vm5, %v6622_v60  ;;  %v6625_v24 = vadd.f32 %v14168_v39, %v6624_v22  ;;  %v9109_v58 = vpop.f32.mrb[227].mxu1 }
 0xde6   :  { %6884 = vst.msk [vmem:[%s14392_s7 + $0x7b8] sm:$0xff] %vm6636_vm5, %v6625_v24 }
 0xde9   :  { %v6629_v11 = vpop.f32.mrb[228].mxu1 }
 0xdea   :  { %v6630_v35 = vadd.f32 %v14168_v39, %v6629_v11  ;;  %v9112_v2 = vpop.f32.mrb[229].mxu1 }
 0xdeb   :  { %v6632_v18 = vpop.f32.mrb[230].mxu1 }
 0xdec   :  { %6885 = vst.msk [vmem:[%s14392_s7 + $0x7c0] sm:$0xff] %vm6636_vm5, %v6630_v35  ;;  %v6633_v34 = vadd.f32 %v14168_v39, %v6632_v18  ;;  %v9113_v44 = vpop.f32.mrb[231].mxu1 }
 0xdee   :  { %6886 = vst.msk [vmem:[%s14392_s7 + $0x7c8] sm:$0xff] %vm6636_vm5, %v6633_v34 }
 0xdef   :  { %6891 = vsyncpa [#allocation3], 1 }
 0xdf0   :  { %6892 = vsyncpa [#allocation5], 1 }
 0xdf1   :  { %6893 = vsyncpa [#allocation8], 1 }

</bundles_post_ra>
